<compile_context>
chip_gen: v5e
topology: v5e:2x2
jax: 0.10.0
libtpu: 0.0.40
codegen_flags: <defaults>
</compile_context>

<pallas_src>
import functools

import jax
import jax.numpy as jnp
import numpy as np
from jax.experimental import pallas as pl
from jax.experimental.pallas import tpu as pltpu


def _knn_kernel(corr_ref, lbl_ref, out_ref, *, K):
    """One (batch, target-tile) block: iterative top-K select + masked matmul."""
    corr = corr_ref[0]          # (HW_src, TN) f32
    lbl = lbl_ref[0]            # (C_pad, HW_src) f32
    hw_src = corr.shape[0]

    # Source-index column; lane-broadcast happens inside the compares (cheap).
    row_ids = jax.lax.broadcasted_iota(jnp.int32, (hw_src, 1), 0)
    neg_inf = jnp.float32(-jnp.inf)

    def body(_, carry):
        cur, acc = carry
        col_max = jnp.max(cur, axis=0, keepdims=True)             # (1, TN)
        # Smallest source index among the per-column maxima (stable tie-break;
        # ties are measure-zero for float inputs).
        cand = jnp.where(cur == col_max, row_ids, hw_src)         # (HW_src, TN) i32
        min_idx = jnp.min(cand, axis=0, keepdims=True)            # (1, TN)
        sel = row_ids == min_idx                                  # (HW_src, TN)
        acc = acc + jnp.where(sel, cur, jnp.float32(0.0))
        cur = jnp.where(sel, neg_inf, cur)
        return cur, acc

    init = (corr, jnp.zeros_like(corr))
    _, masked = jax.lax.fori_loop(0, K, body, init, unroll=True)

    # out[c, p] = sum_s lbl[c, s] * masked[s, p]   (single MXU matmul)
    out_ref[0] = jnp.dot(lbl, masked, preferred_element_type=jnp.float32)


def knn_geometric(correlation_tensor, src_lbl_batch, *, K, num_classes, resize=True):
    """correlation_tensor: (bs, h*w, h, w) f32; src_lbl_batch: (bs, C, H0, W0)."""
    bs, hw_src, h, w = correlation_tensor.shape
    hw = h * w
    assert hw_src == hw, "dim 1 of correlation tensor must equal h*w"
    assert K <= hw_src, "K must not exceed the number of source positions"

    if resize:
        # F.interpolate default mode='nearest': in_idx = floor(out_idx * in/out)
        H0, W0 = src_lbl_batch.shape[2], src_lbl_batch.shape[3]
        ih = (jnp.arange(h) * H0) // h
        iw = (jnp.arange(w) * W0) // w
        src_lbl = src_lbl_batch[:, :, ih, :][:, :, :, iw]
    else:
        src_lbl = src_lbl_batch

    corr_f = correlation_tensor.reshape(bs, hw, hw).astype(jnp.float32)
    lbl_f = src_lbl.reshape(bs, num_classes, hw).astype(jnp.float32)

    # Pad the class dim up to a sublane multiple (>=8): unmasked stores and
    # better MXU row utilization. Padded rows are zero, so they don't affect
    # the result and are sliced off below.
    c_pad = max(8, ((num_classes + 7) // 8) * 8)
    if c_pad != num_classes:
        lbl_f = jnp.pad(lbl_f, ((0, 0), (0, c_pad - num_classes), (0, 0)))

    # Target (lane) tile: largest 128-multiple divisor of hw, capped at 512;
    # fall back to the full extent when no such divisor exists.
    tn = hw
    for cand in (512, 384, 256, 128):
        if hw % cand == 0:
            tn = cand
            break
    n_t = hw // tn

    kernel = functools.partial(_knn_kernel, K=K)
    out = pl.pallas_call(
        kernel,
        out_shape=jax.ShapeDtypeStruct((bs, c_pad, hw), jnp.float32),
        grid_spec=pltpu.PrefetchScalarGridSpec(
            num_scalar_prefetch=0,
            grid=(bs, n_t),
            in_specs=[
                pl.BlockSpec((1, hw, tn), lambda b, t: (b, 0, t)),
                pl.BlockSpec((1, c_pad, hw), lambda b, t: (b, 0, 0)),
            ],
            out_specs=pl.BlockSpec((1, c_pad, tn), lambda b, t: (b, 0, t)),
        ),
        compiler_params=pltpu.CompilerParams(
            dimension_semantics=("parallel", "parallel")),
    )(corr_f, lbl_f)

    return out[:, :num_classes, :].reshape(bs, num_classes, h, w)


def _numpy_reference(corr, lbl_resized, K):
    """Direct emulation of the PyTorch gather/argsort path (post-resize)."""
    bs, hw, h, w = corr.shape
    C = lbl_resized.shape[1]
    corr_f = corr.reshape(bs, hw, hw)
    lbl_f = lbl_resized.reshape(bs, C, hw)
    out = np.zeros((bs, C, hw), dtype=np.float32)
    for b in range(bs):
        for p in range(hw):
            col = corr_f[b, :, p]
            idx = np.argsort(-col, kind="stable")[:K]
            out[b, :, p] = (lbl_f[b][:, idx] * col[idx][None, :]).sum(axis=1)
    return out.reshape(bs, C, h, w)


if __name__ == "__main__":
    bs, h, w = 2, 16, 16
    num_classes, K = 4, 5
    H0, W0 = 32, 32
    hw = h * w

    key = jax.random.PRNGKey(0)
    k1, k2 = jax.random.split(key)
    correlation_tensor = jax.random.normal(k1, (bs, hw, h, w), dtype=jnp.float32)
    src_lbl_batch = jax.random.uniform(k2, (bs, num_classes, H0, W0), dtype=jnp.float32)

    out = knn_geometric(correlation_tensor, src_lbl_batch,
                        K=K, num_classes=num_classes, resize=True)
    out = jax.block_until_ready(out)

    # Cross-check against a straightforward host reference.
    ih = (np.arange(h) * H0) // h
    iw = (np.arange(w) * W0) // w
    lbl_resized_np = np.asarray(src_lbl_batch)[:, :, ih, :][:, :, :, iw]
    ref = _numpy_reference(np.asarray(correlation_tensor), lbl_resized_np, K)
    np.testing.assert_allclose(np.asarray(out), ref, rtol=1e-5, atol=1e-5)

    print("KERNEL_OK")
</pallas_src>

<mosaic_0001>
module attributes {stable_mosaic.version = 11 : i64} {
  func.func @_knn_kernel(%arg0: i32, %arg1: i32, %arg2: memref<1x256x256xf32, #tpu.memory_space<vmem>>, %arg3: memref<1x8x256xf32, #tpu.memory_space<vmem>>, %arg4: memref<1x8x256xf32, #tpu.memory_space<vmem>>) attributes {dimension_semantics = [#tpu.dimension_semantics<parallel>, #tpu.dimension_semantics<parallel>], iteration_bounds = array<i64: 2, 1>, scalar_prefetch = 0 : i64, scratch_operands = 0 : i64, tpu.core_type = #tpu.core_type<tc>, window_params = [{transform_indices = @transform_0, window_bounds = array<i64: 1, 256, 256>}, {transform_indices = @transform_1, window_bounds = array<i64: 1, 8, 256>}, {transform_indices = @transform_2, window_bounds = array<i64: 1, 8, 256>}]} {
    %c0 = arith.constant 0 : index
    %c0_0 = arith.constant 0 : index
    %c0_1 = arith.constant 0 : index
    %0 = vector.load %arg2[%c0, %c0_0, %c0_1] : memref<1x256x256xf32, #tpu.memory_space<vmem>>, vector<1x256x256xf32>
    %1 = vector.shape_cast %0 : vector<1x256x256xf32> to vector<256x256xf32>
    %c0_2 = arith.constant 0 : index
    %c0_3 = arith.constant 0 : index
    %c0_4 = arith.constant 0 : index
    %2 = vector.load %arg3[%c0_2, %c0_3, %c0_4] : memref<1x8x256xf32, #tpu.memory_space<vmem>>, vector<1x8x256xf32>
    %3 = vector.shape_cast %2 : vector<1x8x256xf32> to vector<8x256xf32>
    %4 = tpu.iota {dimensions = array<i32: 0>} : vector<256x1xi32>
    %cst = arith.constant 0.000000e+00 : f32
    %5 = vector.broadcast %cst : f32 to vector<256x256xf32>
    %cst_5 = arith.constant 0xFF800000 : f32
    %c0_i32 = arith.constant 0 : i32
    %cst_6 = arith.constant dense<0xFF800000> : vector<256xf32>
    %6 = vector.multi_reduction <maximumf>, %1, %cst_6 [0] : vector<256x256xf32> to vector<256xf32>
    %7 = vector.shape_cast %6 : vector<256xf32> to vector<1x256xf32>
    %8 = vector.broadcast %7 : vector<1x256xf32> to vector<256x256xf32>
    %9 = arith.cmpf oeq, %1, %8 : vector<256x256xf32>
    %c256_i32 = arith.constant 256 : i32
    %10 = vector.shape_cast %4 : vector<256x1xi32> to vector<256x1xi32>
    %11 = vector.broadcast %10 : vector<256x1xi32> to vector<256x256xi32>
    %12 = vector.broadcast %c256_i32 : i32 to vector<256x256xi32>
    %13 = arith.select %9, %11, %12 : vector<256x256xi1>, vector<256x256xi32>
    %cst_7 = arith.constant dense<2147483647> : vector<256xi32>
    %14 = vector.multi_reduction <minsi>, %13, %cst_7 [0] : vector<256x256xi32> to vector<256xi32>
    %15 = vector.shape_cast %14 : vector<256xi32> to vector<1x256xi32>
    %16 = vector.broadcast %4 : vector<256x1xi32> to vector<256x256xi32>
    %17 = vector.broadcast %15 : vector<1x256xi32> to vector<256x256xi32>
    %18 = arith.cmpi eq, %16, %17 : vector<256x256xi32>
    %cst_8 = arith.constant 0.000000e+00 : f32
    %19 = vector.broadcast %cst_8 : f32 to vector<256x256xf32>
    %20 = arith.select %18, %1, %19 : vector<256x256xi1>, vector<256x256xf32>
    %21 = arith.addf %5, %20 : vector<256x256xf32>
    %22 = vector.broadcast %cst_5 : f32 to vector<256x256xf32>
    %23 = arith.select %18, %22, %1 : vector<256x256xi1>, vector<256x256xf32>
    %c1_i32 = arith.constant 1 : i32
    %cst_9 = arith.constant dense<0xFF800000> : vector<256xf32>
    %24 = vector.multi_reduction <maximumf>, %23, %cst_9 [0] : vector<256x256xf32> to vector<256xf32>
    %25 = vector.shape_cast %24 : vector<256xf32> to vector<1x256xf32>
    %26 = vector.broadcast %25 : vector<1x256xf32> to vector<256x256xf32>
    %27 = arith.cmpf oeq, %23, %26 : vector<256x256xf32>
    %c256_i32_10 = arith.constant 256 : i32
    %28 = vector.shape_cast %4 : vector<256x1xi32> to vector<256x1xi32>
    %29 = vector.broadcast %28 : vector<256x1xi32> to vector<256x256xi32>
    %30 = vector.broadcast %c256_i32_10 : i32 to vector<256x256xi32>
    %31 = arith.select %27, %29, %30 : vector<256x256xi1>, vector<256x256xi32>
    %cst_11 = arith.constant dense<2147483647> : vector<256xi32>
    %32 = vector.multi_reduction <minsi>, %31, %cst_11 [0] : vector<256x256xi32> to vector<256xi32>
    %33 = vector.shape_cast %32 : vector<256xi32> to vector<1x256xi32>
    %34 = vector.broadcast %4 : vector<256x1xi32> to vector<256x256xi32>
    %35 = vector.broadcast %33 : vector<1x256xi32> to vector<256x256xi32>
    %36 = arith.cmpi eq, %34, %35 : vector<256x256xi32>
    %cst_12 = arith.constant 0.000000e+00 : f32
    %37 = vector.broadcast %cst_12 : f32 to vector<256x256xf32>
    %38 = arith.select %36, %23, %37 : vector<256x256xi1>, vector<256x256xf32>
    %39 = arith.addf %21, %38 : vector<256x256xf32>
    %40 = vector.broadcast %cst_5 : f32 to vector<256x256xf32>
    %41 = arith.select %36, %40, %23 : vector<256x256xi1>, vector<256x256xf32>
    %c2_i32 = arith.constant 2 : i32
    %cst_13 = arith.constant dense<0xFF800000> : vector<256xf32>
    %42 = vector.multi_reduction <maximumf>, %41, %cst_13 [0] : vector<256x256xf32> to vector<256xf32>
    %43 = vector.shape_cast %42 : vector<256xf32> to vector<1x256xf32>
    %44 = vector.broadcast %43 : vector<1x256xf32> to vector<256x256xf32>
    %45 = arith.cmpf oeq, %41, %44 : vector<256x256xf32>
    %c256_i32_14 = arith.constant 256 : i32
    %46 = vector.shape_cast %4 : vector<256x1xi32> to vector<256x1xi32>
    %47 = vector.broadcast %46 : vector<256x1xi32> to vector<256x256xi32>
    %48 = vector.broadcast %c256_i32_14 : i32 to vector<256x256xi32>
    %49 = arith.select %45, %47, %48 : vector<256x256xi1>, vector<256x256xi32>
    %cst_15 = arith.constant dense<2147483647> : vector<256xi32>
    %50 = vector.multi_reduction <minsi>, %49, %cst_15 [0] : vector<256x256xi32> to vector<256xi32>
    %51 = vector.shape_cast %50 : vector<256xi32> to vector<1x256xi32>
    %52 = vector.broadcast %4 : vector<256x1xi32> to vector<256x256xi32>
    %53 = vector.broadcast %51 : vector<1x256xi32> to vector<256x256xi32>
    %54 = arith.cmpi eq, %52, %53 : vector<256x256xi32>
    %cst_16 = arith.constant 0.000000e+00 : f32
    %55 = vector.broadcast %cst_16 : f32 to vector<256x256xf32>
    %56 = arith.select %54, %41, %55 : vector<256x256xi1>, vector<256x256xf32>
    %57 = arith.addf %39, %56 : vector<256x256xf32>
    %58 = vector.broadcast %cst_5 : f32 to vector<256x256xf32>
    %59 = arith.select %54, %58, %41 : vector<256x256xi1>, vector<256x256xf32>
    %c3_i32 = arith.constant 3 : i32
    %cst_17 = arith.constant dense<0xFF800000> : vector<256xf32>
    %60 = vector.multi_reduction <maximumf>, %59, %cst_17 [0] : vector<256x256xf32> to vector<256xf32>
    %61 = vector.shape_cast %60 : vector<256xf32> to vector<1x256xf32>
    %62 = vector.broadcast %61 : vector<1x256xf32> to vector<256x256xf32>
    %63 = arith.cmpf oeq, %59, %62 : vector<256x256xf32>
    %c256_i32_18 = arith.constant 256 : i32
    %64 = vector.shape_cast %4 : vector<256x1xi32> to vector<256x1xi32>
    %65 = vector.broadcast %64 : vector<256x1xi32> to vector<256x256xi32>
    %66 = vector.broadcast %c256_i32_18 : i32 to vector<256x256xi32>
    %67 = arith.select %63, %65, %66 : vector<256x256xi1>, vector<256x256xi32>
    %cst_19 = arith.constant dense<2147483647> : vector<256xi32>
    %68 = vector.multi_reduction <minsi>, %67, %cst_19 [0] : vector<256x256xi32> to vector<256xi32>
    %69 = vector.shape_cast %68 : vector<256xi32> to vector<1x256xi32>
    %70 = vector.broadcast %4 : vector<256x1xi32> to vector<256x256xi32>
    %71 = vector.broadcast %69 : vector<1x256xi32> to vector<256x256xi32>
    %72 = arith.cmpi eq, %70, %71 : vector<256x256xi32>
    %cst_20 = arith.constant 0.000000e+00 : f32
    %73 = vector.broadcast %cst_20 : f32 to vector<256x256xf32>
    %74 = arith.select %72, %59, %73 : vector<256x256xi1>, vector<256x256xf32>
    %75 = arith.addf %57, %74 : vector<256x256xf32>
    %76 = vector.broadcast %cst_5 : f32 to vector<256x256xf32>
    %77 = arith.select %72, %76, %59 : vector<256x256xi1>, vector<256x256xf32>
    %c4_i32 = arith.constant 4 : i32
    %cst_21 = arith.constant dense<0xFF800000> : vector<256xf32>
    %78 = vector.multi_reduction <maximumf>, %77, %cst_21 [0] : vector<256x256xf32> to vector<256xf32>
    %79 = vector.shape_cast %78 : vector<256xf32> to vector<1x256xf32>
    %80 = vector.broadcast %79 : vector<1x256xf32> to vector<256x256xf32>
    %81 = arith.cmpf oeq, %77, %80 : vector<256x256xf32>
    %c256_i32_22 = arith.constant 256 : i32
    %82 = vector.shape_cast %4 : vector<256x1xi32> to vector<256x1xi32>
    %83 = vector.broadcast %82 : vector<256x1xi32> to vector<256x256xi32>
    %84 = vector.broadcast %c256_i32_22 : i32 to vector<256x256xi32>
    %85 = arith.select %81, %83, %84 : vector<256x256xi1>, vector<256x256xi32>
    %cst_23 = arith.constant dense<2147483647> : vector<256xi32>
    %86 = vector.multi_reduction <minsi>, %85, %cst_23 [0] : vector<256x256xi32> to vector<256xi32>
    %87 = vector.shape_cast %86 : vector<256xi32> to vector<1x256xi32>
    %88 = vector.broadcast %4 : vector<256x1xi32> to vector<256x256xi32>
    %89 = vector.broadcast %87 : vector<1x256xi32> to vector<256x256xi32>
    %90 = arith.cmpi eq, %88, %89 : vector<256x256xi32>
    %cst_24 = arith.constant 0.000000e+00 : f32
    %91 = vector.broadcast %cst_24 : f32 to vector<256x256xf32>
    %92 = arith.select %90, %77, %91 : vector<256x256xi1>, vector<256x256xf32>
    %93 = arith.addf %75, %92 : vector<256x256xf32>
    %94 = vector.broadcast %cst_5 : f32 to vector<256x256xf32>
    %95 = arith.select %90, %94, %77 : vector<256x256xi1>, vector<256x256xf32>
    %cst_25 = arith.constant dense<0.000000e+00> : vector<8x256xf32>
    %96 = tpu.matmul %3, %93, %cst_25 {dimension_numbers = #tpu.dot_dimension_numbers<[1], [0], [0], [1], [0, 0, 1, 1], [], []>} : vector<8x256xf32>, vector<256x256xf32>, vector<8x256xf32> -> vector<8x256xf32>
    %c0_26 = arith.constant 0 : index
    %c0_27 = arith.constant 0 : index
    %c0_28 = arith.constant 0 : index
    %97 = vector.load %arg4[%c0_26, %c0_27, %c0_28] : memref<1x8x256xf32, #tpu.memory_space<vmem>>, vector<1x8x256xf32>
    %98 = vector.shape_cast %97 : vector<1x8x256xf32> to vector<8x256xf32>
    %99 = vector.shape_cast %96 : vector<8x256xf32> to vector<1x8x256xf32>
    tpu.vector_store %arg4[%c0_26, %c0_27, %c0_28], %99 {strides = array<i32>} : memref<1x8x256xf32, #tpu.memory_space<vmem>>, vector<1x8x256xf32>,
    return
  }
  func.func @transform_0(%arg0: i32, %arg1: i32) -> (i32, i32, i32) {
    %c0_i32 = arith.constant 0 : i32
    %c0_i32_0 = arith.constant 0 : i32
    return %arg0, %c0_i32, %arg1 : i32, i32, i32
  }
  func.func @transform_1(%arg0: i32, %arg1: i32) -> (i32, i32, i32) {
    %c0_i32 = arith.constant 0 : i32
    %c0_i32_0 = arith.constant 0 : i32
    %c0_i32_1 = arith.constant 0 : i32
    return %arg0, %c0_i32, %c0_i32_0 : i32, i32, i32
  }
  func.func @transform_2(%arg0: i32, %arg1: i32) -> (i32, i32, i32) {
    %c0_i32 = arith.constant 0 : i32
    %c0_i32_0 = arith.constant 0 : i32
    return %arg0, %c0_i32, %arg1 : i32, i32, i32
  }
}

</mosaic_0001>

<bundles_post_ra>
// kernel: tpu_custom_call.1
= control target key start
LH: loop header
LB: loop body
LE: loop exit
PB: predicated region body
PF: predicated region fallthrough
CT: control target
= control target key end

     0   :  { %7 = vsyncpa [#allocation3], 0  ;;  %s9538_s0 = inlined_call_operand.hbm [shape: f32[2,256,256], index: 0, kind: input, shape index: {}]   ;;  %s9539_s1 = inlined_call_operand.hbm [shape: f32[2,8,256], index: 1, kind: input, shape index: {}]   ;;  %s9540_s2 = inlined_call_operand.hbm [shape: f32[2,8,256], index: 2, kind: output, shape index: {}]  }
   0x1   :  { %9 = vsyncpa [#allocation3 + $0x1], 0 }
   0x2   :  { %10 = vsyncpa [#allocation6], 0 }
   0x3   :  { %12 = vsyncpa [#allocation6 + $0x1], 0 }
   0x4   :  { %13 = vsyncpa [#allocation4], 0 }
   0x5   :  { %15 = vsyncpa [#allocation4 + $0x1], 0  ;;  %s3814_s9 = smov 0   ;;  %s3816_s10 = smov 0  }
   0x6   :  { %s3818_s11 = smov 0   ;;  %s3820_s12 = smov 0  }
   0x7   :  { %s3822_s13 = smov 0   ;;  %s3824_s14 = smov 0  }
   0x8 LB: > { %s3467_s15 = sadd.s32 4294967295, %s3795_s14   ;;  %s3468_s16 = sadd.s32 4294967294, %s3795_s14   ;;  %s3795_s14 = sphi %s3824_s14, %s21_s14   ;;  %s3791_s13 = sphi %s3822_s13, %s11787_s13   ;;  %s3787_s12 = sphi %s3820_s12, %s11786_s12   ;;  %s3783_s11 = sphi %s3818_s11, %s11785_s11   ;;  %s3779_s10 = sphi %s3816_s10, %s11784_s10   ;;  %s3775_s9 = sphi %s3814_s9, %s11783_s9  }
   0x9   : > { %s33_s17 = sadd.s32 1, %s3791_s13  ;;  %s42_s18 = sadd.s32 1, %s3783_s11 }
   0xa   : > { %p35_p0 = scmp.ge.s32.totalorder %s33_s17, 2  ;;  %p49_p1 = scmp.ne.s32.totalorder %s3783_s11, %s3779_s10 }
   0xb   : > { %p50_p2 = scmp.eq.s32.totalorder %s3795_s14, 0  ;;  %p55_p3 = scmp.ne.s32.totalorder %s3779_s10, %s3775_s9 }
   0xc   : > { %s11789_s17 = smov (%p35_p0, %s33_s17), 0  ;;  %p56_p5 = scmp.eq.s32.totalorder %s3467_s15, 0 }
   0xd   : > { %p3855_p4 = por %p50_p2, %p49_p1  ;;  %s37_s20 = ssub.s32 %s3791_s13, %s11789_s17 }
   0xe   : > { %p107_p6 = scmp.eq.s32.totalorder %s3467_s15, 1  ;;  %p40_p7 = scmp.eq.s32.totalorder %s37_s20, 0 }
   0xf   : > { %p3861_p8 = por %p56_p5, %p55_p3  ;;  %p113_p10 = scmp.eq.s32.totalorder %s3468_s16, 1 }
  0x10   : > { %p3865_p9 = por %p107_p6, %p49_p1  ;;  %p3470_p12 = scmp.ge.s32.totalorder %s3795_s14, 2 }
  0x11   : > { %s3870_s23 = scalar_select %p40_p7, %s3783_s11, %s42_s18  }
  0x12   : > { %p3872_p11 = por %p113_p10, %p55_p3  ;;  %p3506_p13 = scmp.lt.s32.totalorder %s3795_s14, 2 }
  0x13   : > { %s133_s25 = sand.u32 1, %s3783_s11   ;;  %s3486_s27 = sshll.u32 %s3791_s13, 9 }
  0x14   : > { %s3471_s26 = sshll.u32 %s133_s25, 9  ;;  %s144_s30 = scalar_lea.hbm %s9538_s0, %s3486_s27 }
  0x15   : > { %s137_s3 = scalar_lea.vmem [#allocation2], %s3471_s26  ;;  %s145_s5 = sshll.u32 %s144_s30, 4  ;;  %s146_s5 = int_to_ptr.hbm [resolvable:$true] %s145_s5 }
  0x16   : > { %s147_s4 = sshll.u32 %s137_s3, 4  ;;  %p3885_p0 = pnand %p3506_p13, %p3855_p4  ;;  %s148_s4 = int_to_ptr.vmem [resolvable:$true] %s147_s4 }
  0x17   : > { %p3477_p1 = scmp.ge.s32.totalorder %s3795_s14, 1  ;;  %s134_s7 = scalar_lea.sflag [#allocation3], %s133_s25 }
  0x18   : > { %s3797_s8 = smov 256   ;;  %s3798_s15 = smov 16  }
  0x19   : > { %3498 = dma.hbm_to_vmem [thread:$0]  (!%p3885_p0), %s146_s5, 8192, %s148_s4, %s134_s7, %s3797_s8, %s3797_s8, %s3798_s15  }
  0x1a   : > { %p175_p2 = scmp.lt.s32.totalorder %s3795_s14, 3  ;;  %s3474_s16 = sshll.u32 %s133_s25, 4 }
  0x1b   : > { %s3487_s18 = sshll.u32 %s3791_s13, 4  ;;  %s161_s27 = scalar_lea.vmem [#allocation5], %s3474_s16 }
  0x1c   : > { %p176_p3 = pnand %p3477_p1, %p175_p2  ;;  %s166_s19 = scalar_lea.hbm %s9539_s1, %s3487_s18 }
  0x1d   : > { %s170_s28 = sshll.u32 %s161_s27, 4  ;;  %s168_s29 = sshll.u32 %s166_s19, 4  ;;  %s171_s28 = int_to_ptr.vmem [resolvable:$true] %s170_s28  ;;  %s169_s29 = int_to_ptr.hbm [resolvable:$true] %s168_s29 }
  0x1e   : > { %s158_s30 = scalar_lea.sflag [#allocation6], %s133_s25  ;;  %179 = sbr.rel (%p176_p3) target bundleno = 1153 (0x481), region = 28 }
  0x1f   : > { %3501 = dma.hbm_to_vmem [thread:$0]  (!%p3885_p0), %s169_s29, 256, %s171_s28, %s158_s30  }
  0x23   : > { %s3900_s3 = sand.u32 1, %s3779_s10  }
  0x24   : > { %s3478_s4 = sshll.u32 %s3900_s3, 9  ;;  %s182_s5 = scalar_lea.sflag [#allocation3], %s3900_s3 }
  0x25   : > { %s3904_s7 = scalar_lea.vmem [#allocation2], %s3478_s4 }
  0x26   : > { %3762 = dma.done.wait (%p3861_p8), %s182_s5, 8192  }
  0x27   : > { %3764 = vsyncadd (%p3861_p8), %s182_s5, 4294959104  ;;  %s3479_s25 = sshll.u32 %s3900_s3, 4  ;;  %s192_s6 = scalar_lea.sflag [#allocation6], %s3900_s3 }
  0x28   : > { %s3914_s8 = scalar_lea.vmem [#allocation5], %s3479_s25 }
  0x29   : > { %3766 = dma.done.wait (%p3861_p8), %s192_s6, 256  }
  0x2a   : > { %3768 = vsyncadd (%p3861_p8), %s192_s6, 4294967040  ;;  %v3921_v0 = vld [vmem:[%s3904_s7 + $0x8] sm:$0xff]  ;;  %v3924_v1 = vld [vmem:[%s3904_s7 + $0x18] sm:$0xff]  ;;  %s3488_s21 = sshll.u32 %s3787_s12, 4  ;;  %s221_s15 = scalar_lea.vmem [#allocation7], %s3479_s25 }
  0x2b   : > { %10472 = vst [vmem:[#allocation11_spill] sm:$0xff] %v3921_v0  ;;  %v3927_v2 = vld [vmem:[%s3904_s7 + $0x28] sm:$0xff]  ;;  %v3930_v3 = vld [vmem:[%s3904_s7 + $0x38] sm:$0xff]  ;;  %s3355_s20 = scalar_lea.hbm %s9540_s2, %s3488_s21  ;;  %s3357_s26 = sshll.u32 %s221_s15, 4  ;;  %s3358_s26 = int_to_ptr.vmem [resolvable:$true] %s3357_s26 }
  0x2c   : > { %10473 = vst [vmem:[#allocation12_spill] sm:$0xff] %v3924_v1  ;;  %v3933_v4 = vld [vmem:[%s3904_s7 + $0x48] sm:$0xff]  ;;  %v3936_v5 = vld [vmem:[%s3904_s7 + $0x58] sm:$0xff]  ;;  %v360_v6 = vmax.f32 %v3921_v0, %v3927_v2  ;;  %v361_v8 = vmax.f32 %v3924_v1, %v3930_v3  ;;  %s3359_s19 = sshll.u32 %s3355_s20, 4  ;;  %s3342_s27 = scalar_lea.sflag [#allocation4], %s3900_s3  ;;  %s3360_s19 = int_to_ptr.hbm [resolvable:$true] %s3359_s19 }
  0x2d   : > { %10474 = vst [vmem:[#allocation13_spill] sm:$0xff] %v3927_v2  ;;  %v3941_v7 = vld [vmem:[%s3904_s7 + $0x68] sm:$0xff]  ;;  %v3946_v9 = vld [vmem:[%s3904_s7 + $0x78] sm:$0xff]  ;;  %s3723_s28 = sshra.s32 %s3360_s19, 4  ;;  %s3729_s4 = scalar_lea.hbm %s9540_s2, 32  ;;  %s3724_s28 = int_to_ptr.hbm [resolvable:$true] %s3723_s28 }
  0x2e   : > { %10475 = vst [vmem:[#allocation14_spill] sm:$0xff] %v3930_v3  ;;  %v362_v10 = vmax.f32 %v360_v6, %v3933_v4  ;;  %v3950_v11 = vld [vmem:[%s3904_s7 + $0x88] sm:$0xff]  ;;  %v363_v12 = vmax.f32 %v361_v8, %v3936_v5  ;;  %v3954_v13 = vld [vmem:[%s3904_s7 + $0x98] sm:$0xff]  ;;  %s3725_s12 = scalar_lea.hbm %s3724_s28, 16  ;;  %p3730_p7 = scmp.lt.s32.totalorder %s3724_s28, %s9540_s2 }
  0x2f   : > { %10476 = vst [vmem:[#allocation15_spill] sm:$0xff] %v3933_v4  ;;  %v3958_v15 = vld [vmem:[%s3904_s7 + $0xa8] sm:$0xff]  ;;  %v3962_v17 = vld [vmem:[%s3904_s7 + $0xb8] sm:$0xff]  ;;  %p3726_p4 = scmp.ne.s32.totalorder %s3724_s28, %s3725_s12  ;;  %p3731_p8 = scmp.lt.s32.totalorder %s3729_s4, %s3725_s12 }
  0x30   : > { %10477 = vst [vmem:[#allocation16_spill] sm:$0xff] %v3936_v5  ;;  %v364_v14 = vmax.f32 %v362_v10, %v3941_v7  ;;  %v365_v16 = vmax.f32 %v363_v12, %v3946_v9  ;;  %v3966_v19 = vld [vmem:[%s3904_s7 + $0xc8] sm:$0xff]  ;;  %v3970_v21 = vld [vmem:[%s3904_s7 + $0xd8] sm:$0xff]  ;;  %v290_v10 = vlaneseq }
  0x31   : > { %10478 = vst [vmem:[#allocation17_spill] sm:$0xff] %v3941_v7  ;;  %v3974_v23 = vld [vmem:[%s3904_s7 + $0xe8] sm:$0xff]  ;;  %v3978_v25 = vld [vmem:[%s3904_s7 + $0xf8] sm:$0xff]  ;;  %p3727_p5 = pnand %p3726_p4, %p3865_p9  ;;  %p3732_p10 = por %p3731_p8, %p3730_p7 }
  0x32   : > { %10479 = vst [vmem:[#allocation18_spill] sm:$0xff] %v3946_v9  ;;  %v366_v18 = vmax.f32 %v364_v14, %v3950_v11  ;;  %v367_v20 = vmax.f32 %v365_v16, %v3954_v13  ;;  %v3982_v27 = vld [vmem:[%s3904_s7 + $0x108] sm:$0xff]  ;;  %v3986_v29 = vld [vmem:[%s3904_s7 + $0x118] sm:$0xff]  ;;  %v4048_v14 = vshrl.u32 %v290_v10, 7 }
  0x33   : > { %10480 = vst [vmem:[#allocation19_spill] sm:$0xff] %v3950_v11  ;;  %v3990_v31 = vld [vmem:[%s3904_s7 + $0x128] sm:$0xff]  ;;  %v3994_v33 = vld [vmem:[%s3904_s7 + $0x138] sm:$0xff]  ;;  %p3728_p6 = pneg %p3727_p5 }
  0x34   : > { %10481 = vst [vmem:[#allocation20_spill] sm:$0xff] %v3954_v13  ;;  %v368_v22 = vmax.f32 %v366_v18, %v3958_v15  ;;  %v369_v24 = vmax.f32 %v367_v20, %v3962_v17  ;;  %v3998_v35 = vld [vmem:[%s3904_s7 + $0x148] sm:$0xff]  ;;  %v4002_v37 = vld [vmem:[%s3904_s7 + $0x158] sm:$0xff]  ;;  %v4051_v18 = vadd.s32 8, %v4048_v14  ;;  %v4054_v20 = vadd.s32 16, %v4048_v14 }
  0x35   : > { %v4006_v39 = vld [vmem:[%s3904_s7 + $0x168] sm:$0xff]  ;;  %v4010_v41 = vld [vmem:[%s3904_s7 + $0x178] sm:$0xff]  ;;  %10485 = vst [vmem:[#allocation24_spill] sm:$0xff] %v4048_v14  ;;  %p3733_p13 = pnand %p3732_p10, %p3728_p6 }
  0x36   : > { %v370_v26 = vmax.f32 %v368_v22, %v3966_v19  ;;  %v371_v28 = vmax.f32 %v369_v24, %v3970_v21  ;;  %v4014_v43 = vld [vmem:[%s3904_s7 + $0x188] sm:$0xff]  ;;  %v4018_v45 = vld [vmem:[%s3904_s7 + $0x198] sm:$0xff]  ;;  %10486 = vst [vmem:[#allocation25_spill] sm:$0xff] %v4051_v18  ;;  %v4057_v22 = vadd.s32 24, %v4048_v14  ;;  %v4060_v24 = vadd.s32 32, %v4048_v14 }
  0x37   : > { %v4022_v47 = vld [vmem:[%s3904_s7 + $0x1a8] sm:$0xff]  ;;  %v4026_v49 = vld [vmem:[%s3904_s7 + $0x1b8] sm:$0xff]  ;;  %10487 = vst [vmem:[#allocation26_spill] sm:$0xff] %v4054_v20 }
  0x38   : > { %v372_v30 = vmax.f32 %v370_v26, %v3974_v23  ;;  %v373_v32 = vmax.f32 %v371_v28, %v3978_v25  ;;  %v4030_v51 = vld [vmem:[%s3904_s7 + $0x1c8] sm:$0xff]  ;;  %v4034_v53 = vld [vmem:[%s3904_s7 + $0x1d8] sm:$0xff]  ;;  %10488 = vst [vmem:[#allocation27_spill] sm:$0xff] %v4057_v22  ;;  %v4063_v26 = vadd.s32 40, %v4048_v14  ;;  %v4066_v28 = vadd.s32 48, %v4048_v14 }
  0x39   : > { %10482 = vst [vmem:[#allocation21_spill] sm:$0xff] %v4034_v53  ;;  %v4038_v55 = vld [vmem:[%s3904_s7 + $0x1e8] sm:$0xff]  ;;  %v4042_v57 = vld [vmem:[%s3904_s7 + $0x1f8] sm:$0xff] }
  0x3a   : > { %v374_v34 = vmax.f32 %v372_v30, %v3982_v27  ;;  %v375_v36 = vmax.f32 %v373_v32, %v3986_v29  ;;  %10483 = vst [vmem:[#allocation22_spill] sm:$0xff] %v4038_v55  ;;  %v4069_v30 = vadd.s32 56, %v4048_v14  ;;  %v4072_v32 = vadd.s32 64, %v4048_v14 }
  0x3b   : > { %10484 = vst [vmem:[#allocation23_spill] sm:$0xff] %v4042_v57 }
  0x3c   : > { %v376_v38 = vmax.f32 %v374_v34, %v3990_v31  ;;  %v377_v40 = vmax.f32 %v375_v36, %v3994_v33  ;;  %10489 = vst [vmem:[#allocation28_spill] sm:$0xff] %v4060_v24  ;;  %v4075_v34 = vadd.s32 72, %v4048_v14 }
  0x3d   : > { %10490 = vst [vmem:[#allocation29_spill] sm:$0xff] %v4063_v26 }
  0x3e   : > { %v378_v42 = vmax.f32 %v376_v38, %v3998_v35  ;;  %v379_v44 = vmax.f32 %v377_v40, %v4002_v37  ;;  %10491 = vst [vmem:[#allocation30_spill] sm:$0xff] %v4066_v28  ;;  %v4080_v38 = vadd.s32 80, %v4048_v14  ;;  %v4083_v40 = vadd.s32 88, %v4048_v14 }
  0x3f   : > { %10492 = vst [vmem:[#allocation31_spill] sm:$0xff] %v4069_v30 }
  0x40   : > { %v380_v46 = vmax.f32 %v378_v42, %v4006_v39  ;;  %v381_v48 = vmax.f32 %v379_v44, %v4010_v41  ;;  %10493 = vst [vmem:[#allocation32_spill] sm:$0xff] %v4072_v32  ;;  %v4086_v42 = vadd.s32 96, %v4048_v14  ;;  %v4089_v44 = vadd.s32 104, %v4048_v14 }
  0x41   : > { %10494 = vst [vmem:[#allocation33_spill] sm:$0xff] %v4075_v34 }
  0x42   : > { %v382_v50 = vmax.f32 %v380_v46, %v4014_v43  ;;  %v383_v52 = vmax.f32 %v381_v48, %v4018_v45  ;;  %10495 = vst [vmem:[#allocation34_spill] sm:$0xff] %v4083_v40  ;;  %v4092_v46 = vadd.s32 112, %v4048_v14  ;;  %v4095_v48 = vadd.s32 120, %v4048_v14 }
  0x43   : > { %10496 = vst [vmem:[#allocation35_spill] sm:$0xff] %v4086_v42 }
  0x44   : > { %v384_v54 = vmax.f32 %v382_v50, %v4022_v47  ;;  %v385_v56 = vmax.f32 %v383_v52, %v4026_v49  ;;  %10497 = vst [vmem:[#allocation36_spill] sm:$0xff] %v4089_v44  ;;  %v4098_v50 = vadd.s32 128, %v4048_v14  ;;  %v4101_v52 = vadd.s32 136, %v4048_v14 }
  0x45   : > { %10498 = vst [vmem:[#allocation37_spill] sm:$0xff] %v4092_v46 }
  0x46   : > { %v386_v58 = vmax.f32 %v384_v54, %v4030_v51  ;;  %v387_v59 = vmax.f32 %v385_v56, %v4034_v53  ;;  %10499 = vst [vmem:[#allocation38_spill] sm:$0xff] %v4095_v48  ;;  %v4104_v54 = vadd.s32 144, %v4048_v14  ;;  %v4107_v56 = vadd.s32 152, %v4048_v14 }
  0x47   : > { %10500 = vst [vmem:[#allocation39_spill] sm:$0xff] %v4098_v50 }
  0x48   : > { %v388_v60 = vmax.f32 %v386_v58, %v4038_v55  ;;  %v389_v61 = vmax.f32 %v387_v59, %v4042_v57  ;;  %10501 = vst [vmem:[#allocation40_spill] sm:$0xff] %v4101_v52  ;;  %v4110_v58 = vadd.s32 160, %v4048_v14  ;;  %v4113_v59 = vadd.s32 168, %v4048_v14 }
  0x49   : > { %10502 = vst [vmem:[#allocation41_spill] sm:$0xff] %v4104_v54 }
  0x4a   : > { %v390_v62 = vmax.f32 %v388_v60, %v389_v61  ;;  %10503 = vst [vmem:[#allocation42_spill] sm:$0xff] %v4107_v56  ;;  %v4124_v60 = vadd.s32 176, %v4048_v14  ;;  %v4127_v61 = vadd.s32 184, %v4048_v14 }
  0x4b   : > { %10504 = vst [vmem:[#allocation43_spill] sm:$0xff] %v4110_v58 }
  0x4c   : > { %v391_v63 = vrot.slane %v390_v62, 4  ;;  %10505 = vst [vmem:[#allocation44_spill] sm:$0xff] %v4113_v59 }
  0x4d   : > { %10506 = vst [vmem:[#allocation45_spill] sm:$0xff] %v4124_v60 }
  0x4e   : > { %v392_v6 = vmax.f32 %v390_v62, %v391_v63  ;;  %10507 = vst [vmem:[#allocation46_spill] sm:$0xff] %v4127_v61  ;;  %v4130_v62 = vadd.s32 192, %v4048_v14  ;;  %v4133_v63 = vadd.s32 200, %v4048_v14 }
  0x50   : > { %v393_v8 = vrot.slane %v392_v6, 2  ;;  %10508 = vst [vmem:[#allocation47_spill] sm:$0xff] %v4130_v62 }
  0x51   : > { %10509 = vst [vmem:[#allocation48_spill] sm:$0xff] %v4133_v63 }
  0x52   : > { %v394_v12 = vmax.f32 %v392_v6, %v393_v8  ;;  %v4136_v6 = vadd.s32 208, %v4048_v14  ;;  %v4139_v8 = vadd.s32 216, %v4048_v14 }
  0x54   : > { %v395_v16 = vrot.slane %v394_v12, 1  ;;  %10510 = vst [vmem:[#allocation49_spill] sm:$0xff] %v4136_v6 }
  0x55   : > { %10511 = vst [vmem:[#allocation50_spill] sm:$0xff] %v4139_v8 }
  0x56   : > { %v4077_v36 = vmax.f32 %v394_v12, %v395_v16 }
  0x58   : > { %vm398_vm0 = vcmp.eq.f32.partialorder %v3921_v0, %v4077_v36  ;;  %vm400_vm1 = vcmp.eq.f32.partialorder %v3924_v1, %v4077_v36  ;;  %vm402_vm2 = vcmp.eq.f32.partialorder %v3927_v2, %v4077_v36  ;;  %vm404_vm3 = vcmp.eq.f32.partialorder %v3930_v3, %v4077_v36 }
  0x59   : > { %vm406_vm4 = vcmp.eq.f32.partialorder %v3933_v4, %v4077_v36  ;;  %vm408_vm5 = vcmp.eq.f32.partialorder %v3936_v5, %v4077_v36  ;;  %v462_v10 = vsel %vm398_vm0, %v4048_v14, 256  ;;  %v464_v12 = vsel %vm400_vm1, %v4051_v18, 256 }
  0x5a   : > { %v466_v16 = vsel %vm402_vm2, %v4054_v20, 256  ;;  %v468_v3 = vsel %vm404_vm3, %v4057_v22, 256  ;;  %v4150_v2 = vadd.s32 224, %v4048_v14  ;;  %v4153_v1 = vadd.s32 232, %v4048_v14 }
  0x5b   : > { %vm410_vm6 = vcmp.eq.f32.partialorder %v3941_v7, %v4077_v36  ;;  %vm412_vm7 = vcmp.eq.f32.partialorder %v3946_v9, %v4077_v36  ;;  %v4160_v5 = vadd.s32 240, %v4048_v14  ;;  %v4163_v4 = vadd.s32 248, %v4048_v14 }
  0x5c   : > { %10512 = vst [vmem:[#allocation51_spill] sm:$0xff] %v4150_v2  ;;  %v470_v0 = vsel %vm406_vm4, %v4060_v24, 256  ;;  %v472_v22 = vsel %vm408_vm5, %v4063_v26, 256  ;;  %vm414_vm8 = vcmp.eq.f32.partialorder %v3950_v11, %v4077_v36  ;;  %vm416_vm9 = vcmp.eq.f32.partialorder %v3954_v13, %v4077_v36 }
  0x5d   : > { %10513 = vst [vmem:[#allocation52_spill] sm:$0xff] %v4153_v1  ;;  %vm596_vm10 = vcmp.lt.s32.totalorder %v462_v10, %v466_v16  ;;  %vm598_vm11 = vcmp.lt.s32.totalorder %v464_v12, %v468_v3  ;;  %v474_v9 = vsel %vm410_vm6, %v4066_v28, 256  ;;  %v476_v7 = vsel %vm412_vm7, %v4069_v30, 256 }
  0x5e   : > { %10514 = vst [vmem:[#allocation53_spill] sm:$0xff] %v4160_v5  ;;  %v597_v20 = vsel %vm596_vm10, %v462_v10, %v466_v16  ;;  %v599_v18 = vsel %vm598_vm11, %v464_v12, %v468_v3  ;;  %vm418_vm12 = vcmp.eq.f32.partialorder %v3958_v15, %v4077_v36  ;;  %vm420_vm13 = vcmp.eq.f32.partialorder %v3962_v17, %v4077_v36 }
  0x5f   : > { %10515 = vst [vmem:[#allocation54_spill] sm:$0xff] %v4163_v4  ;;  %vm600_vm14 = vcmp.lt.s32.totalorder %v597_v20, %v470_v0  ;;  %vm602_vm15 = vcmp.lt.s32.totalorder %v599_v18, %v472_v22  ;;  %v478_v11 = vsel %vm414_vm8, %v4072_v32, 256  ;;  %v480_v13 = vsel %vm416_vm9, %v4075_v34, 256 }
  0x60   : > { %v601_v26 = vsel %vm600_vm14, %v597_v20, %v470_v0  ;;  %v603_v24 = vsel %vm602_vm15, %v599_v18, %v472_v22  ;;  %vm422_vm0 = vcmp.eq.f32.partialorder %v3966_v19, %v4077_v36  ;;  %vm424_vm1 = vcmp.eq.f32.partialorder %v3970_v21, %v4077_v36 }
  0x61   : > { %vm604_vm2 = vcmp.lt.s32.totalorder %v601_v26, %v474_v9  ;;  %vm606_vm3 = vcmp.lt.s32.totalorder %v603_v24, %v476_v7  ;;  %v482_v3 = vsel %vm418_vm12, %v4080_v38, 256  ;;  %v484_v10 = vsel %vm420_vm13, %v4083_v40, 256 }
  0x62   : > { %v605_v12 = vsel %vm604_vm2, %v601_v26, %v474_v9  ;;  %v607_v16 = vsel %vm606_vm3, %v603_v24, %v476_v7  ;;  %vm426_vm4 = vcmp.eq.f32.partialorder %v3974_v23, %v4077_v36  ;;  %vm428_vm5 = vcmp.eq.f32.partialorder %v3978_v25, %v4077_v36 }
  0x63   : > { %vm608_vm6 = vcmp.lt.s32.totalorder %v605_v12, %v478_v11  ;;  %vm610_vm7 = vcmp.lt.s32.totalorder %v607_v16, %v480_v13  ;;  %v486_v0 = vsel %vm422_vm0, %v4086_v42, 256  ;;  %v488_v18 = vsel %vm424_vm1, %v4089_v44, 256 }
  0x64   : > { %v609_v20 = vsel %vm608_vm6, %v605_v12, %v478_v11  ;;  %v611_v22 = vsel %vm610_vm7, %v607_v16, %v480_v13  ;;  %vm430_vm8 = vcmp.eq.f32.partialorder %v3982_v27, %v4077_v36  ;;  %vm432_vm9 = vcmp.eq.f32.partialorder %v3986_v29, %v4077_v36 }
  0x65   : > { %vm612_vm10 = vcmp.lt.s32.totalorder %v609_v20, %v482_v3  ;;  %vm614_vm11 = vcmp.lt.s32.totalorder %v611_v22, %v484_v10  ;;  %v490_v7 = vsel %vm426_vm4, %v4092_v46, 256  ;;  %v492_v9 = vsel %vm428_vm5, %v4095_v48, 256 }
  0x66   : > { %v613_v24 = vsel %vm612_vm10, %v609_v20, %v482_v3  ;;  %v615_v26 = vsel %vm614_vm11, %v611_v22, %v484_v10  ;;  %vm434_vm12 = vcmp.eq.f32.partialorder %v3990_v31, %v4077_v36  ;;  %vm436_vm13 = vcmp.eq.f32.partialorder %v3994_v33, %v4077_v36 }
  0x67   : > { %vm616_vm14 = vcmp.lt.s32.totalorder %v613_v24, %v486_v0  ;;  %vm618_vm15 = vcmp.lt.s32.totalorder %v615_v26, %v488_v18  ;;  %v494_v11 = vsel %vm430_vm8, %v4098_v50, 256  ;;  %v496_v13 = vsel %vm432_vm9, %v4101_v52, 256 }
  0x68   : > { %v617_v12 = vsel %vm616_vm14, %v613_v24, %v486_v0  ;;  %v619_v16 = vsel %vm618_vm15, %v615_v26, %v488_v18  ;;  %vm438_vm0 = vcmp.eq.f32.partialorder %v3998_v35, %v4077_v36  ;;  %vm440_vm1 = vcmp.eq.f32.partialorder %v4002_v37, %v4077_v36 }
  0x69   : > { %vm620_vm2 = vcmp.lt.s32.totalorder %v617_v12, %v490_v7  ;;  %vm622_vm3 = vcmp.lt.s32.totalorder %v619_v16, %v492_v9  ;;  %v498_v3 = vsel %vm434_vm12, %v4104_v54, 256  ;;  %v500_v10 = vsel %vm436_vm13, %v4107_v56, 256 }
  0x6a   : > { %v621_v20 = vsel %vm620_vm2, %v617_v12, %v490_v7  ;;  %v623_v22 = vsel %vm622_vm3, %v619_v16, %v492_v9  ;;  %vm442_vm4 = vcmp.eq.f32.partialorder %v4006_v39, %v4077_v36  ;;  %vm444_vm5 = vcmp.eq.f32.partialorder %v4010_v41, %v4077_v36 }
  0x6b   : > { %vm624_vm6 = vcmp.lt.s32.totalorder %v621_v20, %v494_v11  ;;  %vm626_vm7 = vcmp.lt.s32.totalorder %v623_v22, %v496_v13  ;;  %v502_v0 = vsel %vm438_vm0, %v4110_v58, 256  ;;  %v504_v18 = vsel %vm440_vm1, %v4113_v59, 256 }
  0x6c   : > { %v625_v24 = vsel %vm624_vm6, %v621_v20, %v494_v11  ;;  %v627_v26 = vsel %vm626_vm7, %v623_v22, %v496_v13  ;;  %vm446_vm8 = vcmp.eq.f32.partialorder %v4014_v43, %v4077_v36  ;;  %vm448_vm9 = vcmp.eq.f32.partialorder %v4018_v45, %v4077_v36 }
  0x6d   : > { %vm628_vm10 = vcmp.lt.s32.totalorder %v625_v24, %v498_v3  ;;  %vm630_vm11 = vcmp.lt.s32.totalorder %v627_v26, %v500_v10  ;;  %v506_v7 = vsel %vm442_vm4, %v4124_v60, 256  ;;  %v508_v9 = vsel %vm444_vm5, %v4127_v61, 256 }
  0x6e   : > { %v629_v12 = vsel %vm628_vm10, %v625_v24, %v498_v3  ;;  %v631_v16 = vsel %vm630_vm11, %v627_v26, %v500_v10  ;;  %vm450_vm12 = vcmp.eq.f32.partialorder %v4022_v47, %v4077_v36  ;;  %vm452_vm13 = vcmp.eq.f32.partialorder %v4026_v49, %v4077_v36 }
  0x6f   : > { %vm632_vm14 = vcmp.lt.s32.totalorder %v629_v12, %v502_v0  ;;  %vm634_vm15 = vcmp.lt.s32.totalorder %v631_v16, %v504_v18  ;;  %v510_v11 = vsel %vm446_vm8, %v4130_v62, 256  ;;  %v512_v13 = vsel %vm448_vm9, %v4133_v63, 256 }
  0x70   : > { %v633_v20 = vsel %vm632_vm14, %v629_v12, %v502_v0  ;;  %v635_v22 = vsel %vm634_vm15, %v631_v16, %v504_v18  ;;  %vm454_vm0 = vcmp.eq.f32.partialorder %v4030_v51, %v4077_v36  ;;  %vm456_vm1 = vcmp.eq.f32.partialorder %v4034_v53, %v4077_v36 }
  0x71   : > { %vm636_vm2 = vcmp.lt.s32.totalorder %v633_v20, %v506_v7  ;;  %vm638_vm3 = vcmp.lt.s32.totalorder %v635_v22, %v508_v9  ;;  %v514_v3 = vsel %vm450_vm12, %v4136_v6, 256  ;;  %v516_v10 = vsel %vm452_vm13, %v4139_v8, 256 }
  0x72   : > { %v637_v24 = vsel %vm636_vm2, %v633_v20, %v506_v7  ;;  %v639_v26 = vsel %vm638_vm3, %v635_v22, %v508_v9  ;;  %vm458_vm4 = vcmp.eq.f32.partialorder %v4038_v55, %v4077_v36  ;;  %vm460_vm5 = vcmp.eq.f32.partialorder %v4042_v57, %v4077_v36  ;;  %v10532_v57 = vld [vmem:[#allocation13_spill] sm:$0xff]  ;;  %v10546_v55 = vld [vmem:[#allocation18_spill] sm:$0xff] }
  0x73   : > { %vm640_vm6 = vcmp.lt.s32.totalorder %v637_v24, %v510_v11  ;;  %vm642_vm7 = vcmp.lt.s32.totalorder %v639_v26, %v512_v13  ;;  %v518_v0 = vsel %vm454_vm0, %v4150_v2, 256  ;;  %v520_v18 = vsel %vm456_vm1, %v4153_v1, 256 }
  0x74   : > { %v641_v12 = vsel %vm640_vm6, %v637_v24, %v510_v11  ;;  %v643_v16 = vsel %vm642_vm7, %v639_v26, %v512_v13  ;;  %v522_v53 = vsel %vm458_vm4, %v4160_v5, 256  ;;  %v524_v7 = vsel %vm460_vm5, %v4163_v4, 256 }
  0x75   : > { %vm644_vm8 = vcmp.lt.s32.totalorder %v641_v12, %v514_v3  ;;  %vm646_vm9 = vcmp.lt.s32.totalorder %v643_v16, %v516_v10 }
  0x76   : > { %v645_v9 = vsel %vm644_vm8, %v641_v12, %v514_v3  ;;  %v647_v20 = vsel %vm646_vm9, %v643_v16, %v516_v10  ;;  %v4245_v16 = vld [vmem:[%s3904_s7 + $0x10] sm:$0xff] }
  0x77   : > { %vm648_vm10 = vcmp.lt.s32.totalorder %v645_v9, %v518_v0  ;;  %vm650_vm11 = vcmp.lt.s32.totalorder %v647_v20, %v520_v18  ;;  %10517 = vst [vmem:[#allocation56_spill] sm:$0xff] %v4245_v16 }
  0x78   : > { %v649_v22 = vsel %vm648_vm10, %v645_v9, %v518_v0  ;;  %v651_v36 = vsel %vm650_vm11, %v647_v20, %v520_v18  ;;  %v4242_v18 = vld [vmem:[%s3904_s7] sm:$0xff] }
  0x79   : > { %vm652_vm12 = vcmp.lt.s32.totalorder %v649_v22, %v522_v53  ;;  %vm654_vm13 = vcmp.lt.s32.totalorder %v651_v36, %v524_v7  ;;  %10516 = vst [vmem:[#allocation55_spill] sm:$0xff] %v4242_v18  ;;  %v4248_v9 = vld [vmem:[%s3904_s7 + $0x20] sm:$0xff] }
  0x7a   : > { %v653_v11 = vsel %vm652_vm12, %v649_v22, %v522_v53  ;;  %v655_v13 = vsel %vm654_vm13, %v651_v36, %v524_v7  ;;  %10518 = vst [vmem:[#allocation57_spill] sm:$0xff] %v4248_v9  ;;  %v4251_v53 = vld [vmem:[%s3904_s7 + $0x30] sm:$0xff]  ;;  %v323_v20 = vmax.f32 %v4242_v18, %v4248_v9  ;;  %v4260_v36 = vld [vmem:[%s3904_s7 + $0x40] sm:$0xff] }
  0x7b   : > { %vm656_vm14 = vcmp.lt.s32.totalorder %v653_v11, %v655_v13  ;;  %10519 = vst [vmem:[#allocation58_spill] sm:$0xff] %v4251_v53  ;;  %v324_v22 = vmax.f32 %v4245_v16, %v4251_v53  ;;  %v10528_v53 = vld [vmem:[#allocation11_spill] sm:$0xff]  ;;  %v10530_v16 = vld [vmem:[#allocation12_spill] sm:$0xff] }
  0x7c   : > { %v657_v24 = vsel %vm656_vm14, %v653_v11, %v655_v13  ;;  %10521 = vst [vmem:[#allocation60_spill] sm:$0xff] %v4260_v36  ;;  %v4263_v11 = vld [vmem:[%s3904_s7 + $0x50] sm:$0xff] }
  0x7d   : > { %v658_v26 = vrot.slane %v657_v24, 4  ;;  %10522 = vst [vmem:[#allocation61_spill] sm:$0xff] %v4263_v11  ;;  %v10523_v13 = vld [vmem:[#allocation25_spill] sm:$0xff] }
  0x7f   : > { %vm659_vm15 = vcmp.lt.s32.totalorder %v657_v24, %v658_v26 }
  0x80   : > { %v660_v3 = vsel %vm659_vm15, %v657_v24, %v658_v26  ;;  %v10524_v24 = vld [vmem:[#allocation26_spill] sm:$0xff]  ;;  %v10525_v26 = vld [vmem:[#allocation27_spill] sm:$0xff] }
  0x81   : > { %v661_v10 = vrot.slane %v660_v3, 2 }
  0x83   : > { %vm662_vm0 = vcmp.lt.s32.totalorder %v660_v3, %v661_v10 }
  0x84   : > { %v663_v12 = vsel %vm662_vm0, %v660_v3, %v661_v10  ;;  %v10526_v3 = vld [vmem:[#allocation28_spill] sm:$0xff]  ;;  %v10527_v10 = vld [vmem:[#allocation29_spill] sm:$0xff] }
  0x85   : > { %v664_v0 = vrot.slane %v663_v12, 1 }
  0x87   : > { %vm665_vm1 = vcmp.lt.s32.totalorder %v663_v12, %v664_v0 }
  0x88   : > { %v4253_v7 = vsel %vm665_vm1, %v663_v12, %v664_v0  ;;  %v325_v12 = vmax.f32 %v323_v20, %v4260_v36  ;;  %v326_v0 = vmax.f32 %v324_v22, %v4263_v11  ;;  %v10534_v22 = vld [vmem:[#allocation14_spill] sm:$0xff]  ;;  %v10540_v36 = vld [vmem:[#allocation16_spill] sm:$0xff] }
  0x89   : > { %10520 = vst [vmem:[#allocation59_spill] sm:$0xff] %v4253_v7  ;;  %vm9605_vm2 = vcmp.eq.s32.totalorder %v4048_v14, %v4253_v7  ;;  %vm9606_vm3 = vcmp.eq.s32.totalorder %v10523_v13, %v4253_v7  ;;  %vm9611_vm4 = vcmp.eq.s32.totalorder %v10524_v24, %v4253_v7  ;;  %vm9612_vm5 = vcmp.eq.s32.totalorder %v10525_v26, %v4253_v7  ;;  %v4328_v24 = vld [vmem:[%s3904_s7 + $0x80] sm:$0xff] }
  0x8a   : > { %vm9616_vm6 = vcmp.eq.s32.totalorder %v10526_v3, %v4253_v7  ;;  %vm9617_vm7 = vcmp.eq.s32.totalorder %v10527_v10, %v4253_v7  ;;  %v4283_v9 = vsel %vm9605_vm2, -inf, %v10528_v53  ;;  %v4289_v18 = vsel %vm9606_vm3, -inf, %v10530_v16  ;;  %v4304_v53 = vld [vmem:[%s3904_s7 + $0x60] sm:$0xff]  ;;  %v4311_v16 = vld [vmem:[%s3904_s7 + $0x70] sm:$0xff]  ;;  %10542 = vst [vmem:[#allocation64_spill] sm:$0xff] %v4328_v24 }
  0x8b   : > { %10529 = vst [vmem:[#allocation11_spill] sm:$0xff] %v4283_v9  ;;  %v4295_v20 = vsel %vm9611_vm4, -inf, %v10532_v57  ;;  %v4301_v11 = vsel %vm9612_vm5, -inf, %v10534_v22  ;;  %vm9638_vm8 = vcmp.eq.s32.totalorder %v4066_v28, %v4253_v7  ;;  %vm9644_vm9 = vcmp.eq.s32.totalorder %v4069_v30, %v4253_v7  ;;  %v10538_v57 = vld [vmem:[#allocation15_spill] sm:$0xff] }
  0x8c   : > { %10531 = vst [vmem:[#allocation12_spill] sm:$0xff] %v4289_v18  ;;  %vm9678_vm10 = vcmp.eq.s32.totalorder %v4072_v32, %v4253_v7  ;;  %v4319_v22 = vsel %vm9616_vm6, -inf, %v10538_v57  ;;  %v4325_v26 = vsel %vm9617_vm7, -inf, %v10540_v36  ;;  %vm9680_vm11 = vcmp.eq.s32.totalorder %v4075_v34, %v4253_v7  ;;  %v4337_v57 = vld [vmem:[%s3904_s7 + $0x90] sm:$0xff] }
  0x8d   : > { %10533 = vst [vmem:[#allocation13_spill] sm:$0xff] %v4295_v20  ;;  %v960_v13 = vmax.f32 %v4283_v9, %v4295_v20  ;;  %v961_v3 = vmax.f32 %v4289_v18, %v4301_v11  ;;  %v327_v14 = vmax.f32 %v325_v12, %v4304_v53  ;;  %vm9682_vm12 = vcmp.eq.s32.totalorder %v4080_v38, %v4253_v7  ;;  %v10544_v36 = vld [vmem:[#allocation17_spill] sm:$0xff] }
  0x8e   : > { %10535 = vst [vmem:[#allocation14_spill] sm:$0xff] %v4301_v11  ;;  %v4346_v10 = vsel %vm9638_vm8, -inf, %v10544_v36  ;;  %v4352_v20 = vsel %vm9644_vm9, -inf, %v10546_v55  ;;  %v4355_v11 = vld [vmem:[%s3904_s7 + $0xa0] sm:$0xff]  ;;  %v328_v12 = vmax.f32 %v326_v0, %v4311_v16  ;;  %vm9684_vm13 = vcmp.eq.s32.totalorder %v4083_v40, %v4253_v7  ;;  %v4363_v36 = vld [vmem:[%s3904_s7 + $0xb0] sm:$0xff] }
  0x8f   : > { %10536 = vst [vmem:[#allocation62_spill] sm:$0xff] %v4304_v53  ;;  %v962_v53 = vmax.f32 %v960_v13, %v4319_v22  ;;  %v963_v28 = vmax.f32 %v961_v3, %v4325_v26  ;;  %v329_v18 = vmax.f32 %v327_v14, %v4328_v24  ;;  %vm9686_vm14 = vcmp.eq.s32.totalorder %v4086_v42, %v4253_v7  ;;  %v10550_v55 = vld [vmem:[#allocation19_spill] sm:$0xff] }
  0x90   : > { %10537 = vst [vmem:[#allocation63_spill] sm:$0xff] %v4311_v16  ;;  %v4372_v0 = vsel %vm9678_vm10, -inf, %v10550_v55  ;;  %v10552_v16 = vld [vmem:[#allocation20_spill] sm:$0xff]  ;;  %v4381_v3 = vld [vmem:[%s3904_s7 + $0xc0] sm:$0xff]  ;;  %v330_v14 = vmax.f32 %v328_v12, %v4337_v57  ;;  %vm9688_vm15 = vcmp.eq.s32.totalorder %v4089_v44, %v4253_v7  ;;  %v4389_v55 = vld [vmem:[%s3904_s7 + $0xd0] sm:$0xff]  ;;  %vm9690_vm0 = vcmp.eq.s32.totalorder %v4092_v46, %v4253_v7 }
  0x91   : > { %10539 = vst [vmem:[#allocation15_spill] sm:$0xff] %v4319_v22  ;;  %v4378_v13 = vsel %vm9680_vm11, -inf, %v10552_v16  ;;  %v964_v24 = vmax.f32 %v962_v53, %v4346_v10  ;;  %v965_v32 = vmax.f32 %v963_v28, %v4352_v20  ;;  %v331_v30 = vmax.f32 %v329_v18, %v4355_v11  ;;  %v4407_v28 = vld [vmem:[%s3904_s7 + $0xe0] sm:$0xff] }
  0x92   : > { %10541 = vst [vmem:[#allocation16_spill] sm:$0xff] %v4325_v26  ;;  %v4398_v16 = vsel %vm9682_vm12, -inf, %v3958_v15  ;;  %v4404_v53 = vsel %vm9684_vm13, -inf, %v3962_v17  ;;  %v332_v18 = vmax.f32 %v330_v14, %v4363_v36  ;;  %vm9696_vm1 = vcmp.eq.s32.totalorder %v4095_v48, %v4253_v7  ;;  %v4415_v15 = vld [vmem:[%s3904_s7 + $0xf0] sm:$0xff] }
  0x93   : > { %10543 = vst [vmem:[#allocation65_spill] sm:$0xff] %v4337_v57  ;;  %v966_v12 = vmax.f32 %v964_v24, %v4372_v0  ;;  %v333_v57 = vmax.f32 %v331_v30, %v4381_v3  ;;  %vm9620_vm2 = vcmp.eq.s32.totalorder %v4098_v50, %v4253_v7  ;;  %v4424_v17 = vsel %vm9686_vm14, -inf, %v3966_v19  ;;  %v4441_v19 = vld [vmem:[%s3904_s7 + $0x110] sm:$0xff] }
  0x94   : > { %10545 = vst [vmem:[#allocation17_spill] sm:$0xff] %v4346_v10  ;;  %v4430_v24 = vsel %vm9688_vm15, -inf, %v3970_v21  ;;  %v334_v30 = vmax.f32 %v332_v18, %v4389_v55  ;;  %vm9621_vm3 = vcmp.eq.s32.totalorder %v4101_v52, %v4253_v7  ;;  %vm9625_vm4 = vcmp.eq.s32.totalorder %v4104_v54, %v4253_v7 }
  0x95   : > { %10547 = vst [vmem:[#allocation18_spill] sm:$0xff] %v4352_v20  ;;  %v968_v14 = vmax.f32 %v966_v12, %v4398_v16  ;;  %v4450_v21 = vsel %vm9690_vm0, -inf, %v3974_v23  ;;  %v4456_v18 = vsel %vm9696_vm1, -inf, %v3978_v25  ;;  %vm9626_vm5 = vcmp.eq.s32.totalorder %v4107_v56, %v4253_v7  ;;  %v4467_v23 = vld [vmem:[%s3904_s7 + $0x130] sm:$0xff] }
  0x96   : > { %10548 = vst [vmem:[#allocation66_spill] sm:$0xff] %v4355_v11  ;;  %v967_v11 = vmax.f32 %v965_v32, %v4378_v13  ;;  %v4433_v32 = vld [vmem:[%s3904_s7 + $0x100] sm:$0xff]  ;;  %vm9631_vm6 = vcmp.eq.s32.totalorder %v4110_v58, %v4253_v7  ;;  %v4476_v25 = vsel %vm9620_vm2, -inf, %v3982_v27  ;;  %vm9632_vm7 = vcmp.eq.s32.totalorder %v4113_v59, %v4253_v7  ;;  %v4493_v27 = vld [vmem:[%s3904_s7 + $0x150] sm:$0xff] }
  0x97   : > { %10549 = vst [vmem:[#allocation67_spill] sm:$0xff] %v4363_v36  ;;  %v335_v36 = vmax.f32 %v333_v57, %v4407_v28  ;;  %v336_v57 = vmax.f32 %v334_v30, %v4415_v15  ;;  %v970_v12 = vmax.f32 %v968_v14, %v4424_v17  ;;  %v4482_v30 = vsel %vm9621_vm3, -inf, %v3986_v29 }
  0x98   : > { %10551 = vst [vmem:[#allocation19_spill] sm:$0xff] %v4372_v0  ;;  %vm9637_vm2 = vcmp.eq.s32.totalorder %v4124_v60, %v4253_v7  ;;  %v4502_v29 = vsel %vm9625_vm4, -inf, %v3990_v31  ;;  %vm9643_vm3 = vcmp.eq.s32.totalorder %v4127_v61, %v4253_v7  ;;  %v4519_v31 = vld [vmem:[%s3904_s7 + $0x170] sm:$0xff]  ;;  %vm9677_vm4 = vcmp.eq.s32.totalorder %v4130_v62, %v4253_v7 }
  0x99   : > { %10553 = vst [vmem:[#allocation20_spill] sm:$0xff] %v4378_v13  ;;  %v972_v14 = vmax.f32 %v970_v12, %v4450_v21  ;;  %vm9687_vm8 = vcmp.eq.s32.totalorder %v4153_v1, %v4253_v7  ;;  %vm9691_vm9 = vcmp.eq.s32.totalorder %v4163_v4, %v4253_v7 }
  0x9a   : > { %10554 = vst [vmem:[#allocation68_spill] sm:$0xff] %v4381_v3  ;;  %v969_v3 = vmax.f32 %v967_v11, %v4404_v53  ;;  %v4459_v11 = vld [vmem:[%s3904_s7 + $0x120] sm:$0xff] }
  0x9b   : > { %10555 = vst [vmem:[#allocation69_spill] sm:$0xff] %v4389_v55  ;;  %v337_v55 = vmax.f32 %v335_v36, %v4433_v32  ;;  %v338_v36 = vmax.f32 %v336_v57, %v4441_v19  ;;  %v4508_v57 = vsel %vm9626_vm5, -inf, %v3994_v33  ;;  %v974_v12 = vmax.f32 %v972_v14, %v4476_v25 }
  0x9c   : > { %10556 = vst [vmem:[#allocation70_spill] sm:$0xff] %v4398_v16  ;;  %v4528_v33 = vsel %vm9631_vm6, -inf, %v3998_v35  ;;  %vm9679_vm5 = vcmp.eq.s32.totalorder %v4133_v63, %v4253_v7  ;;  %v4545_v35 = vld [vmem:[%s3904_s7 + $0x190] sm:$0xff]  ;;  %vm9681_vm6 = vcmp.eq.s32.totalorder %v4136_v6, %v4253_v7 }
  0x9d   : > { %10557 = vst [vmem:[#allocation71_spill] sm:$0xff] %v4404_v53  ;;  %v976_v14 = vmax.f32 %v974_v12, %v4502_v29 }
  0x9e   : > { %10558 = vst [vmem:[#allocation72_spill] sm:$0xff] %v4407_v28  ;;  %v971_v28 = vmax.f32 %v969_v3, %v4430_v24  ;;  %v4485_v3 = vld [vmem:[%s3904_s7 + $0x140] sm:$0xff] }
  0x9f   : > { %10559 = vst [vmem:[#allocation73_spill] sm:$0xff] %v4415_v15  ;;  %v339_v15 = vmax.f32 %v337_v55, %v4459_v11  ;;  %v340_v55 = vmax.f32 %v338_v36, %v4467_v23  ;;  %v4534_v36 = vsel %vm9632_vm7, -inf, %v4002_v37  ;;  %v4554_v37 = vsel %vm9637_vm2, -inf, %v4006_v39 }
  0xa0   : > { %10560 = vst [vmem:[#allocation74_spill] sm:$0xff] %v4424_v17  ;;  %vm9683_vm7 = vcmp.eq.s32.totalorder %v4139_v8, %v4253_v7  ;;  %v978_v12 = vmax.f32 %v976_v14, %v4528_v33  ;;  %vm9685_vm2 = vcmp.eq.s32.totalorder %v4150_v2, %v4253_v7  ;;  %v4639_v8 = vld [vmem:[%s3904_s7 + $0x1f0] sm:$0xff] }
  0xa1   : > { %10561 = vst [vmem:[#allocation75_spill] sm:$0xff] %v4430_v24 }
  0xa2   : > { %10562 = vst [vmem:[#allocation76_spill] sm:$0xff] %v4433_v32  ;;  %v973_v32 = vmax.f32 %v971_v28, %v4456_v18  ;;  %v4511_v28 = vld [vmem:[%s3904_s7 + $0x160] sm:$0xff] }
  0xa3   : > { %10563 = vst [vmem:[#allocation77_spill] sm:$0xff] %v4441_v19  ;;  %v341_v19 = vmax.f32 %v339_v15, %v4485_v3  ;;  %v342_v15 = vmax.f32 %v340_v55, %v4493_v27  ;;  %v4560_v55 = vsel %vm9643_vm3, -inf, %v4010_v41  ;;  %v4580_v41 = vsel %vm9677_vm4, -inf, %v4014_v43  ;;  %v4597_v43 = vld [vmem:[%s3904_s7 + $0x1d0] sm:$0xff] }
  0xa4   : > { %10564 = vst [vmem:[#allocation78_spill] sm:$0xff] %v4450_v21  ;;  %vm9689_vm3 = vcmp.eq.s32.totalorder %v4160_v5, %v4253_v7 }
  0xa5   : > { %10565 = vst [vmem:[#allocation79_spill] sm:$0xff] %v4456_v18 }
  0xa6   : > { %10566 = vst [vmem:[#allocation80_spill] sm:$0xff] %v4459_v11  ;;  %v975_v11 = vmax.f32 %v973_v32, %v4482_v30  ;;  %v4537_v32 = vld [vmem:[%s3904_s7 + $0x180] sm:$0xff] }
  0xa7   : > { %10567 = vst [vmem:[#allocation81_spill] sm:$0xff] %v4467_v23  ;;  %v343_v23 = vmax.f32 %v341_v19, %v4511_v28  ;;  %v344_v19 = vmax.f32 %v342_v15, %v4519_v31  ;;  %v4586_v15 = vsel %vm9679_vm5, -inf, %v4018_v45  ;;  %v4604_v45 = vsel %vm9681_vm6, -inf, %v4022_v47 }
  0xa8   : > { %10568 = vst [vmem:[#allocation82_spill] sm:$0xff] %v4476_v25  ;;  %v4623_v47 = vsel %vm9685_vm2, -inf, %v4030_v51  ;;  %v10593_v51 = vld [vmem:[#allocation22_spill] sm:$0xff] }
  0xa9   : > { %10569 = vst [vmem:[#allocation83_spill] sm:$0xff] %v4482_v30  ;;  %v4645_v2 = vsel %vm9689_vm3, -inf, %v10593_v51 }
  0xaa   : > { %10570 = vst [vmem:[#allocation84_spill] sm:$0xff] %v4485_v3  ;;  %v977_v3 = vmax.f32 %v975_v11, %v4508_v57  ;;  %v4563_v11 = vld [vmem:[%s3904_s7 + $0x1a0] sm:$0xff] }
  0xab   : > { %10571 = vst [vmem:[#allocation85_spill] sm:$0xff] %v4493_v27  ;;  %v345_v27 = vmax.f32 %v343_v23, %v4537_v32  ;;  %v980_v23 = vmax.f32 %v978_v12, %v4554_v37 }
  0xac   : > { %10572 = vst [vmem:[#allocation86_spill] sm:$0xff] %v4502_v29  ;;  %v979_v39 = vmax.f32 %v977_v3, %v4534_v36  ;;  %v346_v3 = vmax.f32 %v344_v19, %v4545_v35  ;;  %v4610_v19 = vsel %vm9683_vm7, -inf, %v4026_v49  ;;  %v10591_v49 = vld [vmem:[#allocation21_spill] sm:$0xff] }
  0xad   : > { %10573 = vst [vmem:[#allocation87_spill] sm:$0xff] %v4508_v57 }
  0xae   : > { %10574 = vst [vmem:[#allocation88_spill] sm:$0xff] %v4511_v28  ;;  %v4571_v28 = vld [vmem:[%s3904_s7 + $0x1b0] sm:$0xff]  ;;  %v981_v14 = vmax.f32 %v979_v39, %v4560_v55 }
  0xaf   : > { %10575 = vst [vmem:[#allocation89_spill] sm:$0xff] %v4519_v31  ;;  %v347_v31 = vmax.f32 %v345_v27, %v4563_v11  ;;  %v348_v12 = vmax.f32 %v346_v3, %v4571_v28  ;;  %v982_v27 = vmax.f32 %v980_v23, %v4580_v41  ;;  %v4629_v3 = vsel %vm9687_vm8, -inf, %v10591_v49  ;;  %v10595_v49 = vld [vmem:[#allocation23_spill] sm:$0xff] }
  0xb0   : > { %10576 = vst [vmem:[#allocation90_spill] sm:$0xff] %v4528_v33  ;;  %v983_v39 = vmax.f32 %v981_v14, %v4586_v15 }
  0xb1   : > { %10577 = vst [vmem:[#allocation91_spill] sm:$0xff] %v4534_v36  ;;  %v984_v23 = vmax.f32 %v982_v27, %v4604_v45 }
  0xb2   : > { %10578 = vst [vmem:[#allocation92_spill] sm:$0xff] %v4537_v32  ;;  %v4594_v32 = vld [vmem:[%s3904_s7 + $0x1c0] sm:$0xff]  ;;  %v985_v14 = vmax.f32 %v983_v39, %v4610_v19 }
  0xb3   : > { %10579 = vst [vmem:[#allocation93_spill] sm:$0xff] %v4545_v35  ;;  %v4636_v35 = vld [vmem:[%s3904_s7 + $0x1e0] sm:$0xff] }
  0xb4   : > { %10580 = vst [vmem:[#allocation94_spill] sm:$0xff] %v4554_v37  ;;  %v987_v27 = vmax.f32 %v985_v14, %v4629_v3 }
  0xb5   : > { %10581 = vst [vmem:[#allocation95_spill] sm:$0xff] %v4560_v55 }
  0xb6   : > { %10582 = vst [vmem:[#allocation96_spill] sm:$0xff] %v4563_v11  ;;  %v350_v11 = vmax.f32 %v348_v12, %v4597_v43  ;;  %v986_v12 = vmax.f32 %v984_v23, %v4623_v47 }
  0xb7   : > { %10583 = vst [vmem:[#allocation97_spill] sm:$0xff] %v4571_v28  ;;  %v349_v28 = vmax.f32 %v347_v31, %v4594_v32  ;;  %v4651_v31 = vsel %vm9691_vm9, -inf, %v10595_v49 }
  0xb8   : > { %10584 = vst [vmem:[#allocation98_spill] sm:$0xff] %v4580_v41  ;;  %v989_v5 = vmax.f32 %v987_v27, %v4651_v31 }
  0xb9   : > { %10585 = vst [vmem:[#allocation99_spill] sm:$0xff] %v4586_v15  ;;  %v351_v39 = vmax.f32 %v349_v28, %v4636_v35 }
  0xba   : > { %10586 = vst [vmem:[#allocation100_spill] sm:$0xff] %v4594_v32  ;;  %v988_v32 = vmax.f32 %v986_v12, %v4645_v2  ;;  %v10604_v12 = vld [vmem:[#allocation28_spill] sm:$0xff] }
  0xbb   : > { %10587 = vst [vmem:[#allocation101_spill] sm:$0xff] %v4597_v43  ;;  %v352_v43 = vmax.f32 %v350_v11, %v4639_v8  ;;  %v10597_v11 = vld [vmem:[#allocation12_spill] sm:$0xff] }
  0xbc   : > { %10588 = vst [vmem:[#allocation102_spill] sm:$0xff] %v4604_v45  ;;  %v990_v51 = vmax.f32 %v988_v32, %v989_v5  ;;  %v10598_v5 = vld [vmem:[#allocation13_spill] sm:$0xff] }
  0xbd   : > { %10589 = vst [vmem:[#allocation103_spill] sm:$0xff] %v4610_v19  ;;  %v353_v1 = vmax.f32 %v351_v39, %v352_v43  ;;  %v10605_v39 = vld [vmem:[#allocation29_spill] sm:$0xff] }
  0xbe   : > { %10590 = vst [vmem:[#allocation104_spill] sm:$0xff] %v4623_v47  ;;  %v991_v6 = vrot.slane %v990_v51, 4 }
  0xbf   : > { %10592 = vst [vmem:[#allocation21_spill] sm:$0xff] %v4629_v3  ;;  %v354_v62 = vrot.slane %v353_v1, 4 }
  0xc0   : > { %10594 = vst [vmem:[#allocation22_spill] sm:$0xff] %v4645_v2  ;;  %v992_v63 = vmax.f32 %v990_v51, %v991_v6  ;;  %v10599_v6 = vld [vmem:[#allocation14_spill] sm:$0xff] }
  0xc1   : > { %10596 = vst [vmem:[#allocation23_spill] sm:$0xff] %v4651_v31  ;;  %v355_v49 = vmax.f32 %v353_v1, %v354_v62  ;;  %v10601_v62 = vld [vmem:[#allocation25_spill] sm:$0xff] }
  0xc2   : > { %v993_v7 = vrot.slane %v992_v63, 2 }
  0xc3   : > { %v356_v61 = vrot.slane %v355_v49, 2 }
  0xc4   : > { %v994_v4 = vmax.f32 %v992_v63, %v993_v7  ;;  %v10602_v7 = vld [vmem:[#allocation26_spill] sm:$0xff] }
  0xc5   : > { %v357_v60 = vmax.f32 %v355_v49, %v356_v61  ;;  %v10606_v49 = vld [vmem:[#allocation30_spill] sm:$0xff] }
  0xc6   : > { %v995_v23 = vrot.slane %v994_v4, 1 }
  0xc7   : > { %v358_v28 = vrot.slane %v357_v60, 1 }
  0xc8   : > { %v4659_v14 = vmax.f32 %v994_v4, %v995_v23  ;;  %v10600_v4 = vld [vmem:[#allocation24_spill] sm:$0xff] }
  0xc9   : > { %v4671_v1 = vmax.f32 %v357_v60, %v358_v28  ;;  %v10603_v60 = vld [vmem:[#allocation27_spill] sm:$0xff] }
  0xca   : > { %vm998_vm4 = vcmp.eq.f32.partialorder %v4283_v9, %v4659_v14  ;;  %vm1000_vm10 = vcmp.eq.f32.partialorder %v10597_v11, %v4659_v14  ;;  %vm1002_vm5 = vcmp.eq.f32.partialorder %v10598_v5, %v4659_v14  ;;  %vm1004_vm11 = vcmp.eq.f32.partialorder %v10599_v6, %v4659_v14  ;;  %v10607_v28 = vld [vmem:[#allocation31_spill] sm:$0xff]  ;;  %v10608_v5 = vld [vmem:[#allocation32_spill] sm:$0xff] }
  0xcb   : > { %vm1006_vm6 = vcmp.eq.f32.partialorder %v4319_v22, %v4659_v14  ;;  %vm1008_vm12 = vcmp.eq.f32.partialorder %v4325_v26, %v4659_v14  ;;  %vm1010_vm7 = vcmp.eq.f32.partialorder %v4346_v10, %v4659_v14  ;;  %vm1012_vm13 = vcmp.eq.f32.partialorder %v4352_v20, %v4659_v14  ;;  %v10628_v9 = vld [vmem:[#allocation51_spill] sm:$0xff] }
  0xcc   : > { %vm1014_vm2 = vcmp.eq.f32.partialorder %v4372_v0, %v4659_v14  ;;  %v1062_v61 = vsel %vm998_vm4, %v10600_v4, 256  ;;  %v1064_v63 = vsel %vm1000_vm10, %v10601_v62, 256  ;;  %v1066_v32 = vsel %vm1002_vm5, %v10602_v7, 256  ;;  %v10625_v0 = vld [vmem:[#allocation49_spill] sm:$0xff] }
  0xcd   : > { %v1068_v43 = vsel %vm1004_vm11, %v10603_v60, 256  ;;  %vm1016_vm14 = vcmp.eq.f32.partialorder %v4378_v13, %v4659_v14  ;;  %vm1018_vm8 = vcmp.eq.f32.partialorder %v4398_v16, %v4659_v14  ;;  %vm1020_vm15 = vcmp.eq.f32.partialorder %v4404_v53, %v4659_v14  ;;  %v10619_v53 = vld [vmem:[#allocation45_spill] sm:$0xff]  ;;  %v10623_v13 = vld [vmem:[#allocation48_spill] sm:$0xff] }
  0xce   : > { %vm1022_vm3 = vcmp.eq.f32.partialorder %v4424_v17, %v4659_v14  ;;  %vm1024_vm4 = vcmp.eq.f32.partialorder %v4430_v24, %v4659_v14  ;;  %vm1026_vm5 = vcmp.eq.f32.partialorder %v4450_v21, %v4659_v14  ;;  %v1070_v27 = vsel %vm1006_vm6, %v10604_v12, 256  ;;  %v10614_v21 = vld [vmem:[#allocation60_spill] sm:$0xff]  ;;  %v10615_v24 = vld [vmem:[#allocation61_spill] sm:$0xff] }
  0xcf   : > { %v1072_v51 = vsel %vm1008_vm12, %v10605_v39, 256  ;;  %vm1028_vm10 = vcmp.eq.f32.partialorder %v4456_v18, %v4659_v14  ;;  %vm1196_vm0 = vcmp.lt.s32.totalorder %v1062_v61, %v1066_v32  ;;  %vm1198_vm9 = vcmp.lt.s32.totalorder %v1064_v63, %v1068_v43  ;;  %v10618_v17 = vld [vmem:[#allocation64_spill] sm:$0xff]  ;;  %v10631_v18 = vld [vmem:[#allocation53_spill] sm:$0xff] }
  0xd0   : > { %v1074_v23 = vsel %vm1010_vm7, %v10606_v49, 256  ;;  %v1076_v26 = vsel %vm1012_vm13, %v10607_v28, 256  ;;  %v1197_v22 = vsel %vm1196_vm0, %v1062_v61, %v1066_v32  ;;  %v1199_v6 = vsel %vm1198_vm9, %v1064_v63, %v1068_v43 }
  0xd1   : > { %vm1032_vm6 = vcmp.eq.f32.partialorder %v4482_v30, %v4659_v14  ;;  %vm1034_vm12 = vcmp.eq.f32.partialorder %v4502_v29, %v4659_v14  ;;  %vm1200_vm1 = vcmp.lt.s32.totalorder %v1197_v22, %v1070_v27  ;;  %vm1202_vm11 = vcmp.lt.s32.totalorder %v1199_v6, %v1072_v51  ;;  %v10616_v29 = vld [vmem:[#allocation62_spill] sm:$0xff] }
  0xd2   : > { %v1078_v10 = vsel %vm1014_vm2, %v10608_v5, 256  ;;  %v1080_v20 = vsel %vm1016_vm14, %v4075_v34, 256  ;;  %v1201_v61 = vsel %vm1200_vm1, %v1197_v22, %v1070_v27  ;;  %v1203_v63 = vsel %vm1202_vm11, %v1199_v6, %v1072_v51 }
  0xd3   : > { %vm1036_vm7 = vcmp.eq.f32.partialorder %v4508_v57, %v4659_v14  ;;  %vm1038_vm9 = vcmp.eq.f32.partialorder %v4528_v33, %v4659_v14  ;;  %vm1204_vm13 = vcmp.lt.s32.totalorder %v1201_v61, %v1074_v23  ;;  %vm1206_vm0 = vcmp.lt.s32.totalorder %v1203_v63, %v1076_v26  ;;  %v10620_v33 = vld [vmem:[#allocation46_spill] sm:$0xff] }
  0xd4   : > { %v1082_v32 = vsel %vm1018_vm8, %v4080_v38, 256  ;;  %v1084_v43 = vsel %vm1020_vm15, %v4083_v40, 256  ;;  %v1205_v22 = vsel %vm1204_vm13, %v1201_v61, %v1074_v23  ;;  %v1207_v6 = vsel %vm1206_vm0, %v1203_v63, %v1076_v26 }
  0xd5   : > { %vm1040_vm2 = vcmp.eq.f32.partialorder %v4534_v36, %v4659_v14  ;;  %vm1042_vm14 = vcmp.eq.f32.partialorder %v4554_v37, %v4659_v14  ;;  %vm1208_vm1 = vcmp.lt.s32.totalorder %v1205_v22, %v1078_v10  ;;  %vm1210_vm11 = vcmp.lt.s32.totalorder %v1207_v6, %v1080_v20 }
  0xd6   : > { %v1086_v27 = vsel %vm1022_vm3, %v4086_v42, 256  ;;  %v1088_v51 = vsel %vm1024_vm4, %v4089_v44, 256  ;;  %v1209_v23 = vsel %vm1208_vm1, %v1205_v22, %v1078_v10  ;;  %v1211_v26 = vsel %vm1210_vm11, %v1207_v6, %v1080_v20 }
  0xd7   : > { %vm1044_vm8 = vcmp.eq.f32.partialorder %v4560_v55, %v4659_v14  ;;  %vm1212_vm13 = vcmp.lt.s32.totalorder %v1209_v23, %v1082_v32  ;;  %vm1214_vm0 = vcmp.lt.s32.totalorder %v1211_v26, %v1084_v43  ;;  %v1090_v61 = vsel %vm1026_vm5, %v4092_v46, 256  ;;  %v10627_v55 = vld [vmem:[#allocation50_spill] sm:$0xff] }
  0xd8   : > { %v1092_v63 = vsel %vm1028_vm10, %v4095_v48, 256  ;;  %v1213_v10 = vsel %vm1212_vm13, %v1209_v23, %v1082_v32  ;;  %v1215_v20 = vsel %vm1214_vm0, %v1211_v26, %v1084_v43  ;;  %vm10609_vm15 = vcmp.eq.f32.partialorder %v4476_v25, %v4659_v14  ;;  %v10610_v23 = vld [vmem:[#allocation55_spill] sm:$0xff]  ;;  %v10611_v26 = vld [vmem:[#allocation56_spill] sm:$0xff]  ;;  %v10612_v25 = vld [vmem:[#allocation57_spill] sm:$0xff] }
  0xd9   : > { %vm1216_vm1 = vcmp.lt.s32.totalorder %v1213_v10, %v1086_v27  ;;  %vm1218_vm11 = vcmp.lt.s32.totalorder %v1215_v20, %v1088_v51  ;;  %v1094_v22 = vsel %vm10609_vm15, %v4098_v50, 256  ;;  %v1096_v6 = vsel %vm1032_vm6, %v4101_v52, 256 }
  0xda   : > { %v1217_v32 = vsel %vm1216_vm1, %v1213_v10, %v1086_v27  ;;  %v1219_v43 = vsel %vm1218_vm11, %v1215_v20, %v1088_v51  ;;  %vm1052_vm13 = vcmp.eq.f32.partialorder %v4610_v19, %v4659_v14  ;;  %vm1054_vm0 = vcmp.eq.f32.partialorder %v4623_v47, %v4659_v14  ;;  %v10613_v27 = vld [vmem:[#allocation58_spill] sm:$0xff] }
  0xdb   : > { %vm1220_vm15 = vcmp.lt.s32.totalorder %v1217_v32, %v1090_v61  ;;  %vm1222_vm4 = vcmp.lt.s32.totalorder %v1219_v43, %v1092_v63  ;;  %v1098_v51 = vsel %vm1034_vm12, %v4104_v54, 256  ;;  %v1100_v10 = vsel %vm1036_vm7, %v4107_v56, 256  ;;  %v10632_v47 = vld [vmem:[#allocation66_spill] sm:$0xff] }
  0xdc   : > { %v1221_v20 = vsel %vm1220_vm15, %v1217_v32, %v1090_v61  ;;  %v1223_v30 = vsel %vm1222_vm4, %v1219_v43, %v1092_v63  ;;  %vm405_vm1 = vcmp.eq.f32.partialorder %v10614_v21, %v4671_v1  ;;  %vm407_vm11 = vcmp.eq.f32.partialorder %v10615_v24, %v4671_v1  ;;  %v10617_v61 = vld [vmem:[#allocation63_spill] sm:$0xff] }
  0xdd   : > { %vm1056_vm6 = vcmp.eq.f32.partialorder %v4629_v3, %v4659_v14  ;;  %vm1058_vm3 = vcmp.eq.f32.partialorder %v4645_v2, %v4659_v14  ;;  %vm1224_vm12 = vcmp.lt.s32.totalorder %v1221_v20, %v1094_v22  ;;  %vm1226_vm10 = vcmp.lt.s32.totalorder %v1223_v30, %v1096_v6  ;;  %v10634_v3 = vld [vmem:[#allocation67_spill] sm:$0xff]  ;;  %v10635_v2 = vld [vmem:[#allocation68_spill] sm:$0xff] }
  0xde   : > { %vm409_vm5 = vcmp.eq.f32.partialorder %v10616_v29, %v4671_v1  ;;  %v1102_v63 = vsel %vm1038_vm9, %v4110_v58, 256  ;;  %v1104_v32 = vsel %vm1040_vm2, %v4113_v59, 256  ;;  %v1225_v43 = vsel %vm1224_vm12, %v1221_v20, %v1094_v22  ;;  %v10621_v22 = vld [vmem:[#allocation47_spill] sm:$0xff] }
  0xdf   : > { %v1227_v57 = vsel %vm1226_vm10, %v1223_v30, %v1096_v6  ;;  %vm1060_vm15 = vcmp.eq.f32.partialorder %v4651_v31, %v4659_v14  ;;  %v1106_v16 = vsel %vm1042_vm14, %v10619_v53, 256  ;;  %vm1228_vm7 = vcmp.lt.s32.totalorder %v1225_v43, %v1098_v51 }
  0xe0   : > { %vm1230_vm9 = vcmp.lt.s32.totalorder %v1227_v57, %v1100_v10  ;;  %v1108_v36 = vsel %vm1044_vm8, %v10620_v33, 256  ;;  %vm10622_vm2 = vcmp.eq.f32.partialorder %v4580_v41, %v4659_v14  ;;  %v1229_v6 = vsel %vm1228_vm7, %v1225_v43, %v1098_v51  ;;  %v10629_v43 = vld [vmem:[#allocation65_spill] sm:$0xff] }
  0xe1   : > { %v1110_v30 = vsel %vm10622_vm2, %v10621_v22, 256  ;;  %v1231_v20 = vsel %vm1230_vm9, %v1227_v57, %v1100_v10  ;;  %vm10624_vm10 = vcmp.eq.f32.partialorder %v4586_v15, %v4659_v14  ;;  %vm10626_vm14 = vcmp.eq.f32.partialorder %v4604_v45, %v4659_v14  ;;  %v10630_v15 = vld [vmem:[#allocation52_spill] sm:$0xff] }
  0xe2   : > { %v1112_v37 = vsel %vm10624_vm10, %v10623_v13, 256  ;;  %v1114_v11 = vsel %vm10626_vm14, %v10625_v0, 256  ;;  %vm1232_vm12 = vcmp.lt.s32.totalorder %v1229_v6, %v1102_v63  ;;  %vm1234_vm4 = vcmp.lt.s32.totalorder %v1231_v20, %v1104_v32 }
  0xe3   : > { %v1116_v41 = vsel %vm1052_vm13, %v10627_v55, 256  ;;  %v1118_v57 = vsel %vm1054_vm0, %v10628_v9, 256  ;;  %v1233_v51 = vsel %vm1232_vm12, %v1229_v6, %v1102_v63  ;;  %v1235_v10 = vsel %vm1234_vm4, %v1231_v20, %v1104_v32  ;;  %v10633_v63 = vld [vmem:[#allocation54_spill] sm:$0xff] }
  0xe4   : > { %vm415_vm8 = vcmp.eq.f32.partialorder %v10629_v43, %v4671_v1  ;;  %v1120_v45 = vsel %vm1056_vm6, %v10630_v15, 256  ;;  %v1122_v19 = vsel %vm1058_vm3, %v10631_v18, 256  ;;  %vm1236_vm13 = vcmp.lt.s32.totalorder %v1233_v51, %v1106_v16  ;;  %v10643_v43 = vld [vmem:[#allocation72_spill] sm:$0xff] }
  0xe5   : > { %vm1238_vm7 = vcmp.lt.s32.totalorder %v1235_v10, %v1108_v36  ;;  %vm417_vm0 = vcmp.eq.f32.partialorder %v10632_v47, %v4671_v1  ;;  %v1124_v32 = vsel %vm1060_vm15, %v10633_v63, 256  ;;  %v1237_v6 = vsel %vm1236_vm13, %v1233_v51, %v1106_v16  ;;  %v10638_v51 = vld [vmem:[#allocation69_spill] sm:$0xff] }
  0xe6   : > { %v1239_v20 = vsel %vm1238_vm7, %v1235_v10, %v1108_v36  ;;  %vm419_vm6 = vcmp.eq.f32.partialorder %v10634_v3, %v4671_v1  ;;  %vm1240_vm4 = vcmp.lt.s32.totalorder %v1237_v6, %v1110_v30  ;;  %vm421_vm3 = vcmp.eq.f32.partialorder %v10635_v2, %v4671_v1 }
  0xe7   : > { %vm1242_vm9 = vcmp.lt.s32.totalorder %v1239_v20, %v1112_v37  ;;  %vm10636_vm2 = vcmp.eq.f32.partialorder %v10610_v23, %v4671_v1  ;;  %vm10637_vm10 = vcmp.eq.f32.partialorder %v10611_v26, %v4671_v1  ;;  %v1241_v16 = vsel %vm1240_vm4, %v1237_v6, %v1110_v30 }
  0xe8   : > { %v461_v18 = vsel %vm10636_vm2, %v10600_v4, 256  ;;  %v463_v14 = vsel %vm10637_vm10, %v10601_v62, 256  ;;  %v1243_v36 = vsel %vm1242_vm9, %v1239_v20, %v1112_v37  ;;  %vm423_vm15 = vcmp.eq.f32.partialorder %v10638_v51, %v4671_v1  ;;  %v10645_v51 = vld [vmem:[#allocation76_spill] sm:$0xff] }
  0xe9   : > { %vm10639_vm14 = vcmp.eq.f32.partialorder %v10612_v25, %v4671_v1  ;;  %vm10640_vm12 = vcmp.eq.f32.partialorder %v10613_v27, %v4671_v1  ;;  %vm1244_vm13 = vcmp.lt.s32.totalorder %v1241_v16, %v1114_v11  ;;  %vm1246_vm7 = vcmp.lt.s32.totalorder %v1243_v36, %v1116_v41 }
  0xea   : > { %v465_v10 = vsel %vm10639_vm14, %v10602_v7, 256  ;;  %v467_v23 = vsel %vm10640_vm12, %v10603_v60, 256  ;;  %v469_v37 = vsel %vm405_vm1, %v10604_v12, 256  ;;  %v471_v26 = vsel %vm407_vm11, %v10605_v39, 256 }
  0xeb   : > { %v1245_v30 = vsel %vm1244_vm13, %v1241_v16, %v1114_v11  ;;  %v1247_v25 = vsel %vm1246_vm7, %v1243_v36, %v1116_v41  ;;  %v473_v27 = vsel %vm409_vm5, %v10606_v49, 256  ;;  %vm10641_vm4 = vcmp.eq.f32.partialorder %v10617_v61, %v4671_v1 }
  0xec   : > { %v475_v6 = vsel %vm10641_vm4, %v10607_v28, 256  ;;  %vm1248_vm9 = vcmp.lt.s32.totalorder %v1245_v30, %v1118_v57  ;;  %vm1250_vm2 = vcmp.lt.s32.totalorder %v1247_v25, %v1120_v45  ;;  %vm10642_vm1 = vcmp.eq.f32.partialorder %v10618_v17, %v4671_v1 }
  0xed   : > { %v477_v24 = vsel %vm10642_vm1, %v10608_v5, 256  ;;  %vm525_vm11 = vcmp.lt.s32.totalorder %v461_v18, %v465_v10  ;;  %v1249_v21 = vsel %vm1248_vm9, %v1245_v30, %v1118_v57  ;;  %v1251_v41 = vsel %vm1250_vm2, %v1247_v25, %v1120_v45 }
  0xee   : > { %v526_v11 = vsel %vm525_vm11, %v461_v18, %v465_v10  ;;  %vm527_vm10 = vcmp.lt.s32.totalorder %v463_v14, %v467_v23  ;;  %vm1252_vm14 = vcmp.lt.s32.totalorder %v1249_v21, %v1122_v19  ;;  %vm1254_vm12 = vcmp.lt.s32.totalorder %v1251_v41, %v1124_v32 }
  0xef   : > { %v528_v29 = vsel %vm527_vm10, %v463_v14, %v467_v23  ;;  %vm529_vm5 = vcmp.lt.s32.totalorder %v526_v11, %v469_v37  ;;  %v1253_v20 = vsel %vm1252_vm14, %v1249_v21, %v1122_v19  ;;  %v1255_v16 = vsel %vm1254_vm12, %v1251_v41, %v1124_v32 }
  0xf0   : > { %v530_v61 = vsel %vm529_vm5, %v526_v11, %v469_v37  ;;  %vm531_vm13 = vcmp.lt.s32.totalorder %v528_v29, %v471_v26  ;;  %vm1256_vm7 = vcmp.lt.s32.totalorder %v1253_v20, %v1255_v16  ;;  %v479_v17 = vsel %vm415_vm8, %v4075_v34, 256  ;;  %v10646_v11 = vld [vmem:[#allocation77_spill] sm:$0xff] }
  0xf1   : > { %v532_v36 = vsel %vm531_vm13, %v528_v29, %v471_v26  ;;  %vm533_vm4 = vcmp.lt.s32.totalorder %v530_v61, %v473_v27  ;;  %v1257_v57 = vsel %vm1256_vm7, %v1253_v20, %v1255_v16  ;;  %v481_v18 = vsel %vm417_vm0, %v4080_v38, 256 }
  0xf2   : > { %v534_v45 = vsel %vm533_vm4, %v530_v61, %v473_v27  ;;  %vm535_vm9 = vcmp.lt.s32.totalorder %v532_v36, %v475_v6  ;;  %v1258_v19 = vrot.slane %v1257_v57, 4  ;;  %v483_v32 = vsel %vm419_vm6, %v4083_v40, 256  ;;  %v10644_v27 = vld [vmem:[#allocation73_spill] sm:$0xff]  ;;  %v3558_v61 = vld [vmem:[%s3904_s7 + $0xf8] sm:$0xff] }
  0xf3   : > { %v536_v14 = vsel %vm535_vm9, %v532_v36, %v475_v6  ;;  %vm537_vm2 = vcmp.lt.s32.totalorder %v534_v45, %v477_v24  ;;  %vm425_vm8 = vcmp.eq.f32.partialorder %v10643_v43, %v4671_v1  ;;  %v485_v10 = vsel %vm421_vm3, %v4086_v42, 256  ;;  %v10655_v43 = vld [vmem:[#allocation92_spill] sm:$0xff] }
  0xf4   : > { %v538_v47 = vsel %vm537_vm2, %v534_v45, %v477_v24  ;;  %vm539_vm0 = vcmp.lt.s32.totalorder %v536_v14, %v479_v17  ;;  %vm1259_vm1 = vcmp.lt.s32.totalorder %v1257_v57, %v1258_v19  ;;  %v487_v23 = vsel %vm423_vm15, %v4089_v44, 256  ;;  %v10651_v45 = vld [vmem:[#allocation84_spill] sm:$0xff] }
  0xf5   : > { %v540_v3 = vsel %vm539_vm0, %v536_v14, %v479_v17  ;;  %vm541_vm6 = vcmp.lt.s32.totalorder %v538_v47, %v481_v18  ;;  %v1260_v37 = vsel %vm1259_vm1, %v1257_v57, %v1258_v19  ;;  %vm427_vm3 = vcmp.eq.f32.partialorder %v10644_v27, %v4671_v1  ;;  %v10647_v17 = vld [vmem:[#allocation59_spill] sm:$0xff]  ;;  %v10649_v57 = vld [vmem:[#allocation80_spill] sm:$0xff]  ;;  %v10652_v19 = vld [vmem:[#allocation85_spill] sm:$0xff] }
  0xf6   : > { %v542_v26 = vsel %vm541_vm6, %v538_v47, %v481_v18  ;;  %vm543_vm11 = vcmp.lt.s32.totalorder %v540_v3, %v483_v32  ;;  %v1261_v30 = vrot.slane %v1260_v37, 2  ;;  %v489_v2 = vsel %vm425_vm8, %v4092_v46, 256  ;;  %v10650_v18 = vld [vmem:[#allocation81_spill] sm:$0xff] }
  0xf7   : > { %v544_v25 = vsel %vm543_vm11, %v540_v3, %v483_v32  ;;  %vm545_vm10 = vcmp.lt.s32.totalorder %v542_v26, %v485_v10  ;;  %vm429_vm15 = vcmp.eq.f32.partialorder %v10645_v51, %v4671_v1  ;;  %v491_v21 = vsel %vm427_vm3, %v4095_v48, 256  ;;  %v10653_v32 = vld [vmem:[#allocation88_spill] sm:$0xff]  ;;  %v10654_v14 = vld [vmem:[#allocation89_spill] sm:$0xff] }
  0xf8   : > { %v546_v6 = vsel %vm545_vm10, %v542_v26, %v485_v10  ;;  %vm547_vm14 = vcmp.lt.s32.totalorder %v544_v25, %v487_v23  ;;  %vm1262_vm12 = vcmp.lt.s32.totalorder %v1260_v37, %v1261_v30  ;;  %vm431_vm13 = vcmp.eq.f32.partialorder %v10646_v11, %v4671_v1  ;;  %v10656_v10 = vld [vmem:[#allocation93_spill] sm:$0xff]  ;;  %v10657_v3 = vld [vmem:[#allocation96_spill] sm:$0xff] }
  0xf9   : > { %v1263_v24 = vsel %vm1262_vm12, %v1260_v37, %v1261_v30  ;;  %v548_v41 = vsel %vm547_vm14, %v544_v25, %v487_v23  ;;  %vm549_vm5 = vcmp.lt.s32.totalorder %v546_v6, %v489_v2  ;;  %v493_v20 = vsel %vm429_vm15, %v4098_v50, 256  ;;  %v10658_v37 = vld [vmem:[#allocation97_spill] sm:$0xff]  ;;  %v10659_v26 = vld [vmem:[#allocation100_spill] sm:$0xff] }
  0xfa   : > { %v1264_v29 = vrot.slane %v1263_v24, 1  ;;  %v550_v16 = vsel %vm549_vm5, %v546_v6, %v489_v2  ;;  %vm551_vm7 = vcmp.lt.s32.totalorder %v548_v41, %v491_v21  ;;  %vm10648_vm4 = vcmp.eq.s32.totalorder %v4095_v48, %v10647_v17  ;;  %v10660_v30 = vld [vmem:[#allocation101_spill] sm:$0xff] }
  0xfb   : > { %v762_v36 = vsel %vm10648_vm4, %v3558_v61, 0.0  ;;  %vm433_vm9 = vcmp.eq.f32.partialorder %v10649_v57, %v4671_v1  ;;  %vm435_vm2 = vcmp.eq.f32.partialorder %v10650_v18, %v4671_v1  ;;  %vm437_vm8 = vcmp.eq.f32.partialorder %v10651_v45, %v4671_v1 }
  0xfc   : > { %vm439_vm0 = vcmp.eq.f32.partialorder %v10652_v19, %v4671_v1  ;;  %vm441_vm1 = vcmp.eq.f32.partialorder %v10653_v32, %v4671_v1  ;;  %vm443_vm6 = vcmp.eq.f32.partialorder %v10654_v14, %v4671_v1  ;;  %vm445_vm11 = vcmp.eq.f32.partialorder %v10655_v43, %v4671_v1  ;;  %v10665_v32 = vld [vmem:[#allocation53_spill] sm:$0xff] }
  0xfd   : > { %v495_v47 = vsel %vm431_vm13, %v4101_v52, 256  ;;  %v552_v23 = vsel %vm551_vm7, %v548_v41, %v491_v21  ;;  %vm553_vm3 = vcmp.lt.s32.totalorder %v550_v16, %v493_v20  ;;  %vm1265_vm14 = vcmp.lt.s32.totalorder %v1263_v24, %v1264_v29 }
  0xfe   : > { %vm449_vm12 = vcmp.eq.f32.partialorder %v10657_v3, %v4671_v1  ;;  %vm451_vm15 = vcmp.eq.f32.partialorder %v10658_v37, %v4671_v1  ;;  %vm453_vm5 = vcmp.eq.f32.partialorder %v10659_v26, %v4671_v1  ;;  %vm455_vm4 = vcmp.eq.f32.partialorder %v10660_v30, %v4671_v1  ;;  %v10670_v26 = vld [vmem:[#allocation13_spill] sm:$0xff] }
  0xff   : > { %vm457_vm10 = vcmp.eq.f32.partialorder %v4636_v35, %v4671_v1  ;;  %vm459_vm13 = vcmp.eq.f32.partialorder %v4639_v8, %v4671_v1  ;;  %v497_v25 = vsel %vm433_vm9, %v4104_v54, 256  ;;  %v499_v27 = vsel %vm435_vm2, %v4107_v56, 256 }
 0x100   : > { %v501_v2 = vsel %vm437_vm8, %v4110_v58, 256  ;;  %v554_v6 = vsel %vm553_vm3, %v550_v16, %v493_v20  ;;  %vm555_vm7 = vcmp.lt.s32.totalorder %v552_v23, %v495_v47  ;;  %v4980_v51 = vsel %vm1265_vm14, %v1263_v24, %v1264_v29  ;;  %v10663_v16 = vld [vmem:[#allocation79_spill] sm:$0xff] }
 0x101   : > { %10661 = vst [vmem:[#allocation55_spill] sm:$0xff] %v4980_v51  ;;  %v503_v21 = vsel %vm439_vm0, %v4113_v59, 256  ;;  %v505_v41 = vsel %vm441_vm1, %v10619_v53, 256  ;;  %v4994_v11 = vsel %vm443_vm6, %v10620_v33, 256  ;;  %vm1298_vm9 = vcmp.eq.s32.totalorder %v4095_v48, %v4980_v51 }
 0x102   : > { %v5002_v24 = vsel %vm445_vm11, %v10621_v22, 256  ;;  %vm10662_vm2 = vcmp.eq.f32.partialorder %v10656_v10, %v4671_v1  ;;  %v5014_v20 = vsel %vm449_vm12, %v10625_v0, 256  ;;  %v1362_v61 = vsel %vm1298_vm9, %v10663_v16, 0.0  ;;  %v10668_v1 = vld [vmem:[#allocation12_spill] sm:$0xff] }
 0x103   : > { %v5008_v29 = vsel %vm10662_vm2, %v10623_v13, 256  ;;  %v5024_v14 = vsel %vm451_vm15, %v10627_v55, 256  ;;  %v556_v43 = vsel %vm555_vm7, %v552_v23, %v495_v47  ;;  %vm557_vm8 = vcmp.lt.s32.totalorder %v554_v6, %v497_v25  ;;  %v10666_v23 = vld [vmem:[#allocation11_spill] sm:$0xff] }
 0x104   : > { %v5026_v10 = vadd.f32 %v1362_v61, %v762_v36  ;;  %v5032_v3 = vsel %vm453_vm5, %v10628_v9, 256  ;;  %v5038_v17 = vsel %vm455_vm4, %v10630_v15, 256  ;;  %v5044_v47 = vsel %vm457_vm10, %v10665_v32, 256  ;;  %v10674_v61 = vld [vmem:[#allocation15_spill] sm:$0xff] }
 0x105   : > { %vm9750_vm0 = vcmp.eq.s32.totalorder %v10600_v4, %v4980_v51  ;;  %vm9751_vm1 = vcmp.eq.s32.totalorder %v10601_v62, %v4980_v51  ;;  %vm9752_vm6 = vcmp.eq.s32.totalorder %v10602_v7, %v4980_v51  ;;  %vm9756_vm11 = vcmp.eq.s32.totalorder %v10603_v60, %v4980_v51 }
 0x106   : > { %10664 = vst [vmem:[#allocation56_spill] sm:$0xff] %v5026_v10  ;;  %vm9757_vm3 = vcmp.eq.s32.totalorder %v10604_v12, %v4980_v51  ;;  %v5060_v35 = vsel %vm459_vm13, %v10633_v63, 256  ;;  %v558_v36 = vsel %vm557_vm8, %v554_v6, %v497_v25  ;;  %vm559_vm10 = vcmp.lt.s32.totalorder %v556_v43, %v499_v27  ;;  %v10672_v25 = vld [vmem:[#allocation14_spill] sm:$0xff] }
 0x107   : > { %vm9758_vm14 = vcmp.eq.s32.totalorder %v10605_v39, %v4980_v51  ;;  %vm9763_vm12 = vcmp.eq.s32.totalorder %v10606_v49, %v4980_v51  ;;  %vm9768_vm15 = vcmp.eq.s32.totalorder %v10607_v28, %v4980_v51  ;;  %vm9769_vm5 = vcmp.eq.s32.totalorder %v10608_v5, %v4980_v51 }
 0x108   : > { %v5074_v8 = vsel %vm9750_vm0, -inf, %v10666_v23  ;;  %v5080_v37 = vsel %vm9751_vm1, -inf, %v10668_v1  ;;  %v5086_v30 = vsel %vm9752_vm6, -inf, %v10670_v26  ;;  %v5092_v6 = vsel %vm9756_vm11, -inf, %v10672_v25  ;;  %v10676_v1 = vld [vmem:[#allocation16_spill] sm:$0xff] }
 0x109   : > { %10667 = vst [vmem:[#allocation57_spill] sm:$0xff] %v5074_v8  ;;  %vm9802_vm4 = vcmp.eq.s32.totalorder %v4075_v34, %v4980_v51  ;;  %vm9804_vm13 = vcmp.eq.s32.totalorder %v4080_v38, %v4980_v51  ;;  %vm9806_vm7 = vcmp.eq.s32.totalorder %v4083_v40, %v4980_v51  ;;  %vm9808_vm2 = vcmp.eq.s32.totalorder %v4086_v42, %v4980_v51 }
 0x10a   : > { %10669 = vst [vmem:[#allocation58_spill] sm:$0xff] %v5080_v37  ;;  %vm9810_vm8 = vcmp.eq.s32.totalorder %v4089_v44, %v4980_v51  ;;  %vm9812_vm0 = vcmp.eq.s32.totalorder %v4092_v46, %v4980_v51  ;;  %v5110_v23 = vsel %vm9757_vm3, -inf, %v10674_v61  ;;  %v5116_v26 = vsel %vm9758_vm14, -inf, %v10676_v1  ;;  %v10678_v61 = vld [vmem:[#allocation17_spill] sm:$0xff]  ;;  %v10680_v1 = vld [vmem:[#allocation18_spill] sm:$0xff] }
 0x10b   : > { %10671 = vst [vmem:[#allocation60_spill] sm:$0xff] %v5086_v30  ;;  %vm9770_vm1 = vcmp.eq.s32.totalorder %v4098_v50, %v4980_v51  ;;  %vm9771_vm6 = vcmp.eq.s32.totalorder %v4101_v52, %v4980_v51  ;;  %v1560_v25 = vmax.f32 %v5074_v8, %v5086_v30  ;;  %v1561_v10 = vmax.f32 %v5080_v37, %v5092_v6  ;;  %v10682_v37 = vld [vmem:[#allocation19_spill] sm:$0xff] }
 0x10c   : > { %10673 = vst [vmem:[#allocation61_spill] sm:$0xff] %v5092_v6  ;;  %v5130_v19 = vsel %vm9763_vm12, -inf, %v10678_v61  ;;  %v5136_v45 = vsel %vm9768_vm15, -inf, %v10680_v1  ;;  %v560_v18 = vsel %vm559_vm10, %v556_v43, %v499_v27  ;;  %vm561_vm11 = vcmp.lt.s32.totalorder %v558_v36, %v501_v2  ;;  %v10684_v27 = vld [vmem:[#allocation20_spill] sm:$0xff] }
 0x10d   : > { %10675 = vst [vmem:[#allocation62_spill] sm:$0xff] %v5110_v23  ;;  %vm9772_vm3 = vcmp.eq.s32.totalorder %v4104_v54, %v4980_v51  ;;  %vm9776_vm14 = vcmp.eq.s32.totalorder %v4107_v56, %v4980_v51  ;;  %v1562_v6 = vmax.f32 %v1560_v25, %v5110_v23  ;;  %v1563_v61 = vmax.f32 %v1561_v10, %v5116_v26  ;;  %v10686_v25 = vld [vmem:[#allocation70_spill] sm:$0xff] }
 0x10e   : > { %10677 = vst [vmem:[#allocation63_spill] sm:$0xff] %v5116_v26  ;;  %v562_v30 = vsel %vm561_vm11, %v558_v36, %v501_v2  ;;  %vm563_vm12 = vcmp.lt.s32.totalorder %v560_v18, %v503_v21  ;;  %v5149_v1 = vsel %vm9769_vm5, -inf, %v10682_v37  ;;  %v5155_v43 = vsel %vm9802_vm4, -inf, %v10684_v27 }
 0x10f   : > { %10679 = vst [vmem:[#allocation64_spill] sm:$0xff] %v5130_v19  ;;  %v564_v8 = vsel %vm563_vm12, %v560_v18, %v503_v21  ;;  %vm565_vm10 = vcmp.lt.s32.totalorder %v562_v30, %v505_v41  ;;  %vm9777_vm15 = vcmp.eq.s32.totalorder %v4110_v58, %v4980_v51  ;;  %vm9778_vm11 = vcmp.eq.s32.totalorder %v4113_v59, %v4980_v51  ;;  %v10688_v18 = vld [vmem:[#allocation71_spill] sm:$0xff] }
 0x110   : > { %10681 = vst [vmem:[#allocation65_spill] sm:$0xff] %v5136_v45  ;;  %v1564_v2 = vmax.f32 %v1562_v6, %v5130_v19  ;;  %v1565_v10 = vmax.f32 %v1563_v61, %v5136_v45  ;;  %v566_v36 = vsel %vm565_vm10, %v562_v30, %v505_v41  ;;  %vm567_vm5 = vcmp.lt.s32.totalorder %v564_v8, %v4994_v11  ;;  %v10690_v61 = vld [vmem:[#allocation74_spill] sm:$0xff] }
 0x111   : > { %10683 = vst [vmem:[#allocation66_spill] sm:$0xff] %v5149_v1  ;;  %v5168_v37 = vsel %vm9804_vm13, -inf, %v10686_v25  ;;  %v5174_v21 = vsel %vm9806_vm7, -inf, %v10688_v18  ;;  %v568_v27 = vsel %vm567_vm5, %v564_v8, %v4994_v11  ;;  %vm569_vm12 = vcmp.lt.s32.totalorder %v566_v36, %v5002_v24  ;;  %v10692_v18 = vld [vmem:[#allocation75_spill] sm:$0xff] }
 0x112   : > { %10685 = vst [vmem:[#allocation67_spill] sm:$0xff] %v5155_v43  ;;  %v1566_v41 = vmax.f32 %v1564_v2, %v5149_v1  ;;  %v1567_v30 = vmax.f32 %v1565_v10, %v5155_v43  ;;  %v570_v6 = vsel %vm569_vm12, %v566_v36, %v5002_v24  ;;  %vm571_vm10 = vcmp.lt.s32.totalorder %v568_v27, %v5008_v29  ;;  %v10694_v36 = vld [vmem:[#allocation78_spill] sm:$0xff] }
 0x113   : > { %10687 = vst [vmem:[#allocation68_spill] sm:$0xff] %v5168_v37  ;;  %v5186_v25 = vsel %vm9808_vm2, -inf, %v10690_v61  ;;  %v5192_v11 = vsel %vm9810_vm8, -inf, %v10692_v18  ;;  %v572_v8 = vsel %vm571_vm10, %v568_v27, %v5008_v29  ;;  %vm573_vm5 = vcmp.lt.s32.totalorder %v570_v6, %v5014_v20 }
 0x114   : > { %10689 = vst [vmem:[#allocation69_spill] sm:$0xff] %v5174_v21  ;;  %v1568_v24 = vmax.f32 %v1566_v41, %v5168_v37  ;;  %v1569_v2 = vmax.f32 %v1567_v30, %v5174_v21  ;;  %v574_v10 = vsel %vm573_vm5, %v570_v6, %v5014_v20  ;;  %vm575_vm12 = vcmp.lt.s32.totalorder %v572_v8, %v5024_v14  ;;  %v10696_v6 = vld [vmem:[#allocation82_spill] sm:$0xff] }
 0x115   : > { %10691 = vst [vmem:[#allocation72_spill] sm:$0xff] %v5186_v25  ;;  %v5204_v61 = vsel %vm9812_vm0, -inf, %v10694_v36  ;;  %v5210_v29 = vsel %vm1298_vm9, -inf, %v10663_v16  ;;  %v576_v27 = vsel %vm575_vm12, %v572_v8, %v5024_v14  ;;  %vm577_vm10 = vcmp.lt.s32.totalorder %v574_v10, %v5032_v3  ;;  %v10698_v16 = vld [vmem:[#allocation83_spill] sm:$0xff] }
 0x116   : > { %10693 = vst [vmem:[#allocation73_spill] sm:$0xff] %v5192_v11  ;;  %v1570_v20 = vmax.f32 %v1568_v24, %v5186_v25  ;;  %v1571_v41 = vmax.f32 %v1569_v2, %v5192_v11  ;;  %v578_v30 = vsel %vm577_vm10, %v574_v10, %v5032_v3  ;;  %vm579_vm5 = vcmp.lt.s32.totalorder %v576_v27, %v5038_v17  ;;  %v10700_v10 = vld [vmem:[#allocation86_spill] sm:$0xff] }
 0x117   : > { %10695 = vst [vmem:[#allocation76_spill] sm:$0xff] %v5204_v61  ;;  %v5222_v18 = vsel %vm9770_vm1, -inf, %v10696_v6  ;;  %v5228_v14 = vsel %vm9771_vm6, -inf, %v10698_v16  ;;  %v580_v8 = vsel %vm579_vm5, %v576_v27, %v5038_v17  ;;  %vm581_vm9 = vcmp.lt.s32.totalorder %v578_v30, %v5044_v47  ;;  %v10702_v17 = vld [vmem:[#allocation87_spill] sm:$0xff] }
 0x118   : > { %10697 = vst [vmem:[#allocation77_spill] sm:$0xff] %v5222_v18  ;;  %v1572_v3 = vmax.f32 %v1570_v20, %v5204_v61  ;;  %v1573_v24 = vmax.f32 %v1571_v41, %v5210_v29  ;;  %v582_v2 = vsel %vm581_vm9, %v578_v30, %v5044_v47  ;;  %vm583_vm12 = vcmp.lt.s32.totalorder %v580_v8, %v5060_v35  ;;  %v10704_v30 = vld [vmem:[#allocation90_spill] sm:$0xff] }
 0x119   : > { %10699 = vst [vmem:[#allocation80_spill] sm:$0xff] %v5228_v14  ;;  %vm9786_vm10 = vcmp.eq.s32.totalorder %v10619_v53, %v4980_v51  ;;  %v5242_v6 = vsel %vm9772_vm3, -inf, %v10700_v10  ;;  %v5248_v27 = vsel %vm9776_vm14, -inf, %v10702_v17  ;;  %v584_v20 = vsel %vm583_vm12, %v580_v8, %v5060_v35  ;;  %v10706_v10 = vld [vmem:[#allocation91_spill] sm:$0xff] }
 0x11a   : > { %10701 = vst [vmem:[#allocation89_spill] sm:$0xff] %v5242_v6  ;;  %vm9793_vm5 = vcmp.eq.s32.totalorder %v10620_v33, %v4980_v51  ;;  %v1574_v47 = vmax.f32 %v1572_v3, %v5222_v18  ;;  %v1575_v41 = vmax.f32 %v1573_v24, %v5228_v14  ;;  %vm585_vm9 = vcmp.lt.s32.totalorder %v582_v2, %v584_v20 }
 0x11b   : > { %10703 = vst [vmem:[#allocation92_spill] sm:$0xff] %v5248_v27  ;;  %vm9800_vm1 = vcmp.eq.s32.totalorder %v10621_v22, %v4980_v51  ;;  %v5261_v16 = vsel %vm9777_vm15, -inf, %v10704_v30  ;;  %v5267_v35 = vsel %vm9778_vm11, -inf, %v10706_v10  ;;  %v586_v8 = vsel %vm585_vm9, %v582_v2, %v584_v20  ;;  %v10708_v30 = vld [vmem:[#allocation94_spill] sm:$0xff]  ;;  %v10710_v10 = vld [vmem:[#allocation95_spill] sm:$0xff]  ;;  %v10720_v22 = vld [vmem:[#allocation104_spill] sm:$0xff] }
 0x11c   : > { %10705 = vst [vmem:[#allocation93_spill] sm:$0xff] %v5261_v16  ;;  %vm9801_vm12 = vcmp.eq.s32.totalorder %v10623_v13, %v4980_v51  ;;  %v1576_v3 = vmax.f32 %v1574_v47, %v5242_v6  ;;  %v1577_v24 = vmax.f32 %v1575_v41, %v5248_v27  ;;  %v587_v17 = vrot.slane %v586_v8, 4  ;;  %v10712_v41 = vld [vmem:[#allocation98_spill] sm:$0xff]  ;;  %v10714_v27 = vld [vmem:[#allocation99_spill] sm:$0xff] }
 0x11d   : > { %10707 = vst [vmem:[#allocation96_spill] sm:$0xff] %v5267_v35  ;;  %vm9803_vm6 = vcmp.eq.s32.totalorder %v10625_v0, %v4980_v51  ;;  %v5279_v36 = vsel %vm9786_vm10, -inf, %v10708_v30  ;;  %v5285_v2 = vsel %vm9793_vm5, -inf, %v10710_v10  ;;  %vm9805_vm9 = vcmp.eq.s32.totalorder %v10627_v55, %v4980_v51  ;;  %v10722_v0 = vld [vmem:[#allocation21_spill] sm:$0xff] }
 0x11e   : > { %10709 = vst [vmem:[#allocation97_spill] sm:$0xff] %v5279_v36  ;;  %v1578_v20 = vmax.f32 %v1576_v3, %v5261_v16  ;;  %v1579_v47 = vmax.f32 %v1577_v24, %v5267_v35  ;;  %vm588_vm3 = vcmp.lt.s32.totalorder %v586_v8, %v587_v17  ;;  %v5295_v30 = vsel %vm9800_vm1, -inf, %v10712_v41  ;;  %v10716_v41 = vld [vmem:[#allocation102_spill] sm:$0xff] }
 0x11f   : > { %10711 = vst [vmem:[#allocation100_spill] sm:$0xff] %v5285_v2  ;;  %v5301_v10 = vsel %vm9801_vm12, -inf, %v10714_v27  ;;  %v589_v33 = vsel %vm588_vm3, %v586_v8, %v587_v17  ;;  %vm9807_vm14 = vcmp.eq.s32.totalorder %v10628_v9, %v4980_v51  ;;  %vm9809_vm15 = vcmp.eq.s32.totalorder %v10630_v15, %v4980_v51  ;;  %v10718_v17 = vld [vmem:[#allocation103_spill] sm:$0xff] }
 0x120   : > { %10713 = vst [vmem:[#allocation101_spill] sm:$0xff] %v5295_v30  ;;  %v1580_v3 = vmax.f32 %v1578_v20, %v5279_v36  ;;  %v1581_v24 = vmax.f32 %v1579_v47, %v5285_v2  ;;  %vm9811_vm11 = vcmp.eq.s32.totalorder %v10665_v32, %v4980_v51  ;;  %v5315_v27 = vsel %vm9803_vm6, -inf, %v10716_v41 }
 0x121   : > { %10715 = vst [vmem:[#allocation79_spill] sm:$0xff] %v5301_v10  ;;  %v5321_v8 = vsel %vm9805_vm9, -inf, %v10718_v17  ;;  %vm9813_vm3 = vcmp.eq.s32.totalorder %v10633_v63, %v4980_v51  ;;  %v590_v13 = vrot.slane %v589_v33, 2  ;;  %v5331_v41 = vsel %vm9807_vm14, -inf, %v10720_v22 }
 0x122   : > { %10717 = vst [vmem:[#allocation105_spill] sm:$0xff] %v5315_v27  ;;  %v1582_v20 = vmax.f32 %v1580_v3, %v5295_v30  ;;  %v1583_v47 = vmax.f32 %v1581_v24, %v5301_v10  ;;  %v5337_v17 = vsel %vm9809_vm15, -inf, %v10722_v0  ;;  %v10724_v3 = vld [vmem:[#allocation22_spill] sm:$0xff]  ;;  %v5351_v22 = vsel %vm9813_vm3, -inf, %v4651_v31  ;;  %v3570_v31 = vld [vmem:[%s3904_s7 + $0xb0] sm:$0xff] }
 0x123   : > { %10719 = vst [vmem:[#allocation106_spill] sm:$0xff] %v5321_v8  ;;  %v5345_v24 = vsel %vm9811_vm11, -inf, %v10724_v3  ;;  %vm591_vm10 = vcmp.lt.s32.totalorder %v589_v33, %v590_v13 }
 0x124   : > { %10721 = vst [vmem:[#allocation107_spill] sm:$0xff] %v5331_v41  ;;  %v1584_v55 = vmax.f32 %v1582_v20, %v5315_v27  ;;  %v1585_v2 = vmax.f32 %v1583_v47, %v5321_v8  ;;  %v592_v9 = vsel %vm591_vm10, %v589_v33, %v590_v13  ;;  %v3560_v33 = vld [vmem:[%s3904_s7 + $0x10] sm:$0xff] }
 0x125   : > { %10723 = vst [vmem:[#allocation108_spill] sm:$0xff] %v5337_v17  ;;  %v593_v3 = vrot.slane %v592_v9, 1 }
 0x126   : > { %10725 = vst [vmem:[#allocation109_spill] sm:$0xff] %v5345_v24  ;;  %v1586_v15 = vmax.f32 %v1584_v55, %v5331_v41  ;;  %v1587_v0 = vmax.f32 %v1585_v2, %v5337_v17  ;;  %v3563_v2 = vld [vmem:[%s3904_s7 + $0x40] sm:$0xff] }
 0x127   : > { %10726 = vst [vmem:[#allocation110_spill] sm:$0xff] %v5351_v22  ;;  %vm594_vm5 = vcmp.lt.s32.totalorder %v592_v9, %v593_v3 }
 0x128   : > { %v1588_v20 = vmax.f32 %v1586_v15, %v5345_v24  ;;  %v1589_v47 = vmax.f32 %v1587_v0, %v5351_v22  ;;  %v5357_v30 = vsel %vm594_vm5, %v592_v9, %v593_v3  ;;  %v3559_v0 = vld [vmem:[%s3904_s7] sm:$0xff]  ;;  %v3564_v3 = vld [vmem:[%s3904_s7 + $0x50] sm:$0xff] }
 0x129   : > { %10727 = vst [vmem:[#allocation111_spill] sm:$0xff] %v5357_v30  ;;  %vm9814_vm1 = vcmp.eq.s32.totalorder %v10600_v4, %v5357_v30  ;;  %vm9816_vm12 = vcmp.eq.s32.totalorder %v10601_v62, %v5357_v30  ;;  %vm9818_vm4 = vcmp.eq.s32.totalorder %v10602_v7, %v5357_v30  ;;  %vm9821_vm10 = vcmp.eq.s32.totalorder %v10603_v60, %v5357_v30  ;;  %v3561_v15 = vld [vmem:[%s3904_s7 + $0x20] sm:$0xff] }
 0x12a   : > { %v1590_v8 = vmax.f32 %v1588_v20, %v1589_v47  ;;  %vm9836_vm6 = vcmp.eq.s32.totalorder %v10604_v12, %v5357_v30  ;;  %vm9837_vm5 = vcmp.eq.s32.totalorder %v10605_v39, %v5357_v30  ;;  %vm9840_vm13 = vcmp.eq.s32.totalorder %v10606_v49, %v5357_v30 }
 0x12b   : > { %vm9841_vm9 = vcmp.eq.s32.totalorder %v10607_v28, %v5357_v30  ;;  %vm9844_vm7 = vcmp.eq.s32.totalorder %v10608_v5, %v5357_v30  ;;  %vm9845_vm14 = vcmp.eq.s32.totalorder %v4075_v34, %v5357_v30  ;;  %vm9832_vm15 = vcmp.eq.s32.totalorder %v4101_v52, %v5357_v30 }
 0x12c   : > { %v1591_v32 = vrot.slane %v1590_v8, 4  ;;  %vm9833_vm8 = vcmp.eq.s32.totalorder %v4104_v54, %v5357_v30  ;;  %vm9834_vm11 = vcmp.eq.s32.totalorder %v4107_v56, %v5357_v30  ;;  %vm9835_vm0 = vcmp.eq.s32.totalorder %v4110_v58, %v5357_v30 }
 0x12d   : > { %vm9838_vm3 = vcmp.eq.s32.totalorder %v4113_v59, %v5357_v30  ;;  %vm9839_vm2 = vcmp.eq.s32.totalorder %v10619_v53, %v5357_v30  ;;  %v5409_v13 = vsel %vm9814_vm1, -inf, %v3559_v0  ;;  %v5415_v55 = vsel %vm9816_vm12, -inf, %v3560_v33  ;;  %v3565_v0 = vld [vmem:[%s3904_s7 + $0x60] sm:$0xff] }
 0x12e   : > { %v1592_v27 = vmax.f32 %v1590_v8, %v1591_v32  ;;  %10728 = vst [vmem:[#allocation112_spill] sm:$0xff] %v5409_v13  ;;  %v5421_v32 = vsel %vm9818_vm4, -inf, %v3561_v15  ;;  %v5433_v8 = vsel %vm9836_vm6, -inf, %v3563_v2  ;;  %v5439_v20 = vsel %vm9837_vm5, -inf, %v3564_v3  ;;  %v3566_v15 = vld [vmem:[%s3904_s7 + $0x70] sm:$0xff]  ;;  %v3567_v2 = vld [vmem:[%s3904_s7 + $0x80] sm:$0xff] }
 0x12f   : > { %10729 = vst [vmem:[#allocation113_spill] sm:$0xff] %v5415_v55  ;;  %v5447_v33 = vsel %vm9840_vm13, -inf, %v3565_v0  ;;  %v3569_v0 = vld [vmem:[%s3904_s7 + $0xa0] sm:$0xff]  ;;  %vm10738_vm1 = vcmp.eq.s32.totalorder %v4080_v38, %v5357_v30  ;;  %vm10740_vm12 = vcmp.eq.s32.totalorder %v4083_v40, %v5357_v30  ;;  %vm10742_vm4 = vcmp.eq.s32.totalorder %v4086_v42, %v5357_v30 }
 0x130   : > { %v1593_v10 = vrot.slane %v1592_v27, 2  ;;  %10730 = vst [vmem:[#allocation114_spill] sm:$0xff] %v5421_v32  ;;  %v5477_v63 = vsel %vm10740_vm12, -inf, %v3570_v31  ;;  %v3574_v31 = vld [vmem:[%s3904_s7 + $0xf0] sm:$0xff]  ;;  %vm10748_vm12 = vcmp.eq.s32.totalorder %v4095_v48, %v5357_v30 }
 0x131   : > { %10732 = vst [vmem:[#allocation116_spill] sm:$0xff] %v5433_v8 }
 0x132   : > { %v1594_v51 = vmax.f32 %v1592_v27, %v1593_v10  ;;  %v3562_v10 = vld [vmem:[%s3904_s7 + $0x30] sm:$0xff]  ;;  %10733 = vst [vmem:[#allocation117_spill] sm:$0xff] %v5439_v20 }
 0x133   : > { %v5427_v27 = vsel %vm9821_vm10, -inf, %v3562_v10  ;;  %10734 = vst [vmem:[#allocation118_spill] sm:$0xff] %v5447_v33  ;;  %v5453_v10 = vsel %vm9841_vm9, -inf, %v3566_v15  ;;  %v5471_v15 = vsel %vm10738_vm1, -inf, %v3569_v0  ;;  %vm10744_vm10 = vcmp.eq.s32.totalorder %v4089_v44, %v5357_v30  ;;  %v3573_v0 = vld [vmem:[%s3904_s7 + $0xe0] sm:$0xff] }
 0x134   : > { %v1595_v9 = vrot.slane %v1594_v51, 1  ;;  %10731 = vst [vmem:[#allocation115_spill] sm:$0xff] %v5427_v27  ;;  %vm10746_vm1 = vcmp.eq.s32.totalorder %v4092_v46, %v5357_v30 }
 0x135   : > { %10735 = vst [vmem:[#allocation119_spill] sm:$0xff] %v5453_v10 }
 0x136   : > { %v5441_v47 = vmax.f32 %v1594_v51, %v1595_v9  ;;  %v5459_v51 = vsel %vm9844_vm7, -inf, %v3567_v2  ;;  %v3568_v9 = vld [vmem:[%s3904_s7 + $0x90] sm:$0xff]  ;;  %10739 = vst [vmem:[#allocation122_spill] sm:$0xff] %v5471_v15  ;;  %v3571_v2 = vld [vmem:[%s3904_s7 + $0xc0] sm:$0xff]  ;;  %v5495_v15 = vsel %vm10746_vm1, -inf, %v3573_v0  ;;  %v5519_v0 = vsel %vm9833_vm8, -inf, %v10649_v57 }
 0x137   : > { %10736 = vst [vmem:[#allocation120_spill] sm:$0xff] %v5459_v51  ;;  %v5465_v3 = vsel %vm9845_vm14, -inf, %v3568_v9  ;;  %v5483_v22 = vsel %vm10742_vm4, -inf, %v3571_v2  ;;  %v3572_v9 = vld [vmem:[%s3904_s7 + $0xd0] sm:$0xff]  ;;  %v3575_v2 = vld [vmem:[%s3904_s7 + $0x100] sm:$0xff]  ;;  %vm10750_vm4 = vcmp.eq.s32.totalorder %v4098_v50, %v5357_v30  ;;  %v10760_v57 = vld [vmem:[#allocation60_spill] sm:$0xff] }
 0x138   : > { %10737 = vst [vmem:[#allocation121_spill] sm:$0xff] %v5465_v3  ;;  %v5489_v24 = vsel %vm10744_vm10, -inf, %v3572_v9  ;;  %v3576_v9 = vld [vmem:[%s3904_s7 + $0x110] sm:$0xff]  ;;  %vm1608_vm8 = vcmp.eq.f32.partialorder %v5116_v26, %v5441_v47  ;;  %vm1614_vm6 = vcmp.eq.f32.partialorder %v5149_v1, %v5441_v47  ;;  %vm1616_vm5 = vcmp.eq.f32.partialorder %v5155_v43, %v5441_v47 }
 0x139   : > { %10741 = vst [vmem:[#allocation123_spill] sm:$0xff] %v5477_v63  ;;  %v5501_v63 = vsel %vm10748_vm12, -inf, %v3574_v31  ;;  %v10754_v31 = vld [vmem:[#allocation81_spill] sm:$0xff]  ;;  %vm1602_vm12 = vcmp.eq.f32.partialorder %v10760_v57, %v5441_v47  ;;  %vm1622_vm13 = vcmp.eq.f32.partialorder %v5186_v25, %v5441_v47  ;;  %vm1624_vm9 = vcmp.eq.f32.partialorder %v5192_v11, %v5441_v47 }
 0x13a   : > { %10743 = vst [vmem:[#allocation124_spill] sm:$0xff] %v5483_v22  ;;  %v5507_v22 = vsel %vm10750_vm4, -inf, %v3575_v2  ;;  %v10756_v2 = vld [vmem:[#allocation84_spill] sm:$0xff]  ;;  %v923_v1 = vmax.f32 %v5409_v13, %v5421_v32  ;;  %v1686_v32 = vsel %vm1622_vm13, %v4086_v42, 256 }
 0x13b   : > { %10745 = vst [vmem:[#allocation125_spill] sm:$0xff] %v5489_v24  ;;  %v5513_v24 = vsel %vm9832_vm15, -inf, %v3576_v9  ;;  %v10758_v9 = vld [vmem:[#allocation57_spill] sm:$0xff]  ;;  %vm1606_vm15 = vcmp.eq.f32.partialorder %v5110_v23, %v5441_v47 }
 0x13c   : > { %10747 = vst [vmem:[#allocation126_spill] sm:$0xff] %v5495_v15  ;;  %vm1598_vm10 = vcmp.eq.f32.partialorder %v10758_v9, %v5441_v47  ;;  %v10764_v9 = vld [vmem:[#allocation88_spill] sm:$0xff]  ;;  %v925_v13 = vmax.f32 %v923_v1, %v5433_v8 }
 0x13d   : > { %10749 = vst [vmem:[#allocation127_spill] sm:$0xff] %v5501_v63  ;;  %v5525_v63 = vsel %vm9834_vm11, -inf, %v10754_v31  ;;  %v10762_v31 = vld [vmem:[#allocation85_spill] sm:$0xff]  ;;  %v5555_v57 = vsel %vm9839_vm2, -inf, %v10764_v9  ;;  %vm1610_vm11 = vcmp.eq.f32.partialorder %v5130_v19, %v5441_v47  ;;  %vm1620_vm2 = vcmp.eq.f32.partialorder %v5174_v21, %v5441_v47 }
 0x13e   : > { %10751 = vst [vmem:[#allocation128_spill] sm:$0xff] %v5507_v22  ;;  %v5531_v22 = vsel %vm9835_vm0, -inf, %v10756_v2  ;;  %v5549_v2 = vsel %vm9838_vm3, -inf, %v10762_v31  ;;  %vm1612_vm0 = vcmp.eq.f32.partialorder %v5136_v45, %v5441_v47  ;;  %v1662_v31 = vsel %vm1598_vm10, %v10600_v4, 256  ;;  %v10768_v21 = vld [vmem:[#allocation101_spill] sm:$0xff] }
 0x13f   : > { %10752 = vst [vmem:[#allocation129_spill] sm:$0xff] %v5513_v24  ;;  %v10759_v24 = vld [vmem:[#allocation58_spill] sm:$0xff]  ;;  %vm1618_vm3 = vcmp.eq.f32.partialorder %v5168_v37, %v5441_v47  ;;  %vm1626_vm10 = vcmp.eq.f32.partialorder %v5204_v61, %v5441_v47  ;;  %v1676_v23 = vsel %vm1612_vm0, %v10607_v28, 256  ;;  %v1678_v19 = vsel %vm1614_vm6, %v10608_v5, 256  ;;  %v10767_v37 = vld [vmem:[#allocation100_spill] sm:$0xff] }
 0x140   : > { %10753 = vst [vmem:[#allocation130_spill] sm:$0xff] %v5519_v0  ;;  %vm1600_vm1 = vcmp.eq.f32.partialorder %v10759_v24, %v5441_v47  ;;  %v10761_v0 = vld [vmem:[#allocation61_spill] sm:$0xff]  ;;  %v1666_v24 = vsel %vm1602_vm12, %v10602_v7, 256  ;;  %v1672_v7 = vsel %vm1608_vm8, %v10605_v39, 256  ;;  %vm1640_vm0 = vcmp.eq.f32.partialorder %v5267_v35, %v5441_v47 }
 0x141   : > { %10755 = vst [vmem:[#allocation81_spill] sm:$0xff] %v5525_v63  ;;  %vm1604_vm4 = vcmp.eq.f32.partialorder %v10761_v0, %v5441_v47  ;;  %v1664_v0 = vsel %vm1600_vm1, %v10601_v62, 256  ;;  %vm1796_vm7 = vcmp.lt.s32.totalorder %v1662_v31, %v1666_v24  ;;  %v1674_v62 = vsel %vm1610_vm11, %v10606_v49, 256 }
 0x142   : > { %10757 = vst [vmem:[#allocation84_spill] sm:$0xff] %v5531_v22  ;;  %v1668_v9 = vsel %vm1604_vm4, %v10603_v60, 256  ;;  %v1670_v60 = vsel %vm1606_vm15, %v10604_v12, 256  ;;  %v1797_v26 = vsel %vm1796_vm7, %v1662_v31, %v1666_v24  ;;  %vm1634_vm15 = vcmp.eq.f32.partialorder %v5242_v6, %v5441_v47  ;;  %v10766_v12 = vld [vmem:[#allocation92_spill] sm:$0xff] }
 0x143   : > { %10763 = vst [vmem:[#allocation85_spill] sm:$0xff] %v5549_v2  ;;  %vm1798_vm14 = vcmp.lt.s32.totalorder %v1664_v0, %v1668_v9  ;;  %vm1636_vm8 = vcmp.eq.f32.partialorder %v10766_v12, %v5441_v47  ;;  %vm1800_vm4 = vcmp.lt.s32.totalorder %v1797_v26, %v1670_v60  ;;  %vm1638_vm1 = vcmp.eq.f32.partialorder %v5261_v16, %v5441_v47 }
 0x144   : > { %10765 = vst [vmem:[#allocation88_spill] sm:$0xff] %v5555_v57  ;;  %v1799_v39 = vsel %vm1798_vm14, %v1664_v0, %v1668_v9  ;;  %v1680_v24 = vsel %vm1616_vm5, %v4075_v34, 256  ;;  %v1801_v0 = vsel %vm1800_vm4, %v1797_v26, %v1670_v60  ;;  %v1682_v9 = vsel %vm1618_vm3, %v4080_v38, 256 }
 0x145   : > { %vm1802_vm12 = vcmp.lt.s32.totalorder %v1799_v39, %v1672_v7  ;;  %vm1804_vm14 = vcmp.lt.s32.totalorder %v1801_v0, %v1674_v62  ;;  %vm1642_vm6 = vcmp.eq.f32.partialorder %v5279_v36, %v5441_v47  ;;  %v924_v26 = vmax.f32 %v5415_v55, %v5427_v27  ;;  %v10769_v27 = vld [vmem:[#allocation79_spill] sm:$0xff]  ;;  %v10770_v55 = vld [vmem:[#allocation105_spill] sm:$0xff]  ;;  %v10784_v36 = vld [vmem:[#allocation48_spill] sm:$0xff] }
 0x146   : > { %v1803_v31 = vsel %vm1802_vm12, %v1799_v39, %v1672_v7  ;;  %v1684_v7 = vsel %vm1620_vm2, %v4083_v40, 256  ;;  %v1805_v60 = vsel %vm1804_vm14, %v1801_v0, %v1674_v62  ;;  %vm1644_vm11 = vcmp.eq.f32.partialorder %v10767_v37, %v5441_v47 }
 0x147   : > { %vm1806_vm7 = vcmp.lt.s32.totalorder %v1803_v31, %v1676_v23  ;;  %vm1808_vm3 = vcmp.lt.s32.totalorder %v1805_v60, %v1678_v19  ;;  %vm1646_vm2 = vcmp.eq.f32.partialorder %v10768_v21, %v5441_v47  ;;  %v1688_v62 = vsel %vm1624_vm9, %v4089_v44, 256  ;;  %v10789_v21 = vld [vmem:[#allocation50_spill] sm:$0xff] }
 0x148   : > { %v1807_v39 = vsel %vm1806_vm7, %v1803_v31, %v1676_v23  ;;  %v1809_v23 = vsel %vm1808_vm3, %v1805_v60, %v1678_v19  ;;  %v926_v31 = vmax.f32 %v924_v26, %v5439_v20  ;;  %vm1648_vm12 = vcmp.eq.f32.partialorder %v10769_v27, %v5441_v47  ;;  %v10772_v26 = vld [vmem:[#allocation106_spill] sm:$0xff] }
 0x149   : > { %vm1810_vm5 = vcmp.lt.s32.totalorder %v1807_v39, %v1680_v24  ;;  %v1690_v1 = vsel %vm1626_vm10, %v4092_v46, 256  ;;  %vm1812_vm13 = vcmp.lt.s32.totalorder %v1809_v23, %v1682_v9  ;;  %v927_v8 = vmax.f32 %v925_v13, %v5447_v33  ;;  %v10778_v20 = vld [vmem:[#allocation46_spill] sm:$0xff] }
 0x14a   : > { %v1811_v0 = vsel %vm1810_vm5, %v1807_v39, %v1680_v24  ;;  %vm10771_vm9 = vcmp.eq.f32.partialorder %v5210_v29, %v5441_v47  ;;  %v1813_v24 = vsel %vm1812_vm13, %v1809_v23, %v1682_v9  ;;  %v928_v39 = vmax.f32 %v926_v31, %v5453_v10  ;;  %v10775_v31 = vld [vmem:[#allocation109_spill] sm:$0xff] }
 0x14b   : > { %vm1814_vm4 = vcmp.lt.s32.totalorder %v1811_v0, %v1684_v7  ;;  %v1692_v19 = vsel %vm10771_vm9, %v4095_v48, 256  ;;  %vm1652_vm7 = vcmp.eq.f32.partialorder %v10772_v26, %v5441_v47  ;;  %vm10773_vm10 = vcmp.eq.f32.partialorder %v5222_v18, %v5441_v47 }
 0x14c   : > { %v1815_v60 = vsel %vm1814_vm4, %v1811_v0, %v1684_v7  ;;  %v1694_v13 = vsel %vm10773_vm10, %v4098_v50, 256  ;;  %vm1816_vm3 = vcmp.lt.s32.totalorder %v1813_v24, %v1686_v32  ;;  %v929_v33 = vmax.f32 %v927_v8, %v5459_v51  ;;  %v10776_v51 = vld [vmem:[#allocation122_spill] sm:$0xff] }
 0x14d   : > { %vm1818_vm5 = vcmp.lt.s32.totalorder %v1815_v60, %v1688_v62  ;;  %vm10774_vm13 = vcmp.eq.f32.partialorder %v5228_v14, %v5441_v47  ;;  %v1817_v7 = vsel %vm1816_vm3, %v1813_v24, %v1686_v32  ;;  %v930_v0 = vmax.f32 %v928_v39, %v5465_v3 }
 0x14e   : > { %v1696_v9 = vsel %vm10774_vm13, %v4101_v52, 256  ;;  %v1819_v23 = vsel %vm1818_vm5, %v1815_v60, %v1688_v62  ;;  %vm1656_vm4 = vcmp.eq.f32.partialorder %v5337_v17, %v5441_v47  ;;  %vm1658_vm9 = vcmp.eq.f32.partialorder %v10775_v31, %v5441_v47  ;;  %v10777_v60 = vld [vmem:[#allocation123_spill] sm:$0xff]  ;;  %v3577_v17 = vld [vmem:[%s3904_s7 + $0x170] sm:$0xff] }
 0x14f   : > { %v1698_v8 = vsel %vm1634_vm15, %v4104_v54, 256  ;;  %vm1820_vm10 = vcmp.lt.s32.totalorder %v1817_v7, %v1690_v1  ;;  %vm1822_vm14 = vcmp.lt.s32.totalorder %v1819_v23, %v1692_v19  ;;  %v931_v10 = vmax.f32 %v929_v33, %v10776_v51  ;;  %v10779_v33 = vld [vmem:[#allocation124_spill] sm:$0xff] }
 0x150   : > { %v1700_v32 = vsel %vm1636_vm8, %v4107_v56, 256  ;;  %v1821_v62 = vsel %vm1820_vm10, %v1817_v7, %v1690_v1  ;;  %v1823_v24 = vsel %vm1822_vm14, %v1819_v23, %v1692_v19  ;;  %v932_v39 = vmax.f32 %v930_v0, %v10777_v60  ;;  %v10780_v23 = vld [vmem:[#allocation125_spill] sm:$0xff] }
 0x151   : > { %v1702_v3 = vsel %vm1638_vm1, %v4110_v58, 256  ;;  %vm1824_vm3 = vcmp.lt.s32.totalorder %v1821_v62, %v1694_v13  ;;  %vm1826_vm15 = vcmp.lt.s32.totalorder %v1823_v24, %v1696_v9  ;;  %vm9909_vm5 = vcmp.eq.s32.totalorder %v10778_v20, %v5357_v30 }
 0x152   : > { %v933_v51 = vmax.f32 %v931_v10, %v10779_v33  ;;  %v1704_v1 = vsel %vm1640_vm0, %v4113_v59, 256  ;;  %v1825_v19 = vsel %vm1824_vm3, %v1821_v62, %v1694_v13  ;;  %v1827_v7 = vsel %vm1826_vm15, %v1823_v24, %v1696_v9  ;;  %v10781_v13 = vld [vmem:[#allocation127_spill] sm:$0xff] }
 0x153   : > { %v934_v0 = vmax.f32 %v932_v39, %v10780_v23  ;;  %v1706_v60 = vsel %vm1642_vm6, %v10619_v53, 256  ;;  %vm1828_vm1 = vcmp.lt.s32.totalorder %v1825_v19, %v1698_v8  ;;  %vm1830_vm8 = vcmp.lt.s32.totalorder %v1827_v7, %v1700_v32  ;;  %v10782_v62 = vld [vmem:[#allocation47_spill] sm:$0xff]  ;;  %v10783_v39 = vld [vmem:[#allocation128_spill] sm:$0xff] }
 0x154   : > { %v935_v16 = vmax.f32 %v933_v51, %v5495_v15  ;;  %v1708_v10 = vsel %vm1644_vm11, %v10778_v20, 256  ;;  %v1829_v33 = vsel %vm1828_vm1, %v1825_v19, %v1698_v8  ;;  %v1831_v35 = vsel %vm1830_vm8, %v1827_v7, %v1700_v32  ;;  %v10785_v8 = vld [vmem:[#allocation129_spill] sm:$0xff] }
 0x155   : > { %v936_v9 = vmax.f32 %v934_v0, %v10781_v13  ;;  %v1710_v24 = vsel %vm1646_vm2, %v10782_v62, 256  ;;  %vm1832_vm0 = vcmp.lt.s32.totalorder %v1829_v33, %v1702_v3  ;;  %vm1834_vm6 = vcmp.lt.s32.totalorder %v1831_v35, %v1704_v1  ;;  %v10786_v19 = vld [vmem:[#allocation49_spill] sm:$0xff]  ;;  %v10788_v0 = vld [vmem:[#allocation130_spill] sm:$0xff] }
 0x156   : > { %v937_v23 = vmax.f32 %v935_v16, %v10783_v39  ;;  %v1712_v51 = vsel %vm1648_vm12, %v10784_v36, 256  ;;  %v1833_v15 = vsel %vm1832_vm0, %v1829_v33, %v1702_v3  ;;  %v1835_v37 = vsel %vm1834_vm6, %v1831_v35, %v1704_v1  ;;  %v10790_v3 = vld [vmem:[#allocation110_spill] sm:$0xff]  ;;  %v10791_v33 = vld [vmem:[#allocation51_spill] sm:$0xff] }
 0x157   : > { %v938_v32 = vmax.f32 %v936_v9, %v10785_v8  ;;  %vm10787_vm11 = vcmp.eq.f32.partialorder %v10770_v55, %v5441_v47  ;;  %vm1836_vm14 = vcmp.lt.s32.totalorder %v1833_v15, %v1706_v60  ;;  %vm1838_vm2 = vcmp.lt.s32.totalorder %v1835_v37, %v1708_v10 }
 0x158   : > { %v1714_v7 = vsel %vm10787_vm11, %v10786_v19, 256  ;;  %v939_v13 = vmax.f32 %v937_v23, %v10788_v0  ;;  %v1716_v16 = vsel %vm1652_vm7, %v10789_v21, 256  ;;  %v1837_v39 = vsel %vm1836_vm14, %v1833_v15, %v1706_v60  ;;  %v10793_v23 = vld [vmem:[#allocation52_spill] sm:$0xff]  ;;  %v10794_v15 = vld [vmem:[#allocation53_spill] sm:$0xff]  ;;  %v10795_v0 = vld [vmem:[#allocation54_spill] sm:$0xff] }
 0x159   : > { %v1839_v27 = vsel %vm1838_vm2, %v1835_v37, %v1708_v10  ;;  %v940_v35 = vmax.f32 %v938_v32, %v5525_v63  ;;  %vm1660_vm12 = vcmp.eq.f32.partialorder %v10790_v3, %v5441_v47  ;;  %vm10792_vm13 = vcmp.eq.f32.partialorder %v5331_v41, %v5441_v47 }
 0x15a   : > { %v1718_v1 = vsel %vm10792_vm13, %v10791_v33, 256  ;;  %vm1840_vm10 = vcmp.lt.s32.totalorder %v1837_v39, %v1710_v24  ;;  %vm1842_vm3 = vcmp.lt.s32.totalorder %v1839_v27, %v1712_v51  ;;  %v1720_v9 = vsel %vm1656_vm4, %v10793_v23, 256 }
 0x15b   : > { %v1722_v37 = vsel %vm1658_vm9, %v10794_v15, 256  ;;  %v1841_v60 = vsel %vm1840_vm10, %v1837_v39, %v1710_v24  ;;  %v1843_v10 = vsel %vm1842_vm3, %v1839_v27, %v1712_v51  ;;  %v941_v32 = vmax.f32 %v939_v13, %v5531_v22 }
 0x15c   : > { %vm1844_vm7 = vcmp.lt.s32.totalorder %v1841_v60, %v1714_v7  ;;  %vm1846_vm15 = vcmp.lt.s32.totalorder %v1843_v10, %v1716_v16  ;;  %v942_v63 = vmax.f32 %v940_v35, %v5549_v2  ;;  %v1724_v8 = vsel %vm1660_vm12, %v10795_v0, 256  ;;  %v3579_v35 = vld [vmem:[%s3904_s7 + $0x190] sm:$0xff] }
 0x15d   : > { %v1845_v3 = vsel %vm1844_vm7, %v1841_v60, %v1714_v7  ;;  %v1847_v41 = vsel %vm1846_vm15, %v1843_v10, %v1716_v16  ;;  %v5750_v47 = vsel %vm9909_vm5, -inf, %v3577_v17  ;;  %vm9928_vm1 = vcmp.eq.s32.totalorder %v10782_v62, %v5357_v30  ;;  %v3578_v7 = vld [vmem:[%s3904_s7 + $0x180] sm:$0xff]  ;;  %v3581_v60 = vld [vmem:[%s3904_s7 + $0x1b0] sm:$0xff] }
 0x15e   : > { %10796 = vst [vmem:[#allocation131_spill] sm:$0xff] %v5750_v47  ;;  %vm1848_vm4 = vcmp.lt.s32.totalorder %v1845_v3, %v1718_v1  ;;  %vm1850_vm9 = vcmp.lt.s32.totalorder %v1847_v41, %v1720_v9  ;;  %vm9937_vm8 = vcmp.eq.s32.totalorder %v10784_v36, %v5357_v30  ;;  %v943_v24 = vmax.f32 %v941_v32, %v5555_v57 }
 0x15f   : > { %v1849_v27 = vsel %vm1848_vm4, %v1845_v3, %v1718_v1  ;;  %v1851_v13 = vsel %vm1850_vm9, %v1847_v41, %v1720_v9  ;;  %v944_v39 = vmax.f32 %v942_v63, %v5750_v47  ;;  %v5762_v16 = vsel %vm9928_vm1, -inf, %v3578_v7  ;;  %v3580_v9 = vld [vmem:[%s3904_s7 + $0x1a0] sm:$0xff] }
 0x160   : > { %vm1852_vm0 = vcmp.lt.s32.totalorder %v1849_v27, %v1722_v37  ;;  %vm1854_vm6 = vcmp.lt.s32.totalorder %v1851_v13, %v1724_v8  ;;  %10797 = vst [vmem:[#allocation132_spill] sm:$0xff] %v5762_v16  ;;  %v5768_v41 = vsel %vm9937_vm8, -inf, %v3579_v35  ;;  %vm9939_vm14 = vcmp.eq.s32.totalorder %v10786_v19, %v5357_v30 }
 0x161   : > { %v1853_v17 = vsel %vm1852_vm0, %v1849_v27, %v1722_v37  ;;  %v1855_v51 = vsel %vm1854_vm6, %v1851_v13, %v1724_v8  ;;  %10798 = vst [vmem:[#allocation133_spill] sm:$0xff] %v5768_v41  ;;  %vm9941_vm2 = vcmp.eq.s32.totalorder %v10789_v21, %v5357_v30  ;;  %v945_v3 = vmax.f32 %v943_v24, %v5762_v16 }
 0x162   : > { %vm1856_vm11 = vcmp.lt.s32.totalorder %v1853_v17, %v1855_v51  ;;  %v946_v1 = vmax.f32 %v944_v39, %v5768_v41  ;;  %v5780_v37 = vsel %vm9939_vm14, -inf, %v3580_v9  ;;  %v5786_v10 = vsel %vm9941_vm2, -inf, %v3581_v60  ;;  %v3582_v39 = vld [vmem:[%s3904_s7 + $0x1c0] sm:$0xff]  ;;  %v3585_v9 = vld [vmem:[%s3904_s7 + $0x1f0] sm:$0xff] }
 0x163   : > { %v1857_v63 = vsel %vm1856_vm11, %v1853_v17, %v1855_v51  ;;  %10799 = vst [vmem:[#allocation134_spill] sm:$0xff] %v5780_v37  ;;  %vm9943_vm13 = vcmp.eq.s32.totalorder %v10791_v33, %v5357_v30  ;;  %vm9945_vm10 = vcmp.eq.s32.totalorder %v10793_v23, %v5357_v30  ;;  %v947_v13 = vmax.f32 %v945_v3, %v5780_v37  ;;  %v3583_v51 = vld [vmem:[%s3904_s7 + $0x1d0] sm:$0xff]  ;;  %v3584_v3 = vld [vmem:[%s3904_s7 + $0x1e0] sm:$0xff] }
 0x164   : > { %v1858_v8 = vrot.slane %v1857_v63, 4  ;;  %10800 = vst [vmem:[#allocation135_spill] sm:$0xff] %v5786_v10  ;;  %v948_v24 = vmax.f32 %v946_v1, %v5786_v10  ;;  %v5798_v17 = vsel %vm9943_vm13, -inf, %v3582_v39  ;;  %v5804_v7 = vsel %vm9945_vm10, -inf, %v3583_v51 }
 0x165   : > { %10801 = vst [vmem:[#allocation136_spill] sm:$0xff] %v5798_v17  ;;  %vm9949_vm7 = vcmp.eq.s32.totalorder %v10794_v15, %v5357_v30  ;;  %vm9955_vm15 = vcmp.eq.s32.totalorder %v10795_v0, %v5357_v30 }
 0x166   : > { %vm1859_vm12 = vcmp.lt.s32.totalorder %v1857_v63, %v1858_v8  ;;  %10802 = vst [vmem:[#allocation137_spill] sm:$0xff] %v5804_v7  ;;  %v5816_v1 = vsel %vm9949_vm7, -inf, %v3584_v3  ;;  %v5822_v60 = vsel %vm9955_vm15, -inf, %v3585_v9  ;;  %v10806_v9 = vld [vmem:[#allocation56_spill] sm:$0xff] }
 0x167   : > { %v1860_v32 = vsel %vm1859_vm12, %v1857_v63, %v1858_v8  ;;  %v949_v63 = vmax.f32 %v947_v13, %v5798_v17  ;;  %v950_v8 = vmax.f32 %v948_v24, %v5804_v7  ;;  %10803 = vst [vmem:[#allocation138_spill] sm:$0xff] %v5816_v1  ;;  %v10819_v17 = vld [vmem:[#allocation61_spill] sm:$0xff] }
 0x168   : > { %v1861_v27 = vrot.slane %v1860_v32, 2  ;;  %10804 = vst [vmem:[#allocation139_spill] sm:$0xff] %v5822_v60 }
 0x169   : > { %v951_v51 = vmax.f32 %v949_v63, %v5816_v1  ;;  %v10808_v63 = vld [vmem:[#allocation25_spill] sm:$0xff]  ;;  %v10817_v1 = vld [vmem:[#allocation60_spill] sm:$0xff] }
 0x16a   : > { %vm1862_vm3 = vcmp.lt.s32.totalorder %v1860_v32, %v1861_v27 }
 0x16b   : > { %v1863_v35 = vsel %vm1862_vm3, %v1860_v32, %v1861_v27  ;;  %v952_v32 = vmax.f32 %v950_v8, %v5822_v60  ;;  %v10810_v8 = vld [vmem:[#allocation27_spill] sm:$0xff] }
 0x16c   : > { %v1864_v39 = vrot.slane %v1863_v35, 1 }
 0x16d   : > { %v953_v27 = vmax.f32 %v951_v51, %v952_v32  ;;  %v10812_v51 = vld [vmem:[#allocation29_spill] sm:$0xff] }
 0x16e   : > { %vm1865_vm4 = vcmp.lt.s32.totalorder %v1863_v35, %v1864_v39 }
 0x16f   : > { %v5826_v13 = vsel %vm1865_vm4, %v1863_v35, %v1864_v39  ;;  %v954_v3 = vrot.slane %v953_v27, 4  ;;  %v10809_v35 = vld [vmem:[#allocation26_spill] sm:$0xff]  ;;  %v10811_v39 = vld [vmem:[#allocation28_spill] sm:$0xff] }
 0x170   : > { %10805 = vst [vmem:[#allocation140_spill] sm:$0xff] %v5826_v13  ;;  %vm1898_vm9 = vcmp.eq.s32.totalorder %v4095_v48, %v5826_v13  ;;  %vm9908_vm0 = vcmp.eq.s32.totalorder %v10600_v4, %v5826_v13  ;;  %vm9910_vm6 = vcmp.eq.s32.totalorder %v10808_v63, %v5826_v13  ;;  %vm9911_vm11 = vcmp.eq.s32.totalorder %v10809_v35, %v5826_v13 }
 0x171   : > { %v1962_v24 = vsel %vm1898_vm9, %v5210_v29, 0.0  ;;  %vm9918_vm12 = vcmp.eq.s32.totalorder %v10810_v8, %v5826_v13  ;;  %vm9919_vm3 = vcmp.eq.s32.totalorder %v10811_v39, %v5826_v13  ;;  %vm9927_vm4 = vcmp.eq.s32.totalorder %v10812_v51, %v5826_v13 }
 0x172   : > { %v5835_v30 = vadd.f32 %v1962_v24, %v10806_v9  ;;  %v955_v32 = vmax.f32 %v953_v27, %v954_v3  ;;  %v10813_v24 = vld [vmem:[#allocation57_spill] sm:$0xff]  ;;  %v5865_v7 = vsel %vm9911_vm11, -inf, %v10817_v1  ;;  %v5871_v27 = vsel %vm9918_vm12, -inf, %v10819_v17  ;;  %v10821_v3 = vld [vmem:[#allocation62_spill] sm:$0xff] }
 0x173   : > { %v5853_v9 = vsel %vm9908_vm0, -inf, %v10813_v24  ;;  %10818 = vst [vmem:[#allocation143_spill] sm:$0xff] %v5865_v7  ;;  %vm9936_vm0 = vcmp.eq.s32.totalorder %v10606_v49, %v5826_v13  ;;  %vm9938_vm5 = vcmp.eq.s32.totalorder %v10607_v28, %v5826_v13  ;;  %v5881_v24 = vsel %vm9919_vm3, -inf, %v10821_v3  ;;  %v10825_v3 = vld [vmem:[#allocation64_spill] sm:$0xff] }
 0x174   : > { %10807 = vst [vmem:[#allocation56_spill] sm:$0xff] %v5835_v30  ;;  %v10815_v30 = vld [vmem:[#allocation58_spill] sm:$0xff]  ;;  %vm9942_vm11 = vcmp.eq.s32.totalorder %v4075_v34, %v5826_v13  ;;  %v2160_v17 = vmax.f32 %v5853_v9, %v5865_v7  ;;  %v5901_v37 = vsel %vm9936_vm0, -inf, %v10825_v3  ;;  %v956_v41 = vrot.slane %v955_v32, 2 }
 0x175   : > { %10814 = vst [vmem:[#allocation141_spill] sm:$0xff] %v5853_v9  ;;  %v5859_v60 = vsel %vm9910_vm6, -inf, %v10815_v30  ;;  %v10823_v30 = vld [vmem:[#allocation63_spill] sm:$0xff]  ;;  %vm9940_vm6 = vcmp.eq.s32.totalorder %v10608_v5, %v5826_v13  ;;  %vm9944_vm12 = vcmp.eq.s32.totalorder %v4080_v38, %v5826_v13  ;;  %vm9946_vm3 = vcmp.eq.s32.totalorder %v4083_v40, %v5826_v13 }
 0x176   : > { %10816 = vst [vmem:[#allocation142_spill] sm:$0xff] %v5859_v60  ;;  %v5887_v1 = vsel %vm9927_vm4, -inf, %v10823_v30  ;;  %v2161_v10 = vmax.f32 %v5859_v60, %v5871_v27  ;;  %v5907_v30 = vsel %vm9938_vm5, -inf, %v5136_v45  ;;  %v10828_v60 = vld [vmem:[#allocation66_spill] sm:$0xff]  ;;  %v5925_v45 = vsel %vm9942_vm11, -inf, %v5155_v43 }
 0x177   : > { %10820 = vst [vmem:[#allocation144_spill] sm:$0xff] %v5871_v27  ;;  %v2162_v27 = vmax.f32 %v2160_v17, %v5881_v24  ;;  %v5919_v3 = vsel %vm9940_vm6, -inf, %v10828_v60  ;;  %vm9951_vm4 = vcmp.eq.s32.totalorder %v4086_v42, %v5826_v13  ;;  %vm10010_vm1 = vcmp.eq.s32.totalorder %v4089_v44, %v5826_v13 }
 0x178   : > { %10822 = vst [vmem:[#allocation145_spill] sm:$0xff] %v5881_v24  ;;  %v2163_v7 = vmax.f32 %v2161_v10, %v5887_v1  ;;  %v10833_v24 = vld [vmem:[#allocation69_spill] sm:$0xff]  ;;  %v957_v9 = vmax.f32 %v955_v32, %v956_v41  ;;  %vm10044_vm0 = vcmp.eq.s32.totalorder %v4092_v46, %v5826_v13  ;;  %vm9950_vm8 = vcmp.eq.s32.totalorder %v4098_v50, %v5826_v13 }
 0x179   : > { %10824 = vst [vmem:[#allocation146_spill] sm:$0xff] %v5887_v1  ;;  %v2164_v10 = vmax.f32 %v2162_v27, %v5901_v37  ;;  %v10831_v1 = vld [vmem:[#allocation68_spill] sm:$0xff]  ;;  %v5943_v43 = vsel %vm9946_vm3, -inf, %v10833_v24  ;;  %vm9954_vm5 = vcmp.eq.s32.totalorder %v4101_v52, %v5826_v13  ;;  %vm9979_vm14 = vcmp.eq.s32.totalorder %v4104_v54, %v5826_v13 }
 0x17a   : > { %10826 = vst [vmem:[#allocation147_spill] sm:$0xff] %v5901_v37  ;;  %v2165_v17 = vmax.f32 %v2163_v7, %v5907_v30  ;;  %v5937_v60 = vsel %vm9944_vm12, -inf, %v10831_v1  ;;  %v5959_v41 = vsel %vm9951_vm4, -inf, %v5186_v25  ;;  %v5965_v32 = vsel %vm10010_vm1, -inf, %v5192_v11 }
 0x17b   : > { %10827 = vst [vmem:[#allocation148_spill] sm:$0xff] %v5907_v30  ;;  %v2166_v7 = vmax.f32 %v2164_v10, %v5919_v3  ;;  %vm9980_vm6 = vcmp.eq.s32.totalorder %v4107_v56, %v5826_v13  ;;  %vm9983_vm2 = vcmp.eq.s32.totalorder %v4110_v58, %v5826_v13  ;;  %vm9985_vm11 = vcmp.eq.s32.totalorder %v4113_v59, %v5826_v13 }
 0x17c   : > { %10829 = vst [vmem:[#allocation149_spill] sm:$0xff] %v5919_v3  ;;  %v2167_v27 = vmax.f32 %v2165_v17, %v5925_v45  ;;  %vm9988_vm13 = vcmp.eq.s32.totalorder %v10619_v53, %v5826_v13  ;;  %v5981_v1 = vsel %vm10044_vm0, -inf, %v5204_v61  ;;  %v5987_v24 = vsel %vm1898_vm9, -inf, %v5210_v29  ;;  %v10843_v61 = vld [vmem:[#allocation93_spill] sm:$0xff] }
 0x17d   : > { %10830 = vst [vmem:[#allocation150_spill] sm:$0xff] %v5925_v45  ;;  %v2168_v10 = vmax.f32 %v2166_v7, %v5937_v60  ;;  %vm9989_vm12 = vcmp.eq.s32.totalorder %v10778_v20, %v5826_v13  ;;  %vm9990_vm10 = vcmp.eq.s32.totalorder %v10782_v62, %v5826_v13  ;;  %vm9991_vm3 = vcmp.eq.s32.totalorder %v10784_v36, %v5826_v13 }
 0x17e   : > { %10832 = vst [vmem:[#allocation151_spill] sm:$0xff] %v5937_v60  ;;  %v2169_v17 = vmax.f32 %v2167_v27, %v5943_v43  ;;  %v6001_v25 = vsel %vm9950_vm8, -inf, %v5222_v18  ;;  %v6007_v29 = vsel %vm9954_vm5, -inf, %v5228_v14  ;;  %v958_v11 = vrot.slane %v957_v9, 1  ;;  %v10866_v60 = vld [vmem:[#allocation114_spill] sm:$0xff] }
 0x17f   : > { %10834 = vst [vmem:[#allocation152_spill] sm:$0xff] %v5943_v43  ;;  %v2170_v7 = vmax.f32 %v2168_v10, %v5959_v41  ;;  %vm9992_vm9 = vcmp.eq.s32.totalorder %v10786_v19, %v5826_v13  ;;  %vm9993_vm7 = vcmp.eq.s32.totalorder %v10789_v21, %v5826_v13  ;;  %vm9996_vm8 = vcmp.eq.s32.totalorder %v10791_v33, %v5826_v13  ;;  %v10864_v43 = vld [vmem:[#allocation112_spill] sm:$0xff] }
 0x180   : > { %10835 = vst [vmem:[#allocation153_spill] sm:$0xff] %v5959_v41  ;;  %v2171_v27 = vmax.f32 %v2169_v17, %v5965_v32  ;;  %vm10007_vm4 = vcmp.eq.s32.totalorder %v10793_v23, %v5826_v13  ;;  %v6023_v18 = vsel %vm9979_vm14, -inf, %v5242_v6  ;;  %v6029_v14 = vsel %vm9980_vm6, -inf, %v10766_v12 }
 0x181   : > { %10836 = vst [vmem:[#allocation154_spill] sm:$0xff] %v5965_v32  ;;  %v2172_v10 = vmax.f32 %v2170_v7, %v5981_v1  ;;  %vm10013_vm5 = vcmp.eq.s32.totalorder %v10794_v15, %v5826_v13  ;;  %vm10046_vm15 = vcmp.eq.s32.totalorder %v10795_v0, %v5826_v13  ;;  %v6041_v6 = vsel %vm9983_vm2, -inf, %v10843_v61  ;;  %v10868_v13 = vld [vmem:[#allocation116_spill] sm:$0xff] }
 0x182   : > { %10837 = vst [vmem:[#allocation155_spill] sm:$0xff] %v5981_v1  ;;  %v2173_v17 = vmax.f32 %v2171_v27, %v5987_v24  ;;  %v10847_v1 = vld [vmem:[#allocation97_spill] sm:$0xff] }
 0x183   : > { %10838 = vst [vmem:[#allocation156_spill] sm:$0xff] %v5987_v24  ;;  %v2174_v7 = vmax.f32 %v2172_v10, %v6001_v25  ;;  %v10845_v24 = vld [vmem:[#allocation96_spill] sm:$0xff]  ;;  %v6053_v32 = vsel %vm9988_vm13, -inf, %v10847_v1  ;;  %v6055_v10 = vmax.f32 %v957_v9, %v958_v11  ;;  %v10853_v1 = vld [vmem:[#allocation79_spill] sm:$0xff]  ;;  %v6081_v9 = vsel %vm9992_vm9, -inf, %v10770_v55 }
 0x184   : > { %10839 = vst [vmem:[#allocation157_spill] sm:$0xff] %v6001_v25  ;;  %v2175_v27 = vmax.f32 %v2173_v17, %v6007_v29  ;;  %v6047_v12 = vsel %vm9985_vm11, -inf, %v10845_v24  ;;  %v10849_v17 = vld [vmem:[#allocation100_spill] sm:$0xff]  ;;  %v6075_v11 = vsel %vm9991_vm3, -inf, %v10853_v1  ;;  %v6105_v55 = vsel %vm10013_vm5, -inf, %v10775_v31 }
 0x185   : > { %10840 = vst [vmem:[#allocation158_spill] sm:$0xff] %v6007_v29  ;;  %v6061_v61 = vsel %vm9989_vm12, -inf, %v10849_v17  ;;  %v10851_v29 = vld [vmem:[#allocation101_spill] sm:$0xff]  ;;  %v2176_v25 = vmax.f32 %v2174_v7, %v6023_v18  ;;  %v6087_v17 = vsel %vm9993_vm7, -inf, %v10772_v26  ;;  %v10857_v7 = vld [vmem:[#allocation107_spill] sm:$0xff]  ;;  %vm997_vm14 = vcmp.eq.f32.partialorder %v10864_v43, %v6055_v10  ;;  %v10870_v43 = vld [vmem:[#allocation118_spill] sm:$0xff] }
 0x186   : > { %10841 = vst [vmem:[#allocation159_spill] sm:$0xff] %v6023_v18  ;;  %v6067_v24 = vsel %vm9990_vm10, -inf, %v10851_v29  ;;  %v2177_v41 = vmax.f32 %v2175_v27, %v6029_v14  ;;  %v6093_v27 = vsel %vm9996_vm8, -inf, %v10857_v7  ;;  %v10859_v29 = vld [vmem:[#allocation108_spill] sm:$0xff]  ;;  %v10862_v18 = vld [vmem:[#allocation110_spill] sm:$0xff]  ;;  %vm1001_vm2 = vcmp.eq.f32.partialorder %v10866_v60, %v6055_v10 }
 0x187   : > { %10842 = vst [vmem:[#allocation160_spill] sm:$0xff] %v6029_v14  ;;  %v6099_v1 = vsel %vm10007_vm4, -inf, %v10859_v29  ;;  %v2178_v26 = vmax.f32 %v2176_v25, %v6041_v6  ;;  %v6113_v7 = vsel %vm10046_vm15, -inf, %v10862_v18  ;;  %v10865_v29 = vld [vmem:[#allocation113_spill] sm:$0xff]  ;;  %vm1005_vm13 = vcmp.eq.f32.partialorder %v10868_v13, %v6055_v10  ;;  %v10872_v60 = vld [vmem:[#allocation120_spill] sm:$0xff] }
 0x188   : > { %10844 = vst [vmem:[#allocation161_spill] sm:$0xff] %v6041_v6  ;;  %v2179_v14 = vmax.f32 %v2177_v41, %v6047_v12  ;;  %vm999_vm6 = vcmp.eq.f32.partialorder %v10865_v29, %v6055_v10  ;;  %v10867_v41 = vld [vmem:[#allocation115_spill] sm:$0xff]  ;;  %v10869_v18 = vld [vmem:[#allocation117_spill] sm:$0xff]  ;;  %vm1009_vm10 = vcmp.eq.f32.partialorder %v10870_v43, %v6055_v10  ;;  %vm1013_vm9 = vcmp.eq.f32.partialorder %v10872_v60, %v6055_v10 }
 0x189   : > { %10846 = vst [vmem:[#allocation162_spill] sm:$0xff] %v6047_v12  ;;  %v2180_v31 = vmax.f32 %v2178_v26, %v6053_v32  ;;  %vm1003_vm11 = vcmp.eq.f32.partialorder %v10867_v41, %v6055_v10  ;;  %vm1007_vm12 = vcmp.eq.f32.partialorder %v10869_v18, %v6055_v10  ;;  %v10871_v29 = vld [vmem:[#allocation119_spill] sm:$0xff]  ;;  %v10873_v41 = vld [vmem:[#allocation121_spill] sm:$0xff]  ;;  %v1063_v12 = vsel %vm999_vm6, %v10808_v63, 256 }
 0x18a   : > { %10848 = vst [vmem:[#allocation163_spill] sm:$0xff] %v6053_v32  ;;  %v2181_v25 = vmax.f32 %v2179_v14, %v6061_v61  ;;  %vm1011_vm3 = vcmp.eq.f32.partialorder %v10871_v29, %v6055_v10  ;;  %vm1015_vm7 = vcmp.eq.f32.partialorder %v10873_v41, %v6055_v10  ;;  %v1061_v32 = vsel %vm997_vm14, %v10600_v4, 256  ;;  %v10878_v4 = vld [vmem:[#allocation126_spill] sm:$0xff] }
 0x18b   : > { %10850 = vst [vmem:[#allocation164_spill] sm:$0xff] %v6061_v61  ;;  %v2182_v14 = vmax.f32 %v2180_v31, %v6067_v24  ;;  %v10874_v61 = vld [vmem:[#allocation122_spill] sm:$0xff]  ;;  %v1065_v6 = vsel %vm1001_vm2, %v10809_v35, 256  ;;  %v1067_v45 = vsel %vm1003_vm11, %v10810_v8, 256  ;;  %vm1025_vm14 = vcmp.eq.f32.partialorder %v10878_v4, %v6055_v10  ;;  %v10905_v41 = vld [vmem:[#allocation157_spill] sm:$0xff] }
 0x18c   : > { %10852 = vst [vmem:[#allocation165_spill] sm:$0xff] %v6067_v24  ;;  %v2183_v26 = vmax.f32 %v2181_v25, %v6075_v11  ;;  %vm1017_vm8 = vcmp.eq.f32.partialorder %v10874_v61, %v6055_v10  ;;  %v10875_v25 = vld [vmem:[#allocation123_spill] sm:$0xff]  ;;  %v10877_v24 = vld [vmem:[#allocation125_spill] sm:$0xff]  ;;  %v1069_v8 = vsel %vm1005_vm13, %v10811_v39, 256  ;;  %vm1125_vm2 = vcmp.lt.s32.totalorder %v1061_v32, %v1065_v6  ;;  %v10902_v4 = vld [vmem:[#allocation154_spill] sm:$0xff] }
 0x18d   : > { %10854 = vst [vmem:[#allocation166_spill] sm:$0xff] %v6075_v11  ;;  %v2184_v3 = vmax.f32 %v2182_v14, %v6081_v9  ;;  %vm1019_vm4 = vcmp.eq.f32.partialorder %v10875_v25, %v6055_v10  ;;  %v10876_v11 = vld [vmem:[#allocation124_spill] sm:$0xff]  ;;  %vm1023_vm5 = vcmp.eq.f32.partialorder %v10877_v24, %v6055_v10  ;;  %v1071_v14 = vsel %vm1007_vm12, %v10812_v51, 256  ;;  %v10903_v25 = vld [vmem:[#allocation155_spill] sm:$0xff]  ;;  %v10906_v60 = vld [vmem:[#allocation158_spill] sm:$0xff] }
 0x18e   : > { %10855 = vst [vmem:[#allocation167_spill] sm:$0xff] %v6081_v9  ;;  %v2185_v31 = vmax.f32 %v2183_v26, %v6087_v17  ;;  %vm1021_vm1 = vcmp.eq.f32.partialorder %v10876_v11, %v6055_v10  ;;  %vm1127_vm6 = vcmp.lt.s32.totalorder %v1063_v12, %v1067_v45  ;;  %v1073_v9 = vsel %vm1009_vm10, %v10606_v49, 256  ;;  %v10904_v61 = vld [vmem:[#allocation156_spill] sm:$0xff] }
 0x18f   : > { %10856 = vst [vmem:[#allocation168_spill] sm:$0xff] %v6087_v17  ;;  %v2186_v26 = vmax.f32 %v2184_v3, %v6093_v27  ;;  %v1075_v13 = vsel %vm1011_vm3, %v10607_v28, 256  ;;  %v1126_v39 = vsel %vm1125_vm2, %v1061_v32, %v1065_v6  ;;  %v1128_v35 = vsel %vm1127_vm6, %v1063_v12, %v1067_v45  ;;  %v10879_v12 = vld [vmem:[#allocation127_spill] sm:$0xff] }
 0x190   : > { %10858 = vst [vmem:[#allocation169_spill] sm:$0xff] %v6093_v27  ;;  %v2187_v17 = vmax.f32 %v2185_v31, %v6099_v1  ;;  %vm1129_vm13 = vcmp.lt.s32.totalorder %v1126_v39, %v1069_v8  ;;  %vm1131_vm11 = vcmp.lt.s32.totalorder %v1128_v35, %v1071_v14  ;;  %v1077_v31 = vsel %vm1013_vm9, %v10608_v5, 256 }
 0x191   : > { %10860 = vst [vmem:[#allocation170_spill] sm:$0xff] %v6099_v1  ;;  %v2188_v18 = vmax.f32 %v2186_v26, %v6105_v55  ;;  %v1079_v43 = vsel %vm1015_vm7, %v4075_v34, 256  ;;  %v1130_v29 = vsel %vm1129_vm13, %v1126_v39, %v1069_v8  ;;  %v1132_v1 = vsel %vm1131_vm11, %v1128_v35, %v1071_v14 }
 0x192   : > { %10861 = vst [vmem:[#allocation171_spill] sm:$0xff] %v6105_v55  ;;  %v2189_v3 = vmax.f32 %v2187_v17, %v6113_v7  ;;  %vm1027_vm10 = vcmp.eq.f32.partialorder %v10879_v12, %v6055_v10  ;;  %vm1133_vm12 = vcmp.lt.s32.totalorder %v1130_v29, %v1073_v9  ;;  %vm1135_vm3 = vcmp.lt.s32.totalorder %v1132_v1, %v1075_v13  ;;  %v10910_v55 = vld [vmem:[#allocation28_spill] sm:$0xff] }
 0x193   : > { %10863 = vst [vmem:[#allocation172_spill] sm:$0xff] %v6113_v7  ;;  %v1081_v45 = vsel %vm1017_vm8, %v4080_v38, 256  ;;  %v1083_v32 = vsel %vm1019_vm4, %v4083_v40, 256  ;;  %v1134_v17 = vsel %vm1133_vm12, %v1130_v29, %v1073_v9  ;;  %v1136_v26 = vsel %vm1135_vm3, %v1132_v1, %v1075_v13  ;;  %v10881_v1 = vld [vmem:[#allocation129_spill] sm:$0xff] }
 0x194   : > { %v2190_v6 = vmax.f32 %v2188_v18, %v2189_v3  ;;  %v10880_v18 = vld [vmem:[#allocation128_spill] sm:$0xff]  ;;  %vm1137_vm9 = vcmp.lt.s32.totalorder %v1134_v17, %v1077_v31  ;;  %vm1139_vm2 = vcmp.lt.s32.totalorder %v1136_v26, %v1079_v43  ;;  %v1085_v35 = vsel %vm1021_vm1, %v4086_v42, 256 }
 0x195   : > { %vm1029_vm7 = vcmp.eq.f32.partialorder %v10880_v18, %v6055_v10  ;;  %v1087_v39 = vsel %vm1023_vm5, %v4089_v44, 256  ;;  %v1138_v14 = vsel %vm1137_vm9, %v1134_v17, %v1077_v31  ;;  %v1140_v3 = vsel %vm1139_vm2, %v1136_v26, %v1079_v43  ;;  %v10901_v18 = vld [vmem:[#allocation153_spill] sm:$0xff] }
 0x196   : > { %v2191_v8 = vrot.slane %v2190_v6, 4  ;;  %vm1031_vm8 = vcmp.eq.f32.partialorder %v10881_v1, %v6055_v10  ;;  %vm1141_vm4 = vcmp.lt.s32.totalorder %v1138_v14, %v1081_v45  ;;  %vm1143_vm6 = vcmp.lt.s32.totalorder %v1140_v3, %v1083_v32 }
 0x197   : > { %v1089_v13 = vsel %vm1025_vm14, %v4092_v46, 256  ;;  %v1091_v9 = vsel %vm1027_vm10, %v4095_v48, 256  ;;  %v1142_v24 = vsel %vm1141_vm4, %v1138_v14, %v1081_v45  ;;  %v1144_v11 = vsel %vm1143_vm6, %v1140_v3, %v1083_v32  ;;  %v10882_v45 = vld [vmem:[#allocation130_spill] sm:$0xff]  ;;  %v10883_v32 = vld [vmem:[#allocation81_spill] sm:$0xff] }
 0x198   : > { %v2192_v29 = vmax.f32 %v2190_v6, %v2191_v8  ;;  %vm1145_vm5 = vcmp.lt.s32.totalorder %v1142_v24, %v1085_v35  ;;  %vm1147_vm1 = vcmp.lt.s32.totalorder %v1144_v11, %v1087_v39  ;;  %v1093_v17 = vsel %vm1029_vm7, %v4098_v50, 256  ;;  %v10884_v3 = vld [vmem:[#allocation133_spill] sm:$0xff] }
 0x199   : > { %v1146_v43 = vsel %vm1145_vm5, %v1142_v24, %v1085_v35  ;;  %v1148_v6 = vsel %vm1147_vm1, %v1144_v11, %v1087_v39  ;;  %v1095_v26 = vsel %vm1031_vm8, %v4101_v52, 256  ;;  %vm1033_vm11 = vcmp.eq.f32.partialorder %v10882_v45, %v6055_v10  ;;  %v10896_v45 = vld [vmem:[#allocation146_spill] sm:$0xff] }
 0x19a   : > { %v2193_v31 = vrot.slane %v2192_v29, 2  ;;  %vm1149_vm14 = vcmp.lt.s32.totalorder %v1146_v43, %v1089_v13  ;;  %vm1151_vm13 = vcmp.lt.s32.totalorder %v1148_v6, %v1091_v9  ;;  %vm1035_vm10 = vcmp.eq.f32.partialorder %v10883_v32, %v6055_v10  ;;  %v10895_v32 = vld [vmem:[#allocation145_spill] sm:$0xff] }
 0x19b   : > { %v1150_v1 = vsel %vm1149_vm14, %v1146_v43, %v1089_v13  ;;  %v1152_v12 = vsel %vm1151_vm13, %v1148_v6, %v1091_v9  ;;  %vm1037_vm9 = vcmp.eq.f32.partialorder %v5531_v22, %v6055_v10  ;;  %vm1039_vm7 = vcmp.eq.f32.partialorder %v5549_v2, %v6055_v10  ;;  %v10886_v13 = vld [vmem:[#allocation135_spill] sm:$0xff]  ;;  %v10887_v9 = vld [vmem:[#allocation136_spill] sm:$0xff]  ;;  %v10889_v43 = vld [vmem:[#allocation138_spill] sm:$0xff] }
 0x19c   : > { %v2194_v8 = vmax.f32 %v2192_v29, %v2193_v31  ;;  %vm1153_vm12 = vcmp.lt.s32.totalorder %v1150_v1, %v1093_v17  ;;  %vm1155_vm3 = vcmp.lt.s32.totalorder %v1152_v12, %v1095_v26  ;;  %vm1041_vm2 = vcmp.eq.f32.partialorder %v5555_v57, %v6055_v10  ;;  %v10885_v29 = vld [vmem:[#allocation134_spill] sm:$0xff]  ;;  %v10888_v31 = vld [vmem:[#allocation137_spill] sm:$0xff]  ;;  %v10893_v2 = vld [vmem:[#allocation143_spill] sm:$0xff] }
 0x19d   : > { %vm1043_vm8 = vcmp.eq.f32.partialorder %v5750_v47, %v6055_v10  ;;  %vm1045_vm4 = vcmp.eq.f32.partialorder %v5762_v16, %v6055_v10  ;;  %v1097_v11 = vsel %vm1033_vm11, %v4104_v54, 256  ;;  %v1099_v35 = vsel %vm1035_vm10, %v4107_v56, 256  ;;  %v10891_v47 = vld [vmem:[#allocation141_spill] sm:$0xff]  ;;  %v10892_v57 = vld [vmem:[#allocation142_spill] sm:$0xff]  ;;  %v10894_v22 = vld [vmem:[#allocation144_spill] sm:$0xff] }
 0x19e   : > { %v2195_v24 = vrot.slane %v2194_v8, 1  ;;  %v1154_v39 = vsel %vm1153_vm12, %v1150_v1, %v1093_v17  ;;  %v1156_v14 = vsel %vm1155_vm3, %v1152_v12, %v1095_v26  ;;  %vm1047_vm6 = vcmp.eq.f32.partialorder %v10884_v3, %v6055_v10  ;;  %v10890_v12 = vld [vmem:[#allocation139_spill] sm:$0xff] }
 0x19f   : > { %vm1049_vm5 = vcmp.eq.f32.partialorder %v10885_v29, %v6055_v10  ;;  %vm1051_vm1 = vcmp.eq.f32.partialorder %v10886_v13, %v6055_v10  ;;  %vm1053_vm14 = vcmp.eq.f32.partialorder %v10887_v9, %v6055_v10  ;;  %vm1055_vm13 = vcmp.eq.f32.partialorder %v10888_v31, %v6055_v10 }
 0x1a0   : > { %vm1057_vm11 = vcmp.eq.f32.partialorder %v10889_v43, %v6055_v10  ;;  %vm1059_vm10 = vcmp.eq.f32.partialorder %v10890_v12, %v6055_v10  ;;  %v1101_v1 = vsel %vm1037_vm9, %v4110_v58, 256  ;;  %v6252_v6 = vmax.f32 %v2194_v8, %v2195_v24 }
 0x1a1   : > { %v1103_v17 = vsel %vm1039_vm7, %v4113_v59, 256  ;;  %vm1157_vm12 = vcmp.lt.s32.totalorder %v1154_v39, %v1097_v11  ;;  %vm1159_vm3 = vcmp.lt.s32.totalorder %v1156_v14, %v1099_v35  ;;  %v6262_v26 = vsel %vm1041_vm2, %v10619_v53, 256 }
 0x1a2   : > { %v6268_v12 = vsel %vm1043_vm8, %v10778_v20, 256  ;;  %v6274_v8 = vsel %vm1045_vm4, %v10782_v62, 256  ;;  %v6277_v24 = vsel %vm1047_vm6, %v10784_v36, 256  ;;  %v6280_v43 = vsel %vm1049_vm5, %v10786_v19, 256 }
 0x1a3   : > { %v6283_v31 = vsel %vm1051_vm1, %v10789_v21, 256  ;;  %v6286_v9 = vsel %vm1053_vm14, %v10791_v33, 256  ;;  %v6289_v13 = vsel %vm1055_vm13, %v10793_v23, 256  ;;  %v6292_v29 = vsel %vm1057_vm11, %v10794_v15, 256  ;;  %v10908_v33 = vld [vmem:[#allocation26_spill] sm:$0xff]  ;;  %v10909_v21 = vld [vmem:[#allocation27_spill] sm:$0xff] }
 0x1a4   : > { %v6295_v10 = vsel %vm1059_vm10, %v10795_v0, 256  ;;  %v1158_v3 = vsel %vm1157_vm12, %v1154_v39, %v1097_v11  ;;  %v1160_v16 = vsel %vm1159_vm3, %v1156_v14, %v1099_v35  ;;  %vm2198_vm9 = vcmp.eq.f32.partialorder %v10891_v47, %v6252_v6  ;;  %v10897_v11 = vld [vmem:[#allocation149_spill] sm:$0xff]  ;;  %v10898_v35 = vld [vmem:[#allocation150_spill] sm:$0xff]  ;;  %v10899_v39 = vld [vmem:[#allocation151_spill] sm:$0xff] }
 0x1a5   : > { %vm2200_vm7 = vcmp.eq.f32.partialorder %v10892_v57, %v6252_v6  ;;  %vm2202_vm2 = vcmp.eq.f32.partialorder %v10893_v2, %v6252_v6  ;;  %vm2204_vm8 = vcmp.eq.f32.partialorder %v10894_v22, %v6252_v6  ;;  %vm2206_vm4 = vcmp.eq.f32.partialorder %v10895_v32, %v6252_v6  ;;  %v10900_v14 = vld [vmem:[#allocation152_spill] sm:$0xff] }
 0x1a6   : > { %vm2208_vm6 = vcmp.eq.f32.partialorder %v10896_v45, %v6252_v6  ;;  %vm2210_vm5 = vcmp.eq.f32.partialorder %v5901_v37, %v6252_v6  ;;  %vm2212_vm1 = vcmp.eq.f32.partialorder %v5907_v30, %v6252_v6  ;;  %vm2214_vm14 = vcmp.eq.f32.partialorder %v10897_v11, %v6252_v6  ;;  %v10907_v0 = vld [vmem:[#allocation24_spill] sm:$0xff] }
 0x1a7   : > { %vm2220_vm10 = vcmp.eq.f32.partialorder %v10900_v14, %v6252_v6  ;;  %vm2222_vm12 = vcmp.eq.f32.partialorder %v10901_v18, %v6252_v6  ;;  %vm2224_vm3 = vcmp.eq.f32.partialorder %v10902_v4, %v6252_v6  ;;  %vm2226_vm0 = vcmp.eq.f32.partialorder %v10903_v25, %v6252_v6  ;;  %v10913_v25 = vld [vmem:[#allocation159_spill] sm:$0xff] }
 0x1a8   : > { %vm2228_vm15 = vcmp.eq.f32.partialorder %v10904_v61, %v6252_v6  ;;  %vm2230_vm13 = vcmp.eq.f32.partialorder %v10905_v41, %v6252_v6  ;;  %vm2232_vm11 = vcmp.eq.f32.partialorder %v10906_v60, %v6252_v6  ;;  %v2262_v15 = vsel %vm2198_vm9, %v10907_v0, 256  ;;  %v10914_v41 = vld [vmem:[#allocation160_spill] sm:$0xff]  ;;  %v10915_v60 = vld [vmem:[#allocation161_spill] sm:$0xff] }
 0x1a9   : > { %v2264_v23 = vsel %vm2200_vm7, %v10808_v63, 256  ;;  %v2266_v7 = vsel %vm2202_vm2, %v10908_v33, 256  ;;  %v2268_v19 = vsel %vm2204_vm8, %v10909_v21, 256  ;;  %v2270_v47 = vsel %vm2206_vm4, %v10910_v55, 256 }
 0x1aa   : > { %v2272_v57 = vsel %vm2208_vm6, %v10812_v51, 256  ;;  %v2274_v2 = vsel %vm2210_vm5, %v10606_v49, 256  ;;  %v2276_v22 = vsel %vm2212_vm1, %v10607_v28, 256  ;;  %v2278_v32 = vsel %vm2214_vm14, %v10608_v5, 256 }
 0x1ab   : > { %vm10911_vm9 = vcmp.eq.f32.partialorder %v10898_v35, %v6252_v6  ;;  %vm10912_vm7 = vcmp.eq.f32.partialorder %v10899_v39, %v6252_v6  ;;  %v2284_v30 = vsel %vm2220_vm10, %v4083_v40, 256  ;;  %v2286_v11 = vsel %vm2222_vm12, %v4086_v42, 256 }
 0x1ac   : > { %v2280_v45 = vsel %vm10911_vm9, %v4075_v34, 256  ;;  %v2282_v37 = vsel %vm10912_vm7, %v4080_v38, 256  ;;  %v2288_v35 = vsel %vm2224_vm3, %v4089_v44, 256  ;;  %v6393_v39 = vsel %vm2226_vm0, %v4092_v46, 256 }
 0x1ad   : > { %v6399_v14 = vsel %vm2228_vm15, %v4095_v48, 256  ;;  %v6405_v18 = vsel %vm2230_vm13, %v4098_v50, 256  ;;  %v6411_v4 = vsel %vm2232_vm11, %v4101_v52, 256  ;;  %vm2396_vm0 = vcmp.lt.s32.totalorder %v2262_v15, %v2266_v7 }
 0x1ae   : > { %vm2398_vm2 = vcmp.lt.s32.totalorder %v2264_v23, %v2268_v19  ;;  %vm1161_vm8 = vcmp.lt.s32.totalorder %v1158_v3, %v1101_v1  ;;  %vm1163_vm4 = vcmp.lt.s32.totalorder %v1160_v16, %v1103_v17  ;;  %vm2234_vm15 = vcmp.eq.f32.partialorder %v10913_v25, %v6252_v6 }
 0x1af   : > { %v2397_v61 = vsel %vm2396_vm0, %v2262_v15, %v2266_v7  ;;  %v2399_v48 = vsel %vm2398_vm2, %v2264_v23, %v2268_v19  ;;  %v1162_v46 = vsel %vm1161_vm8, %v1158_v3, %v1101_v1  ;;  %v1164_v44 = vsel %vm1163_vm4, %v1160_v16, %v1103_v17  ;;  %v10916_v23 = vld [vmem:[#allocation162_spill] sm:$0xff] }
 0x1b0   : > { %vm2236_vm6 = vcmp.eq.f32.partialorder %v10914_v41, %v6252_v6  ;;  %vm2400_vm5 = vcmp.lt.s32.totalorder %v2397_v61, %v2270_v47  ;;  %vm2402_vm1 = vcmp.lt.s32.totalorder %v2399_v48, %v2272_v57  ;;  %vm1165_vm14 = vcmp.lt.s32.totalorder %v1162_v46, %v6262_v26 }
 0x1b1   : > { %vm1167_vm13 = vcmp.lt.s32.totalorder %v1164_v44, %v6268_v12  ;;  %vm2238_vm11 = vcmp.eq.f32.partialorder %v10915_v60, %v6252_v6  ;;  %v2401_v52 = vsel %vm2400_vm5, %v2397_v61, %v2270_v47  ;;  %v2403_v50 = vsel %vm2402_vm1, %v2399_v48, %v2272_v57  ;;  %v10917_v48 = vld [vmem:[#allocation163_spill] sm:$0xff] }
 0x1b2   : > { %v1166_v42 = vsel %vm1165_vm14, %v1162_v46, %v6262_v26  ;;  %v1168_v19 = vsel %vm1167_vm13, %v1164_v44, %v6268_v12  ;;  %vm2240_vm10 = vcmp.eq.f32.partialorder %v10916_v23, %v6252_v6  ;;  %vm2404_vm12 = vcmp.lt.s32.totalorder %v2401_v52, %v2274_v2  ;;  %v10918_v44 = vld [vmem:[#allocation164_spill] sm:$0xff]  ;;  %v10919_v46 = vld [vmem:[#allocation165_spill] sm:$0xff]  ;;  %v10920_v12 = vld [vmem:[#allocation166_spill] sm:$0xff] }
 0x1b3   : > { %vm2406_vm3 = vcmp.lt.s32.totalorder %v2403_v50, %v2276_v22  ;;  %vm1169_vm9 = vcmp.lt.s32.totalorder %v1166_v42, %v6274_v8  ;;  %vm1171_vm7 = vcmp.lt.s32.totalorder %v1168_v19, %v6277_v24  ;;  %v2405_v15 = vsel %vm2404_vm12, %v2401_v52, %v2274_v2 }
 0x1b4   : > { %v2407_v16 = vsel %vm2406_vm3, %v2403_v50, %v2276_v22  ;;  %v1170_v7 = vsel %vm1169_vm9, %v1166_v42, %v6274_v8  ;;  %v1172_v61 = vsel %vm1171_vm7, %v1168_v19, %v6277_v24  ;;  %vm2242_vm0 = vcmp.eq.f32.partialorder %v10917_v48, %v6252_v6 }
 0x1b5   : > { %vm2244_vm2 = vcmp.eq.f32.partialorder %v10918_v44, %v6252_v6  ;;  %vm2408_vm8 = vcmp.lt.s32.totalorder %v2405_v15, %v2278_v32  ;;  %vm2410_vm4 = vcmp.lt.s32.totalorder %v2407_v16, %v2280_v45  ;;  %vm1173_vm5 = vcmp.lt.s32.totalorder %v1170_v7, %v6280_v43 }
 0x1b6   : > { %vm1175_vm1 = vcmp.lt.s32.totalorder %v1172_v61, %v6283_v31  ;;  %v2409_v50 = vsel %vm2408_vm8, %v2405_v15, %v2278_v32  ;;  %v2411_v52 = vsel %vm2410_vm4, %v2407_v16, %v2280_v45  ;;  %v1174_v42 = vsel %vm1173_vm5, %v1170_v7, %v6280_v43  ;;  %v10924_v7 = vld [vmem:[#allocation170_spill] sm:$0xff] }
 0x1b7   : > { %v1176_v22 = vsel %vm1175_vm1, %v1172_v61, %v6283_v31  ;;  %vm2412_vm13 = vcmp.lt.s32.totalorder %v2409_v50, %v2282_v37  ;;  %vm2414_vm12 = vcmp.lt.s32.totalorder %v2411_v52, %v2284_v30  ;;  %vm1177_vm3 = vcmp.lt.s32.totalorder %v1174_v42, %v6286_v9  ;;  %v10925_v61 = vld [vmem:[#allocation171_spill] sm:$0xff] }
 0x1b8   : > { %vm1179_vm9 = vcmp.lt.s32.totalorder %v1176_v22, %v6289_v13  ;;  %v2413_v57 = vsel %vm2412_vm13, %v2409_v50, %v2282_v37  ;;  %v2415_v2 = vsel %vm2414_vm12, %v2411_v52, %v2284_v30  ;;  %v1178_v47 = vsel %vm1177_vm3, %v1174_v42, %v6286_v9  ;;  %v10926_v50 = vld [vmem:[#allocation49_spill] sm:$0xff]  ;;  %v10927_v42 = vld [vmem:[#allocation50_spill] sm:$0xff] }
 0x1b9   : > { %v1180_v3 = vsel %vm1179_vm9, %v1176_v22, %v6289_v13  ;;  %vm2416_vm7 = vcmp.lt.s32.totalorder %v2413_v57, %v2286_v11  ;;  %vm2418_vm14 = vcmp.lt.s32.totalorder %v2415_v2, %v2288_v35  ;;  %vm1181_vm8 = vcmp.lt.s32.totalorder %v1178_v47, %v6292_v29 }
 0x1ba   : > { %vm1183_vm4 = vcmp.lt.s32.totalorder %v1180_v3, %v6295_v10  ;;  %v2417_v45 = vsel %vm2416_vm7, %v2413_v57, %v2286_v11  ;;  %v2419_v32 = vsel %vm2418_vm14, %v2415_v2, %v2288_v35  ;;  %v1182_v31 = vsel %vm1181_vm8, %v1178_v47, %v6292_v29  ;;  %v10922_v11 = vld [vmem:[#allocation168_spill] sm:$0xff] }
 0x1bb   : > { %v1184_v43 = vsel %vm1183_vm4, %v1180_v3, %v6295_v10  ;;  %v2298_v30 = vsel %vm2234_vm15, %v4104_v54, 256  ;;  %vm2420_vm5 = vcmp.lt.s32.totalorder %v2417_v45, %v6393_v39  ;;  %vm2422_vm1 = vcmp.lt.s32.totalorder %v2419_v32, %v6399_v14  ;;  %v10921_v10 = vld [vmem:[#allocation167_spill] sm:$0xff]  ;;  %v10928_v47 = vld [vmem:[#allocation172_spill] sm:$0xff] }
 0x1bc   : > { %vm1185_vm13 = vcmp.lt.s32.totalorder %v1182_v31, %v1184_v43  ;;  %v2300_v37 = vsel %vm2236_vm6, %v4107_v56, 256  ;;  %v2421_v13 = vsel %vm2420_vm5, %v2417_v45, %v6393_v39  ;;  %v2423_v29 = vsel %vm2422_vm1, %v2419_v32, %v6399_v14  ;;  %v10929_v45 = vld [vmem:[#allocation51_spill] sm:$0xff] }
 0x1bd   : > { %v1186_v9 = vsel %vm1185_vm13, %v1182_v31, %v1184_v43  ;;  %vm2248_vm14 = vcmp.eq.f32.partialorder %v10920_v12, %v6252_v6  ;;  %v2302_v1 = vsel %vm2238_vm11, %v4110_v58, 256  ;;  %vm2424_vm15 = vcmp.lt.s32.totalorder %v2421_v13, %v6405_v18  ;;  %v10930_v31 = vld [vmem:[#allocation52_spill] sm:$0xff] }
 0x1be   : > { %vm2426_vm12 = vcmp.lt.s32.totalorder %v2423_v29, %v6411_v4  ;;  %v2304_v17 = vsel %vm2240_vm10, %v4113_v59, 256  ;;  %v2425_v26 = vsel %vm2424_vm15, %v2421_v13, %v6405_v18  ;;  %v1187_v24 = vrot.slane %v1186_v9, 4  ;;  %v10931_v13 = vld [vmem:[#allocation53_spill] sm:$0xff] }
 0x1bf   : > { %v2427_v8 = vsel %vm2426_vm12, %v2423_v29, %v6411_v4  ;;  %vm2250_vm6 = vcmp.eq.f32.partialorder %v10921_v10, %v6252_v6  ;;  %vm2252_vm11 = vcmp.eq.f32.partialorder %v10922_v11, %v6252_v6  ;;  %vm2428_vm3 = vcmp.lt.s32.totalorder %v2425_v26, %v2298_v30 }
 0x1c0   : > { %vm2430_vm9 = vcmp.lt.s32.totalorder %v2427_v8, %v2300_v37  ;;  %v2306_v35 = vsel %vm2242_vm0, %v10619_v53, 256  ;;  %v2308_v18 = vsel %vm2244_vm2, %v10778_v20, 256  ;;  %v2429_v4 = vsel %vm2428_vm3, %v2425_v26, %v2298_v30 }
 0x1c1   : > { %v2431_v39 = vsel %vm2430_vm9, %v2427_v8, %v2300_v37  ;;  %vm2254_vm10 = vcmp.eq.f32.partialorder %v6093_v27, %v6252_v6  ;;  %vm10923_vm7 = vcmp.eq.f32.partialorder %v10919_v46, %v6252_v6  ;;  %vm2432_vm8 = vcmp.lt.s32.totalorder %v2429_v4, %v2302_v1  ;;  %v10979_v27 = vld [vmem:[#allocation142_spill] sm:$0xff] }
 0x1c2   : > { %v2310_v14 = vsel %vm10923_vm7, %v10782_v62, 256  ;;  %vm2434_vm4 = vcmp.lt.s32.totalorder %v2431_v39, %v2304_v17  ;;  %v2312_v19 = vsel %vm2248_vm14, %v10784_v36, 256  ;;  %v2433_v15 = vsel %vm2432_vm8, %v2429_v4, %v2302_v1  ;;  %v10932_v1 = vld [vmem:[#allocation54_spill] sm:$0xff] }
 0x1c3   : > { %v2435_v16 = vsel %vm2434_vm4, %v2431_v39, %v2304_v17  ;;  %vm1188_vm0 = vcmp.lt.s32.totalorder %v1186_v9, %v1187_v24  ;;  %vm2256_vm2 = vcmp.eq.f32.partialorder %v10924_v7, %v6252_v6  ;;  %vm2258_vm5 = vcmp.eq.f32.partialorder %v10925_v61, %v6252_v6 }
 0x1c4   : > { %vm2436_vm1 = vcmp.lt.s32.totalorder %v2433_v15, %v2306_v35  ;;  %vm2438_vm13 = vcmp.lt.s32.totalorder %v2435_v16, %v2308_v18  ;;  %v2314_v52 = vsel %vm2250_vm6, %v10926_v50, 256  ;;  %v2316_v22 = vsel %vm2252_vm11, %v10927_v42, 256 }
 0x1c5   : > { %v2437_v57 = vsel %vm2436_vm1, %v2433_v15, %v2306_v35  ;;  %v2439_v2 = vsel %vm2438_vm13, %v2435_v16, %v2308_v18  ;;  %vm2260_vm14 = vcmp.eq.f32.partialorder %v10928_v47, %v6252_v6  ;;  %v1189_v3 = vsel %vm1188_vm0, %v1186_v9, %v1187_v24 }
 0x1c6   : > { %vm2440_vm15 = vcmp.lt.s32.totalorder %v2437_v57, %v2310_v14  ;;  %vm2442_vm12 = vcmp.lt.s32.totalorder %v2439_v2, %v2312_v19  ;;  %v2318_v32 = vsel %vm2254_vm10, %v10929_v45, 256  ;;  %v2320_v43 = vsel %vm2256_vm2, %v10930_v31, 256 }
 0x1c7   : > { %v2441_v30 = vsel %vm2440_vm15, %v2437_v57, %v2310_v14  ;;  %v2443_v37 = vsel %vm2442_vm12, %v2439_v2, %v2312_v19  ;;  %v2322_v29 = vsel %vm2258_vm5, %v10931_v13, 256  ;;  %v2324_v17 = vsel %vm2260_vm14, %v10932_v1, 256  ;;  %v10934_v2 = vld [vmem:[#allocation35_spill] sm:$0xff] }
 0x1c8   : > { %vm2444_vm6 = vcmp.lt.s32.totalorder %v2441_v30, %v2314_v52  ;;  %vm2446_vm11 = vcmp.lt.s32.totalorder %v2443_v37, %v2316_v22  ;;  %v1190_v35 = vrot.slane %v1189_v3, 2 }
 0x1c9   : > { %v2445_v26 = vsel %vm2444_vm6, %v2441_v30, %v2314_v52  ;;  %v2447_v8 = vsel %vm2446_vm11, %v2443_v37, %v2316_v22  ;;  %v10939_v37 = vld [vmem:[#allocation39_spill] sm:$0xff] }
 0x1ca   : > { %vm2448_vm3 = vcmp.lt.s32.totalorder %v2445_v26, %v2318_v32  ;;  %vm2450_vm9 = vcmp.lt.s32.totalorder %v2447_v8, %v2320_v43  ;;  %vm1191_vm10 = vcmp.lt.s32.totalorder %v1189_v3, %v1190_v35 }
 0x1cb   : > { %v2449_v9 = vsel %vm2448_vm3, %v2445_v26, %v2318_v32  ;;  %v2451_v24 = vsel %vm2450_vm9, %v2447_v8, %v2320_v43  ;;  %v1192_v14 = vsel %vm1191_vm10, %v1189_v3, %v1190_v35  ;;  %v10935_v3 = vld [vmem:[#allocation36_spill] sm:$0xff]  ;;  %v10936_v32 = vld [vmem:[#allocation37_spill] sm:$0xff]  ;;  %v10937_v43 = vld [vmem:[#allocation38_spill] sm:$0xff] }
 0x1cc   : > { %vm2452_vm7 = vcmp.lt.s32.totalorder %v2449_v9, %v2322_v29  ;;  %vm2454_vm8 = vcmp.lt.s32.totalorder %v2451_v24, %v2324_v17  ;;  %v1193_v15 = vrot.slane %v1192_v14, 1  ;;  %v10943_v8 = vld [vmem:[#allocation113_spill] sm:$0xff] }
 0x1cd   : > { %v2453_v6 = vsel %vm2452_vm7, %v2449_v9, %v2322_v29  ;;  %v2455_v18 = vsel %vm2454_vm8, %v2451_v24, %v2324_v17  ;;  %v10940_v29 = vld [vmem:[#allocation40_spill] sm:$0xff] }
 0x1ce   : > { %vm2456_vm4 = vcmp.lt.s32.totalorder %v2453_v6, %v2455_v18  ;;  %vm1194_vm5 = vcmp.lt.s32.totalorder %v1192_v14, %v1193_v15  ;;  %v10941_v17 = vld [vmem:[#allocation112_spill] sm:$0xff] }
 0x1cf   : > { %v2457_v4 = vsel %vm2456_vm4, %v2453_v6, %v2455_v18  ;;  %v6516_v22 = vsel %vm1194_vm5, %v1192_v14, %v1193_v15  ;;  %v10945_v9 = vld [vmem:[#allocation156_spill] sm:$0xff]  ;;  %v10946_v6 = vld [vmem:[#allocation114_spill] sm:$0xff] }
 0x1d0   : > { %v2458_v39 = vrot.slane %v2457_v4, 4  ;;  %10933 = vst [vmem:[#allocation173_spill] sm:$0xff] %v6516_v22  ;;  %vm10091_vm1 = vcmp.eq.s32.totalorder %v10907_v0, %v6516_v22  ;;  %vm10092_vm13 = vcmp.eq.s32.totalorder %v10808_v63, %v6516_v22  ;;  %vm10093_vm14 = vcmp.eq.s32.totalorder %v10908_v33, %v6516_v22  ;;  %v10950_v14 = vld [vmem:[#allocation116_spill] sm:$0xff] }
 0x1d1   : > { %vm10094_vm15 = vcmp.eq.s32.totalorder %v10909_v21, %v6516_v22  ;;  %vm10095_vm12 = vcmp.eq.s32.totalorder %v10910_v55, %v6516_v22  ;;  %vm10096_vm11 = vcmp.eq.s32.totalorder %v10812_v51, %v6516_v22  ;;  %vm10097_vm3 = vcmp.eq.s32.totalorder %v10606_v49, %v6516_v22  ;;  %v10952_v15 = vld [vmem:[#allocation56_spill] sm:$0xff] }
 0x1d2   : > { %vm2459_vm0 = vcmp.lt.s32.totalorder %v2457_v4, %v2458_v39  ;;  %vm10098_vm9 = vcmp.eq.s32.totalorder %v10607_v28, %v6516_v22  ;;  %vm10099_vm8 = vcmp.eq.s32.totalorder %v4075_v34, %v6516_v22  ;;  %vm10251_vm7 = vcmp.eq.s32.totalorder %v10937_v43, %v6516_v22 }
 0x1d3   : > { %v2460_v19 = vsel %vm2459_vm0, %v2457_v4, %v2458_v39  ;;  %vm10119_vm10 = vcmp.eq.s32.totalorder %v10939_v37, %v6516_v22  ;;  %vm10120_vm4 = vcmp.eq.s32.totalorder %v10940_v29, %v6516_v22  ;;  %vm10121_vm0 = vcmp.eq.s32.totalorder %v4104_v54, %v6516_v22  ;;  %v10948_v4 = vld [vmem:[#allocation115_spill] sm:$0xff] }
 0x1d4   : > { %v2461_v16 = vrot.slane %v2460_v19, 2  ;;  %vm10126_vm5 = vcmp.eq.s32.totalorder %v4107_v56, %v6516_v22  ;;  %v6566_v26 = vsel %vm10091_vm1, -inf, %v10941_v17  ;;  %v6572_v35 = vsel %vm10092_vm13, -inf, %v10943_v8  ;;  %v10956_v17 = vld [vmem:[#allocation118_spill] sm:$0xff] }
 0x1d5   : > { %10942 = vst [vmem:[#allocation36_spill] sm:$0xff] %v6566_v26  ;;  %v6584_v18 = vsel %vm10093_vm14, -inf, %v10946_v6  ;;  %v6590_v39 = vsel %vm10094_vm15, -inf, %v10948_v4  ;;  %v6611_v8 = vsel %vm10097_vm3, -inf, %v10956_v17  ;;  %v10958_v6 = vld [vmem:[#allocation119_spill] sm:$0xff]  ;;  %v10965_v17 = vld [vmem:[#allocation122_spill] sm:$0xff]  ;;  %vm10969_vm3 = vcmp.eq.s32.totalorder %v4083_v40, %v6516_v22 }
 0x1d6   : > { %vm2462_vm2 = vcmp.lt.s32.totalorder %v2460_v19, %v2461_v16  ;;  %10944 = vst [vmem:[#allocation37_spill] sm:$0xff] %v6572_v35  ;;  %v6617_v4 = vsel %vm10098_vm9, -inf, %v10958_v6 }
 0x1d7   : > { %v2463_v52 = vsel %vm2462_vm2, %v2460_v19, %v2461_v16  ;;  %10947 = vst [vmem:[#allocation38_spill] sm:$0xff] %v6584_v18  ;;  %v6596_v19 = vsel %vm10095_vm12, -inf, %v10950_v14  ;;  %vm10961_vm12 = vcmp.eq.s32.totalorder %v10608_v5, %v6516_v22  ;;  %v10963_v14 = vld [vmem:[#allocation121_spill] sm:$0xff] }
 0x1d8   : > { %v2464_v57 = vrot.slane %v2463_v52, 1  ;;  %10949 = vst [vmem:[#allocation156_spill] sm:$0xff] %v6590_v39 }
 0x1d9   : > { %10951 = vst [vmem:[#allocation174_spill] sm:$0xff] %v6596_v19 }
 0x1da   : > { %vm2465_vm6 = vcmp.lt.s32.totalorder %v2463_v52, %v2464_v57  ;;  %10957 = vst [vmem:[#allocation176_spill] sm:$0xff] %v6611_v8 }
 0x1db   : > { %v6550_v30 = vsel %vm2465_vm6, %v2463_v52, %v2464_v57  ;;  %vm10133_vm6 = vcmp.eq.s32.totalorder %v4110_v58, %v6516_v22  ;;  %v10954_v52 = vld [vmem:[#allocation117_spill] sm:$0xff]  ;;  %10959 = vst [vmem:[#allocation177_spill] sm:$0xff] %v6617_v4 }
 0x1dc   : > { %10938 = vst [vmem:[#allocation35_spill] sm:$0xff] %v6550_v30  ;;  %vm2498_vm2 = vcmp.eq.s32.totalorder %v10937_v43, %v6550_v30  ;;  %v6605_v57 = vsel %vm10096_vm11, -inf, %v10954_v52  ;;  %vm10109_vm1 = vcmp.eq.s32.totalorder %v10907_v0, %v6550_v30  ;;  %vm10128_vm13 = vcmp.eq.s32.totalorder %v10808_v63, %v6550_v30  ;;  %v10992_v63 = vld [vmem:[#allocation146_spill] sm:$0xff] }
 0x1dd   : > { %v2562_v24 = vsel %vm2498_vm2, %v10945_v9, 0.0  ;;  %10955 = vst [vmem:[#allocation175_spill] sm:$0xff] %v6605_v57  ;;  %vm10138_vm14 = vcmp.eq.s32.totalorder %v10908_v33, %v6550_v30  ;;  %vm10143_vm15 = vcmp.eq.s32.totalorder %v10909_v21, %v6550_v30  ;;  %v6637_v52 = vsel %vm10099_vm8, -inf, %v10963_v14 }
 0x1de   : > { %v6599_v16 = vadd.f32 %v2562_v24, %v10952_v15  ;;  %v10960_v24 = vld [vmem:[#allocation120_spill] sm:$0xff]  ;;  %10964 = vst [vmem:[#allocation179_spill] sm:$0xff] %v6637_v52  ;;  %vm10966_vm11 = vcmp.eq.s32.totalorder %v4080_v38, %v6516_v22  ;;  %vm10147_vm9 = vcmp.eq.s32.totalorder %v10812_v51, %v6550_v30  ;;  %vm10972_vm8 = vcmp.eq.s32.totalorder %v10934_v2, %v6516_v22 }
 0x1df   : > { %v6631_v15 = vsel %vm10961_vm12, -inf, %v10960_v24  ;;  %v6643_v6 = vsel %vm10966_vm11, -inf, %v10965_v17  ;;  %vm10146_vm12 = vcmp.eq.s32.totalorder %v10910_v55, %v6550_v30  ;;  %v10971_v24 = vld [vmem:[#allocation124_spill] sm:$0xff]  ;;  %v10974_v17 = vld [vmem:[#allocation125_spill] sm:$0xff]  ;;  %vm10975_vm11 = vcmp.eq.s32.totalorder %v10935_v3, %v6516_v22 }
 0x1e0   : > { %10953 = vst [vmem:[#allocation56_spill] sm:$0xff] %v6599_v16  ;;  %v10968_v16 = vld [vmem:[#allocation123_spill] sm:$0xff]  ;;  %v6659_v14 = vsel %vm10972_vm8, -inf, %v10971_v24  ;;  %v6665_v61 = vsel %vm10975_vm11, -inf, %v10974_v17  ;;  %v6677_v1 = vsel %vm10128_vm13, -inf, %v10979_v27  ;;  %v10983_v17 = vld [vmem:[#allocation144_spill] sm:$0xff]  ;;  %vm10151_vm8 = vcmp.eq.s32.totalorder %v10607_v28, %v6550_v30 }
 0x1e1   : > { %10962 = vst [vmem:[#allocation178_spill] sm:$0xff] %v6631_v15  ;;  %v6649_v47 = vsel %vm10969_vm3, -inf, %v10968_v16  ;;  %v10977_v16 = vld [vmem:[#allocation141_spill] sm:$0xff]  ;;  %v10981_v24 = vld [vmem:[#allocation143_spill] sm:$0xff]  ;;  %v6689_v11 = vsel %vm10143_vm15, -inf, %v10983_v17  ;;  %vm10148_vm3 = vcmp.eq.s32.totalorder %v10606_v49, %v6550_v30  ;;  %vm10986_vm11 = vcmp.eq.s32.totalorder %v10936_v32, %v6516_v22 }
 0x1e2   : > { %10967 = vst [vmem:[#allocation180_spill] sm:$0xff] %v6643_v6  ;;  %v6671_v7 = vsel %vm10109_vm1, -inf, %v10977_v16  ;;  %v6683_v13 = vsel %vm10138_vm14, -inf, %v10981_v24  ;;  %v10985_v16 = vld [vmem:[#allocation126_spill] sm:$0xff]  ;;  %v10988_v24 = vld [vmem:[#allocation127_spill] sm:$0xff]  ;;  %v10990_v17 = vld [vmem:[#allocation145_spill] sm:$0xff]  ;;  %vm10207_vm1 = vcmp.eq.s32.totalorder %v4075_v34, %v6550_v30  ;;  %vm2496_vm13 = vcmp.eq.s32.totalorder %v10936_v32, %v6550_v30 }
 0x1e3   : > { %10970 = vst [vmem:[#allocation181_spill] sm:$0xff] %v6649_v47  ;;  %v6699_v27 = vsel %vm10986_vm11, -inf, %v10985_v16  ;;  %v6705_v33 = vsel %vm10251_vm7, -inf, %v10988_v24  ;;  %v6711_v21 = vsel %vm10146_vm12, -inf, %v10990_v17  ;;  %v6717_v0 = vsel %vm10147_vm9, -inf, %v10992_v63  ;;  %v10994_v16 = vld [vmem:[#allocation128_spill] sm:$0xff] }
 0x1e4   : > { %10973 = vst [vmem:[#allocation182_spill] sm:$0xff] %v6659_v14  ;;  %v6723_v10 = vsel %vm10119_vm10, -inf, %v10994_v16  ;;  %v10996_v24 = vld [vmem:[#allocation129_spill] sm:$0xff]  ;;  %vm10158_vm11 = vcmp.eq.s32.totalorder %v10608_v5, %v6550_v30  ;;  %v2760_v17 = vmax.f32 %v6671_v7, %v6683_v13  ;;  %v2761_v63 = vmax.f32 %v6677_v1, %v6689_v11  ;;  %v10998_v16 = vld [vmem:[#allocation147_spill] sm:$0xff] }
 0x1e5   : > { %10976 = vst [vmem:[#allocation183_spill] sm:$0xff] %v6665_v61  ;;  %v6729_v12 = vsel %vm10120_vm4, -inf, %v10996_v24  ;;  %v6743_v51 = vsel %vm10148_vm3, -inf, %v10998_v16  ;;  %v11000_v24 = vld [vmem:[#allocation148_spill] sm:$0xff]  ;;  %vm10233_vm10 = vcmp.eq.s32.totalorder %v4080_v38, %v6550_v30  ;;  %vm10236_vm4 = vcmp.eq.s32.totalorder %v4083_v40, %v6550_v30  ;;  %v11018_v40 = vld [vmem:[#allocation154_spill] sm:$0xff] }
 0x1e6   : > { %10978 = vst [vmem:[#allocation184_spill] sm:$0xff] %v6671_v7  ;;  %v6749_v55 = vsel %vm10151_vm8, -inf, %v11000_v24  ;;  %v11004_v7 = vld [vmem:[#allocation81_spill] sm:$0xff]  ;;  %v2762_v16 = vmax.f32 %v2760_v17, %v6711_v21  ;;  %v2763_v24 = vmax.f32 %v2761_v63, %v6717_v0  ;;  %v1523_v5 = vmax.f32 %v6566_v26, %v6584_v18 }
 0x1e7   : > { %10980 = vst [vmem:[#allocation185_spill] sm:$0xff] %v6677_v1  ;;  %v11010_v1 = vld [vmem:[#allocation84_spill] sm:$0xff]  ;;  %vm10157_vm14 = vcmp.eq.s32.totalorder %v10940_v29, %v6550_v30  ;;  %vm10159_vm15 = vcmp.eq.s32.totalorder %v4104_v54, %v6550_v30  ;;  %vm10161_vm12 = vcmp.eq.s32.totalorder %v4107_v56, %v6550_v30  ;;  %vm10182_vm9 = vcmp.eq.s32.totalorder %v4113_v59, %v6516_v22 }
 0x1e8   : > { %10982 = vst [vmem:[#allocation186_spill] sm:$0xff] %v6683_v13  ;;  %v6787_v63 = vsel %vm10133_vm6, -inf, %v11010_v1  ;;  %v2764_v17 = vmax.f32 %v2762_v16, %v6743_v51  ;;  %v11014_v1 = vld [vmem:[#allocation152_spill] sm:$0xff]  ;;  %v1524_v16 = vmax.f32 %v6572_v35, %v6590_v39  ;;  %vm10156_vm6 = vcmp.eq.s32.totalorder %v10939_v37, %v6550_v30  ;;  %v11053_v35 = vld [vmem:[#allocation133_spill] sm:$0xff] }
 0x1e9   : > { %10984 = vst [vmem:[#allocation187_spill] sm:$0xff] %v6689_v11  ;;  %v6761_v11 = vsel %vm10126_vm5, -inf, %v11004_v7  ;;  %v11008_v7 = vld [vmem:[#allocation150_spill] sm:$0xff]  ;;  %vm2494_vm5 = vcmp.eq.s32.totalorder %v10935_v3, %v6550_v30  ;;  %v1525_v26 = vmax.f32 %v1523_v5, %v6596_v19  ;;  %vm10163_vm3 = vcmp.eq.s32.totalorder %v4110_v58, %v6550_v30 }
 0x1ea   : > { %10987 = vst [vmem:[#allocation188_spill] sm:$0xff] %v6699_v27  ;;  %v6781_v49 = vsel %vm10207_vm1, -inf, %v11008_v7  ;;  %v11012_v7 = vld [vmem:[#allocation151_spill] sm:$0xff]  ;;  %v6828_v39 = vsel %vm2494_vm5, -inf, %v11018_v40  ;;  %vm10165_vm8 = vcmp.eq.s32.totalorder %v4113_v59, %v6550_v30  ;;  %vm10215_vm1 = vcmp.eq.s32.totalorder %v10927_v42, %v6516_v22 }
 0x1eb   : > { %10989 = vst [vmem:[#allocation189_spill] sm:$0xff] %v6705_v33  ;;  %v6801_v34 = vsel %vm10233_vm10, -inf, %v11012_v7  ;;  %v11016_v7 = vld [vmem:[#allocation153_spill] sm:$0xff]  ;;  %v1527_v19 = vmax.f32 %v1525_v26, %v6611_v8 }
 0x1ec   : > { %10991 = vst [vmem:[#allocation190_spill] sm:$0xff] %v6711_v21 }
 0x1ed   : > { %10993 = vst [vmem:[#allocation191_spill] sm:$0xff] %v6717_v0  ;;  %v6807_v0 = vsel %vm10236_vm4, -inf, %v11014_v1  ;;  %v1529_v8 = vmax.f32 %v1527_v19, %v6631_v15 }
 0x1ee   : > { %10995 = vst [vmem:[#allocation192_spill] sm:$0xff] %v6723_v10 }
 0x1ef   : > { %10997 = vst [vmem:[#allocation193_spill] sm:$0xff] %v6729_v12  ;;  %v11002_v12 = vld [vmem:[#allocation130_spill] sm:$0xff]  ;;  %v1531_v15 = vmax.f32 %v1529_v8, %v6643_v6  ;;  %v11045_v6 = vld [vmem:[#allocation88_spill] sm:$0xff] }
 0x1f0   : > { %10999 = vst [vmem:[#allocation194_spill] sm:$0xff] %v6743_v51  ;;  %v6755_v13 = vsel %vm10121_vm0, -inf, %v11002_v12  ;;  %vm10246_vm0 = vcmp.eq.s32.totalorder %v10934_v2, %v6550_v30  ;;  %v11006_v12 = vld [vmem:[#allocation149_spill] sm:$0xff] }
 0x1f1   : > { %11001 = vst [vmem:[#allocation195_spill] sm:$0xff] %v6749_v55  ;;  %v6775_v28 = vsel %vm10158_vm11, -inf, %v11006_v12  ;;  %v2765_v12 = vmax.f32 %v2763_v24, %v6749_v55  ;;  %v6822_v1 = vsel %vm10246_vm0, -inf, %v11016_v7  ;;  %v11019_v7 = vld [vmem:[#allocation155_spill] sm:$0xff]  ;;  %vm10183_vm11 = vcmp.eq.s32.totalorder %v10782_v62, %v6550_v30 }
 0x1f2   : > { %11003 = vst [vmem:[#allocation196_spill] sm:$0xff] %v6755_v13  ;;  %v2766_v24 = vmax.f32 %v2764_v17, %v6775_v28  ;;  %v1526_v17 = vmax.f32 %v1524_v16, %v6605_v57  ;;  %v6842_v40 = vsel %vm2496_vm13, -inf, %v11019_v7  ;;  %v6848_v16 = vsel %vm2498_vm2, -inf, %v10945_v9  ;;  %v11020_v57 = vld [vmem:[#allocation157_spill] sm:$0xff]  ;;  %v11022_v7 = vld [vmem:[#allocation158_spill] sm:$0xff] }
 0x1f3   : > { %11005 = vst [vmem:[#allocation197_spill] sm:$0xff] %v6761_v11  ;;  %v2767_v18 = vmax.f32 %v2765_v12, %v6781_v49  ;;  %v6864_v9 = vsel %vm10156_vm6, -inf, %v11020_v57  ;;  %vm10167_vm2 = vcmp.eq.s32.totalorder %v10619_v53, %v6550_v30  ;;  %vm10181_vm6 = vcmp.eq.s32.totalorder %v10778_v20, %v6550_v30 }
 0x1f4   : > { %11007 = vst [vmem:[#allocation198_spill] sm:$0xff] %v6775_v28  ;;  %v2768_v5 = vmax.f32 %v2766_v24, %v6801_v34  ;;  %v1528_v26 = vmax.f32 %v1526_v17, %v6617_v4  ;;  %v6870_v17 = vsel %vm10157_vm14, -inf, %v11022_v7  ;;  %v6884_v57 = vsel %vm10159_vm15, -inf, %v10913_v25 }
 0x1f5   : > { %11009 = vst [vmem:[#allocation199_spill] sm:$0xff] %v6781_v49  ;;  %v2769_v12 = vmax.f32 %v2767_v18, %v6807_v0  ;;  %vm10196_vm14 = vcmp.eq.s32.totalorder %v10619_v53, %v6516_v22  ;;  %v1533_v7 = vmax.f32 %v1531_v15, %v6659_v14  ;;  %vm10197_vm15 = vcmp.eq.s32.totalorder %v10784_v36, %v6550_v30  ;;  %v11038_v14 = vld [vmem:[#allocation168_spill] sm:$0xff] }
 0x1f6   : > { %11011 = vst [vmem:[#allocation200_spill] sm:$0xff] %v6787_v63  ;;  %v2770_v18 = vmax.f32 %v2768_v5, %v6822_v1  ;;  %v1530_v5 = vmax.f32 %v1528_v26, %v6637_v52  ;;  %v6890_v26 = vsel %vm10161_vm12, -inf, %v10914_v41  ;;  %v6906_v25 = vsel %vm10163_vm3, -inf, %v10915_v60  ;;  %v11047_v52 = vld [vmem:[#allocation131_spill] sm:$0xff] }
 0x1f7   : > { %11013 = vst [vmem:[#allocation201_spill] sm:$0xff] %v6801_v34  ;;  %v2771_v24 = vmax.f32 %v2769_v12, %v6828_v39  ;;  %vm10230_vm12 = vcmp.eq.s32.totalorder %v10926_v50, %v6550_v30  ;;  %v1535_v41 = vmax.f32 %v1533_v7, %v6699_v27  ;;  %vm10235_vm3 = vcmp.eq.s32.totalorder %v10927_v42, %v6550_v30 }
 0x1f8   : > { %11015 = vst [vmem:[#allocation202_spill] sm:$0xff] %v6807_v0  ;;  %v2772_v19 = vmax.f32 %v2770_v18, %v6842_v40  ;;  %v1532_v8 = vmax.f32 %v1530_v5, %v6649_v47  ;;  %v6912_v5 = vsel %vm10165_vm8, -inf, %v10916_v23  ;;  %v6926_v60 = vsel %vm10167_vm2, -inf, %v10917_v48 }
 0x1f9   : > { %11017 = vst [vmem:[#allocation203_spill] sm:$0xff] %v6822_v1  ;;  %v2773_v12 = vmax.f32 %v2771_v24, %v6848_v16  ;;  %vm10238_vm8 = vcmp.eq.s32.totalorder %v10929_v45, %v6550_v30  ;;  %v1537_v23 = vmax.f32 %v1535_v41, %v6723_v10  ;;  %vm2526_vm2 = vcmp.eq.s32.totalorder %v10930_v31, %v6550_v30  ;;  %v11034_v10 = vld [vmem:[#allocation85_spill] sm:$0xff] }
 0x1fa   : > { %11021 = vst [vmem:[#allocation204_spill] sm:$0xff] %v6864_v9  ;;  %v2774_v18 = vmax.f32 %v2772_v19, %v6864_v9  ;;  %v1534_v19 = vmax.f32 %v1532_v8, %v6665_v61  ;;  %v6932_v8 = vsel %vm10181_vm6, -inf, %v10918_v44  ;;  %v6946_v48 = vsel %vm10183_vm11, -inf, %v10919_v46  ;;  %v11031_v44 = vld [vmem:[#allocation166_spill] sm:$0xff]  ;;  %v11036_v61 = vld [vmem:[#allocation167_spill] sm:$0xff] }
 0x1fb   : > { %11023 = vst [vmem:[#allocation205_spill] sm:$0xff] %v6870_v17  ;;  %v2775_v24 = vmax.f32 %v2773_v12, %v6870_v17  ;;  %v6961_v27 = vsel %vm10182_vm9, -inf, %v11034_v10  ;;  %v1539_v46 = vmax.f32 %v1537_v23, %v6755_v13  ;;  %vm10206_vm6 = vcmp.eq.s32.totalorder %v10778_v20, %v6516_v22  ;;  %v11041_v23 = vld [vmem:[#allocation54_spill] sm:$0xff]  ;;  %v11042_v13 = vld [vmem:[#allocation169_spill] sm:$0xff] }
 0x1fc   : > { %11024 = vst [vmem:[#allocation206_spill] sm:$0xff] %v6884_v57  ;;  %v2776_v15 = vmax.f32 %v2774_v18, %v6884_v57  ;;  %v1536_v18 = vmax.f32 %v1534_v19, %v6705_v33  ;;  %v6952_v19 = vsel %vm10197_vm15, -inf, %v11031_v44  ;;  %v6968_v44 = vsel %vm10230_vm12, -inf, %v11036_v61 }
 0x1fd   : > { %11025 = vst [vmem:[#allocation207_spill] sm:$0xff] %v6890_v26  ;;  %v2777_v12 = vmax.f32 %v2775_v24, %v6890_v26  ;;  %vm2530_vm11 = vcmp.eq.s32.totalorder %v11041_v23, %v6550_v30  ;;  %v7011_v4 = vsel %vm10206_vm6, -inf, %v11047_v52  ;;  %vm10211_vm15 = vcmp.eq.s32.totalorder %v10784_v36, %v6516_v22 }
 0x1fe   : > { %11026 = vst [vmem:[#allocation208_spill] sm:$0xff] %v6906_v25  ;;  %v2778_v7 = vmax.f32 %v2776_v15, %v6906_v25  ;;  %v11033_v15 = vld [vmem:[#allocation193_spill] sm:$0xff]  ;;  %vm10214_vm6 = vcmp.eq.s32.totalorder %v10926_v50, %v6516_v22 }
 0x1ff   : > { %11027 = vst [vmem:[#allocation209_spill] sm:$0xff] %v6912_v5  ;;  %v2779_v24 = vmax.f32 %v2777_v12, %v6912_v5  ;;  %v1538_v33 = vmax.f32 %v1536_v18, %v11033_v15  ;;  %v6974_v18 = vsel %vm10235_vm3, -inf, %v11038_v14  ;;  %v6989_v14 = vsel %vm10238_vm8, -inf, %v11042_v13  ;;  %v11044_v15 = vld [vmem:[#allocation170_spill] sm:$0xff] }
 0x200   : > { %11028 = vst [vmem:[#allocation210_spill] sm:$0xff] %v6926_v60  ;;  %v2780_v12 = vmax.f32 %v2778_v7, %v6926_v60  ;;  %v7005_v13 = vsel %vm10196_vm14, -inf, %v11045_v6  ;;  %vm10210_vm14 = vcmp.eq.s32.totalorder %v10782_v62, %v6516_v22 }
 0x201   : > { %11029 = vst [vmem:[#allocation211_spill] sm:$0xff] %v6932_v8  ;;  %v2781_v41 = vmax.f32 %v2779_v24, %v6932_v8  ;;  %v1540_v7 = vmax.f32 %v1538_v33, %v6761_v11  ;;  %v11040_v24 = vld [vmem:[#allocation53_spill] sm:$0xff]  ;;  %v6995_v33 = vsel %vm2526_vm2, -inf, %v11044_v15  ;;  %v1541_v11 = vmax.f32 %v1539_v46, %v6787_v63  ;;  %v11049_v15 = vld [vmem:[#allocation171_spill] sm:$0xff] }
 0x202   : > { %11030 = vst [vmem:[#allocation212_spill] sm:$0xff] %v6946_v48  ;;  %vm2528_vm9 = vcmp.eq.s32.totalorder %v11040_v24, %v6550_v30  ;;  %v2782_v10 = vmax.f32 %v2780_v12, %v6946_v48  ;;  %v11051_v30 = vld [vmem:[#allocation132_spill] sm:$0xff] }
 0x203   : > { %11032 = vst [vmem:[#allocation213_spill] sm:$0xff] %v6952_v19  ;;  %v2783_v61 = vmax.f32 %v2781_v41, %v6952_v19  ;;  %v1542_v47 = vmax.f32 %v1540_v7, %v6961_v27  ;;  %v7017_v46 = vsel %vm2528_vm9, -inf, %v11049_v15  ;;  %v1543_v52 = vmax.f32 %v1541_v11, %v7005_v13 }
 0x204   : > { %11035 = vst [vmem:[#allocation214_spill] sm:$0xff] %v6961_v27  ;;  %v2784_v12 = vmax.f32 %v2782_v10, %v6968_v44  ;;  %v11050_v10 = vld [vmem:[#allocation172_spill] sm:$0xff] }
 0x205   : > { %11037 = vst [vmem:[#allocation215_spill] sm:$0xff] %v6968_v44  ;;  %v2785_v41 = vmax.f32 %v2783_v61, %v6974_v18  ;;  %v7023_v61 = vsel %vm2530_vm11, -inf, %v11050_v10  ;;  %v1544_v27 = vmax.f32 %v1542_v47, %v7011_v4  ;;  %v7039_v10 = vsel %vm10210_vm14, -inf, %v11051_v30 }
 0x206   : > { %11039 = vst [vmem:[#allocation216_spill] sm:$0xff] %v6974_v18  ;;  %v2786_v7 = vmax.f32 %v2784_v12, %v6989_v14  ;;  %v7045_v12 = vsel %vm10211_vm15, -inf, %v11053_v35  ;;  %v1545_v47 = vmax.f32 %v1543_v52, %v7039_v10  ;;  %v11057_v35 = vld [vmem:[#allocation135_spill] sm:$0xff]  ;;  %vm10229_vm14 = vcmp.eq.s32.totalorder %v10929_v45, %v6516_v22 }
 0x207   : > { %11043 = vst [vmem:[#allocation217_spill] sm:$0xff] %v6989_v14  ;;  %v2787_v6 = vmax.f32 %v2785_v41, %v6995_v33  ;;  %vm10234_vm15 = vcmp.eq.s32.totalorder %v10930_v31, %v6516_v22 }
 0x208   : > { %11046 = vst [vmem:[#allocation218_spill] sm:$0xff] %v7005_v13  ;;  %v2788_v63 = vmax.f32 %v2786_v7, %v7017_v46  ;;  %v11055_v7 = vld [vmem:[#allocation134_spill] sm:$0xff] }
 0x209   : > { %11048 = vst [vmem:[#allocation219_spill] sm:$0xff] %v7011_v4  ;;  %v2789_v15 = vmax.f32 %v2787_v6, %v7023_v61  ;;  %v1546_v6 = vmax.f32 %v1544_v27, %v7045_v12  ;;  %v7057_v30 = vsel %vm10214_vm6, -inf, %v11055_v7  ;;  %v7063_v4 = vsel %vm10215_vm1, -inf, %v11057_v35 }
 0x20a   : > { %11052 = vst [vmem:[#allocation220_spill] sm:$0xff] %v7039_v10  ;;  %v1547_v52 = vmax.f32 %v1545_v47, %v7057_v30  ;;  %vm10237_vm6 = vcmp.eq.s32.totalorder %v11040_v24, %v6516_v22  ;;  %vm10247_vm1 = vcmp.eq.s32.totalorder %v11041_v23, %v6516_v22  ;;  %v11067_v24 = vld [vmem:[#allocation184_spill] sm:$0xff]  ;;  %v11069_v22 = vld [vmem:[#allocation186_spill] sm:$0xff] }
 0x20b   : > { %11054 = vst [vmem:[#allocation221_spill] sm:$0xff] %v7045_v12  ;;  %v2790_v11 = vmax.f32 %v2788_v63, %v2789_v15  ;;  %v1548_v63 = vmax.f32 %v1546_v6, %v7063_v4  ;;  %v11059_v15 = vld [vmem:[#allocation136_spill] sm:$0xff]  ;;  %v11061_v12 = vld [vmem:[#allocation137_spill] sm:$0xff] }
 0x20c   : > { %11056 = vst [vmem:[#allocation222_spill] sm:$0xff] %v7057_v30  ;;  %v7075_v7 = vsel %vm10229_vm14, -inf, %v11059_v15  ;;  %v7081_v35 = vsel %vm10234_vm15, -inf, %v11061_v12 }
 0x20d   : > { %v2791_v41 = vrot.slane %v2790_v11, 4  ;;  %11058 = vst [vmem:[#allocation223_spill] sm:$0xff] %v7063_v4  ;;  %v1549_v47 = vmax.f32 %v1547_v52, %v7075_v7  ;;  %v1550_v6 = vmax.f32 %v1548_v63, %v7081_v35  ;;  %v11065_v4 = vld [vmem:[#allocation139_spill] sm:$0xff] }
 0x20e   : > { %11060 = vst [vmem:[#allocation224_spill] sm:$0xff] %v7075_v7  ;;  %v7099_v12 = vsel %vm10247_vm1, -inf, %v11065_v4 }
 0x20f   : > { %v2792_v27 = vmax.f32 %v2790_v11, %v2791_v41  ;;  %11062 = vst [vmem:[#allocation225_spill] sm:$0xff] %v7081_v35  ;;  %v11063_v41 = vld [vmem:[#allocation138_spill] sm:$0xff]  ;;  %v1552_v13 = vmax.f32 %v1550_v6, %v7099_v12 }
 0x210   : > { %v7093_v15 = vsel %vm10237_vm6, -inf, %v11063_v41  ;;  %11066 = vst [vmem:[#allocation227_spill] sm:$0xff] %v7099_v12  ;;  %v11068_v41 = vld [vmem:[#allocation185_spill] sm:$0xff] }
 0x211   : > { %v2793_v11 = vrot.slane %v2792_v27, 2  ;;  %11064 = vst [vmem:[#allocation226_spill] sm:$0xff] %v7093_v15  ;;  %v1551_v10 = vmax.f32 %v1549_v47, %v7093_v15  ;;  %v11073_v47 = vld [vmem:[#allocation25_spill] sm:$0xff] }
 0x213   : > { %v2794_v30 = vmax.f32 %v2792_v27, %v2793_v11  ;;  %v1553_v7 = vmax.f32 %v1551_v10, %v1552_v13  ;;  %v11070_v27 = vld [vmem:[#allocation187_spill] sm:$0xff] }
 0x214   : > { %v11071_v13 = vld [vmem:[#allocation191_spill] sm:$0xff] }
 0x215   : > { %v2795_v52 = vrot.slane %v2794_v30, 1  ;;  %v1554_v35 = vrot.slane %v1553_v7, 4 }
 0x217   : > { %v7103_v63 = vmax.f32 %v2794_v30, %v2795_v52  ;;  %v7113_v11 = vmax.f32 %v1553_v7, %v1554_v35  ;;  %v11072_v30 = vld [vmem:[#allocation24_spill] sm:$0xff]  ;;  %v11074_v52 = vld [vmem:[#allocation26_spill] sm:$0xff] }
 0x218   : > { %v11076_v35 = vld [vmem:[#allocation28_spill] sm:$0xff] }
 0x219   : > { %vm2798_vm14 = vcmp.eq.f32.partialorder %v11067_v24, %v7103_v63  ;;  %vm2800_vm12 = vcmp.eq.f32.partialorder %v11068_v41, %v7103_v63  ;;  %vm2802_vm10 = vcmp.eq.f32.partialorder %v11069_v22, %v7103_v63  ;;  %vm2804_vm15 = vcmp.eq.f32.partialorder %v11070_v27, %v7103_v63  ;;  %v11075_v41 = vld [vmem:[#allocation27_spill] sm:$0xff]  ;;  %v11077_v22 = vld [vmem:[#allocation29_spill] sm:$0xff] }
 0x21a   : > { %vm2806_vm3 = vcmp.eq.f32.partialorder %v6711_v21, %v7103_v63  ;;  %vm2808_vm4 = vcmp.eq.f32.partialorder %v11071_v13, %v7103_v63  ;;  %v2862_v10 = vsel %vm2798_vm14, %v11072_v30, 256  ;;  %v2864_v6 = vsel %vm2800_vm12, %v11073_v47, 256  ;;  %v11078_v13 = vld [vmem:[#allocation30_spill] sm:$0xff]  ;;  %v11080_v21 = vld [vmem:[#allocation32_spill] sm:$0xff] }
 0x21b   : > { %v2866_v24 = vsel %vm2802_vm10, %v11074_v52, 256  ;;  %v2868_v4 = vsel %vm2804_vm15, %v11075_v41, 256  ;;  %vm2810_vm6 = vcmp.eq.f32.partialorder %v6743_v51, %v7103_v63  ;;  %vm2812_vm8 = vcmp.eq.f32.partialorder %v6749_v55, %v7103_v63  ;;  %v11079_v51 = vld [vmem:[#allocation31_spill] sm:$0xff] }
 0x21c   : > { %v2870_v7 = vsel %vm2806_vm3, %v11076_v35, 256  ;;  %v2872_v27 = vsel %vm2808_vm4, %v11077_v22, 256  ;;  %vm2814_vm14 = vcmp.eq.f32.partialorder %v6775_v28, %v7103_v63  ;;  %vm2816_vm10 = vcmp.eq.f32.partialorder %v6781_v49, %v7103_v63  ;;  %v11081_v22 = vld [vmem:[#allocation33_spill] sm:$0xff] }
 0x21d   : > { %vm2996_vm12 = vcmp.lt.s32.totalorder %v2862_v10, %v2866_v24  ;;  %vm2998_vm15 = vcmp.lt.s32.totalorder %v2864_v6, %v2868_v4  ;;  %v2874_v12 = vsel %vm2810_vm6, %v11078_v13, 256  ;;  %v2876_v15 = vsel %vm2812_vm8, %v11079_v51, 256 }
 0x21e   : > { %v2997_v41 = vsel %vm2996_vm12, %v2862_v10, %v2866_v24  ;;  %v2999_v55 = vsel %vm2998_vm15, %v2864_v6, %v2868_v4  ;;  %vm2818_vm3 = vcmp.eq.f32.partialorder %v6801_v34, %v7103_v63  ;;  %vm2820_vm4 = vcmp.eq.f32.partialorder %v6807_v0, %v7103_v63  ;;  %v11082_v24 = vld [vmem:[#allocation34_spill] sm:$0xff] }
 0x21f   : > { %vm3000_vm0 = vcmp.lt.s32.totalorder %v2997_v41, %v2870_v7  ;;  %vm3002_vm1 = vcmp.lt.s32.totalorder %v2999_v55, %v2872_v27  ;;  %v2878_v28 = vsel %vm2814_vm14, %v11080_v21, 256  ;;  %v2880_v49 = vsel %vm2816_vm10, %v11081_v22, 256 }
 0x220   : > { %v3001_v35 = vsel %vm3000_vm0, %v2997_v41, %v2870_v7  ;;  %v3003_v47 = vsel %vm3002_vm1, %v2999_v55, %v2872_v27  ;;  %vm2822_vm6 = vcmp.eq.f32.partialorder %v6822_v1, %v7103_v63  ;;  %vm2824_vm8 = vcmp.eq.f32.partialorder %v6828_v39, %v7103_v63  ;;  %v11119_v1 = vld [vmem:[#allocation171_spill] sm:$0xff] }
 0x221   : > { %vm3004_vm12 = vcmp.lt.s32.totalorder %v3001_v35, %v2874_v12  ;;  %vm3006_vm15 = vcmp.lt.s32.totalorder %v3003_v47, %v2876_v15  ;;  %v2882_v4 = vsel %vm2818_vm3, %v4080_v38, 256  ;;  %v2884_v10 = vsel %vm2820_vm4, %v11082_v24, 256 }
 0x222   : > { %v3005_v6 = vsel %vm3004_vm12, %v3001_v35, %v2874_v12  ;;  %v3007_v34 = vsel %vm3006_vm15, %v3003_v47, %v2876_v15  ;;  %vm2826_vm14 = vcmp.eq.f32.partialorder %v6842_v40, %v7103_v63  ;;  %vm2828_vm1 = vcmp.eq.f32.partialorder %v6848_v16, %v7103_v63 }
 0x223   : > { %vm3008_vm0 = vcmp.lt.s32.totalorder %v3005_v6, %v2878_v28  ;;  %vm3010_vm10 = vcmp.lt.s32.totalorder %v3007_v34, %v2880_v49  ;;  %v2886_v55 = vsel %vm2822_vm6, %v10934_v2, 256  ;;  %v2888_v41 = vsel %vm2824_vm8, %v10935_v3, 256 }
 0x224   : > { %v3009_v27 = vsel %vm3008_vm0, %v3005_v6, %v2878_v28  ;;  %v3011_v7 = vsel %vm3010_vm10, %v3007_v34, %v2880_v49  ;;  %vm2830_vm3 = vcmp.eq.f32.partialorder %v6864_v9, %v7103_v63  ;;  %vm2832_vm4 = vcmp.eq.f32.partialorder %v6870_v17, %v7103_v63 }
 0x225   : > { %vm3012_vm12 = vcmp.lt.s32.totalorder %v3009_v27, %v2882_v4  ;;  %vm3014_vm15 = vcmp.lt.s32.totalorder %v3011_v7, %v2884_v10  ;;  %v2890_v12 = vsel %vm2826_vm14, %v10936_v32, 256  ;;  %v2892_v15 = vsel %vm2828_vm1, %v10937_v43, 256 }
 0x226   : > { %v3013_v47 = vsel %vm3012_vm12, %v3009_v27, %v2882_v4  ;;  %v3015_v35 = vsel %vm3014_vm15, %v3011_v7, %v2884_v10  ;;  %vm2834_vm6 = vcmp.eq.f32.partialorder %v6884_v57, %v7103_v63  ;;  %vm2836_vm8 = vcmp.eq.f32.partialorder %v6890_v26, %v7103_v63 }
 0x227   : > { %vm3016_vm0 = vcmp.lt.s32.totalorder %v3013_v47, %v2886_v55  ;;  %vm3018_vm10 = vcmp.lt.s32.totalorder %v3015_v35, %v2888_v41  ;;  %v2894_v34 = vsel %vm2830_vm3, %v10939_v37, 256  ;;  %v2896_v49 = vsel %vm2832_vm4, %v10940_v29, 256 }
 0x228   : > { %v3017_v28 = vsel %vm3016_vm0, %v3013_v47, %v2886_v55  ;;  %v3019_v6 = vsel %vm3018_vm10, %v3015_v35, %v2888_v41  ;;  %vm2838_vm14 = vcmp.eq.f32.partialorder %v6906_v25, %v7103_v63  ;;  %vm2840_vm1 = vcmp.eq.f32.partialorder %v6912_v5, %v7103_v63  ;;  %v11087_v25 = vld [vmem:[#allocation23_spill] sm:$0xff]  ;;  %v3590_v5 = vld [vmem:[%s3904_s7 + $0x1d8] sm:$0xff] }
 0x229   : > { %vm3020_vm12 = vcmp.lt.s32.totalorder %v3017_v28, %v2890_v12  ;;  %vm3022_vm15 = vcmp.lt.s32.totalorder %v3019_v6, %v2892_v15  ;;  %v2898_v4 = vsel %vm2834_vm6, %v4104_v54, 256  ;;  %v2900_v10 = vsel %vm2836_vm8, %v4107_v56, 256 }
 0x22a   : > { %v3021_v27 = vsel %vm3020_vm12, %v3017_v28, %v2890_v12  ;;  %v3023_v7 = vsel %vm3022_vm15, %v3019_v6, %v2892_v15  ;;  %vm2842_vm3 = vcmp.eq.f32.partialorder %v6926_v60, %v7103_v63  ;;  %vm2844_vm4 = vcmp.eq.f32.partialorder %v6932_v8, %v7103_v63  ;;  %v11103_v8 = vld [vmem:[#allocation140_spill] sm:$0xff] }
 0x22b   : > { %vm3024_vm0 = vcmp.lt.s32.totalorder %v3021_v27, %v2894_v34  ;;  %vm3026_vm10 = vcmp.lt.s32.totalorder %v3023_v7, %v2896_v49  ;;  %v2902_v55 = vsel %vm2838_vm14, %v4110_v58, 256  ;;  %v2904_v41 = vsel %vm2840_vm1, %v4113_v59, 256 }
 0x22c   : > { %v3025_v47 = vsel %vm3024_vm0, %v3021_v27, %v2894_v34  ;;  %v3027_v35 = vsel %vm3026_vm10, %v3023_v7, %v2896_v49  ;;  %vm2846_vm6 = vcmp.eq.f32.partialorder %v6946_v48, %v7103_v63  ;;  %vm2848_vm8 = vcmp.eq.f32.partialorder %v6952_v19, %v7103_v63  ;;  %v11105_v19 = vld [vmem:[#allocation76_spill] sm:$0xff] }
 0x22d   : > { %vm3028_vm12 = vcmp.lt.s32.totalorder %v3025_v47, %v2898_v4  ;;  %vm3030_vm15 = vcmp.lt.s32.totalorder %v3027_v35, %v2900_v10  ;;  %v2906_v12 = vsel %vm2842_vm3, %v10619_v53, 256  ;;  %v2908_v15 = vsel %vm2844_vm4, %v10778_v20, 256 }
 0x22e   : > { %v3029_v28 = vsel %vm3028_vm12, %v3025_v47, %v2898_v4  ;;  %v3031_v6 = vsel %vm3030_vm15, %v3027_v35, %v2900_v10  ;;  %vm2850_vm14 = vcmp.eq.f32.partialorder %v6968_v44, %v7103_v63  ;;  %vm2852_vm1 = vcmp.eq.f32.partialorder %v6974_v18, %v7103_v63 }
 0x22f   : > { %vm3032_vm0 = vcmp.lt.s32.totalorder %v3029_v28, %v2902_v55  ;;  %vm3034_vm10 = vcmp.lt.s32.totalorder %v3031_v6, %v2904_v41  ;;  %v2910_v34 = vsel %vm2846_vm6, %v10782_v62, 256  ;;  %v2912_v49 = vsel %vm2848_vm8, %v10784_v36, 256 }
 0x230   : > { %v3033_v27 = vsel %vm3032_vm0, %v3029_v28, %v2902_v55  ;;  %v3035_v7 = vsel %vm3034_vm10, %v3031_v6, %v2904_v41  ;;  %vm2854_vm3 = vcmp.eq.f32.partialorder %v6989_v14, %v7103_v63  ;;  %vm2856_vm4 = vcmp.eq.f32.partialorder %v6995_v33, %v7103_v63  ;;  %v11107_v14 = vld [vmem:[#allocation109_spill] sm:$0xff] }
 0x231   : > { %vm3036_vm12 = vcmp.lt.s32.totalorder %v3033_v27, %v2906_v12  ;;  %vm3038_vm15 = vcmp.lt.s32.totalorder %v3035_v7, %v2908_v15  ;;  %v2914_v4 = vsel %vm2850_vm14, %v10926_v50, 256  ;;  %v2916_v10 = vsel %vm2852_vm1, %v10927_v42, 256 }
 0x232   : > { %v3037_v47 = vsel %vm3036_vm12, %v3033_v27, %v2906_v12  ;;  %v3039_v35 = vsel %vm3038_vm15, %v3035_v7, %v2908_v15  ;;  %vm2858_vm6 = vcmp.eq.f32.partialorder %v7017_v46, %v7103_v63  ;;  %vm2860_vm8 = vcmp.eq.f32.partialorder %v7023_v61, %v7103_v63  ;;  %v11084_v27 = vld [vmem:[#allocation53_spill] sm:$0xff] }
 0x233   : > { %vm3040_vm0 = vcmp.lt.s32.totalorder %v3037_v47, %v2910_v34  ;;  %vm3042_vm10 = vcmp.lt.s32.totalorder %v3039_v35, %v2912_v49  ;;  %v2918_v55 = vsel %vm2854_vm3, %v10929_v45, 256  ;;  %v2920_v41 = vsel %vm2856_vm4, %v10930_v31, 256 }
 0x234   : > { %v3041_v28 = vsel %vm3040_vm0, %v3037_v47, %v2910_v34  ;;  %v3043_v6 = vsel %vm3042_vm10, %v3039_v35, %v2912_v49  ;;  %v11083_v12 = vrot.slane %v7113_v11, 2  ;;  %v2922_v7 = vsel %vm2858_vm6, %v11084_v27, 256 }
 0x235   : > { %vm3044_vm7 = vcmp.lt.s32.totalorder %v3041_v28, %v2914_v4  ;;  %vm3046_vm14 = vcmp.lt.s32.totalorder %v3043_v6, %v2916_v10  ;;  %v2924_v9 = vsel %vm2860_vm8, %v11041_v23, 256 }
 0x236   : > { %v1557_v15 = vmax.f32 %v7113_v11, %v11083_v12  ;;  %v3045_v63 = vsel %vm3044_vm7, %v3041_v28, %v2914_v4  ;;  %v3047_v17 = vsel %vm3046_vm14, %v3043_v6, %v2916_v10  ;;  %v3586_v11 = vld [vmem:[%s3904_s7 + $0x1f8] sm:$0xff]  ;;  %v11085_v12 = vld [vmem:[#allocation59_spill] sm:$0xff] }
 0x237   : > { %vm3048_vm1 = vcmp.lt.s32.totalorder %v3045_v63, %v2918_v55  ;;  %vm3050_vm3 = vcmp.lt.s32.totalorder %v3047_v17, %v2920_v41  ;;  %vm11086_vm15 = vcmp.eq.s32.totalorder %v11041_v23, %v11085_v12  ;;  %v11088_v4 = vld [vmem:[#allocation55_spill] sm:$0xff]  ;;  %vm11090_vm8 = vcmp.eq.s32.totalorder %v10936_v32, %v11085_v12 }
 0x238   : > { %v3049_v57 = vsel %vm3048_vm1, %v3045_v63, %v2918_v55  ;;  %v3051_v34 = vsel %vm3050_vm3, %v3047_v17, %v2920_v41  ;;  %v1558_v49 = vrot.slane %v1557_v15, 1  ;;  %v794_v26 = vsel %vm11086_vm15, %v3586_v11, 0.0  ;;  %v3587_v55 = vld [vmem:[%s3904_s7 + $0xe8] sm:$0xff]  ;;  %v11091_v41 = vld [vmem:[#allocation78_spill] sm:$0xff]  ;;  %v11097_v11 = vld [vmem:[#allocation75_spill] sm:$0xff] }
 0x239   : > { %vm3052_vm4 = vcmp.lt.s32.totalorder %v3049_v57, %v2922_v7  ;;  %vm3054_vm12 = vcmp.lt.s32.totalorder %v3051_v34, %v2924_v9  ;;  %vm11089_vm7 = vcmp.eq.s32.totalorder %v11041_v23, %v11088_v4  ;;  %v760_v17 = vsel %vm11090_vm8, %v3587_v55, 0.0  ;;  %v3589_v63 = vld [vmem:[%s3904_s7 + $0xd8] sm:$0xff] }
 0x23a   : > { %v3053_v47 = vsel %vm3052_vm4, %v3049_v57, %v2922_v7  ;;  %v3055_v35 = vsel %vm3054_vm12, %v3051_v34, %v2924_v9  ;;  %v1394_v10 = vsel %vm11089_vm7, %v11087_v25, 0.0  ;;  %vm11092_vm0 = vcmp.eq.s32.totalorder %v10936_v32, %v11088_v4  ;;  %v3588_v9 = vld [vmem:[%s3904_s7 + $0x1e8] sm:$0xff]  ;;  %v11094_v7 = vld [vmem:[#allocation22_spill] sm:$0xff] }
 0x23b   : > { %vm3056_vm6 = vcmp.lt.s32.totalorder %v3053_v47, %v3055_v35  ;;  %v1360_v57 = vsel %vm11092_vm0, %v11091_v41, 0.0  ;;  %vm11093_vm10 = vcmp.eq.s32.totalorder %v11084_v27, %v11085_v12  ;;  %vm11095_vm14 = vcmp.eq.s32.totalorder %v11084_v27, %v11088_v4 }
 0x23c   : > { %v792_v28 = vsel %vm11093_vm10, %v3588_v9, 0.0  ;;  %v3057_v6 = vsel %vm3056_vm6, %v3053_v47, %v3055_v35  ;;  %v1392_v25 = vsel %vm11095_vm14, %v11094_v7, 0.0  ;;  %vm11096_vm1 = vcmp.eq.s32.totalorder %v10935_v3, %v11085_v12  ;;  %v11100_v35 = vld [vmem:[#allocation21_spill] sm:$0xff] }
 0x23d   : > { %v758_v34 = vsel %vm11096_vm1, %v3589_v63, 0.0  ;;  %vm11098_vm3 = vcmp.eq.s32.totalorder %v10935_v3, %v11088_v4  ;;  %v3058_v41 = vrot.slane %v3057_v6, 4  ;;  %vm11099_vm4 = vcmp.eq.s32.totalorder %v10930_v31, %v11085_v12  ;;  %v11102_v63 = vld [vmem:[#allocation110_spill] sm:$0xff]  ;;  %v11143_v12 = vld [vmem:[#allocation196_spill] sm:$0xff] }
 0x23e   : > { %v1358_v55 = vsel %vm11098_vm3, %v11097_v11, 0.0  ;;  %v790_v47 = vsel %vm11099_vm4, %v3590_v5, 0.0  ;;  %vm11101_vm12 = vcmp.eq.s32.totalorder %v10930_v31, %v11088_v4  ;;  %v7247_v7 = vmax.f32 %v1557_v15, %v1558_v49  ;;  %v11109_v15 = vld [vmem:[#allocation73_spill] sm:$0xff] }
 0x23f   : > { %v1390_v9 = vsel %vm11101_vm12, %v11100_v35, 0.0  ;;  %v1458_v60 = vadd.f32 %v1394_v10, %v794_v26  ;;  %vm11104_vm15 = vcmp.eq.s32.totalorder %v11041_v23, %v11103_v8  ;;  %v1424_v11 = vadd.f32 %v1360_v57, %v760_v17  ;;  %v11111_v57 = vld [vmem:[#allocation108_spill] sm:$0xff]  ;;  %v11118_v35 = vld [vmem:[#allocation155_spill] sm:$0xff]  ;;  %v11142_v4 = vld [vmem:[#allocation193_spill] sm:$0xff] }
 0x240   : > { %v1994_v48 = vsel %vm11104_vm15, %v11102_v63, 0.0  ;;  %vm3059_vm7 = vcmp.lt.s32.totalorder %v3057_v6, %v3058_v41  ;;  %vm11106_vm6 = vcmp.eq.s32.totalorder %v10936_v32, %v11103_v8  ;;  %v1456_v44 = vadd.f32 %v1392_v25, %v792_v28  ;;  %v11113_v28 = vld [vmem:[#allocation36_spill] sm:$0xff] }
 0x241   : > { %v1960_v5 = vsel %vm11106_vm6, %v11105_v19, 0.0  ;;  %v1422_v18 = vadd.f32 %v1358_v55, %v758_v34  ;;  %v3060_v0 = vsel %vm3059_vm7, %v3057_v6, %v3058_v41  ;;  %vm11108_vm8 = vcmp.eq.s32.totalorder %v11084_v27, %v11103_v8  ;;  %v11114_v6 = vld [vmem:[#allocation37_spill] sm:$0xff]  ;;  %v11141_v34 = vld [vmem:[#allocation192_spill] sm:$0xff] }
 0x242   : > { %v1992_v26 = vsel %vm11108_vm8, %v11107_v14, 0.0  ;;  %vm11110_vm0 = vcmp.eq.s32.totalorder %v10935_v3, %v11103_v8  ;;  %v1454_v10 = vadd.f32 %v1390_v9, %v790_v47  ;;  %v3061_v17 = vrot.slane %v3060_v0, 2  ;;  %v11115_v14 = vld [vmem:[#allocation172_spill] sm:$0xff]  ;;  %v11117_v47 = vld [vmem:[#allocation38_spill] sm:$0xff] }
 0x243   : > { %v1958_v49 = vsel %vm11110_vm0, %v11109_v15, 0.0  ;;  %vm11112_vm10 = vcmp.eq.s32.totalorder %v10930_v31, %v11103_v8  ;;  %vm1597_vm14 = vcmp.eq.f32.partialorder %v11113_v28, %v7247_v7  ;;  %vm1599_vm1 = vcmp.eq.f32.partialorder %v11114_v6, %v7247_v7  ;;  %v11121_v8 = vld [vmem:[#allocation170_spill] sm:$0xff] }
 0x244   : > { %v1990_v19 = vsel %vm11112_vm10, %v11111_v57, 0.0  ;;  %v2058_v25 = vadd.f32 %v1994_v48, %v1458_v60  ;;  %v2594_v55 = vsel %vm2530_vm11, %v11115_v14, 0.0  ;;  %v2024_v41 = vadd.f32 %v1960_v5, %v1424_v11  ;;  %v11120_v48 = vld [vmem:[#allocation154_spill] sm:$0xff] }
 0x245   : > { %vm1601_vm3 = vcmp.eq.f32.partialorder %v11117_v47, %v7247_v7  ;;  %vm3062_vm4 = vcmp.lt.s32.totalorder %v3060_v0, %v3061_v17  ;;  %v2560_v9 = vsel %vm2496_vm13, %v11118_v35, 0.0  ;;  %v2056_v63 = vadd.f32 %v1992_v26, %v1456_v44  ;;  %v11122_v44 = vld [vmem:[#allocation156_spill] sm:$0xff]  ;;  %v11124_v26 = vld [vmem:[#allocation175_spill] sm:$0xff] }
 0x246   : > { %v2022_v15 = vadd.f32 %v1958_v49, %v1422_v18  ;;  %v3063_v57 = vsel %vm3062_vm4, %v3060_v0, %v3061_v17  ;;  %v2592_v60 = vsel %vm2528_vm9, %v11119_v1, 0.0  ;;  %v2558_v11 = vsel %vm2494_vm5, %v11120_v48, 0.0  ;;  %v11123_v0 = vld [vmem:[#allocation174_spill] sm:$0xff]  ;;  %v11125_v49 = vld [vmem:[#allocation176_spill] sm:$0xff] }
 0x247   : > { %v2054_v5 = vadd.f32 %v1990_v19, %v1454_v10  ;;  %v3064_v14 = vrot.slane %v3063_v57, 1  ;;  %v2590_v35 = vsel %vm2526_vm2, %v11121_v8, 0.0  ;;  %vm1603_vm13 = vcmp.eq.f32.partialorder %v11122_v44, %v7247_v7  ;;  %v11126_v19 = vld [vmem:[#allocation177_spill] sm:$0xff] }
 0x248   : > { %vm1605_vm11 = vcmp.eq.f32.partialorder %v11123_v0, %v7247_v7  ;;  %v2658_v18 = vadd.f32 %v2594_v55, %v2058_v25  ;;  %v2624_v1 = vadd.f32 %v2560_v9, %v2024_v41  ;;  %vm1607_vm9 = vcmp.eq.f32.partialorder %v11124_v26, %v7247_v7 }
 0x249   : > { %vm1609_vm5 = vcmp.eq.f32.partialorder %v11125_v49, %v7247_v7  ;;  %vm3065_vm12 = vcmp.lt.s32.totalorder %v3063_v57, %v3064_v14  ;;  %v2656_v10 = vadd.f32 %v2592_v60, %v2056_v63  ;;  %v2622_v17 = vadd.f32 %v2558_v11, %v2022_v15 }
 0x24a   : > { %vm1611_vm2 = vcmp.eq.f32.partialorder %v11126_v19, %v7247_v7  ;;  %v7305_v8 = vsel %vm3065_vm12, %v3063_v57, %v3064_v14  ;;  %v2654_v48 = vadd.f32 %v2590_v35, %v2054_v5  ;;  %v1661_v25 = vsel %vm1597_vm14, %v11072_v30, 256  ;;  %v11128_v57 = vld [vmem:[#allocation56_spill] sm:$0xff]  ;;  %v11129_v35 = vld [vmem:[#allocation25_spill] sm:$0xff] }
 0x24b   : > { %11127 = vst [vmem:[#allocation34_spill] sm:$0xff] %v7305_v8  ;;  %v1665_v55 = vsel %vm1601_vm3, %v11074_v52, 256  ;;  %vm3098_vm15 = vcmp.eq.s32.totalorder %v10937_v43, %v7305_v8  ;;  %vm3130_vm7 = vcmp.eq.s32.totalorder %v11041_v23, %v7305_v8  ;;  %vm3096_vm6 = vcmp.eq.s32.totalorder %v10936_v32, %v7305_v8 }
 0x24c   : > { %vm3128_vm8 = vcmp.eq.s32.totalorder %v11084_v27, %v7305_v8  ;;  %v3162_v41 = vsel %vm3098_vm15, %v6848_v16, 0.0  ;;  %v3194_v9 = vsel %vm3130_vm7, %v7023_v61, 0.0  ;;  %v3160_v63 = vsel %vm3096_vm6, %v6842_v40, 0.0  ;;  %v11130_v61 = vld [vmem:[#allocation27_spill] sm:$0xff] }
 0x24d   : > { %v3192_v15 = vsel %vm3128_vm8, %v7017_v46, 0.0  ;;  %v3226_v60 = vadd.f32 %v3162_v41, %v11128_v57  ;;  %v3258_v11 = vadd.f32 %v3194_v9, %v2658_v18  ;;  %v3224_v5 = vadd.f32 %v3160_v63, %v2624_v1  ;;  %v11131_v1 = vld [vmem:[#allocation178_spill] sm:$0xff] }
 0x24e   : > { %v3256_v14 = vadd.f32 %v3192_v15, %v2656_v10  ;;  %vm3094_vm0 = vcmp.eq.s32.totalorder %v10935_v3, %v7305_v8  ;;  %vm3126_vm10 = vcmp.eq.s32.totalorder %v10930_v31, %v7305_v8  ;;  %v1663_v16 = vsel %vm1599_vm1, %v11129_v35, 256  ;;  %v11132_v10 = vld [vmem:[#allocation28_spill] sm:$0xff]  ;;  %v11133_v15 = vld [vmem:[#allocation29_spill] sm:$0xff] }
 0x24f   : > { %v1667_v40 = vsel %vm1603_vm13, %v11130_v61, 256  ;;  %3299 = vmatpush.msra.mxu2 %v3226_v60  ;;  %3319 = vmatpush.msra.mxu3 %v3258_v11  ;;  %v3158_v46 = vsel %vm3094_vm0, %v6828_v39, 0.0  ;;  %v3190_v18 = vsel %vm3126_vm10, %v6995_v33, 0.0  ;;  %vm1613_vm14 = vcmp.eq.f32.partialorder %v11131_v1, %v7247_v7  ;;  %v11134_v39 = vld [vmem:[#allocation179_spill] sm:$0xff]  ;;  %v11140_v8 = vld [vmem:[#allocation189_spill] sm:$0xff] }
 0x250   : > { %v1669_v41 = vsel %vm1605_vm11, %v11132_v10, 256  ;;  %v3222_v9 = vadd.f32 %v3158_v46, %v2622_v17  ;;  %v3254_v63 = vadd.f32 %v3190_v18, %v2654_v48  ;;  %v1671_v57 = vsel %vm1607_vm9, %v11133_v15, 256  ;;  %v11135_v17 = vld [vmem:[#allocation180_spill] sm:$0xff] }
 0x251   : > { %vm1725_vm1 = vcmp.lt.s32.totalorder %v1661_v25, %v1665_v55  ;;  %3300 = vmatpush.msra.mxu2 %v3224_v5  ;;  %3320 = vmatpush.msra.mxu3 %v3256_v14  ;;  %vm1615_vm3 = vcmp.eq.f32.partialorder %v11134_v39, %v7247_v7  ;;  %v1673_v33 = vsel %vm1609_vm5, %v11078_v13, 256  ;;  %vm1727_vm4 = vcmp.lt.s32.totalorder %v1663_v16, %v1667_v40  ;;  %v11136_v5 = vld [vmem:[#allocation181_spill] sm:$0xff]  ;;  %v11137_v14 = vld [vmem:[#allocation182_spill] sm:$0xff] }
 0x252   : > { %v1726_v60 = vsel %vm1725_vm1, %v1661_v25, %v1665_v55  ;;  %vm1617_vm13 = vcmp.eq.f32.partialorder %v11135_v17, %v7247_v7  ;;  %v1675_v48 = vsel %vm1611_vm2, %v11079_v51, 256  ;;  %v1728_v11 = vsel %vm1727_vm4, %v1663_v16, %v1667_v40  ;;  %v11138_v16 = vld [vmem:[#allocation183_spill] sm:$0xff] }
 0x253   : > { %vm1729_vm11 = vcmp.lt.s32.totalorder %v1726_v60, %v1669_v41  ;;  %3301 = vmatpush.msra.mxu2 %v3222_v9  ;;  %3321 = vmatpush.msra.mxu3 %v3254_v63  ;;  %vm1619_vm9 = vcmp.eq.f32.partialorder %v11136_v5, %v7247_v7  ;;  %v1677_v25 = vsel %vm1613_vm14, %v11080_v21, 256  ;;  %vm1731_vm5 = vcmp.lt.s32.totalorder %v1728_v11, %v1671_v57  ;;  %v11139_v63 = vld [vmem:[#allocation188_spill] sm:$0xff] }
 0x254   : > { %v1730_v55 = vsel %vm1729_vm11, %v1726_v60, %v1669_v41  ;;  %vm1621_vm12 = vcmp.eq.f32.partialorder %v11137_v14, %v7247_v7  ;;  %v1679_v46 = vsel %vm1615_vm3, %v11081_v22, 256  ;;  %v1732_v18 = vsel %vm1731_vm5, %v1728_v11, %v1671_v57 }
 0x255   : > { %vm1733_vm2 = vcmp.lt.s32.totalorder %v1730_v55, %v1673_v33  ;;  %vm1623_vm15 = vcmp.eq.f32.partialorder %v11138_v16, %v7247_v7  ;;  %v1681_v40 = vsel %vm1617_vm13, %v4080_v38, 256  ;;  %vm1735_vm7 = vcmp.lt.s32.totalorder %v1732_v18, %v1675_v48 }
 0x256   : > { %v1734_v9 = vsel %vm1733_vm2, %v1730_v55, %v1673_v33  ;;  %vm1625_vm6 = vcmp.eq.f32.partialorder %v11139_v63, %v7247_v7  ;;  %v1683_v41 = vsel %vm1619_vm9, %v11082_v24, 256  ;;  %v1736_v60 = vsel %vm1735_vm7, %v1732_v18, %v1675_v48 }
 0x257   : > { %vm1737_vm8 = vcmp.lt.s32.totalorder %v1734_v9, %v1677_v25  ;;  %vm1627_vm0 = vcmp.eq.f32.partialorder %v11140_v8, %v7247_v7  ;;  %v1685_v57 = vsel %vm1621_vm12, %v10934_v2, 256  ;;  %vm1739_vm10 = vcmp.lt.s32.totalorder %v1736_v60, %v1679_v46 }
 0x258   : > { %v1738_v11 = vsel %vm1737_vm8, %v1734_v9, %v1677_v25  ;;  %vm1629_vm14 = vcmp.eq.f32.partialorder %v11141_v34, %v7247_v7  ;;  %v1687_v33 = vsel %vm1623_vm15, %v10935_v3, 256  ;;  %v1740_v55 = vsel %vm1739_vm10, %v1736_v60, %v1679_v46  ;;  %v11144_v34 = vld [vmem:[#allocation197_spill] sm:$0xff] }
 0x259   : > { %vm1741_vm1 = vcmp.lt.s32.totalorder %v1738_v11, %v1681_v40  ;;  %vm1631_vm3 = vcmp.eq.f32.partialorder %v11142_v4, %v7247_v7  ;;  %v1689_v48 = vsel %vm1625_vm6, %v10936_v32, 256  ;;  %vm1743_vm4 = vcmp.lt.s32.totalorder %v1740_v55, %v1683_v41  ;;  %v11145_v4 = vld [vmem:[#allocation200_spill] sm:$0xff] }
 0x25a   : > { %v1742_v18 = vsel %vm1741_vm1, %v1738_v11, %v1681_v40  ;;  %vm1633_vm13 = vcmp.eq.f32.partialorder %v11143_v12, %v7247_v7  ;;  %v1691_v25 = vsel %vm1627_vm0, %v10937_v43, 256  ;;  %v1744_v9 = vsel %vm1743_vm4, %v1740_v55, %v1683_v41  ;;  %v11146_v12 = vld [vmem:[#allocation214_spill] sm:$0xff] }
 0x25b   : > { %vm1745_vm11 = vcmp.lt.s32.totalorder %v1742_v18, %v1685_v57  ;;  %vm1635_vm9 = vcmp.eq.f32.partialorder %v11144_v34, %v7247_v7  ;;  %v1693_v46 = vsel %vm1629_vm14, %v10939_v37, 256  ;;  %vm1747_vm5 = vcmp.lt.s32.totalorder %v1744_v9, %v1687_v33  ;;  %v11147_v34 = vld [vmem:[#allocation218_spill] sm:$0xff] }
 0x25c   : > { %v1746_v60 = vsel %vm1745_vm11, %v1742_v18, %v1685_v57  ;;  %vm1637_vm12 = vcmp.eq.f32.partialorder %v11145_v4, %v7247_v7  ;;  %v1695_v40 = vsel %vm1631_vm3, %v10940_v29, 256  ;;  %v1748_v11 = vsel %vm1747_vm5, %v1744_v9, %v1687_v33  ;;  %v11148_v4 = vld [vmem:[#allocation219_spill] sm:$0xff] }
 0x25d   : > { %vm1749_vm2 = vcmp.lt.s32.totalorder %v1746_v60, %v1689_v48  ;;  %vm1639_vm15 = vcmp.eq.f32.partialorder %v11146_v12, %v7247_v7  ;;  %v1697_v41 = vsel %vm1633_vm13, %v4104_v54, 256  ;;  %vm1751_vm7 = vcmp.lt.s32.totalorder %v1748_v11, %v1691_v25  ;;  %v11149_v12 = vld [vmem:[#allocation220_spill] sm:$0xff] }
 0x25e   : > { %v1750_v55 = vsel %vm1749_vm2, %v1746_v60, %v1689_v48  ;;  %vm1641_vm6 = vcmp.eq.f32.partialorder %v11147_v34, %v7247_v7  ;;  %v1699_v57 = vsel %vm1635_vm9, %v4107_v56, 256  ;;  %v1752_v18 = vsel %vm1751_vm7, %v1748_v11, %v1691_v25  ;;  %v11150_v34 = vld [vmem:[#allocation221_spill] sm:$0xff] }
 0x25f   : > { %vm1753_vm8 = vcmp.lt.s32.totalorder %v1750_v55, %v1693_v46  ;;  %vm1643_vm0 = vcmp.eq.f32.partialorder %v11148_v4, %v7247_v7  ;;  %v1701_v33 = vsel %vm1637_vm12, %v4110_v58, 256  ;;  %vm1755_vm10 = vcmp.lt.s32.totalorder %v1752_v18, %v1695_v40  ;;  %v11151_v4 = vld [vmem:[#allocation222_spill] sm:$0xff] }
 0x260   : > { %v1754_v9 = vsel %vm1753_vm8, %v1750_v55, %v1693_v46  ;;  %vm1645_vm14 = vcmp.eq.f32.partialorder %v11149_v12, %v7247_v7  ;;  %v1703_v48 = vsel %vm1639_vm15, %v4113_v59, 256  ;;  %v1756_v60 = vsel %vm1755_vm10, %v1752_v18, %v1695_v40  ;;  %v11152_v12 = vld [vmem:[#allocation223_spill] sm:$0xff] }
 0x261   : > { %vm1757_vm1 = vcmp.lt.s32.totalorder %v1754_v9, %v1697_v41  ;;  %vm1647_vm3 = vcmp.eq.f32.partialorder %v11150_v34, %v7247_v7  ;;  %v1705_v25 = vsel %vm1641_vm6, %v10619_v53, 256  ;;  %vm1759_vm4 = vcmp.lt.s32.totalorder %v1756_v60, %v1699_v57  ;;  %v11153_v34 = vld [vmem:[#allocation224_spill] sm:$0xff] }
 0x262   : > { %v1758_v11 = vsel %vm1757_vm1, %v1754_v9, %v1697_v41  ;;  %vm1649_vm13 = vcmp.eq.f32.partialorder %v11151_v4, %v7247_v7  ;;  %v1707_v46 = vsel %vm1643_vm0, %v10778_v20, 256  ;;  %v1760_v55 = vsel %vm1759_vm4, %v1756_v60, %v1699_v57  ;;  %v11154_v4 = vld [vmem:[#allocation225_spill] sm:$0xff] }
 0x263   : > { %vm1761_vm11 = vcmp.lt.s32.totalorder %v1758_v11, %v1701_v33  ;;  %vm1651_vm9 = vcmp.eq.f32.partialorder %v11152_v12, %v7247_v7  ;;  %v1709_v40 = vsel %vm1645_vm14, %v10782_v62, 256  ;;  %vm1763_vm5 = vcmp.lt.s32.totalorder %v1760_v55, %v1703_v48  ;;  %v11155_v12 = vld [vmem:[#allocation226_spill] sm:$0xff] }
 0x264   : > { %v1762_v18 = vsel %vm1761_vm11, %v1758_v11, %v1701_v33  ;;  %vm1653_vm12 = vcmp.eq.f32.partialorder %v11153_v34, %v7247_v7  ;;  %v1711_v41 = vsel %vm1647_vm3, %v10784_v36, 256  ;;  %v1764_v9 = vsel %vm1763_vm5, %v1760_v55, %v1703_v48  ;;  %v11156_v34 = vld [vmem:[#allocation227_spill] sm:$0xff] }
 0x265   : > { %vm1765_vm2 = vcmp.lt.s32.totalorder %v1762_v18, %v1705_v25  ;;  %vm1655_vm15 = vcmp.eq.f32.partialorder %v11154_v4, %v7247_v7  ;;  %v1713_v57 = vsel %vm1649_vm13, %v10926_v50, 256  ;;  %vm1767_vm7 = vcmp.lt.s32.totalorder %v1764_v9, %v1707_v46 }
 0x266   : > { %v1766_v60 = vsel %vm1765_vm2, %v1762_v18, %v1705_v25  ;;  %vm1657_vm6 = vcmp.eq.f32.partialorder %v11155_v12, %v7247_v7  ;;  %v1715_v33 = vsel %vm1651_vm9, %v10927_v42, 256  ;;  %v1768_v11 = vsel %vm1767_vm7, %v1764_v9, %v1707_v46 }
 0x267   : > { %vm1769_vm8 = vcmp.lt.s32.totalorder %v1766_v60, %v1709_v40  ;;  %vm1659_vm0 = vcmp.eq.f32.partialorder %v11156_v34, %v7247_v7  ;;  %v1717_v48 = vsel %vm1653_vm12, %v10929_v45, 256  ;;  %vm1771_vm10 = vcmp.lt.s32.totalorder %v1768_v11, %v1711_v41 }
 0x268   : > { %v1770_v55 = vsel %vm1769_vm8, %v1766_v60, %v1709_v40  ;;  %v1719_v4 = vsel %vm1655_vm15, %v10930_v31, 256  ;;  %v1772_v36 = vsel %vm1771_vm10, %v1768_v11, %v1711_v41  ;;  %v1721_v25 = vsel %vm1657_vm6, %v11084_v27, 256 }
 0x269   : > { %vm1773_vm14 = vcmp.lt.s32.totalorder %v1770_v55, %v1713_v57  ;;  %vm1775_vm1 = vcmp.lt.s32.totalorder %v1772_v36, %v1715_v33  ;;  %v1723_v12 = vsel %vm1659_vm0, %v11041_v23, 256 }
 0x26a   : > { %v1774_v18 = vsel %vm1773_vm14, %v1770_v55, %v1713_v57  ;;  %v1776_v42 = vsel %vm1775_vm1, %v1772_v36, %v1715_v33 }
 0x26b   : > { %vm1777_vm3 = vcmp.lt.s32.totalorder %v1774_v18, %v1717_v48  ;;  %vm1779_vm4 = vcmp.lt.s32.totalorder %v1776_v42, %v1719_v4 }
 0x26c   : > { %v1778_v46 = vsel %vm1777_vm3, %v1774_v18, %v1717_v48  ;;  %v1780_v9 = vsel %vm1779_vm4, %v1776_v42, %v1719_v4 }
 0x26d   : > { %vm1781_vm13 = vcmp.lt.s32.totalorder %v1778_v46, %v1721_v25  ;;  %vm1783_vm11 = vcmp.lt.s32.totalorder %v1780_v9, %v1723_v12 }
 0x26e   : > { %v1782_v7 = vsel %vm1781_vm13, %v1778_v46, %v1721_v25  ;;  %v1784_v40 = vsel %vm1783_vm11, %v1780_v9, %v1723_v12 }
 0x26f   : > { %vm1785_vm9 = vcmp.lt.s32.totalorder %v1782_v7, %v1784_v40 }
 0x270   : > { %v1786_v60 = vsel %vm1785_vm9, %v1782_v7, %v1784_v40 }
 0x271   : > { %v1787_v34 = vrot.slane %v1786_v60, 4 }
 0x273   : > { %vm1788_vm5 = vcmp.lt.s32.totalorder %v1786_v60, %v1787_v34 }
 0x274   : > { %v1789_v41 = vsel %vm1788_vm5, %v1786_v60, %v1787_v34 }
 0x275   : > { %v1790_v11 = vrot.slane %v1789_v41, 2 }
 0x277   : > { %vm1791_vm12 = vcmp.lt.s32.totalorder %v1789_v41, %v1790_v11 }
 0x278   : > { %v1792_v57 = vsel %vm1791_vm12, %v1789_v41, %v1790_v11 }
 0x279   : > { %v1793_v55 = vrot.slane %v1792_v57, 1 }
 0x27b   : > { %vm1794_vm2 = vcmp.lt.s32.totalorder %v1792_v57, %v1793_v55 }
 0x27c   : > { %v7433_v23 = vsel %vm1794_vm2, %v1792_v57, %v1793_v55 }
 0x27d   : > { %11157 = vst [vmem:[#allocation23_spill] sm:$0xff] %v7433_v23  ;;  %vm10276_vm15 = vcmp.eq.s32.totalorder %v11072_v30, %v7433_v23  ;;  %vm10277_vm7 = vcmp.eq.s32.totalorder %v11129_v35, %v7433_v23  ;;  %vm10280_vm6 = vcmp.eq.s32.totalorder %v11074_v52, %v7433_v23  ;;  %vm10281_vm8 = vcmp.eq.s32.totalorder %v11130_v61, %v7433_v23 }
 0x27e   : > { %vm10286_vm0 = vcmp.eq.s32.totalorder %v11132_v10, %v7433_v23  ;;  %vm10287_vm10 = vcmp.eq.s32.totalorder %v11133_v15, %v7433_v23  ;;  %v7451_v36 = vsel %vm10276_vm15, -inf, %v11113_v28  ;;  %v7457_v42 = vsel %vm10277_vm7, -inf, %v11114_v6 }
 0x27f   : > { %11158 = vst [vmem:[#allocation78_spill] sm:$0xff] %v7451_v36  ;;  %v7463_v12 = vsel %vm10280_vm6, -inf, %v11117_v47  ;;  %v7469_v4 = vsel %vm10281_vm8, -inf, %v11122_v44  ;;  %vm10305_vm14 = vcmp.eq.s32.totalorder %v11078_v13, %v7433_v23  ;;  %vm10310_vm1 = vcmp.eq.s32.totalorder %v11079_v51, %v7433_v23  ;;  %v11173_v47 = vld [vmem:[#allocation192_spill] sm:$0xff] }
 0x280   : > { %11159 = vst [vmem:[#allocation22_spill] sm:$0xff] %v7457_v42  ;;  %v7479_v34 = vsel %vm10286_vm0, -inf, %v11123_v0  ;;  %v7485_v33 = vsel %vm10287_vm10, -inf, %v11124_v26  ;;  %vm10330_vm3 = vcmp.eq.s32.totalorder %v11080_v21, %v7433_v23  ;;  %vm10332_vm4 = vcmp.eq.s32.totalorder %v11081_v22, %v7433_v23  ;;  %v11175_v0 = vld [vmem:[#allocation193_spill] sm:$0xff] }
 0x281   : > { %11160 = vst [vmem:[#allocation75_spill] sm:$0xff] %v7463_v12  ;;  %v2123_v48 = vmax.f32 %v7451_v36, %v7463_v12  ;;  %v2124_v25 = vmax.f32 %v7457_v42, %v7469_v4  ;;  %v7499_v18 = vsel %vm10305_vm14, -inf, %v11125_v49  ;;  %v7505_v46 = vsel %vm10310_vm1, -inf, %v11126_v19  ;;  %v11177_v49 = vld [vmem:[#allocation196_spill] sm:$0xff]  ;;  %v11179_v19 = vld [vmem:[#allocation197_spill] sm:$0xff] }
 0x282   : > { %11161 = vst [vmem:[#allocation21_spill] sm:$0xff] %v7469_v4  ;;  %vm10334_vm13 = vcmp.eq.s32.totalorder %v4080_v38, %v7433_v23  ;;  %vm10336_vm11 = vcmp.eq.s32.totalorder %v11082_v24, %v7433_v23  ;;  %v7517_v40 = vsel %vm10330_vm3, -inf, %v11131_v1  ;;  %v7523_v60 = vsel %vm10332_vm4, -inf, %v11134_v39  ;;  %v11181_v1 = vld [vmem:[#allocation200_spill] sm:$0xff]  ;;  %v11183_v39 = vld [vmem:[#allocation214_spill] sm:$0xff] }
 0x283   : > { %11162 = vst [vmem:[#allocation110_spill] sm:$0xff] %v7479_v34  ;;  %v2125_v9 = vmax.f32 %v2123_v48, %v7479_v34  ;;  %v2126_v7 = vmax.f32 %v2124_v25, %v7485_v33  ;;  %vm10338_vm9 = vcmp.eq.s32.totalorder %v10934_v2, %v7433_v23  ;;  %vm10358_vm5 = vcmp.eq.s32.totalorder %v10935_v3, %v7433_v23 }
 0x284   : > { %11163 = vst [vmem:[#allocation76_spill] sm:$0xff] %v7485_v33  ;;  %v7535_v57 = vsel %vm10334_vm13, -inf, %v11135_v17  ;;  %v7541_v55 = vsel %vm10336_vm11, -inf, %v11136_v5  ;;  %vm10430_vm12 = vcmp.eq.s32.totalorder %v10936_v32, %v7433_v23  ;;  %vm1897_vm2 = vcmp.eq.s32.totalorder %v10937_v43, %v7433_v23  ;;  %v11185_v17 = vld [vmem:[#allocation48_spill] sm:$0xff]  ;;  %v11186_v5 = vld [vmem:[#allocation218_spill] sm:$0xff] }
 0x285   : > { %11164 = vst [vmem:[#allocation109_spill] sm:$0xff] %v7499_v18  ;;  %v2127_v41 = vmax.f32 %v2125_v9, %v7499_v18  ;;  %v2128_v11 = vmax.f32 %v2126_v7, %v7505_v46  ;;  %v7553_v9 = vsel %vm10338_vm9, -inf, %v11137_v14  ;;  %v7559_v7 = vsel %vm10358_vm5, -inf, %v11138_v16  ;;  %v11188_v14 = vld [vmem:[#allocation219_spill] sm:$0xff]  ;;  %v11190_v16 = vld [vmem:[#allocation50_spill] sm:$0xff] }
 0x286   : > { %11165 = vst [vmem:[#allocation73_spill] sm:$0xff] %v7505_v46  ;;  %vm10290_vm15 = vcmp.eq.s32.totalorder %v10939_v37, %v7433_v23  ;;  %vm10291_vm7 = vcmp.eq.s32.totalorder %v10940_v29, %v7433_v23  ;;  %v7571_v28 = vsel %vm10430_vm12, -inf, %v11139_v63  ;;  %v7577_v6 = vsel %vm1897_vm2, -inf, %v11140_v8  ;;  %v11191_v63 = vld [vmem:[#allocation220_spill] sm:$0xff]  ;;  %v11193_v8 = vld [vmem:[#allocation221_spill] sm:$0xff] }
 0x287   : > { %11166 = vst [vmem:[#allocation108_spill] sm:$0xff] %v7517_v40  ;;  %v2129_v48 = vmax.f32 %v2127_v41, %v7517_v40  ;;  %v2130_v25 = vmax.f32 %v2128_v11, %v7523_v60  ;;  %vm10294_vm6 = vcmp.eq.s32.totalorder %v4104_v54, %v7433_v23  ;;  %vm10296_vm8 = vcmp.eq.s32.totalorder %v4107_v56, %v7433_v23 }
 0x288   : > { %11167 = vst [vmem:[#allocation172_spill] sm:$0xff] %v7523_v60  ;;  %v7589_v44 = vsel %vm10290_vm15, -inf, %v11173_v47  ;;  %v7595_v26 = vsel %vm10291_vm7, -inf, %v11175_v0  ;;  %vm10299_vm0 = vcmp.eq.s32.totalorder %v4110_v58, %v7433_v23  ;;  %vm10301_vm10 = vcmp.eq.s32.totalorder %v4113_v59, %v7433_v23  ;;  %v11204_v58 = vld [vmem:[#allocation226_spill] sm:$0xff] }
 0x289   : > { %11168 = vst [vmem:[#allocation155_spill] sm:$0xff] %v7535_v57  ;;  %v2131_v41 = vmax.f32 %v2129_v48, %v7535_v57  ;;  %v2132_v11 = vmax.f32 %v2130_v25, %v7541_v55  ;;  %v7607_v47 = vsel %vm10294_vm6, -inf, %v11177_v49  ;;  %v7613_v0 = vsel %vm10296_vm8, -inf, %v11179_v19 }
 0x28a   : > { %11169 = vst [vmem:[#allocation171_spill] sm:$0xff] %v7541_v55  ;;  %vm10304_vm15 = vcmp.eq.s32.totalorder %v10619_v53, %v7433_v23  ;;  %vm10308_vm7 = vcmp.eq.s32.totalorder %v10778_v20, %v7433_v23  ;;  %v7625_v49 = vsel %vm10299_vm0, -inf, %v11181_v1  ;;  %v7631_v19 = vsel %vm10301_vm10, -inf, %v11183_v39  ;;  %v11195_v20 = vld [vmem:[#allocation222_spill] sm:$0xff]  ;;  %v11200_v53 = vld [vmem:[#allocation224_spill] sm:$0xff] }
 0x28b   : > { %11170 = vst [vmem:[#allocation154_spill] sm:$0xff] %v7553_v9  ;;  %v2133_v48 = vmax.f32 %v2131_v41, %v7553_v9  ;;  %v2134_v25 = vmax.f32 %v2132_v11, %v7559_v7  ;;  %vm10329_vm6 = vcmp.eq.s32.totalorder %v10782_v62, %v7433_v23  ;;  %vm10331_vm8 = vcmp.eq.s32.totalorder %v11185_v17, %v7433_v23  ;;  %v11197_v62 = vld [vmem:[#allocation223_spill] sm:$0xff]  ;;  %v11199_v17 = vld [vmem:[#allocation54_spill] sm:$0xff] }
 0x28c   : > { %11171 = vst [vmem:[#allocation170_spill] sm:$0xff] %v7559_v7  ;;  %v7643_v1 = vsel %vm10304_vm15, -inf, %v11186_v5  ;;  %v7649_v39 = vsel %vm10308_vm7, -inf, %v11188_v14  ;;  %vm10333_vm0 = vcmp.eq.s32.totalorder %v10926_v50, %v7433_v23  ;;  %vm10335_vm10 = vcmp.eq.s32.totalorder %v11190_v16, %v7433_v23  ;;  %v11202_v50 = vld [vmem:[#allocation225_spill] sm:$0xff] }
 0x28d   : > { %11172 = vst [vmem:[#allocation56_spill] sm:$0xff] %v7571_v28  ;;  %v2135_v41 = vmax.f32 %v2133_v48, %v7571_v28  ;;  %v2136_v11 = vmax.f32 %v2134_v25, %v7577_v6  ;;  %v7661_v5 = vsel %vm10329_vm6, -inf, %v11191_v63  ;;  %v7667_v14 = vsel %vm10331_vm8, -inf, %v11193_v8 }
 0x28e   : > { %11174 = vst [vmem:[#allocation228_spill] sm:$0xff] %v7589_v44  ;;  %vm10337_vm15 = vcmp.eq.s32.totalorder %v10929_v45, %v7433_v23  ;;  %vm10357_vm14 = vcmp.eq.s32.totalorder %v10930_v31, %v7433_v23  ;;  %v7679_v63 = vsel %vm10333_vm0, -inf, %v11195_v20  ;;  %v7685_v8 = vsel %vm10335_vm10, -inf, %v11197_v62 }
 0x28f   : > { %11176 = vst [vmem:[#allocation229_spill] sm:$0xff] %v7595_v26  ;;  %v2137_v48 = vmax.f32 %v2135_v41, %v7589_v44  ;;  %v2138_v25 = vmax.f32 %v2136_v11, %v7595_v26  ;;  %vm10428_vm7 = vcmp.eq.s32.totalorder %v11084_v27, %v7433_v23  ;;  %vm10432_vm1 = vcmp.eq.s32.totalorder %v11199_v17, %v7433_v23 }
 0x290   : > { %11178 = vst [vmem:[#allocation230_spill] sm:$0xff] %v7607_v47  ;;  %v7697_v20 = vsel %vm10337_vm15, -inf, %v11200_v53  ;;  %v7703_v62 = vsel %vm10357_vm14, -inf, %v11202_v50 }
 0x291   : > { %11180 = vst [vmem:[#allocation231_spill] sm:$0xff] %v7613_v0  ;;  %v2139_v41 = vmax.f32 %v2137_v48, %v7607_v47  ;;  %v2140_v11 = vmax.f32 %v2138_v25, %v7613_v0 }
 0x292   : > { %11182 = vst [vmem:[#allocation232_spill] sm:$0xff] %v7625_v49 }
 0x293   : > { %11184 = vst [vmem:[#allocation233_spill] sm:$0xff] %v7631_v19  ;;  %v2141_v48 = vmax.f32 %v2139_v41, %v7625_v49  ;;  %v2142_v25 = vmax.f32 %v2140_v11, %v7631_v19 }
 0x294   : > { %11187 = vst [vmem:[#allocation234_spill] sm:$0xff] %v7643_v1 }
 0x295   : > { %11189 = vst [vmem:[#allocation235_spill] sm:$0xff] %v7649_v39  ;;  %v2143_v41 = vmax.f32 %v2141_v48, %v7643_v1  ;;  %v2144_v11 = vmax.f32 %v2142_v25, %v7649_v39 }
 0x296   : > { %11192 = vst [vmem:[#allocation236_spill] sm:$0xff] %v7661_v5 }
 0x297   : > { %11194 = vst [vmem:[#allocation237_spill] sm:$0xff] %v7667_v14  ;;  %v2145_v48 = vmax.f32 %v2143_v41, %v7661_v5  ;;  %v2146_v25 = vmax.f32 %v2144_v11, %v7667_v14  ;;  %v7711_v41 = vsel %vm10428_vm7, -inf, %v11204_v58  ;;  %v11206_v11 = vld [vmem:[#allocation227_spill] sm:$0xff] }
 0x298   : > { %11196 = vst [vmem:[#allocation238_spill] sm:$0xff] %v7679_v63  ;;  %v7717_v53 = vsel %vm10432_vm1, -inf, %v11206_v11 }
 0x299   : > { %11198 = vst [vmem:[#allocation239_spill] sm:$0xff] %v7685_v8  ;;  %v2147_v16 = vmax.f32 %v2145_v48, %v7679_v63  ;;  %v2148_v59 = vmax.f32 %v2146_v25, %v7685_v8 }
 0x29a   : > { %11201 = vst [vmem:[#allocation240_spill] sm:$0xff] %v7697_v20 }
 0x29b   : > { %11203 = vst [vmem:[#allocation241_spill] sm:$0xff] %v7703_v62  ;;  %v2149_v31 = vmax.f32 %v2147_v16, %v7697_v20  ;;  %v2150_v50 = vmax.f32 %v2148_v59, %v7703_v62 }
 0x29c   : > { %11205 = vst [vmem:[#allocation242_spill] sm:$0xff] %v7711_v41 }
 0x29d   : > { %11207 = vst [vmem:[#allocation243_spill] sm:$0xff] %v7717_v53  ;;  %v2151_v48 = vmax.f32 %v2149_v31, %v7711_v41  ;;  %v2152_v25 = vmax.f32 %v2150_v50, %v7717_v53  ;;  %v11261_v23 = vld [vmem:[#allocation236_spill] sm:$0xff] }
 0x29f   : > { %v2153_v45 = vmax.f32 %v2151_v48, %v2152_v25 }
 0x2a1   : > { %v2154_v8 = vrot.slane %v2153_v45, 4 }
 0x2a3   : > { %v2155_v63 = vmax.f32 %v2153_v45, %v2154_v8 }
 0x2a5   : > { %v2156_v27 = vrot.slane %v2155_v63, 2 }
 0x2a7   : > { %v2157_v58 = vmax.f32 %v2155_v63, %v2156_v27 }
 0x2a9   : > { %v2158_v14 = vrot.slane %v2157_v58, 1 }
 0x2ab   : > { %v7723_v5 = vmax.f32 %v2157_v58, %v2158_v14 }
 0x2ad   : > { %vm2197_vm6 = vcmp.eq.f32.partialorder %v7451_v36, %v7723_v5  ;;  %vm2199_vm3 = vcmp.eq.f32.partialorder %v7457_v42, %v7723_v5  ;;  %vm2201_vm8 = vcmp.eq.f32.partialorder %v7463_v12, %v7723_v5  ;;  %vm2203_vm4 = vcmp.eq.f32.partialorder %v7469_v4, %v7723_v5 }
 0x2ae   : > { %vm2205_vm0 = vcmp.eq.f32.partialorder %v7479_v34, %v7723_v5  ;;  %vm2207_vm13 = vcmp.eq.f32.partialorder %v7485_v33, %v7723_v5  ;;  %v2261_v58 = vsel %vm2197_vm6, %v11072_v30, 256  ;;  %v2263_v59 = vsel %vm2199_vm3, %v11129_v35, 256 }
 0x2af   : > { %v2265_v50 = vsel %vm2201_vm8, %v11074_v52, 256  ;;  %v2267_v45 = vsel %vm2203_vm4, %v11130_v61, 256  ;;  %vm2209_vm10 = vcmp.eq.f32.partialorder %v7499_v18, %v7723_v5  ;;  %vm2211_vm11 = vcmp.eq.f32.partialorder %v7505_v46, %v7723_v5 }
 0x2b0   : > { %v2269_v31 = vsel %vm2205_vm0, %v11132_v10, 256  ;;  %v2271_v27 = vsel %vm2207_vm13, %v11133_v15, 256  ;;  %vm2213_vm15 = vcmp.eq.f32.partialorder %v7517_v40, %v7723_v5  ;;  %vm2215_vm6 = vcmp.eq.f32.partialorder %v7523_v60, %v7723_v5 }
 0x2b1   : > { %vm2325_vm3 = vcmp.lt.s32.totalorder %v2261_v58, %v2265_v50  ;;  %vm2327_vm8 = vcmp.lt.s32.totalorder %v2263_v59, %v2267_v45  ;;  %v2273_v8 = vsel %vm2209_vm10, %v11078_v13, 256  ;;  %v2275_v14 = vsel %vm2211_vm11, %v11079_v51, 256 }
 0x2b2   : > { %v2326_v16 = vsel %vm2325_vm3, %v2261_v58, %v2265_v50  ;;  %v2328_v63 = vsel %vm2327_vm8, %v2263_v59, %v2267_v45  ;;  %vm2217_vm4 = vcmp.eq.f32.partialorder %v7535_v57, %v7723_v5  ;;  %vm2219_vm0 = vcmp.eq.f32.partialorder %v7541_v55, %v7723_v5 }
 0x2b3   : > { %vm2329_vm13 = vcmp.lt.s32.totalorder %v2326_v16, %v2269_v31  ;;  %vm2331_vm9 = vcmp.lt.s32.totalorder %v2328_v63, %v2271_v27  ;;  %v2277_v48 = vsel %vm2213_vm15, %v11080_v21, 256  ;;  %v2279_v25 = vsel %vm2215_vm6, %v11081_v22, 256 }
 0x2b4   : > { %v2330_v11 = vsel %vm2329_vm13, %v2326_v16, %v2269_v31  ;;  %v2332_v60 = vsel %vm2331_vm9, %v2328_v63, %v2271_v27  ;;  %vm2221_vm10 = vcmp.eq.f32.partialorder %v7553_v9, %v7723_v5  ;;  %vm2223_vm11 = vcmp.eq.f32.partialorder %v7559_v7, %v7723_v5 }
 0x2b5   : > { %vm2333_vm3 = vcmp.lt.s32.totalorder %v2330_v11, %v2273_v8  ;;  %vm2335_vm8 = vcmp.lt.s32.totalorder %v2332_v60, %v2275_v14  ;;  %v2281_v58 = vsel %vm2217_vm4, %v4080_v38, 256  ;;  %v2283_v59 = vsel %vm2219_vm0, %v11082_v24, 256 }
 0x2b6   : > { %v2334_v50 = vsel %vm2333_vm3, %v2330_v11, %v2273_v8  ;;  %v2336_v45 = vsel %vm2335_vm8, %v2332_v60, %v2275_v14  ;;  %vm2225_vm15 = vcmp.eq.f32.partialorder %v7571_v28, %v7723_v5  ;;  %vm2227_vm9 = vcmp.eq.f32.partialorder %v7577_v6, %v7723_v5 }
 0x2b7   : > { %vm2337_vm6 = vcmp.lt.s32.totalorder %v2334_v50, %v2277_v48  ;;  %vm2339_vm13 = vcmp.lt.s32.totalorder %v2336_v45, %v2279_v25  ;;  %v2285_v31 = vsel %vm2221_vm10, %v10934_v2, 256  ;;  %v2287_v27 = vsel %vm2223_vm11, %v10935_v3, 256 }
 0x2b8   : > { %v2338_v16 = vsel %vm2337_vm6, %v2334_v50, %v2277_v48  ;;  %v2340_v63 = vsel %vm2339_vm13, %v2336_v45, %v2279_v25  ;;  %vm2229_vm4 = vcmp.eq.f32.partialorder %v7589_v44, %v7723_v5  ;;  %vm2231_vm0 = vcmp.eq.f32.partialorder %v7595_v26, %v7723_v5 }
 0x2b9   : > { %vm2341_vm3 = vcmp.lt.s32.totalorder %v2338_v16, %v2281_v58  ;;  %vm2343_vm8 = vcmp.lt.s32.totalorder %v2340_v63, %v2283_v59  ;;  %v2289_v60 = vsel %vm2225_vm15, %v10936_v32, 256  ;;  %v2291_v11 = vsel %vm2227_vm9, %v10937_v43, 256 }
 0x2ba   : > { %v2342_v8 = vsel %vm2341_vm3, %v2338_v16, %v2281_v58  ;;  %v2344_v14 = vsel %vm2343_vm8, %v2340_v63, %v2283_v59  ;;  %vm2233_vm10 = vcmp.eq.f32.partialorder %v7607_v47, %v7723_v5  ;;  %vm2235_vm11 = vcmp.eq.f32.partialorder %v7613_v0, %v7723_v5  ;;  %v11210_v0 = vld [vmem:[#allocation236_spill] sm:$0xff] }
 0x2bb   : > { %vm2345_vm6 = vcmp.lt.s32.totalorder %v2342_v8, %v2285_v31  ;;  %vm2347_vm13 = vcmp.lt.s32.totalorder %v2344_v14, %v2287_v27  ;;  %v2293_v48 = vsel %vm2229_vm4, %v10939_v37, 256  ;;  %v2295_v25 = vsel %vm2231_vm0, %v10940_v29, 256 }
 0x2bc   : > { %v2346_v50 = vsel %vm2345_vm6, %v2342_v8, %v2285_v31  ;;  %v2348_v45 = vsel %vm2347_vm13, %v2344_v14, %v2287_v27  ;;  %vm2237_vm15 = vcmp.eq.f32.partialorder %v7625_v49, %v7723_v5  ;;  %vm2239_vm9 = vcmp.eq.f32.partialorder %v7631_v19, %v7723_v5  ;;  %v11208_v31 = vld [vmem:[#allocation43_spill] sm:$0xff]  ;;  %v11209_v8 = vld [vmem:[#allocation44_spill] sm:$0xff] }
 0x2bd   : > { %vm2349_vm3 = vcmp.lt.s32.totalorder %v2346_v50, %v2289_v60  ;;  %vm2351_vm8 = vcmp.lt.s32.totalorder %v2348_v45, %v2291_v11  ;;  %v2297_v58 = vsel %vm2233_vm10, %v4104_v54, 256  ;;  %v2299_v59 = vsel %vm2235_vm11, %v4107_v56, 256 }
 0x2be   : > { %v2350_v16 = vsel %vm2349_vm3, %v2346_v50, %v2289_v60  ;;  %v2352_v63 = vsel %vm2351_vm8, %v2348_v45, %v2291_v11  ;;  %vm2241_vm4 = vcmp.eq.f32.partialorder %v7643_v1, %v7723_v5  ;;  %vm2243_vm0 = vcmp.eq.f32.partialorder %v7649_v39, %v7723_v5  ;;  %v11211_v60 = vld [vmem:[#allocation237_spill] sm:$0xff]  ;;  %v11213_v45 = vld [vmem:[#allocation46_spill] sm:$0xff] }
 0x2bf   : > { %vm2353_vm6 = vcmp.lt.s32.totalorder %v2350_v16, %v2293_v48  ;;  %vm2355_vm13 = vcmp.lt.s32.totalorder %v2352_v63, %v2295_v25  ;;  %v2301_v27 = vsel %vm2237_vm15, %v11208_v31, 256  ;;  %v2303_v14 = vsel %vm2239_vm9, %v11209_v8, 256  ;;  %v11212_v11 = vld [vmem:[#allocation45_spill] sm:$0xff]  ;;  %v11214_v31 = vld [vmem:[#allocation238_spill] sm:$0xff] }
 0x2c0   : > { %v2354_v19 = vsel %vm2353_vm6, %v2350_v16, %v2293_v48  ;;  %v2356_v49 = vsel %vm2355_vm13, %v2352_v63, %v2295_v25  ;;  %vm2245_vm10 = vcmp.eq.f32.partialorder %v11210_v0, %v7723_v5  ;;  %vm2247_vm11 = vcmp.eq.f32.partialorder %v11211_v60, %v7723_v5  ;;  %v11215_v48 = vld [vmem:[#allocation239_spill] sm:$0xff]  ;;  %v11217_v63 = vld [vmem:[#allocation48_spill] sm:$0xff] }
 0x2c1   : > { %vm2357_vm3 = vcmp.lt.s32.totalorder %v2354_v19, %v2297_v58  ;;  %vm2359_vm8 = vcmp.lt.s32.totalorder %v2356_v49, %v2299_v59  ;;  %v2305_v50 = vsel %vm2241_vm4, %v11212_v11, 256  ;;  %v2307_v39 = vsel %vm2243_vm0, %v11213_v45, 256  ;;  %v11216_v25 = vld [vmem:[#allocation47_spill] sm:$0xff] }
 0x2c2   : > { %v2358_v1 = vsel %vm2357_vm3, %v2354_v19, %v2297_v58  ;;  %v2360_v47 = vsel %vm2359_vm8, %v2356_v49, %v2299_v59  ;;  %vm2249_vm15 = vcmp.eq.f32.partialorder %v11214_v31, %v7723_v5  ;;  %vm2251_vm9 = vcmp.eq.f32.partialorder %v11215_v48, %v7723_v5  ;;  %v11218_v49 = vld [vmem:[#allocation49_spill] sm:$0xff]  ;;  %v11219_v58 = vld [vmem:[#allocation50_spill] sm:$0xff] }
 0x2c3   : > { %vm2361_vm6 = vcmp.lt.s32.totalorder %v2358_v1, %v2301_v27  ;;  %vm2363_vm13 = vcmp.lt.s32.totalorder %v2360_v47, %v2303_v14  ;;  %v2309_v16 = vsel %vm2245_vm10, %v11216_v25, 256  ;;  %v2311_v60 = vsel %vm2247_vm11, %v11217_v63, 256 }
 0x2c4   : > { %v2362_v0 = vsel %vm2361_vm6, %v2358_v1, %v2301_v27  ;;  %v2364_v8 = vsel %vm2363_vm13, %v2360_v47, %v2303_v14  ;;  %vm2253_vm4 = vcmp.eq.f32.partialorder %v7697_v20, %v7723_v5  ;;  %vm2255_vm0 = vcmp.eq.f32.partialorder %v7703_v62, %v7723_v5  ;;  %v11220_v47 = vld [vmem:[#allocation51_spill] sm:$0xff]  ;;  %v11221_v27 = vld [vmem:[#allocation52_spill] sm:$0xff] }
 0x2c5   : > { %vm2365_vm3 = vcmp.lt.s32.totalorder %v2362_v0, %v2305_v50  ;;  %vm2367_vm8 = vcmp.lt.s32.totalorder %v2364_v8, %v2307_v39  ;;  %v2313_v19 = vsel %vm2249_vm15, %v11218_v49, 256  ;;  %v2315_v59 = vsel %vm2251_vm9, %v11219_v58, 256  ;;  %v11222_v49 = vld [vmem:[#allocation53_spill] sm:$0xff] }
 0x2c6   : > { %v2366_v48 = vsel %vm2365_vm3, %v2362_v0, %v2305_v50  ;;  %v2368_v31 = vsel %vm2367_vm8, %v2364_v8, %v2307_v39  ;;  %vm2257_vm10 = vcmp.eq.f32.partialorder %v7711_v41, %v7723_v5  ;;  %vm2259_vm11 = vcmp.eq.f32.partialorder %v7717_v53, %v7723_v5 }
 0x2c7   : > { %vm2369_vm6 = vcmp.lt.s32.totalorder %v2366_v48, %v2309_v16  ;;  %vm2371_vm13 = vcmp.lt.s32.totalorder %v2368_v31, %v2311_v60  ;;  %v2317_v1 = vsel %vm2253_vm4, %v11220_v47, 256  ;;  %v2319_v14 = vsel %vm2255_vm0, %v11221_v27, 256 }
 0x2c8   : > { %v2370_v62 = vsel %vm2369_vm6, %v2366_v48, %v2309_v16  ;;  %v2372_v20 = vsel %vm2371_vm13, %v2368_v31, %v2311_v60  ;;  %v2321_v58 = vsel %vm2257_vm10, %v11222_v49, 256  ;;  %v2323_v0 = vsel %vm2259_vm11, %v11199_v17, 256  ;;  %v3591_v17 = vld [vmem:[%s3904_s7 + $0xf0] sm:$0xff] }
 0x2c9   : > { %vm2373_vm14 = vcmp.lt.s32.totalorder %v2370_v62, %v2313_v19  ;;  %vm2375_vm15 = vcmp.lt.s32.totalorder %v2372_v20, %v2315_v59 }
 0x2ca   : > { %v2374_v39 = vsel %vm2373_vm14, %v2370_v62, %v2313_v19  ;;  %v2376_v8 = vsel %vm2375_vm15, %v2372_v20, %v2315_v59  ;;  %v11223_v20 = vld [vmem:[#allocation111_spill] sm:$0xff]  ;;  %v11226_v59 = vld [vmem:[#allocation173_spill] sm:$0xff] }
 0x2cb   : > { %vm2377_vm9 = vcmp.lt.s32.totalorder %v2374_v39, %v2317_v1  ;;  %vm2379_vm3 = vcmp.lt.s32.totalorder %v2376_v8, %v2319_v14  ;;  %vm11224_vm14 = vcmp.eq.s32.totalorder %v10937_v43, %v11223_v20  ;;  %v11225_v19 = vld [vmem:[#allocation127_spill] sm:$0xff]  ;;  %vm11227_vm11 = vcmp.eq.s32.totalorder %v10937_v43, %v11226_v59  ;;  %v11263_v59 = vld [vmem:[#allocation237_spill] sm:$0xff]  ;;  %v11265_v20 = vld [vmem:[#allocation238_spill] sm:$0xff] }
 0x2cc   : > { %v2378_v5 = vsel %vm2377_vm9, %v2374_v39, %v2317_v1  ;;  %v2380_v50 = vsel %vm2379_vm3, %v2376_v8, %v2319_v14  ;;  %v761_v62 = vsel %vm11224_vm14, %v3591_v17, 0.0  ;;  %v1361_v1 = vsel %vm11227_vm11, %v11225_v19, 0.0 }
 0x2cd   : > { %vm2381_vm8 = vcmp.lt.s32.totalorder %v2378_v5, %v2321_v58  ;;  %vm2383_vm5 = vcmp.lt.s32.totalorder %v2380_v50, %v2323_v0  ;;  %v1425_v14 = vadd.f32 %v1361_v1, %v761_v62 }
 0x2ce   : > { %v2382_v53 = vsel %vm2381_vm8, %v2378_v5, %v2321_v58  ;;  %v2384_v41 = vsel %vm2383_vm5, %v2380_v50, %v2323_v0  ;;  %v11228_v0 = vld [vmem:[#allocation189_spill] sm:$0xff] }
 0x2cf   : > { %vm2385_vm4 = vcmp.lt.s32.totalorder %v2382_v53, %v2384_v41 }
 0x2d0   : > { %v2386_v48 = vsel %vm2385_vm4, %v2382_v53, %v2384_v41  ;;  %v1961_v53 = vsel %vm1897_vm2, %v11228_v0, 0.0 }
 0x2d1   : > { %v2387_v31 = vrot.slane %v2386_v48, 4  ;;  %v2025_v41 = vadd.f32 %v1961_v53, %v1425_v14  ;;  %v11239_v53 = vld [vmem:[#allocation172_spill] sm:$0xff] }
 0x2d3   : > { %vm2388_vm0 = vcmp.lt.s32.totalorder %v2386_v48, %v2387_v31 }
 0x2d4   : > { %v2389_v60 = vsel %vm2388_vm0, %v2386_v48, %v2387_v31 }
 0x2d5   : > { %v2390_v16 = vrot.slane %v2389_v60, 2 }
 0x2d7   : > { %vm2391_vm10 = vcmp.lt.s32.totalorder %v2389_v60, %v2390_v16 }
 0x2d8   : > { %v2392_v49 = vsel %vm2391_vm10, %v2389_v60, %v2390_v16 }
 0x2d9   : > { %v2393_v58 = vrot.slane %v2392_v49, 1 }
 0x2db   : > { %vm2394_vm5 = vcmp.lt.s32.totalorder %v2392_v49, %v2393_v58 }
 0x2dc   : > { %v7833_v39 = vsel %vm2394_vm5, %v2392_v49, %v2393_v58 }
 0x2dd   : > { %vm2497_vm6 = vcmp.eq.s32.totalorder %v10937_v43, %v7833_v39  ;;  %vm10364_vm13 = vcmp.eq.s32.totalorder %v11072_v30, %v7833_v39  ;;  %vm10365_vm2 = vcmp.eq.s32.totalorder %v11129_v35, %v7833_v39  ;;  %vm10367_vm15 = vcmp.eq.s32.totalorder %v11074_v52, %v7833_v39 }
 0x2de   : > { %v2561_v17 = vsel %vm2497_vm6, %v7577_v6, 0.0  ;;  %vm10370_vm9 = vcmp.eq.s32.totalorder %v11130_v61, %v7833_v39  ;;  %vm10371_vm3 = vcmp.eq.s32.totalorder %v11132_v10, %v7833_v39  ;;  %vm10374_vm8 = vcmp.eq.s32.totalorder %v11133_v15, %v7833_v39 }
 0x2df   : > { %v7841_v8 = vadd.f32 %v2561_v17, %v2025_v41  ;;  %v7859_v49 = vsel %vm10364_vm13, -inf, %v7451_v36  ;;  %v7865_v5 = vsel %vm10365_vm2, -inf, %v7457_v42  ;;  %v7871_v50 = vsel %vm10367_vm15, -inf, %v7463_v12 }
 0x2e0   : > { %11230 = vst [vmem:[#allocation189_spill] sm:$0xff] %v7859_v49  ;;  %v7877_v48 = vsel %vm10370_vm9, -inf, %v7469_v4  ;;  %vm10375_vm4 = vcmp.eq.s32.totalorder %v11078_v13, %v7833_v39  ;;  %vm10379_vm0 = vcmp.eq.s32.totalorder %v11079_v51, %v7833_v39  ;;  %v7887_v31 = vsel %vm10371_vm3, -inf, %v7479_v34 }
 0x2e1   : > { %11229 = vst [vmem:[#allocation127_spill] sm:$0xff] %v7841_v8  ;;  %v7893_v60 = vsel %vm10374_vm8, -inf, %v7485_v33  ;;  %vm10402_vm10 = vcmp.eq.s32.totalorder %v11080_v21, %v7833_v39  ;;  %vm10418_vm14 = vcmp.eq.s32.totalorder %v11081_v22, %v7833_v39  ;;  %v2723_v16 = vmax.f32 %v7859_v49, %v7871_v50  ;;  %v11257_v8 = vld [vmem:[#allocation235_spill] sm:$0xff] }
 0x2e2   : > { %11231 = vst [vmem:[#allocation244_spill] sm:$0xff] %v7865_v5  ;;  %v2724_v62 = vmax.f32 %v7865_v5, %v7877_v48  ;;  %v7907_v19 = vsel %vm10375_vm4, -inf, %v7499_v18  ;;  %v7913_v1 = vsel %vm10379_vm0, -inf, %v7505_v46  ;;  %vm10420_vm11 = vcmp.eq.s32.totalorder %v4080_v38, %v7833_v39  ;;  %v11245_v18 = vld [vmem:[#allocation43_spill] sm:$0xff]  ;;  %v11246_v46 = vld [vmem:[#allocation44_spill] sm:$0xff] }
 0x2e3   : > { %11232 = vst [vmem:[#allocation245_spill] sm:$0xff] %v7871_v50  ;;  %vm10422_vm5 = vcmp.eq.s32.totalorder %v11082_v24, %v7833_v39  ;;  %v2725_v58 = vmax.f32 %v2723_v16, %v7887_v31  ;;  %v7925_v0 = vsel %vm10402_vm10, -inf, %v7517_v40  ;;  %v7931_v41 = vsel %vm10418_vm14, -inf, %v11239_v53  ;;  %v11247_v40 = vld [vmem:[#allocation230_spill] sm:$0xff]  ;;  %v11249_v53 = vld [vmem:[#allocation231_spill] sm:$0xff] }
 0x2e4   : > { %11233 = vst [vmem:[#allocation246_spill] sm:$0xff] %v7877_v48  ;;  %v2726_v14 = vmax.f32 %v2724_v62, %v7893_v60  ;;  %vm10424_vm13 = vcmp.eq.s32.totalorder %v10934_v2, %v7833_v39  ;;  %vm10426_vm2 = vcmp.eq.s32.totalorder %v10935_v3, %v7833_v39  ;;  %v7943_v62 = vsel %vm10420_vm11, -inf, %v7535_v57  ;;  %v11251_v57 = vld [vmem:[#allocation232_spill] sm:$0xff] }
 0x2e5   : > { %11234 = vst [vmem:[#allocation247_spill] sm:$0xff] %v7887_v31  ;;  %v2727_v17 = vmax.f32 %v2725_v58, %v7907_v19  ;;  %v7949_v36 = vsel %vm10422_vm5, -inf, %v7541_v55  ;;  %vm10429_vm15 = vcmp.eq.s32.totalorder %v10936_v32, %v7833_v39  ;;  %v7965_v12 = vsel %vm10426_vm2, -inf, %v7559_v7  ;;  %v11253_v55 = vld [vmem:[#allocation233_spill] sm:$0xff] }
 0x2e6   : > { %11235 = vst [vmem:[#allocation248_spill] sm:$0xff] %v7893_v60  ;;  %v2728_v16 = vmax.f32 %v2726_v14, %v7913_v1  ;;  %v7959_v14 = vsel %vm10424_vm13, -inf, %v7553_v9  ;;  %vm10383_vm9 = vcmp.eq.s32.totalorder %v10939_v37, %v7833_v39  ;;  %vm10384_vm3 = vcmp.eq.s32.totalorder %v10940_v29, %v7833_v39  ;;  %v11255_v9 = vld [vmem:[#allocation234_spill] sm:$0xff]  ;;  %v11259_v7 = vld [vmem:[#allocation49_spill] sm:$0xff] }
 0x2e7   : > { %11236 = vst [vmem:[#allocation249_spill] sm:$0xff] %v7907_v19  ;;  %v2729_v42 = vmax.f32 %v2727_v17, %v7925_v0  ;;  %v7977_v4 = vsel %vm10429_vm15, -inf, %v7571_v28  ;;  %v7983_v34 = vsel %vm2497_vm6, -inf, %v7577_v6  ;;  %vm10387_vm8 = vcmp.eq.s32.totalorder %v4104_v54, %v7833_v39  ;;  %v11260_v28 = vld [vmem:[#allocation50_spill] sm:$0xff] }
 0x2e8   : > { %11237 = vst [vmem:[#allocation250_spill] sm:$0xff] %v7913_v1  ;;  %v2730_v58 = vmax.f32 %v2728_v16, %v7931_v41  ;;  %vm10388_vm4 = vcmp.eq.s32.totalorder %v4107_v56, %v7833_v39  ;;  %v7995_v33 = vsel %vm10383_vm9, -inf, %v7589_v44  ;;  %v8001_v6 = vsel %vm10384_vm3, -inf, %v7595_v26 }
 0x2e9   : > { %11238 = vst [vmem:[#allocation251_spill] sm:$0xff] %v7925_v0  ;;  %v2731_v17 = vmax.f32 %v2729_v42, %v7943_v62  ;;  %vm10391_vm6 = vcmp.eq.s32.totalorder %v11245_v18, %v7833_v39  ;;  %vm10393_vm0 = vcmp.eq.s32.totalorder %v11246_v46, %v7833_v39  ;;  %v8013_v44 = vsel %vm10387_vm8, -inf, %v11247_v40  ;;  %v11273_v18 = vld [vmem:[#allocation242_spill] sm:$0xff] }
 0x2ea   : > { %11240 = vst [vmem:[#allocation252_spill] sm:$0xff] %v7931_v41  ;;  %v2732_v16 = vmax.f32 %v2730_v58, %v7949_v36  ;;  %v8019_v26 = vsel %vm10388_vm4, -inf, %v11249_v53  ;;  %vm10396_vm9 = vcmp.eq.s32.totalorder %v11212_v11, %v7833_v39  ;;  %vm10397_vm3 = vcmp.eq.s32.totalorder %v11213_v45, %v7833_v39  ;;  %v11270_v45 = vld [vmem:[#allocation54_spill] sm:$0xff]  ;;  %v11271_v11 = vld [vmem:[#allocation240_spill] sm:$0xff] }
 0x2eb   : > { %11241 = vst [vmem:[#allocation253_spill] sm:$0xff] %v7943_v62  ;;  %v2733_v42 = vmax.f32 %v2731_v17, %v7959_v14  ;;  %v8031_v40 = vsel %vm10391_vm6, -inf, %v11251_v57  ;;  %v8037_v53 = vsel %vm10393_vm0, -inf, %v11253_v55  ;;  %vm10400_vm8 = vcmp.eq.s32.totalorder %v11216_v25, %v7833_v39  ;;  %v11267_v25 = vld [vmem:[#allocation239_spill] sm:$0xff] }
 0x2ec   : > { %11242 = vst [vmem:[#allocation254_spill] sm:$0xff] %v7949_v36  ;;  %v2734_v58 = vmax.f32 %v2732_v16, %v7965_v12  ;;  %vm10417_vm4 = vcmp.eq.s32.totalorder %v11217_v63, %v7833_v39  ;;  %v8049_v57 = vsel %vm10396_vm9, -inf, %v11255_v9  ;;  %v8055_v55 = vsel %vm10397_vm3, -inf, %v11257_v8  ;;  %v11269_v63 = vld [vmem:[#allocation53_spill] sm:$0xff] }
 0x2ed   : > { %11243 = vst [vmem:[#allocation255_spill] sm:$0xff] %v7995_v33  ;;  %v2735_v17 = vmax.f32 %v2733_v42, %v7977_v4  ;;  %vm10419_vm6 = vcmp.eq.s32.totalorder %v11259_v7, %v7833_v39  ;;  %vm10421_vm0 = vcmp.eq.s32.totalorder %v11260_v28, %v7833_v39  ;;  %v8067_v9 = vsel %vm10400_vm8, -inf, %v11261_v23  ;;  %v11272_v7 = vld [vmem:[#allocation241_spill] sm:$0xff] }
 0x2ee   : > { %11244 = vst [vmem:[#allocation256_spill] sm:$0xff] %v8001_v6  ;;  %v2736_v16 = vmax.f32 %v2734_v58, %v7983_v34  ;;  %v8073_v8 = vsel %vm10417_vm4, -inf, %v11263_v59  ;;  %vm10423_vm9 = vcmp.eq.s32.totalorder %v11220_v47, %v7833_v39  ;;  %vm10425_vm3 = vcmp.eq.s32.totalorder %v11221_v27, %v7833_v39 }
 0x2ef   : > { %11248 = vst [vmem:[#allocation257_spill] sm:$0xff] %v8013_v44  ;;  %v2737_v42 = vmax.f32 %v2735_v17, %v7995_v33  ;;  %v8085_v23 = vsel %vm10419_vm6, -inf, %v11265_v20  ;;  %v8091_v59 = vsel %vm10421_vm0, -inf, %v11267_v25  ;;  %vm10427_vm8 = vcmp.eq.s32.totalorder %v11269_v63, %v7833_v39 }
 0x2f0   : > { %11250 = vst [vmem:[#allocation258_spill] sm:$0xff] %v8019_v26  ;;  %v2738_v58 = vmax.f32 %v2736_v16, %v8001_v6  ;;  %vm10431_vm10 = vcmp.eq.s32.totalorder %v11270_v45, %v7833_v39  ;;  %v8103_v20 = vsel %vm10423_vm9, -inf, %v11271_v11  ;;  %v8109_v25 = vsel %vm10425_vm3, -inf, %v11272_v7 }
 0x2f1   : > { %11252 = vst [vmem:[#allocation259_spill] sm:$0xff] %v8031_v40  ;;  %v2739_v17 = vmax.f32 %v2737_v42, %v8013_v44 }
 0x2f2   : > { %11254 = vst [vmem:[#allocation260_spill] sm:$0xff] %v8037_v53  ;;  %v2740_v16 = vmax.f32 %v2738_v58, %v8019_v26 }
 0x2f3   : > { %11256 = vst [vmem:[#allocation261_spill] sm:$0xff] %v8049_v57  ;;  %v2741_v42 = vmax.f32 %v2739_v17, %v8031_v40 }
 0x2f4   : > { %11258 = vst [vmem:[#allocation262_spill] sm:$0xff] %v8055_v55  ;;  %v2742_v58 = vmax.f32 %v2740_v16, %v8037_v53 }
 0x2f5   : > { %11262 = vst [vmem:[#allocation263_spill] sm:$0xff] %v8067_v9  ;;  %v2743_v17 = vmax.f32 %v2741_v42, %v8049_v57 }
 0x2f6   : > { %11264 = vst [vmem:[#allocation264_spill] sm:$0xff] %v8073_v8  ;;  %v2744_v16 = vmax.f32 %v2742_v58, %v8055_v55 }
 0x2f7   : > { %11266 = vst [vmem:[#allocation265_spill] sm:$0xff] %v8085_v23  ;;  %v2745_v42 = vmax.f32 %v2743_v17, %v8067_v9  ;;  %v8117_v17 = vsel %vm10427_vm8, -inf, %v11273_v18 }
 0x2f8   : > { %11268 = vst [vmem:[#allocation266_spill] sm:$0xff] %v8091_v59  ;;  %v2746_v58 = vmax.f32 %v2744_v16, %v8073_v8  ;;  %v11274_v16 = vld [vmem:[#allocation243_spill] sm:$0xff] }
 0x2f9   : > { %v2747_v28 = vmax.f32 %v2745_v42, %v8085_v23  ;;  %v8123_v11 = vsel %vm10431_vm10, -inf, %v11274_v16 }
 0x2fa   : > { %v2748_v46 = vmax.f32 %v2746_v58, %v8091_v59 }
 0x2fb   : > { %v2749_v27 = vmax.f32 %v2747_v28, %v8103_v20 }
 0x2fc   : > { %v2750_v7 = vmax.f32 %v2748_v46, %v8109_v25 }
 0x2fd   : > { %v2751_v42 = vmax.f32 %v2749_v27, %v8117_v17 }
 0x2fe   : > { %v2752_v58 = vmax.f32 %v2750_v7, %v8123_v11 }
 0x300   : > { %v2753_v47 = vmax.f32 %v2751_v42, %v2752_v58 }
 0x302   : > { %v2754_v56 = vrot.slane %v2753_v47, 4 }
 0x304   : > { %v2755_v54 = vmax.f32 %v2753_v47, %v2754_v56 }
 0x306   : > { %v2756_v63 = vrot.slane %v2755_v54, 2 }
 0x308   : > { %v2757_v18 = vmax.f32 %v2755_v54, %v2756_v63 }
 0x30a   : > { %v2758_v29 = vrot.slane %v2757_v18, 1 }
 0x30c   : > { %v8129_v37 = vmax.f32 %v2757_v18, %v2758_v29 }
 0x30e   : > { %vm2797_vm4 = vcmp.eq.f32.partialorder %v7859_v49, %v8129_v37  ;;  %vm2799_vm14 = vcmp.eq.f32.partialorder %v7865_v5, %v8129_v37  ;;  %vm2801_vm6 = vcmp.eq.f32.partialorder %v7871_v50, %v8129_v37  ;;  %vm2803_vm11 = vcmp.eq.f32.partialorder %v7877_v48, %v8129_v37  ;;  %v11282_v48 = vld [vmem:[#allocation39_spill] sm:$0xff] }
 0x30f   : > { %vm2805_vm0 = vcmp.eq.f32.partialorder %v7887_v31, %v8129_v37  ;;  %vm2807_vm5 = vcmp.eq.f32.partialorder %v7893_v60, %v8129_v37  ;;  %vm2809_vm9 = vcmp.eq.f32.partialorder %v7907_v19, %v8129_v37  ;;  %vm2811_vm13 = vcmp.eq.f32.partialorder %v7913_v1, %v8129_v37  ;;  %v11284_v31 = vld [vmem:[#allocation40_spill] sm:$0xff]  ;;  %v11286_v60 = vld [vmem:[#allocation41_spill] sm:$0xff]  ;;  %v11288_v19 = vld [vmem:[#allocation42_spill] sm:$0xff] }
 0x310   : > { %vm2813_vm3 = vcmp.eq.f32.partialorder %v7925_v0, %v8129_v37  ;;  %vm2847_vm7 = vcmp.eq.f32.partialorder %v8073_v8, %v8129_v37  ;;  %vm2849_vm15 = vcmp.eq.f32.partialorder %v8085_v23, %v8129_v37  ;;  %vm2851_vm12 = vcmp.eq.f32.partialorder %v8091_v59, %v8129_v37  ;;  %v11294_v1 = vld [vmem:[#allocation45_spill] sm:$0xff]  ;;  %v11316_v59 = vld [vmem:[#allocation74_spill] sm:$0xff] }
 0x311   : > { %vm2853_vm10 = vcmp.eq.f32.partialorder %v8103_v20, %v8129_v37  ;;  %vm2855_vm1 = vcmp.eq.f32.partialorder %v8109_v25, %v8129_v37  ;;  %vm2857_vm2 = vcmp.eq.f32.partialorder %v8117_v17, %v8129_v37  ;;  %vm2859_vm8 = vcmp.eq.f32.partialorder %v8123_v11, %v8129_v37  ;;  %v3592_v23 = vld [vmem:[%s3904_s7 + $0x1f0] sm:$0xff] }
 0x312   : > { %v2861_v54 = vsel %vm2797_vm4, %v11072_v30, 256  ;;  %v2863_v56 = vsel %vm2799_vm14, %v11129_v35, 256  ;;  %v2865_v29 = vsel %vm2801_vm6, %v11074_v52, 256  ;;  %v2867_v28 = vsel %vm2803_vm11, %v11130_v61, 256 }
 0x313   : > { %v2869_v18 = vsel %vm2805_vm0, %v11132_v10, 256  ;;  %v2871_v46 = vsel %vm2807_vm5, %v11133_v15, 256  ;;  %v2873_v7 = vsel %vm2809_vm9, %v11078_v13, 256  ;;  %v2875_v63 = vsel %vm2811_vm13, %v11079_v51, 256 }
 0x314   : > { %v2877_v47 = vsel %vm2813_vm3, %v11080_v21, 256  ;;  %vm11275_vm4 = vcmp.eq.f32.partialorder %v7931_v41, %v8129_v37  ;;  %vm11276_vm0 = vcmp.eq.f32.partialorder %v7943_v62, %v8129_v37  ;;  %vm11277_vm9 = vcmp.eq.f32.partialorder %v7949_v36, %v8129_v37  ;;  %v11317_v36 = vld [vmem:[#allocation55_spill] sm:$0xff] }
 0x315   : > { %v2879_v27 = vsel %vm11275_vm4, %v11081_v22, 256  ;;  %v2881_v42 = vsel %vm11276_vm0, %v4080_v38, 256  ;;  %v2883_v58 = vsel %vm11277_vm9, %v11082_v24, 256  ;;  %vm11278_vm13 = vcmp.eq.f32.partialorder %v7959_v14, %v8129_v37 }
 0x316   : > { %v2885_v49 = vsel %vm11278_vm13, %v10934_v2, 256  ;;  %vm11279_vm3 = vcmp.eq.f32.partialorder %v7965_v12, %v8129_v37  ;;  %vm11280_vm14 = vcmp.eq.f32.partialorder %v7977_v4, %v8129_v37  ;;  %vm11281_vm11 = vcmp.eq.f32.partialorder %v7983_v34, %v8129_v37 }
 0x317   : > { %v2887_v5 = vsel %vm11279_vm3, %v10935_v3, 256  ;;  %v2889_v50 = vsel %vm11280_vm14, %v10936_v32, 256  ;;  %v2891_v30 = vsel %vm11281_vm11, %v10937_v43, 256  ;;  %vm11283_vm5 = vcmp.eq.f32.partialorder %v7995_v33, %v8129_v37  ;;  %v11290_v33 = vld [vmem:[#allocation43_spill] sm:$0xff] }
 0x318   : > { %v8263_v35 = vsel %vm11283_vm5, %v11282_v48, 256  ;;  %vm11285_vm6 = vcmp.eq.f32.partialorder %v8001_v6, %v8129_v37  ;;  %vm11287_vm4 = vcmp.eq.f32.partialorder %v8013_v44, %v8129_v37  ;;  %vm11289_vm0 = vcmp.eq.f32.partialorder %v8019_v26, %v8129_v37  ;;  %v11292_v48 = vld [vmem:[#allocation44_spill] sm:$0xff] }
 0x319   : > { %v8269_v52 = vsel %vm11285_vm6, %v11284_v31, 256  ;;  %v8275_v61 = vsel %vm11287_vm4, %v11286_v60, 256  ;;  %v8281_v10 = vsel %vm11289_vm0, %v11288_v19, 256  ;;  %vm2925_vm9 = vcmp.lt.s32.totalorder %v2861_v54, %v2865_v29  ;;  %v11296_v19 = vld [vmem:[#allocation46_spill] sm:$0xff] }
 0x31a   : > { %vm2927_vm13 = vcmp.lt.s32.totalorder %v2863_v56, %v2867_v28  ;;  %vm11291_vm3 = vcmp.eq.f32.partialorder %v8031_v40, %v8129_v37  ;;  %vm11293_vm14 = vcmp.eq.f32.partialorder %v8037_v53, %v8129_v37  ;;  %v2926_v31 = vsel %vm2925_vm9, %v2861_v54, %v2865_v29 }
 0x31b   : > { %v8287_v6 = vsel %vm11291_vm3, %v11290_v33, 256  ;;  %v8293_v44 = vsel %vm11293_vm14, %v11292_v48, 256  ;;  %v2928_v60 = vsel %vm2927_vm13, %v2863_v56, %v2867_v28  ;;  %vm11295_vm11 = vcmp.eq.f32.partialorder %v8049_v57, %v8129_v37  ;;  %v11298_v33 = vld [vmem:[#allocation47_spill] sm:$0xff]  ;;  %v11300_v56 = vld [vmem:[#allocation48_spill] sm:$0xff]  ;;  %v11301_v57 = vld [vmem:[#allocation49_spill] sm:$0xff] }
 0x31c   : > { %v8299_v26 = vsel %vm11295_vm11, %v11294_v1, 256  ;;  %vm11297_vm5 = vcmp.eq.f32.partialorder %v8055_v55, %v8129_v37  ;;  %vm2929_vm6 = vcmp.lt.s32.totalorder %v2926_v31, %v2869_v18  ;;  %vm2931_vm4 = vcmp.lt.s32.totalorder %v2928_v60, %v2871_v46  ;;  %v11302_v48 = vld [vmem:[#allocation50_spill] sm:$0xff]  ;;  %v11305_v1 = vld [vmem:[#allocation53_spill] sm:$0xff] }
 0x31d   : > { %v8305_v40 = vsel %vm11297_vm5, %v11296_v19, 256  ;;  %vm11299_vm0 = vcmp.eq.f32.partialorder %v8067_v9, %v8129_v37  ;;  %v8317_v29 = vsel %vm2847_vm7, %v11300_v56, 256  ;;  %v2930_v28 = vsel %vm2929_vm6, %v2926_v31, %v2869_v18  ;;  %v11303_v9 = vld [vmem:[#allocation51_spill] sm:$0xff]  ;;  %v3593_v37 = vld [vmem:[%s3904_s7 + $0xc8] sm:$0xff] }
 0x31e   : > { %v8311_v54 = vsel %vm11299_vm0, %v11298_v33, 256  ;;  %v2932_v53 = vsel %vm2931_vm4, %v2928_v60, %v2871_v46  ;;  %v8323_v55 = vsel %vm2849_vm15, %v11301_v57, 256  ;;  %v8329_v15 = vsel %vm2851_vm12, %v11302_v48, 256  ;;  %v11304_v60 = vld [vmem:[#allocation52_spill] sm:$0xff]  ;;  %v11311_v33 = vld [vmem:[#allocation59_spill] sm:$0xff] }
 0x31f   : > { %vm2933_vm9 = vcmp.lt.s32.totalorder %v2930_v28, %v2873_v7  ;;  %vm2935_vm13 = vcmp.lt.s32.totalorder %v2932_v53, %v2875_v63  ;;  %v8335_v31 = vsel %vm2853_vm10, %v11303_v9, 256  ;;  %v8341_v18 = vsel %vm2855_vm1, %v11304_v60, 256 }
 0x320   : > { %v2934_v46 = vsel %vm2933_vm9, %v2930_v28, %v2873_v7  ;;  %v2936_v0 = vsel %vm2935_vm13, %v2932_v53, %v2875_v63  ;;  %v8347_v8 = vsel %vm2857_vm2, %v11305_v1, 256  ;;  %v8353_v13 = vsel %vm2859_vm8, %v11270_v45, 256  ;;  %v11306_v7 = vld [vmem:[#allocation111_spill] sm:$0xff]  ;;  %v11309_v28 = vld [vmem:[#allocation173_spill] sm:$0xff] }
 0x321   : > { %vm2937_vm7 = vcmp.lt.s32.totalorder %v2934_v46, %v2877_v47  ;;  %vm2939_vm12 = vcmp.lt.s32.totalorder %v2936_v0, %v2879_v27  ;;  %vm11307_vm1 = vcmp.eq.s32.totalorder %v11270_v45, %v11306_v7  ;;  %v11308_v63 = vld [vmem:[#allocation139_spill] sm:$0xff]  ;;  %vm11310_vm2 = vcmp.eq.s32.totalorder %v11270_v45, %v11309_v28 }
 0x322   : > { %v2938_v41 = vsel %vm2937_vm7, %v2934_v46, %v2877_v47  ;;  %v2940_v19 = vsel %vm2939_vm12, %v2936_v0, %v2879_v27  ;;  %v793_v53 = vsel %vm11307_vm1, %v3592_v23, 0.0  ;;  %v1393_v51 = vsel %vm11310_vm2, %v11308_v63, 0.0  ;;  %v11313_v27 = vld [vmem:[#allocation227_spill] sm:$0xff] }
 0x323   : > { %vm2941_vm15 = vcmp.lt.s32.totalorder %v2938_v41, %v2881_v42  ;;  %vm2943_vm10 = vcmp.lt.s32.totalorder %v2940_v19, %v2883_v58  ;;  %v1457_v62 = vadd.f32 %v1393_v51, %v793_v53  ;;  %vm11312_vm8 = vcmp.eq.s32.totalorder %v10934_v2, %v11311_v33  ;;  %v11314_v46 = vld [vmem:[#allocation23_spill] sm:$0xff] }
 0x324   : > { %v756_v21 = vsel %vm11312_vm8, %v3593_v37, 0.0  ;;  %v2942_v47 = vsel %vm2941_vm15, %v2938_v41, %v2881_v42  ;;  %v2944_v0 = vsel %vm2943_vm10, %v2940_v19, %v2883_v58  ;;  %vm11315_vm3 = vcmp.eq.s32.totalorder %v11270_v45, %v11314_v46  ;;  %v11320_v41 = vld [vmem:[#allocation72_spill] sm:$0xff] }
 0x325   : > { %v1993_v23 = vsel %vm11315_vm3, %v11313_v27, 0.0  ;;  %vm11318_vm14 = vcmp.eq.s32.totalorder %v10934_v2, %v11317_v36  ;;  %vm2945_vm11 = vcmp.lt.s32.totalorder %v2942_v47, %v2885_v49  ;;  %vm2947_vm5 = vcmp.lt.s32.totalorder %v2944_v0, %v2887_v5  ;;  %v11321_v42 = vld [vmem:[#allocation140_spill] sm:$0xff]  ;;  %v11327_v27 = vld [vmem:[#allocation203_spill] sm:$0xff] }
 0x326   : > { %v1356_v63 = vsel %vm11318_vm14, %v11316_v59, 0.0  ;;  %v2057_v51 = vadd.f32 %v1993_v23, %v1457_v62  ;;  %v2946_v56 = vsel %vm2945_vm11, %v2942_v47, %v2885_v49  ;;  %v2948_v22 = vsel %vm2947_vm5, %v2944_v0, %v2887_v5  ;;  %v11323_v49 = vld [vmem:[#allocation153_spill] sm:$0xff]  ;;  %v11324_v5 = vld [vmem:[#allocation35_spill] sm:$0xff]  ;;  %v11326_v0 = vld [vmem:[#allocation34_spill] sm:$0xff] }
 0x327   : > { %v1420_v53 = vadd.f32 %v1356_v63, %v756_v21  ;;  %vm11319_vm6 = vcmp.eq.s32.totalorder %v11270_v45, %v7833_v39  ;;  %vm11322_vm4 = vcmp.eq.s32.totalorder %v10934_v2, %v11321_v42  ;;  %vm2949_vm0 = vcmp.lt.s32.totalorder %v2946_v56, %v2889_v50 }
 0x328   : > { %v2593_v19 = vsel %vm11319_vm6, %v11274_v16, 0.0  ;;  %v1956_v58 = vsel %vm11322_vm4, %v11320_v41, 0.0  ;;  %vm2951_vm9 = vcmp.lt.s32.totalorder %v2948_v22, %v2891_v30  ;;  %v2950_v62 = vsel %vm2949_vm0, %v2946_v56, %v2889_v50  ;;  %v11329_v56 = vld [vmem:[#allocation104_spill] sm:$0xff]  ;;  %v11331_v41 = vld [vmem:[#allocation107_spill] sm:$0xff] }
 0x329   : > { %v8383_v59 = vadd.f32 %v2593_v19, %v2057_v51  ;;  %v2020_v37 = vadd.f32 %v1956_v58, %v1420_v53  ;;  %v2952_v21 = vsel %vm2951_vm9, %v2948_v22, %v2891_v30  ;;  %vm11325_vm13 = vcmp.eq.s32.totalorder %v10934_v2, %v11324_v5  ;;  %v3594_v22 = vld [vmem:[%s3904_s7 + $0x1c8] sm:$0xff] }
 0x32a   : > { %v2556_v47 = vsel %vm11325_vm13, %v11323_v49, 0.0  ;;  %vm3092_vm7 = vcmp.eq.s32.totalorder %v10934_v2, %v11326_v0  ;;  %vm2953_vm12 = vcmp.lt.s32.totalorder %v2950_v62, %v8263_v35  ;;  %vm2955_vm1 = vcmp.lt.s32.totalorder %v2952_v21, %v8269_v52  ;;  %v11335_v49 = vld [vmem:[#allocation217_spill] sm:$0xff] }
 0x32b   : > { %v2620_v16 = vadd.f32 %v2556_v47, %v2020_v37  ;;  %v3156_v23 = vsel %vm3092_vm7, %v11327_v27, 0.0  ;;  %v2954_v63 = vsel %vm2953_vm12, %v2950_v62, %v8263_v35  ;;  %v2956_v50 = vsel %vm2955_vm1, %v2952_v21, %v8269_v52  ;;  %v11333_v37 = vld [vmem:[#allocation169_spill] sm:$0xff] }
 0x32c   : > { %vm11328_vm2 = vcmp.eq.s32.totalorder %v11303_v9, %v11311_v33  ;;  %vm11330_vm15 = vcmp.eq.s32.totalorder %v11303_v9, %v11317_v36  ;;  %vm2957_vm10 = vcmp.lt.s32.totalorder %v2954_v63, %v8275_v61  ;;  %vm2959_vm8 = vcmp.lt.s32.totalorder %v2956_v50, %v8281_v10 }
 0x32d   : > { %v788_v30 = vsel %vm11328_vm2, %v3594_v22, 0.0  ;;  %v1388_v51 = vsel %vm11330_vm15, %v11329_v56, 0.0  ;;  %v3220_v53 = vadd.f32 %v3156_v23, %v2620_v16  ;;  %v2958_v35 = vsel %vm2957_vm10, %v2954_v63, %v8275_v61  ;;  %v3595_v16 = vld [vmem:[%s3904_s7 + $0xe0] sm:$0xff]  ;;  %v11337_v63 = vld [vmem:[#allocation126_spill] sm:$0xff] }
 0x32e   : > { %v1452_v19 = vadd.f32 %v1388_v51, %v788_v30  ;;  %v2960_v52 = vsel %vm2959_vm8, %v2956_v50, %v8281_v10  ;;  %vm11332_vm3 = vcmp.eq.s32.totalorder %v11303_v9, %v11321_v42  ;;  %vm11334_vm14 = vcmp.eq.s32.totalorder %v11303_v9, %v11324_v5  ;;  %v11339_v30 = vld [vmem:[#allocation188_spill] sm:$0xff] }
 0x32f   : > { %v1988_v58 = vsel %vm11332_vm3, %v11331_v41, 0.0  ;;  %v2588_v62 = vsel %vm11334_vm14, %v11333_v37, 0.0  ;;  %vm2961_vm11 = vcmp.lt.s32.totalorder %v2958_v35, %v8287_v6  ;;  %vm2963_vm5 = vcmp.lt.s32.totalorder %v2960_v52, %v8293_v44  ;;  %3302 = vmatpush.msra.mxu2 %v3220_v53  ;;  %v11341_v53 = vld [vmem:[#allocation56_spill] sm:$0xff] }
 0x330   : > { %v2052_v21 = vadd.f32 %v1988_v58, %v1452_v19  ;;  %vm3124_vm6 = vcmp.eq.s32.totalorder %v11303_v9, %v11326_v0  ;;  %v2962_v61 = vsel %vm2961_vm11, %v2958_v35, %v8287_v6  ;;  %v2964_v10 = vsel %vm2963_vm5, %v2960_v52, %v8293_v44  ;;  %v3596_v52 = vld [vmem:[%s3904_s7 + $0x1e0] sm:$0xff]  ;;  %v11344_v58 = vld [vmem:[#allocation138_spill] sm:$0xff] }
 0x331   : > { %v3188_v47 = vsel %vm3124_vm6, %v11335_v49, 0.0  ;;  %vm11336_vm4 = vcmp.eq.s32.totalorder %v10936_v32, %v11306_v7  ;;  %vm2965_vm0 = vcmp.lt.s32.totalorder %v2962_v61, %v8299_v26  ;;  %vm2967_vm9 = vcmp.lt.s32.totalorder %v2964_v10, %v8305_v40  ;;  %v11348_v49 = vld [vmem:[#allocation242_spill] sm:$0xff] }
 0x332   : > { %v759_v27 = vsel %vm11336_vm4, %v3595_v16, 0.0  ;;  %v2652_v23 = vadd.f32 %v2588_v62, %v2052_v21  ;;  %vm11338_vm13 = vcmp.eq.s32.totalorder %v10936_v32, %v11309_v28  ;;  %v2966_v44 = vsel %vm2965_vm0, %v2962_v61, %v8299_v26  ;;  %v3597_v16 = vld [vmem:[%s3904_s7 + $0xb8] sm:$0xff] }
 0x333   : > { %v1359_v6 = vsel %vm11338_vm13, %v11337_v63, 0.0  ;;  %v2968_v50 = vsel %vm2967_vm9, %v2964_v10, %v8305_v40  ;;  %vm11340_vm7 = vcmp.eq.s32.totalorder %v10936_v32, %v11314_v46  ;;  %vm2969_vm12 = vcmp.lt.s32.totalorder %v2966_v44, %v8311_v54  ;;  %v11351_v63 = vld [vmem:[#allocation71_spill] sm:$0xff] }
 0x334   : > { %v1423_v22 = vadd.f32 %v1359_v6, %v759_v27  ;;  %v1959_v56 = vsel %vm11340_vm7, %v11339_v30, 0.0  ;;  %vm2971_vm1 = vcmp.lt.s32.totalorder %v2968_v50, %v8317_v29  ;;  %v3252_v51 = vadd.f32 %v3188_v47, %v2652_v23 }
 0x335   : > { %vm11342_vm2 = vcmp.eq.s32.totalorder %v10936_v32, %v7833_v39  ;;  %v2970_v26 = vsel %vm2969_vm12, %v2966_v44, %v8311_v54  ;;  %v2972_v40 = vsel %vm2971_vm1, %v2968_v50, %v8317_v29  ;;  %vm11343_vm15 = vcmp.eq.s32.totalorder %v11305_v1, %v11306_v7  ;;  %v11346_v54 = vld [vmem:[#allocation226_spill] sm:$0xff]  ;;  %v11353_v50 = vld [vmem:[#allocation69_spill] sm:$0xff] }
 0x336   : > { %v2559_v19 = vsel %vm11342_vm2, %v11341_v53, 0.0  ;;  %v2023_v35 = vadd.f32 %v1959_v56, %v1423_v22  ;;  %v791_v41 = vsel %vm11343_vm15, %v3596_v52, 0.0  ;;  %vm2973_vm10 = vcmp.lt.s32.totalorder %v2970_v26, %v8323_v55  ;;  %3322 = vmatpush.msra.mxu3 %v3252_v51  ;;  %v11355_v56 = vld [vmem:[#allocation152_spill] sm:$0xff] }
 0x337   : > { %vm2975_vm8 = vcmp.lt.s32.totalorder %v2972_v40, %v8329_v15  ;;  %vm11345_vm3 = vcmp.eq.s32.totalorder %v11305_v1, %v11309_v28  ;;  %vm11347_vm14 = vcmp.eq.s32.totalorder %v11305_v1, %v11314_v46  ;;  %v2974_v62 = vsel %vm2973_vm10, %v2970_v26, %v8323_v55 }
 0x338   : > { %v1391_v37 = vsel %vm11345_vm3, %v11344_v58, 0.0  ;;  %v1991_v29 = vsel %vm11347_vm14, %v11346_v54, 0.0  ;;  %v2976_v21 = vsel %vm2975_vm8, %v2972_v40, %v8329_v15  ;;  %v8463_v61 = vadd.f32 %v2559_v19, %v2023_v35  ;;  %v3598_v19 = vld [vmem:[%s3904_s7 + $0x1b8] sm:$0xff]  ;;  %v11359_v35 = vld [vmem:[#allocation103_spill] sm:$0xff] }
 0x339   : > { %v1455_v10 = vadd.f32 %v1391_v37, %v791_v41  ;;  %vm2977_vm11 = vcmp.lt.s32.totalorder %v2974_v62, %v8335_v31  ;;  %vm2979_vm5 = vcmp.lt.s32.totalorder %v2976_v21, %v8341_v18  ;;  %vm11349_vm6 = vcmp.eq.s32.totalorder %v11305_v1, %v7833_v39  ;;  %v11361_v41 = vld [vmem:[#allocation106_spill] sm:$0xff] }
 0x33a   : > { %v2591_v47 = vsel %vm11349_vm6, %v11348_v49, 0.0  ;;  %vm11350_vm4 = vcmp.eq.s32.totalorder %v11082_v24, %v11311_v33  ;;  %v2978_v15 = vsel %vm2977_vm11, %v2974_v62, %v8335_v31  ;;  %v2980_v55 = vsel %vm2979_vm5, %v2976_v21, %v8341_v18  ;;  %v11363_v62 = vld [vmem:[#allocation168_spill] sm:$0xff] }
 0x33b   : > { %v754_v27 = vsel %vm11350_vm4, %v3597_v16, 0.0  ;;  %v2055_v23 = vadd.f32 %v1991_v29, %v1455_v10  ;;  %vm11352_vm0 = vcmp.eq.s32.totalorder %v11082_v24, %v11317_v36  ;;  %vm2981_vm9 = vcmp.lt.s32.totalorder %v2978_v15, %v8347_v8  ;;  %v3599_v10 = vld [vmem:[%s3904_s7 + $0xd0] sm:$0xff] }
 0x33c   : > { %v1354_v6 = vsel %vm11352_vm0, %v11351_v63, 0.0  ;;  %vm2983_vm13 = vcmp.lt.s32.totalorder %v2980_v55, %v8353_v13  ;;  %vm11354_vm7 = vcmp.eq.s32.totalorder %v11082_v24, %v11321_v42  ;;  %v2982_v31 = vsel %vm2981_vm9, %v2978_v15, %v8347_v8  ;;  %v11370_v63 = vld [vmem:[#allocation216_spill] sm:$0xff] }
 0x33d   : > { %v1418_v44 = vadd.f32 %v1354_v6, %v754_v27  ;;  %v1954_v22 = vsel %vm11354_vm7, %v11353_v50, 0.0  ;;  %v2984_v18 = vsel %vm2983_vm13, %v2980_v55, %v8353_v13  ;;  %v8489_v30 = vadd.f32 %v2591_v47, %v2055_v23  ;;  %v11358_v13 = vld [vmem:[#allocation202_spill] sm:$0xff]  ;;  %v11366_v47 = vld [vmem:[#allocation125_spill] sm:$0xff]  ;;  %v11368_v27 = vld [vmem:[#allocation183_spill] sm:$0xff] }
 0x33e   : > { %vm11356_vm12 = vcmp.eq.s32.totalorder %v11082_v24, %v11324_v5  ;;  %vm2985_vm1 = vcmp.lt.s32.totalorder %v2982_v31, %v2984_v18  ;;  %vm3090_vm2 = vcmp.eq.s32.totalorder %v11082_v24, %v11326_v0  ;;  %vm11357_vm15 = vcmp.eq.s32.totalorder %v11302_v48, %v11311_v33 }
 0x33f   : > { %v2554_v51 = vsel %vm11356_vm12, %v11355_v56, 0.0  ;;  %v2018_v53 = vadd.f32 %v1954_v22, %v1418_v44  ;;  %v786_v8 = vsel %vm11357_vm15, %v3598_v19, 0.0  ;;  %v2986_v26 = vsel %vm2985_vm1, %v2982_v31, %v2984_v18  ;;  %v11371_v22 = vld [vmem:[#allocation170_spill] sm:$0xff]  ;;  %v3600_v18 = vld [vmem:[%s3904_s7 + $0x1d0] sm:$0xff] }
 0x340   : > { %v3154_v40 = vsel %vm3090_vm2, %v11358_v13, 0.0  ;;  %vm11360_vm10 = vcmp.eq.s32.totalorder %v11302_v48, %v11317_v36  ;;  %vm11362_vm8 = vcmp.eq.s32.totalorder %v11302_v48, %v11321_v42  ;;  %v2987_v37 = vrot.slane %v2986_v26, 4  ;;  %v11374_v19 = vld [vmem:[#allocation137_spill] sm:$0xff] }
 0x341   : > { %v1386_v52 = vsel %vm11360_vm10, %v11359_v35, 0.0  ;;  %v1986_v58 = vsel %vm11362_vm8, %v11361_v41, 0.0  ;;  %v2618_v54 = vadd.f32 %v2554_v51, %v2018_v53  ;;  %vm11364_vm3 = vcmp.eq.s32.totalorder %v11302_v48, %v11324_v5 }
 0x342   : > { %v1450_v29 = vadd.f32 %v1386_v52, %v786_v8  ;;  %v2586_v21 = vsel %vm11364_vm3, %v11363_v62, 0.0  ;;  %vm3122_vm14 = vcmp.eq.s32.totalorder %v11302_v48, %v11326_v0  ;;  %vm11365_vm11 = vcmp.eq.s32.totalorder %v10935_v3, %v11306_v7  ;;  %v11378_v52 = vld [vmem:[#allocation241_spill] sm:$0xff] }
 0x343   : > { %v757_v49 = vsel %vm11365_vm11, %v3599_v10, 0.0  ;;  %vm11367_vm5 = vcmp.eq.s32.totalorder %v10935_v3, %v11309_v28  ;;  %vm11369_vm6 = vcmp.eq.s32.totalorder %v10935_v3, %v11314_v46  ;;  %vm2988_vm4 = vcmp.lt.s32.totalorder %v2986_v26, %v2987_v37 }
 0x344   : > { %v1357_v16 = vsel %vm11367_vm5, %v11366_v47, 0.0  ;;  %v1957_v15 = vsel %vm11369_vm6, %v11368_v27, 0.0  ;;  %v3218_v55 = vadd.f32 %v3154_v40, %v2618_v54  ;;  %v2050_v23 = vadd.f32 %v1986_v58, %v1450_v29  ;;  %v3601_v58 = vld [vmem:[%s3904_s7 + $0xa8] sm:$0xff]  ;;  %v11381_v29 = vld [vmem:[#allocation70_spill] sm:$0xff] }
 0x345   : > { %v3186_v6 = vsel %vm3122_vm14, %v11370_v63, 0.0  ;;  %v2989_v44 = vsel %vm2988_vm4, %v2986_v26, %v2987_v37  ;;  %v1421_v50 = vadd.f32 %v1357_v16, %v757_v49  ;;  %vm11372_vm0 = vcmp.eq.s32.totalorder %v10935_v3, %v7833_v39  ;;  %v11376_v26 = vld [vmem:[#allocation225_spill] sm:$0xff]  ;;  %v3602_v63 = vld [vmem:[%s3904_s7 + $0x1a8] sm:$0xff] }
 0x346   : > { %v2557_v31 = vsel %vm11372_vm0, %v11371_v22, 0.0  ;;  %vm11373_vm9 = vcmp.eq.s32.totalorder %v11304_v60, %v11306_v7  ;;  %v2990_v51 = vrot.slane %v2989_v44, 2  ;;  %3303 = vmatpush.msra.mxu2 %v3218_v55  ;;  %v2650_v53 = vadd.f32 %v2586_v21, %v2050_v23  ;;  %v11383_v21 = vld [vmem:[#allocation68_spill] sm:$0xff]  ;;  %v11385_v55 = vld [vmem:[#allocation151_spill] sm:$0xff]  ;;  %v11388_v22 = vld [vmem:[#allocation201_spill] sm:$0xff] }
 0x347   : > { %v789_v56 = vsel %vm11373_vm9, %v3600_v18, 0.0  ;;  %vm11375_vm13 = vcmp.eq.s32.totalorder %v11304_v60, %v11309_v28  ;;  %vm11377_vm7 = vcmp.eq.s32.totalorder %v11304_v60, %v11314_v46  ;;  %v2021_v40 = vadd.f32 %v1957_v15, %v1421_v50  ;;  %v11389_v18 = vld [vmem:[#allocation102_spill] sm:$0xff] }
 0x348   : > { %v1389_v8 = vsel %vm11375_vm13, %v11374_v19, 0.0  ;;  %v1989_v13 = vsel %vm11377_vm7, %v11376_v26, 0.0  ;;  %vm11379_vm12 = vcmp.eq.s32.totalorder %v11304_v60, %v7833_v39  ;;  %vm11380_vm1 = vcmp.eq.s32.totalorder %v4080_v38, %v11311_v33 }
 0x349   : > { %v1453_v35 = vadd.f32 %v1389_v8, %v789_v56  ;;  %v2589_v41 = vsel %vm11379_vm12, %v11378_v52, 0.0  ;;  %v752_v37 = vsel %vm11380_vm1, %v3601_v58, 0.0  ;;  %vm2991_vm2 = vcmp.lt.s32.totalorder %v2989_v44, %v2990_v51  ;;  %v11393_v8 = vld [vmem:[#allocation167_spill] sm:$0xff] }
 0x34a   : > { %v3250_v54 = vadd.f32 %v3186_v6, %v2650_v53  ;;  %vm11382_vm15 = vcmp.eq.s32.totalorder %v4080_v38, %v11317_v36  ;;  %vm11384_vm10 = vcmp.eq.s32.totalorder %v4080_v38, %v11321_v42  ;;  %v2992_v49 = vsel %vm2991_vm2, %v2989_v44, %v2990_v51  ;;  %v11391_v53 = vld [vmem:[#allocation105_spill] sm:$0xff] }
 0x34b   : > { %v1352_v62 = vsel %vm11382_vm15, %v11381_v29, 0.0  ;;  %v1952_v10 = vsel %vm11384_vm10, %v11383_v21, 0.0  ;;  %v2621_v47 = vadd.f32 %v2557_v31, %v2021_v40  ;;  %v2053_v16 = vadd.f32 %v1989_v13, %v1453_v35  ;;  %v3603_v35 = vld [vmem:[%s3904_s7 + $0xc0] sm:$0xff] }
 0x34c   : > { %v1416_v27 = vadd.f32 %v1352_v62, %v752_v37  ;;  %v2993_v15 = vrot.slane %v2992_v49, 1  ;;  %3323 = vmatpush.msra.mxu3 %v3250_v54  ;;  %vm11386_vm8 = vcmp.eq.s32.totalorder %v4080_v38, %v11324_v5  ;;  %vm3088_vm3 = vcmp.eq.s32.totalorder %v4080_v38, %v11326_v0  ;;  %v11396_v29 = vld [vmem:[#allocation127_spill] sm:$0xff] }
 0x34d   : > { %v2552_v23 = vsel %vm11386_vm8, %v11385_v55, 0.0  ;;  %vm11387_vm14 = vcmp.eq.s32.totalorder %v11301_v57, %v11311_v33  ;;  %v2653_v44 = vadd.f32 %v2589_v41, %v2053_v16  ;;  %v3152_v31 = vsel %vm3088_vm3, %v11388_v22, 0.0  ;;  %v11409_v22 = vld [vmem:[#allocation240_spill] sm:$0xff] }
 0x34e   : > { %v784_v6 = vsel %vm11387_vm14, %v3602_v63, 0.0  ;;  %v2016_v50 = vadd.f32 %v1952_v10, %v1416_v27  ;;  %vm11390_vm11 = vcmp.eq.s32.totalorder %v11301_v57, %v11317_v36  ;;  %vm2994_vm5 = vcmp.lt.s32.totalorder %v2992_v49, %v2993_v15  ;;  %v11405_v63 = vld [vmem:[#allocation136_spill] sm:$0xff] }
 0x34f   : > { %v1384_v56 = vsel %vm11390_vm11, %v11389_v18, 0.0  ;;  %vm11392_vm6 = vcmp.eq.s32.totalorder %v11301_v57, %v11321_v42  ;;  %vm11394_vm4 = vcmp.eq.s32.totalorder %v11301_v57, %v11324_v5  ;;  %v8584_v13 = vsel %vm2994_vm5, %v2992_v49, %v2993_v15  ;;  %v11402_v49 = vld [vmem:[#allocation154_spill] sm:$0xff] }
 0x350   : > { %v1448_v51 = vadd.f32 %v1384_v56, %v784_v6  ;;  %v1984_v19 = vsel %vm11392_vm6, %v11391_v53, 0.0  ;;  %v2584_v26 = vsel %vm11394_vm4, %v11393_v8, 0.0  ;;  %v2616_v40 = vadd.f32 %v2552_v23, %v2016_v50  ;;  %v11407_v50 = vld [vmem:[#allocation224_spill] sm:$0xff]  ;;  %v3605_v56 = vld [vmem:[%s3904_s7 + $0x98] sm:$0xff] }
 0x351   : > { %vm3120_vm0 = vcmp.eq.s32.totalorder %v11301_v57, %v11326_v0  ;;  %vm11395_vm9 = vcmp.eq.s32.totalorder %v10934_v2, %v11306_v7  ;;  %vm3097_vm13 = vcmp.eq.s32.totalorder %v10937_v43, %v8584_v13  ;;  %vm3129_vm7 = vcmp.eq.s32.totalorder %v11270_v45, %v8584_v13 }
 0x352   : > { %v755_v52 = vsel %vm11395_vm9, %v3603_v35, 0.0  ;;  %vm3095_vm12 = vcmp.eq.s32.totalorder %v10936_v32, %v8584_v13  ;;  %vm3127_vm1 = vcmp.eq.s32.totalorder %v11305_v1, %v8584_v13  ;;  %v3161_v41 = vsel %vm3097_vm13, %v7983_v34, 0.0  ;;  %v11397_v1 = vld [vmem:[#allocation215_spill] sm:$0xff] }
 0x353   : > { %v3193_v58 = vsel %vm3129_vm7, %v8123_v11, 0.0  ;;  %v3159_v37 = vsel %vm3095_vm12, %v7977_v4, 0.0  ;;  %v3191_v54 = vsel %vm3127_vm1, %v8117_v17, 0.0  ;;  %v3225_v62 = vadd.f32 %v3161_v41, %v11396_v29  ;;  %v11415_v35 = vld [vmem:[#allocation67_spill] sm:$0xff] }
 0x354   : > { %v3257_v43 = vadd.f32 %v3193_v58, %v8383_v59  ;;  %v3223_v45 = vadd.f32 %v3159_v37, %v8463_v61  ;;  %v3255_v21 = vadd.f32 %v3191_v54, %v8489_v30  ;;  %vm3093_vm2 = vcmp.eq.s32.totalorder %v10935_v3, %v8584_v13  ;;  %v11398_v59 = vld [vmem:[#allocation124_spill] sm:$0xff]  ;;  %v3606_v58 = vld [vmem:[%s3904_s7 + $0x198] sm:$0xff]  ;;  %v11421_v29 = vld [vmem:[#allocation99_spill] sm:$0xff] }
 0x355   : > { %vm3125_vm15 = vcmp.eq.s32.totalorder %v11304_v60, %v8584_v13  ;;  %v3216_v32 = vadd.f32 %v3152_v31, %v2616_v40  ;;  %v2048_v34 = vadd.f32 %v1984_v19, %v1448_v51  ;;  %3259 = vmatpush.msra.mxu0 %v3225_v62  ;;  %v3157_v4 = vsel %vm3093_vm2, %v7965_v12, 0.0  ;;  %v11400_v12 = vld [vmem:[#allocation182_spill] sm:$0xff]  ;;  %v11411_v51 = vld [vmem:[#allocation33_spill] sm:$0xff]  ;;  %v11413_v19 = vld [vmem:[#allocation20_spill] sm:$0xff] }
 0x356   : > { %3279 = vmatpush.msra.mxu1 %v3257_v43  ;;  %v3189_v11 = vsel %vm3125_vm15, %v8109_v25, 0.0  ;;  %v3184_v17 = vsel %vm3120_vm0, %v11397_v1, 0.0  ;;  %vm11399_vm10 = vcmp.eq.s32.totalorder %v10934_v2, %v11309_v28  ;;  %v3221_v60 = vadd.f32 %v3157_v4, %v2621_v47  ;;  %v3604_v47 = vld [vmem:[%s3904_s7 + $0x1c0] sm:$0xff]  ;;  %v11419_v37 = vld [vmem:[#allocation48_spill] sm:$0xff]  ;;  %v11426_v1 = vld [vmem:[#allocation166_spill] sm:$0xff] }
 0x357   : > { %v1355_v3 = vsel %vm11399_vm10, %v11398_v59, 0.0  ;;  %v3253_v61 = vadd.f32 %v3189_v11, %v2653_v44  ;;  %3304 = vmatpush.msra.mxu2 %v3216_v32  ;;  %v2648_v30 = vadd.f32 %v2584_v26, %v2048_v34  ;;  %3260 = vmatpush.msra.mxu0 %v3223_v45  ;;  %vm11401_vm8 = vcmp.eq.s32.totalorder %v10934_v2, %v11314_v46  ;;  %v11424_v4 = vld [vmem:[#allocation79_spill] sm:$0xff]  ;;  %v3607_v59 = vld [vmem:[%s3904_s7 + $0xb0] sm:$0xff] }
 0x358   : > { %v1419_v10 = vadd.f32 %v1355_v3, %v755_v52  ;;  %3280 = vmatpush.msra.mxu1 %v3255_v21  ;;  %v1955_v25 = vsel %vm11401_vm8, %v11400_v12, 0.0  ;;  %vm11403_vm3 = vcmp.eq.s32.totalorder %v10934_v2, %v7833_v39  ;;  %vm3091_vm14 = vcmp.eq.s32.totalorder %v10934_v2, %v8584_v13  ;;  %v11417_v52 = vld [vmem:[#allocation150_spill] sm:$0xff]  ;;  %v11423_v21 = vld [vmem:[#allocation199_spill] sm:$0xff] }
 0x359   : > { %v2555_v16 = vsel %vm11403_vm3, %v11402_v49, 0.0  ;;  %vm11404_vm11 = vcmp.eq.s32.totalorder %v11303_v9, %v11306_v7  ;;  %v3248_v15 = vadd.f32 %v3184_v17, %v2648_v30  ;;  %v3155_v23 = vsel %vm3091_vm14, %v7959_v14, 0.0  ;;  %3261 = vmatpush.msra.mxu0 %v3221_v60 }
 0x35a   : > { %v787_v27 = vsel %vm11404_vm11, %v3604_v47, 0.0  ;;  %v2019_v55 = vadd.f32 %v1955_v25, %v1419_v10  ;;  %vm11406_vm5 = vcmp.eq.s32.totalorder %v11303_v9, %v11309_v28  ;;  %3281 = vmatpush.msra.mxu1 %v3253_v61  ;;  %vm11408_vm6 = vcmp.eq.s32.totalorder %v11303_v9, %v11314_v46  ;;  %v11429_v10 = vld [vmem:[#allocation213_spill] sm:$0xff]  ;;  %v11430_v25 = vld [vmem:[#allocation123_spill] sm:$0xff] }
 0x35b   : > { %v1387_v6 = vsel %vm11406_vm5, %v11405_v63, 0.0  ;;  %v1987_v2 = vsel %vm11408_vm6, %v11407_v50, 0.0  ;;  %vm11410_vm4 = vcmp.eq.s32.totalorder %v11303_v9, %v7833_v39  ;;  %vm3123_vm0 = vcmp.eq.s32.totalorder %v11303_v9, %v8584_v13  ;;  %3324 = vmatpush.msra.mxu3 %v3248_v15  ;;  %v3608_v50 = vld [vmem:[%s3904_s7 + $0x1b0] sm:$0xff] }
 0x35c   : > { %v1451_v44 = vadd.f32 %v1387_v6, %v787_v27  ;;  %v2587_v31 = vsel %vm11410_vm4, %v11409_v22, 0.0  ;;  %v2619_v14 = vadd.f32 %v2555_v16, %v2019_v55  ;;  %v3187_v18 = vsel %vm3123_vm0, %v8103_v20, 0.0  ;;  %v11432_v16 = vld [vmem:[#allocation181_spill] sm:$0xff]  ;;  %v11434_v27 = vld [vmem:[#allocation171_spill] sm:$0xff]  ;;  %v11436_v6 = vld [vmem:[#allocation254_spill] sm:$0xff] }
 0x35d   : > { %vm11412_vm9 = vcmp.eq.s32.totalorder %v11411_v51, %v11311_v33  ;;  %vm11414_vm13 = vcmp.eq.s32.totalorder %v11411_v51, %v11317_v36  ;;  %vm11416_vm7 = vcmp.eq.s32.totalorder %v11411_v51, %v11321_v42  ;;  %vm11418_vm12 = vcmp.eq.s32.totalorder %v11411_v51, %v11324_v5  ;;  %v11438_v22 = vld [vmem:[#allocation135_spill] sm:$0xff] }
 0x35e   : > { %v750_v53 = vsel %vm11412_vm9, %v3605_v56, 0.0  ;;  %v1350_v8 = vsel %vm11414_vm13, %v11413_v19, 0.0  ;;  %v2051_v26 = vadd.f32 %v1987_v2, %v1451_v44  ;;  %v1950_v9 = vsel %vm11416_vm7, %v11415_v35, 0.0  ;;  %v3609_v35 = vld [vmem:[%s3904_s7 + $0x88] sm:$0xff] }
 0x35f   : > { %v1414_v40 = vadd.f32 %v1350_v8, %v750_v53  ;;  %v2550_v20 = vsel %vm11418_vm12, %v11417_v52, 0.0  ;;  %v3219_v41 = vadd.f32 %v3155_v23, %v2619_v14  ;;  %vm3086_vm1 = vcmp.eq.s32.totalorder %v11411_v51, %v11326_v0  ;;  %v11440_v14 = vld [vmem:[#allocation223_spill] sm:$0xff] }
 0x360   : > { %vm11420_vm2 = vcmp.eq.s32.totalorder %v11419_v37, %v11311_v33  ;;  %vm11422_vm15 = vcmp.eq.s32.totalorder %v11419_v37, %v11317_v36  ;;  %v2651_v43 = vadd.f32 %v2587_v31, %v2051_v26  ;;  %v3150_v32 = vsel %vm3086_vm1, %v11423_v21, 0.0  ;;  %v11444_v26 = vld [vmem:[#allocation266_spill] sm:$0xff]  ;;  %v3610_v21 = vld [vmem:[%s3904_s7 + $0x188] sm:$0xff] }
 0x361   : > { %v782_v54 = vsel %vm11420_vm2, %v3606_v58, 0.0  ;;  %v1382_v62 = vsel %vm11422_vm15, %v11421_v29, 0.0  ;;  %v2014_v45 = vadd.f32 %v1950_v9, %v1414_v40  ;;  %3262 = vmatpush.msra.mxu0 %v3219_v41  ;;  %vm11425_vm10 = vcmp.eq.s32.totalorder %v11419_v37, %v11321_v42  ;;  %v11445_v9 = vld [vmem:[#allocation32_spill] sm:$0xff]  ;;  %v11449_v58 = vld [vmem:[#allocation66_spill] sm:$0xff] }
 0x362   : > { %v1446_v34 = vadd.f32 %v1382_v62, %v782_v54  ;;  %v1982_v11 = vsel %vm11425_vm10, %v11424_v4, 0.0  ;;  %vm11427_vm8 = vcmp.eq.s32.totalorder %v11419_v37, %v11324_v5  ;;  %vm3118_vm3 = vcmp.eq.s32.totalorder %v11419_v37, %v11326_v0  ;;  %v11455_v4 = vld [vmem:[#allocation98_spill] sm:$0xff] }
 0x363   : > { %v2582_v17 = vsel %vm11427_vm8, %v11426_v1, 0.0  ;;  %vm11428_vm14 = vcmp.eq.s32.totalorder %v11082_v24, %v11306_v7  ;;  %v3251_v60 = vadd.f32 %v3187_v18, %v2651_v43  ;;  %v2614_v61 = vadd.f32 %v2550_v20, %v2014_v45  ;;  %v11442_v18 = vld [vmem:[#allocation239_spill] sm:$0xff]  ;;  %v11451_v43 = vld [vmem:[#allocation149_spill] sm:$0xff] }
 0x364   : > { %v753_v3 = vsel %vm11428_vm14, %v3607_v59, 0.0  ;;  %v2046_v30 = vadd.f32 %v1982_v11, %v1446_v34  ;;  %v3182_v12 = vsel %vm3118_vm3, %v11429_v10, 0.0  ;;  %vm11431_vm11 = vcmp.eq.s32.totalorder %v11082_v24, %v11309_v28  ;;  %v11447_v20 = vld [vmem:[#allocation19_spill] sm:$0xff]  ;;  %v11457_v1 = vld [vmem:[#allocation101_spill] sm:$0xff] }
 0x365   : > { %v1353_v49 = vsel %vm11431_vm11, %v11430_v25, 0.0  ;;  %vm11433_vm5 = vcmp.eq.s32.totalorder %v11082_v24, %v11314_v46  ;;  %vm11435_vm6 = vcmp.eq.s32.totalorder %v11082_v24, %v7833_v39  ;;  %vm3089_vm4 = vcmp.eq.s32.totalorder %v11082_v24, %v8584_v13  ;;  %3282 = vmatpush.msra.mxu1 %v3251_v60 }
 0x366   : > { %v1953_v47 = vsel %vm11433_vm5, %v11432_v16, 0.0  ;;  %v2553_v15 = vsel %vm11435_vm6, %v11434_v27, 0.0  ;;  %v3214_v55 = vadd.f32 %v3150_v32, %v2614_v61  ;;  %v2646_v23 = vadd.f32 %v2582_v17, %v2046_v30  ;;  %v11453_v32 = vld [vmem:[#allocation47_spill] sm:$0xff]  ;;  %v11459_v61 = vld [vmem:[#allocation198_spill] sm:$0xff] }
 0x367   : > { %v1417_v63 = vadd.f32 %v1353_v49, %v753_v3  ;;  %v3153_v44 = vsel %vm3089_vm4, %v11436_v6, 0.0  ;;  %vm11437_vm0 = vcmp.eq.s32.totalorder %v11302_v48, %v11306_v7  ;;  %vm11439_vm9 = vcmp.eq.s32.totalorder %v11302_v48, %v11309_v28  ;;  %v3611_v49 = vld [vmem:[%s3904_s7 + $0xa0] sm:$0xff] }
 0x368   : > { %v785_v2 = vsel %vm11437_vm0, %v3608_v50, 0.0  ;;  %v1385_v31 = vsel %vm11439_vm9, %v11438_v22, 0.0  ;;  %vm11441_vm13 = vcmp.eq.s32.totalorder %v11302_v48, %v11314_v46  ;;  %vm11443_vm7 = vcmp.eq.s32.totalorder %v11302_v48, %v7833_v39  ;;  %3305 = vmatpush.msra.mxu2 %v3214_v55  ;;  %v11466_v50 = vld [vmem:[#allocation180_spill] sm:$0xff]  ;;  %v11468_v22 = vld [vmem:[#allocation155_spill] sm:$0xff] }
 0x369   : > { %v1985_v24 = vsel %vm11441_vm13, %v11440_v14, 0.0  ;;  %v2585_v56 = vsel %vm11443_vm7, %v11442_v18, 0.0  ;;  %v3246_v53 = vadd.f32 %v3182_v12, %v2646_v23  ;;  %v2017_v19 = vadd.f32 %v1953_v47, %v1417_v63  ;;  %v11460_v12 = vld [vmem:[#allocation165_spill] sm:$0xff]  ;;  %v11464_v23 = vld [vmem:[#allocation122_spill] sm:$0xff] }
 0x36a   : > { %v1449_v8 = vadd.f32 %v1385_v31, %v785_v2  ;;  %vm3121_vm12 = vcmp.eq.s32.totalorder %v11302_v48, %v8584_v13  ;;  %vm11446_vm1 = vcmp.eq.s32.totalorder %v11445_v9, %v11311_v33  ;;  %vm11448_vm2 = vcmp.eq.s32.totalorder %v11445_v9, %v11317_v36 }
 0x36b   : > { %v3185_v40 = vsel %vm3121_vm12, %v11444_v26, 0.0  ;;  %v748_v52 = vsel %vm11446_vm1, %v3609_v35, 0.0  ;;  %v1348_v41 = vsel %vm11448_vm2, %v11447_v20, 0.0  ;;  %vm11450_vm15 = vcmp.eq.s32.totalorder %v11445_v9, %v11321_v42  ;;  %3325 = vmatpush.msra.mxu3 %v3246_v53  ;;  %v11473_v26 = vld [vmem:[#allocation253_spill] sm:$0xff]  ;;  %v11476_v20 = vld [vmem:[#allocation238_spill] sm:$0xff] }
 0x36c   : > { %v1948_v54 = vsel %vm11450_vm15, %v11449_v58, 0.0  ;;  %v2617_v29 = vadd.f32 %v2553_v15, %v2017_v19  ;;  %v2049_v48 = vadd.f32 %v1985_v24, %v1449_v8  ;;  %v1412_v62 = vadd.f32 %v1348_v41, %v748_v52  ;;  %v11463_v15 = vld [vmem:[#allocation212_spill] sm:$0xff]  ;;  %v3612_v24 = vld [vmem:[%s3904_s7 + $0x1a0] sm:$0xff]  ;;  %v11474_v52 = vld [vmem:[#allocation222_spill] sm:$0xff] }
 0x36d   : > { %vm11452_vm10 = vcmp.eq.s32.totalorder %v11445_v9, %v11324_v5  ;;  %vm3084_vm8 = vcmp.eq.s32.totalorder %v11445_v9, %v11326_v0  ;;  %vm11454_vm3 = vcmp.eq.s32.totalorder %v11453_v32, %v11311_v33  ;;  %vm11456_vm14 = vcmp.eq.s32.totalorder %v11453_v32, %v11317_v36  ;;  %v3613_v58 = vld [vmem:[%s3904_s7 + $0x78] sm:$0xff] }
 0x36e   : > { %v2548_v45 = vsel %vm11452_vm10, %v11451_v43, 0.0  ;;  %v780_v34 = vsel %vm11454_vm3, %v3610_v21, 0.0  ;;  %v1380_v11 = vsel %vm11456_vm14, %v11455_v4, 0.0  ;;  %vm11458_vm11 = vcmp.eq.s32.totalorder %v11453_v32, %v11321_v42 }
 0x36f   : > { %v1980_v17 = vsel %vm11458_vm11, %v11457_v1, 0.0  ;;  %v3217_v59 = vadd.f32 %v3153_v44, %v2617_v29  ;;  %v2649_v3 = vadd.f32 %v2585_v56, %v2049_v48  ;;  %v2012_v60 = vadd.f32 %v1948_v54, %v1412_v62  ;;  %v11471_v56 = vld [vmem:[#allocation134_spill] sm:$0xff]  ;;  %v11478_v54 = vld [vmem:[#allocation31_spill] sm:$0xff]  ;;  %v11485_v1 = vld [vmem:[#allocation148_spill] sm:$0xff] }
 0x370   : > { %v3148_v30 = vsel %vm3084_vm8, %v11459_v61, 0.0  ;;  %v1444_v10 = vadd.f32 %v1380_v11, %v780_v34  ;;  %vm11461_vm5 = vcmp.eq.s32.totalorder %v11453_v32, %v11324_v5  ;;  %vm3116_vm6 = vcmp.eq.s32.totalorder %v11453_v32, %v11326_v0  ;;  %v11481_v34 = vld [vmem:[#allocation18_spill] sm:$0xff]  ;;  %v11483_v11 = vld [vmem:[#allocation65_spill] sm:$0xff]  ;;  %v11487_v61 = vld [vmem:[#allocation195_spill] sm:$0xff] }
 0x371   : > { %v2580_v25 = vsel %vm11461_vm5, %v11460_v12, 0.0  ;;  %vm11462_vm4 = vcmp.eq.s32.totalorder %v4080_v38, %v11306_v7  ;;  %3263 = vmatpush.msra.mxu0 %v3217_v59  ;;  %v3249_v47 = vadd.f32 %v3185_v40, %v2649_v3  ;;  %v2612_v27 = vadd.f32 %v2548_v45, %v2012_v60  ;;  %v11480_v45 = vld [vmem:[#allocation265_spill] sm:$0xff]  ;;  %v11488_v12 = vld [vmem:[#allocation46_spill] sm:$0xff] }
 0x372   : > { %v751_v16 = vsel %vm11462_vm4, %v3611_v49, 0.0  ;;  %v3180_v55 = vsel %vm3116_vm6, %v11463_v15, 0.0  ;;  %vm11465_vm0 = vcmp.eq.s32.totalorder %v4080_v38, %v11309_v28  ;;  %v2044_v6 = vadd.f32 %v1980_v17, %v1444_v10  ;;  %v3614_v10 = vld [vmem:[%s3904_s7 + $0x178] sm:$0xff]  ;;  %v11490_v49 = vld [vmem:[#allocation95_spill] sm:$0xff]  ;;  %v11494_v15 = vld [vmem:[#allocation164_spill] sm:$0xff] }
 0x373   : > { %v1351_v63 = vsel %vm11465_vm0, %v11464_v23, 0.0  ;;  %vm11467_vm9 = vcmp.eq.s32.totalorder %v4080_v38, %v11314_v46  ;;  %vm11469_vm13 = vcmp.eq.s32.totalorder %v4080_v38, %v7833_v39  ;;  %3283 = vmatpush.msra.mxu1 %v3249_v47  ;;  %v3212_v14 = vadd.f32 %v3148_v30, %v2612_v27  ;;  %v11492_v47 = vld [vmem:[#allocation100_spill] sm:$0xff] }
 0x374   : > { %v1415_v44 = vadd.f32 %v1351_v63, %v751_v16  ;;  %v1951_v2 = vsel %vm11467_vm9, %v11466_v50, 0.0  ;;  %v2551_v31 = vsel %vm11469_vm13, %v11468_v22, 0.0  ;;  %vm3087_vm7 = vcmp.eq.s32.totalorder %v4080_v38, %v8584_v13 }
 0x375   : > { %vm11470_vm12 = vcmp.eq.s32.totalorder %v11301_v57, %v11306_v7  ;;  %vm11472_vm1 = vcmp.eq.s32.totalorder %v11301_v57, %v11309_v28  ;;  %v2644_v19 = vadd.f32 %v2580_v25, %v2044_v6  ;;  %v3151_v40 = vsel %vm3087_vm7, %v11473_v26, 0.0  ;;  %3306 = vmatpush.msra.mxu2 %v3212_v14 }
 0x376   : > { %v783_v18 = vsel %vm11470_vm12, %v3612_v24, 0.0  ;;  %v1383_v53 = vsel %vm11472_vm1, %v11471_v56, 0.0  ;;  %v2015_v8 = vadd.f32 %v1951_v2, %v1415_v44  ;;  %vm11475_vm2 = vcmp.eq.s32.totalorder %v11301_v57, %v11314_v46  ;;  %v11496_v44 = vld [vmem:[#allocation211_spill] sm:$0xff]  ;;  %v3615_v2 = vld [vmem:[%s3904_s7 + $0x90] sm:$0xff] }
 0x377   : > { %v1447_v35 = vadd.f32 %v1383_v53, %v783_v18  ;;  %v1983_v38 = vsel %vm11475_vm2, %v11474_v52, 0.0  ;;  %vm11477_vm15 = vcmp.eq.s32.totalorder %v11301_v57, %v7833_v39  ;;  %vm3119_vm10 = vcmp.eq.s32.totalorder %v11301_v57, %v8584_v13  ;;  %v11500_v24 = vld [vmem:[#allocation179_spill] sm:$0xff]  ;;  %v11505_v52 = vld [vmem:[#allocation133_spill] sm:$0xff] }
 0x378   : > { %v2583_v41 = vsel %vm11477_vm15, %v11476_v20, 0.0  ;;  %vm11479_vm8 = vcmp.eq.s32.totalorder %v11478_v54, %v11311_v33  ;;  %v3244_v48 = vadd.f32 %v3180_v55, %v2644_v19  ;;  %v2615_v62 = vadd.f32 %v2551_v31, %v2015_v8  ;;  %v11498_v31 = vld [vmem:[#allocation121_spill] sm:$0xff]  ;;  %v11502_v8 = vld [vmem:[#allocation172_spill] sm:$0xff] }
 0x379   : > { %v746_v29 = vsel %vm11479_vm8, %v3613_v58, 0.0  ;;  %v2047_v43 = vadd.f32 %v1983_v38, %v1447_v35  ;;  %v3183_v21 = vsel %vm3119_vm10, %v11480_v45, 0.0  ;;  %vm11482_vm3 = vcmp.eq.s32.totalorder %v11478_v54, %v11317_v36  ;;  %v11507_v20 = vld [vmem:[#allocation221_spill] sm:$0xff] }
 0x37a   : > { %v1346_v4 = vsel %vm11482_vm3, %v11481_v34, 0.0  ;;  %vm11484_vm14 = vcmp.eq.s32.totalorder %v11478_v54, %v11321_v42  ;;  %vm11486_vm11 = vcmp.eq.s32.totalorder %v11478_v54, %v11324_v5  ;;  %vm3082_vm5 = vcmp.eq.s32.totalorder %v11478_v54, %v11326_v0  ;;  %3326 = vmatpush.msra.mxu3 %v3244_v48  ;;  %v11510_v45 = vld [vmem:[#allocation237_spill] sm:$0xff]  ;;  %v3617_v34 = vld [vmem:[%s3904_s7 + $0x68] sm:$0xff] }
 0x37b   : > { %v1946_v57 = vsel %vm11484_vm14, %v11483_v11, 0.0  ;;  %v2546_v17 = vsel %vm11486_vm11, %v11485_v1, 0.0  ;;  %v3215_v59 = vadd.f32 %v3151_v40, %v2615_v62  ;;  %v2647_v3 = vadd.f32 %v2583_v41, %v2047_v43  ;;  %v3616_v40 = vld [vmem:[%s3904_s7 + $0x190] sm:$0xff]  ;;  %v11509_v62 = vld [vmem:[#allocation252_spill] sm:$0xff] }
 0x37c   : > { %v1410_v60 = vadd.f32 %v1346_v4, %v746_v29  ;;  %v3146_v30 = vsel %vm3082_vm5, %v11487_v61, 0.0  ;;  %vm11489_vm6 = vcmp.eq.s32.totalorder %v11488_v12, %v11311_v33  ;;  %vm11491_vm4 = vcmp.eq.s32.totalorder %v11488_v12, %v11317_v36  ;;  %v11512_v4 = vld [vmem:[#allocation30_spill] sm:$0xff] }
 0x37d   : > { %v778_v25 = vsel %vm11489_vm6, %v3614_v10, 0.0  ;;  %v1378_v16 = vsel %vm11491_vm4, %v11490_v49, 0.0  ;;  %vm11493_vm0 = vcmp.eq.s32.totalorder %v11488_v12, %v11321_v42  ;;  %vm11495_vm9 = vcmp.eq.s32.totalorder %v11488_v12, %v11324_v5  ;;  %3264 = vmatpush.msra.mxu0 %v3215_v59  ;;  %v11517_v10 = vld [vmem:[#allocation64_spill] sm:$0xff] }
 0x37e   : > { %v1978_v27 = vsel %vm11493_vm0, %v11492_v47, 0.0  ;;  %v2578_v55 = vsel %vm11495_vm9, %v11494_v15, 0.0  ;;  %v3247_v23 = vadd.f32 %v3183_v21, %v2647_v3  ;;  %v2010_v63 = vadd.f32 %v1946_v57, %v1410_v60  ;;  %v11515_v3 = vld [vmem:[#allocation17_spill] sm:$0xff]  ;;  %v3618_v47 = vld [vmem:[%s3904_s7 + $0x168] sm:$0xff] }
 0x37f   : > { %v1442_v6 = vadd.f32 %v1378_v16, %v778_v25  ;;  %vm3114_vm13 = vcmp.eq.s32.totalorder %v11488_v12, %v11326_v0  ;;  %vm11497_vm7 = vcmp.eq.s32.totalorder %v11411_v51, %v11306_v7  ;;  %vm11499_vm12 = vcmp.eq.s32.totalorder %v11411_v51, %v11309_v28  ;;  %v11519_v25 = vld [vmem:[#allocation147_spill] sm:$0xff] }
 0x380   : > { %v3178_v50 = vsel %vm3114_vm13, %v11496_v44, 0.0  ;;  %v749_v22 = vsel %vm11497_vm7, %v3615_v2, 0.0  ;;  %v1349_v14 = vsel %vm11499_vm12, %v11498_v31, 0.0  ;;  %vm11501_vm1 = vcmp.eq.s32.totalorder %v11411_v51, %v11314_v46  ;;  %3284 = vmatpush.msra.mxu1 %v3247_v23  ;;  %v11525_v44 = vld [vmem:[#allocation194_spill] sm:$0xff] }
 0x381   : > { %v1949_v18 = vsel %vm11501_vm1, %v11500_v24, 0.0  ;;  %v2610_v56 = vadd.f32 %v2546_v17, %v2010_v63  ;;  %v2042_v53 = vadd.f32 %v1978_v27, %v1442_v6  ;;  %v1413_v19 = vadd.f32 %v1349_v14, %v749_v22  ;;  %v11514_v17 = vld [vmem:[#allocation264_spill] sm:$0xff]  ;;  %v11521_v27 = vld [vmem:[#allocation45_spill] sm:$0xff]  ;;  %v11528_v14 = vld [vmem:[#allocation163_spill] sm:$0xff] }
 0x382   : > { %vm11503_vm2 = vcmp.eq.s32.totalorder %v11411_v51, %v7833_v39  ;;  %vm3085_vm15 = vcmp.eq.s32.totalorder %v11411_v51, %v8584_v13  ;;  %vm11504_vm10 = vcmp.eq.s32.totalorder %v11419_v37, %v11306_v7  ;;  %vm11506_vm8 = vcmp.eq.s32.totalorder %v11419_v37, %v11309_v28  ;;  %v11526_v22 = vld [vmem:[#allocation97_spill] sm:$0xff] }
 0x383   : > { %v2549_v26 = vsel %vm11503_vm2, %v11502_v8, 0.0  ;;  %v781_v35 = vsel %vm11504_vm10, %v3616_v40, 0.0  ;;  %v1381_v38 = vsel %vm11506_vm8, %v11505_v52, 0.0  ;;  %vm11508_vm3 = vcmp.eq.s32.totalorder %v11419_v37, %v11314_v46 }
 0x384   : > { %v1981_v41 = vsel %vm11508_vm3, %v11507_v20, 0.0  ;;  %v3210_v58 = vadd.f32 %v3146_v30, %v2610_v56  ;;  %v2642_v29 = vadd.f32 %v2578_v55, %v2042_v53  ;;  %v2013_v48 = vadd.f32 %v1949_v18, %v1413_v19  ;;  %v11523_v55 = vld [vmem:[#allocation94_spill] sm:$0xff]  ;;  %v3619_v18 = vld [vmem:[%s3904_s7 + $0x80] sm:$0xff] }
 0x385   : > { %v3149_v51 = vsel %vm3085_vm15, %v11509_v62, 0.0  ;;  %v1445_v43 = vadd.f32 %v1381_v38, %v781_v35  ;;  %vm11511_vm14 = vcmp.eq.s32.totalorder %v11419_v37, %v7833_v39  ;;  %vm3117_vm11 = vcmp.eq.s32.totalorder %v11419_v37, %v8584_v13  ;;  %v11532_v35 = vld [vmem:[#allocation120_spill] sm:$0xff]  ;;  %v11534_v38 = vld [vmem:[#allocation178_spill] sm:$0xff] }
 0x386   : > { %v2581_v21 = vsel %vm11511_vm14, %v11510_v45, 0.0  ;;  %vm11513_vm5 = vcmp.eq.s32.totalorder %v11512_v4, %v11311_v33  ;;  %3307 = vmatpush.msra.mxu2 %v3210_v58  ;;  %v3242_v57 = vadd.f32 %v3178_v50, %v2642_v29  ;;  %v2613_v1 = vadd.f32 %v2549_v26, %v2013_v48  ;;  %v11531_v26 = vld [vmem:[#allocation210_spill] sm:$0xff]  ;;  %v3620_v45 = vld [vmem:[%s3904_s7 + $0x180] sm:$0xff] }
 0x387   : > { %v744_v11 = vsel %vm11513_vm5, %v3617_v34, 0.0  ;;  %v3181_v59 = vsel %vm3117_vm11, %v11514_v17, 0.0  ;;  %vm11516_vm6 = vcmp.eq.s32.totalorder %v11512_v4, %v11317_v36  ;;  %v2045_v61 = vadd.f32 %v1981_v41, %v1445_v43  ;;  %v11536_v41 = vld [vmem:[#allocation108_spill] sm:$0xff] }
 0x388   : > { %v1344_v60 = vsel %vm11516_vm6, %v11515_v3, 0.0  ;;  %vm11518_vm4 = vcmp.eq.s32.totalorder %v11512_v4, %v11321_v42  ;;  %vm11520_vm0 = vcmp.eq.s32.totalorder %v11512_v4, %v11324_v5  ;;  %3327 = vmatpush.msra.mxu3 %v3242_v57  ;;  %v3213_v16 = vadd.f32 %v3149_v51, %v2613_v1  ;;  %v11538_v51 = vld [vmem:[#allocation251_spill] sm:$0xff]  ;;  %v11540_v34 = vld [vmem:[#allocation132_spill] sm:$0xff] }
 0x389   : > { %v1408_v30 = vadd.f32 %v1344_v60, %v744_v11  ;;  %v1944_v37 = vsel %vm11518_vm4, %v11517_v10, 0.0  ;;  %v2544_v49 = vsel %vm11520_vm0, %v11519_v25, 0.0  ;;  %vm3080_vm9 = vcmp.eq.s32.totalorder %v11512_v4, %v11326_v0  ;;  %v11542_v57 = vld [vmem:[#allocation220_spill] sm:$0xff]  ;;  %v3621_v10 = vld [vmem:[%s3904_s7 + $0x58] sm:$0xff] }
 0x38a   : > { %vm11522_vm13 = vcmp.eq.s32.totalorder %v11521_v27, %v11311_v33  ;;  %vm11524_vm7 = vcmp.eq.s32.totalorder %v11521_v27, %v11317_v36  ;;  %v2645_v63 = vadd.f32 %v2581_v21, %v2045_v61  ;;  %v3144_v50 = vsel %vm3080_vm9, %v11525_v44, 0.0  ;;  %3265 = vmatpush.msra.mxu0 %v3213_v16  ;;  %v11544_v1 = vld [vmem:[#allocation236_spill] sm:$0xff]  ;;  %v11546_v61 = vld [vmem:[#allocation263_spill] sm:$0xff]  ;;  %v3622_v44 = vld [vmem:[%s3904_s7 + $0x158] sm:$0xff] }
 0x38b   : > { %v776_v15 = vsel %vm11522_vm13, %v3618_v47, 0.0  ;;  %v1376_v23 = vsel %vm11524_vm7, %v11523_v55, 0.0  ;;  %v2008_v6 = vadd.f32 %v1944_v37, %v1408_v30  ;;  %vm11527_vm12 = vcmp.eq.s32.totalorder %v11521_v27, %v11321_v42  ;;  %v11547_v37 = vld [vmem:[#allocation29_spill] sm:$0xff]  ;;  %v11551_v47 = vld [vmem:[#allocation63_spill] sm:$0xff] }
 0x38c   : > { %v1440_v2 = vadd.f32 %v1376_v23, %v776_v15  ;;  %v1976_v31 = vsel %vm11527_vm12, %v11526_v22, 0.0  ;;  %vm11529_vm1 = vcmp.eq.s32.totalorder %v11521_v27, %v11324_v5  ;;  %vm3112_vm2 = vcmp.eq.s32.totalorder %v11521_v27, %v11326_v0  ;;  %v11557_v22 = vld [vmem:[#allocation91_spill] sm:$0xff] }
 0x38d   : > { %v2576_v24 = vsel %vm11529_vm1, %v11528_v14, 0.0  ;;  %vm11530_vm15 = vcmp.eq.s32.totalorder %v11445_v9, %v11306_v7  ;;  %v3245_v53 = vadd.f32 %v3181_v59, %v2645_v63  ;;  %v2608_v19 = vadd.f32 %v2544_v49, %v2008_v6  ;;  %v11549_v49 = vld [vmem:[#allocation16_spill] sm:$0xff]  ;;  %v11553_v63 = vld [vmem:[#allocation146_spill] sm:$0xff] }
 0x38e   : > { %v747_v56 = vsel %vm11530_vm15, %v3619_v18, 0.0  ;;  %v2040_v8 = vadd.f32 %v1976_v31, %v1440_v2  ;;  %v3176_v40 = vsel %vm3112_vm2, %v11531_v26, 0.0  ;;  %vm11533_vm10 = vcmp.eq.s32.totalorder %v11445_v9, %v11309_v28  ;;  %v11559_v14 = vld [vmem:[#allocation96_spill] sm:$0xff] }
 0x38f   : > { %v1347_v52 = vsel %vm11533_vm10, %v11532_v35, 0.0  ;;  %vm11535_vm8 = vcmp.eq.s32.totalorder %v11445_v9, %v11314_v46  ;;  %vm11537_vm3 = vcmp.eq.s32.totalorder %v11445_v9, %v7833_v39  ;;  %vm3083_vm14 = vcmp.eq.s32.totalorder %v11445_v9, %v8584_v13  ;;  %3285 = vmatpush.msra.mxu1 %v3245_v53 }
 0x390   : > { %v1947_v20 = vsel %vm11535_vm8, %v11534_v38, 0.0  ;;  %v2547_v58 = vsel %vm11537_vm3, %v11536_v41, 0.0  ;;  %v3208_v29 = vadd.f32 %v3144_v50, %v2608_v19  ;;  %v2640_v48 = vadd.f32 %v2576_v24, %v2040_v8  ;;  %v11555_v50 = vld [vmem:[#allocation44_spill] sm:$0xff]  ;;  %v11561_v19 = vld [vmem:[#allocation191_spill] sm:$0xff] }
 0x391   : > { %v1411_v62 = vadd.f32 %v1347_v52, %v747_v56  ;;  %v3147_v43 = vsel %vm3083_vm14, %v11538_v51, 0.0  ;;  %vm11539_vm11 = vcmp.eq.s32.totalorder %v11453_v32, %v11306_v7  ;;  %vm11541_vm5 = vcmp.eq.s32.totalorder %v11453_v32, %v11309_v28  ;;  %v3623_v52 = vld [vmem:[%s3904_s7 + $0x70] sm:$0xff] }
 0x392   : > { %v779_v21 = vsel %vm11539_vm11, %v3620_v45, 0.0  ;;  %v1379_v11 = vsel %vm11541_vm5, %v11540_v34, 0.0  ;;  %vm11543_vm6 = vcmp.eq.s32.totalorder %v11453_v32, %v11314_v46  ;;  %vm11545_vm4 = vcmp.eq.s32.totalorder %v11453_v32, %v7833_v39  ;;  %3308 = vmatpush.msra.mxu2 %v3208_v29  ;;  %v11568_v45 = vld [vmem:[#allocation177_spill] sm:$0xff] }
 0x393   : > { %v1979_v9 = vsel %vm11543_vm6, %v11542_v57, 0.0  ;;  %v2579_v17 = vsel %vm11545_vm4, %v11544_v1, 0.0  ;;  %v3240_v59 = vadd.f32 %v3176_v40, %v2640_v48  ;;  %v2011_v3 = vadd.f32 %v1947_v20, %v1411_v62  ;;  %v11562_v40 = vld [vmem:[#allocation162_spill] sm:$0xff]  ;;  %v11566_v48 = vld [vmem:[#allocation119_spill] sm:$0xff]  ;;  %v11570_v34 = vld [vmem:[#allocation73_spill] sm:$0xff] }
 0x394   : > { %v1443_v60 = vadd.f32 %v1379_v11, %v779_v21  ;;  %vm3115_vm0 = vcmp.eq.s32.totalorder %v11453_v32, %v8584_v13  ;;  %vm11548_vm9 = vcmp.eq.s32.totalorder %v11547_v37, %v11311_v33  ;;  %vm11550_vm13 = vcmp.eq.s32.totalorder %v11547_v37, %v11317_v36 }
 0x395   : > { %v3179_v30 = vsel %vm3115_vm0, %v11546_v61, 0.0  ;;  %v742_v25 = vsel %vm11548_vm9, %v3621_v10, 0.0  ;;  %v1342_v16 = vsel %vm11550_vm13, %v11549_v49, 0.0  ;;  %vm11552_vm7 = vcmp.eq.s32.totalorder %v11547_v37, %v11321_v42  ;;  %3328 = vmatpush.msra.mxu3 %v3240_v59  ;;  %v11575_v61 = vld [vmem:[#allocation250_spill] sm:$0xff]  ;;  %v11578_v49 = vld [vmem:[#allocation235_spill] sm:$0xff] }
 0x396   : > { %v1942_v15 = vsel %vm11552_vm7, %v11551_v47, 0.0  ;;  %v2611_v55 = vadd.f32 %v2547_v58, %v2011_v3  ;;  %v2043_v32 = vadd.f32 %v1979_v9, %v1443_v60  ;;  %v1406_v23 = vadd.f32 %v1342_v16, %v742_v25  ;;  %v11565_v58 = vld [vmem:[#allocation209_spill] sm:$0xff]  ;;  %v11576_v25 = vld [vmem:[#allocation219_spill] sm:$0xff]  ;;  %v3625_v47 = vld [vmem:[%s3904_s7 + $0x48] sm:$0xff] }
 0x397   : > { %vm11554_vm12 = vcmp.eq.s32.totalorder %v11547_v37, %v11324_v5  ;;  %vm3078_vm1 = vcmp.eq.s32.totalorder %v11547_v37, %v11326_v0  ;;  %vm11556_vm2 = vcmp.eq.s32.totalorder %v11555_v50, %v11311_v33  ;;  %vm11558_vm15 = vcmp.eq.s32.totalorder %v11555_v50, %v11317_v36  ;;  %v3624_v9 = vld [vmem:[%s3904_s7 + $0x170] sm:$0xff] }
 0x398   : > { %v2542_v6 = vsel %vm11554_vm12, %v11553_v63, 0.0  ;;  %v774_v2 = vsel %vm11556_vm2, %v3622_v44, 0.0  ;;  %v1374_v31 = vsel %vm11558_vm15, %v11557_v22, 0.0  ;;  %vm11560_vm10 = vcmp.eq.s32.totalorder %v11555_v50, %v11321_v42 }
 0x399   : > { %v1974_v24 = vsel %vm11560_vm10, %v11559_v14, 0.0  ;;  %v3211_v18 = vadd.f32 %v3147_v43, %v2611_v55  ;;  %v2643_v56 = vadd.f32 %v2579_v17, %v2043_v32  ;;  %v2006_v53 = vadd.f32 %v1942_v15, %v1406_v23  ;;  %v11573_v17 = vld [vmem:[#allocation131_spill] sm:$0xff]  ;;  %v11580_v15 = vld [vmem:[#allocation28_spill] sm:$0xff]  ;;  %v11587_v14 = vld [vmem:[#allocation145_spill] sm:$0xff] }
 0x39a   : > { %v3142_v8 = vsel %vm3078_vm1, %v11561_v19, 0.0  ;;  %v1438_v26 = vadd.f32 %v1374_v31, %v774_v2  ;;  %vm11563_vm8 = vcmp.eq.s32.totalorder %v11555_v50, %v11324_v5  ;;  %vm3110_vm3 = vcmp.eq.s32.totalorder %v11555_v50, %v11326_v0  ;;  %v11583_v2 = vld [vmem:[#allocation15_spill] sm:$0xff]  ;;  %v11585_v31 = vld [vmem:[#allocation62_spill] sm:$0xff] }
 0x39b   : > { %v2574_v35 = vsel %vm11563_vm8, %v11562_v40, 0.0  ;;  %vm11564_vm14 = vcmp.eq.s32.totalorder %v11478_v54, %v11306_v7  ;;  %3266 = vmatpush.msra.mxu0 %v3211_v18  ;;  %v3243_v20 = vadd.f32 %v3179_v30, %v2643_v56  ;;  %v2606_v41 = vadd.f32 %v2542_v6, %v2006_v53  ;;  %v11582_v6 = vld [vmem:[#allocation262_spill] sm:$0xff]  ;;  %v11590_v40 = vld [vmem:[#allocation43_spill] sm:$0xff] }
 0x39c   : > { %v745_v38 = vsel %vm11564_vm14, %v3623_v52, 0.0  ;;  %v3174_v29 = vsel %vm3110_vm3, %v11565_v58, 0.0  ;;  %vm11567_vm11 = vcmp.eq.s32.totalorder %v11478_v54, %v11309_v28  ;;  %v2038_v51 = vadd.f32 %v1974_v24, %v1438_v26  ;;  %v11589_v19 = vld [vmem:[#allocation190_spill] sm:$0xff]  ;;  %v3626_v26 = vld [vmem:[%s3904_s7 + $0x148] sm:$0xff]  ;;  %v11596_v58 = vld [vmem:[#allocation161_spill] sm:$0xff] }
 0x39d   : > { %v1345_v62 = vsel %vm11567_vm11, %v11566_v48, 0.0  ;;  %vm11569_vm5 = vcmp.eq.s32.totalorder %v11478_v54, %v11314_v46  ;;  %vm11571_vm6 = vcmp.eq.s32.totalorder %v11478_v54, %v7833_v39  ;;  %3286 = vmatpush.msra.mxu1 %v3243_v20  ;;  %v3206_v57 = vadd.f32 %v3142_v8, %v2606_v41  ;;  %v11592_v52 = vld [vmem:[#allocation90_spill] sm:$0xff]  ;;  %v11594_v20 = vld [vmem:[#allocation93_spill] sm:$0xff] }
 0x39e   : > { %v1409_v43 = vadd.f32 %v1345_v62, %v745_v38  ;;  %v1945_v21 = vsel %vm11569_vm5, %v11568_v45, 0.0  ;;  %v2545_v11 = vsel %vm11571_vm6, %v11570_v34, 0.0  ;;  %vm3081_vm4 = vcmp.eq.s32.totalorder %v11478_v54, %v8584_v13 }
 0x39f   : > { %vm11572_vm0 = vcmp.eq.s32.totalorder %v11488_v12, %v11306_v7  ;;  %vm11574_vm9 = vcmp.eq.s32.totalorder %v11488_v12, %v11309_v28  ;;  %v2638_v3 = vadd.f32 %v2574_v35, %v2038_v51  ;;  %v3145_v30 = vsel %vm3081_vm4, %v11575_v61, 0.0  ;;  %3309 = vmatpush.msra.mxu2 %v3206_v57 }
 0x3a0   : > { %v777_v1 = vsel %vm11572_vm0, %v3624_v9, 0.0  ;;  %v1377_v59 = vsel %vm11574_vm9, %v11573_v17, 0.0  ;;  %v2009_v60 = vadd.f32 %v1945_v21, %v1409_v43  ;;  %vm11577_vm13 = vcmp.eq.s32.totalorder %v11488_v12, %v11314_v46  ;;  %v11598_v43 = vld [vmem:[#allocation208_spill] sm:$0xff]  ;;  %v3627_v21 = vld [vmem:[%s3904_s7 + $0x60] sm:$0xff] }
 0x3a1   : > { %v1441_v10 = vadd.f32 %v1377_v59, %v777_v1  ;;  %v1977_v54 = vsel %vm11577_vm13, %v11576_v25, 0.0  ;;  %vm11579_vm7 = vcmp.eq.s32.totalorder %v11488_v12, %v7833_v39  ;;  %vm3113_vm12 = vcmp.eq.s32.totalorder %v11488_v12, %v8584_v13  ;;  %v11602_v9 = vld [vmem:[#allocation176_spill] sm:$0xff] }
 0x3a2   : > { %v2577_v16 = vsel %vm11579_vm7, %v11578_v49, 0.0  ;;  %vm11581_vm1 = vcmp.eq.s32.totalorder %v11580_v15, %v11311_v33  ;;  %v3238_v32 = vadd.f32 %v3174_v29, %v2638_v3  ;;  %v2609_v23 = vadd.f32 %v2545_v11, %v2009_v60  ;;  %v11600_v11 = vld [vmem:[#allocation118_spill] sm:$0xff]  ;;  %v11604_v60 = vld [vmem:[#allocation109_spill] sm:$0xff]  ;;  %v11607_v25 = vld [vmem:[#allocation88_spill] sm:$0xff] }
 0x3a3   : > { %v740_v55 = vsel %vm11581_vm1, %v3625_v47, 0.0  ;;  %v2041_v63 = vadd.f32 %v1977_v54, %v1441_v10  ;;  %v3177_v44 = vsel %vm3113_vm12, %v11582_v6, 0.0  ;;  %vm11584_vm2 = vcmp.eq.s32.totalorder %v11580_v15, %v11317_v36  ;;  %v11609_v49 = vld [vmem:[#allocation218_spill] sm:$0xff] }
 0x3a4   : > { %v1340_v22 = vsel %vm11584_vm2, %v11583_v2, 0.0  ;;  %vm11586_vm15 = vcmp.eq.s32.totalorder %v11580_v15, %v11321_v42  ;;  %vm11588_vm10 = vcmp.eq.s32.totalorder %v11580_v15, %v11324_v5  ;;  %vm3076_vm8 = vcmp.eq.s32.totalorder %v11580_v15, %v11326_v0  ;;  %3329 = vmatpush.msra.mxu3 %v3238_v32  ;;  %v11612_v6 = vld [vmem:[#allocation234_spill] sm:$0xff] }
 0x3a5   : > { %v1940_v12 = vsel %vm11586_vm15, %v11585_v31, 0.0  ;;  %v2540_v24 = vsel %vm11588_vm10, %v11587_v14, 0.0  ;;  %v3209_v18 = vadd.f32 %v3145_v30, %v2609_v23  ;;  %v2641_v56 = vadd.f32 %v2577_v16, %v2041_v63  ;;  %v3628_v30 = vld [vmem:[%s3904_s7 + $0x160] sm:$0xff]  ;;  %v11611_v23 = vld [vmem:[#allocation249_spill] sm:$0xff]  ;;  %v3629_v2 = vld [vmem:[%s3904_s7 + $0x38] sm:$0xff] }
 0x3a6   : > { %v1404_v53 = vadd.f32 %v1340_v22, %v740_v55  ;;  %v3140_v8 = vsel %vm3076_vm8, %v11589_v19, 0.0  ;;  %vm11591_vm3 = vcmp.eq.s32.totalorder %v11590_v40, %v11311_v33  ;;  %vm11593_vm14 = vcmp.eq.s32.totalorder %v11590_v40, %v11317_v36  ;;  %v11614_v22 = vld [vmem:[#allocation27_spill] sm:$0xff] }
 0x3a7   : > { %v772_v35 = vsel %vm11591_vm3, %v3626_v26, 0.0  ;;  %v1372_v38 = vsel %vm11593_vm14, %v11592_v52, 0.0  ;;  %vm11595_vm11 = vcmp.eq.s32.totalorder %v11590_v40, %v11321_v42  ;;  %vm11597_vm5 = vcmp.eq.s32.totalorder %v11590_v40, %v11324_v5  ;;  %3267 = vmatpush.msra.mxu0 %v3209_v18  ;;  %v11619_v26 = vld [vmem:[#allocation61_spill] sm:$0xff] }
 0x3a8   : > { %v1972_v41 = vsel %vm11595_vm11, %v11594_v20, 0.0  ;;  %v2572_v29 = vsel %vm11597_vm5, %v11596_v58, 0.0  ;;  %v3241_v48 = vadd.f32 %v3177_v44, %v2641_v56  ;;  %v2004_v62 = vadd.f32 %v1940_v12, %v1404_v53  ;;  %v11617_v56 = vld [vmem:[#allocation14_spill] sm:$0xff] }
 0x3a9   : > { %v1436_v51 = vadd.f32 %v1372_v38, %v772_v35  ;;  %vm3108_vm6 = vcmp.eq.s32.totalorder %v11590_v40, %v11326_v0  ;;  %vm11599_vm4 = vcmp.eq.s32.totalorder %v11512_v4, %v11306_v7  ;;  %vm11601_vm0 = vcmp.eq.s32.totalorder %v11512_v4, %v11309_v28  ;;  %v11621_v35 = vld [vmem:[#allocation144_spill] sm:$0xff]  ;;  %v3630_v20 = vld [vmem:[%s3904_s7 + $0x138] sm:$0xff] }
 0x3aa   : > { %v3172_v45 = vsel %vm3108_vm6, %v11598_v43, 0.0  ;;  %v743_v34 = vsel %vm11599_vm4, %v3627_v21, 0.0  ;;  %v1343_v57 = vsel %vm11601_vm0, %v11600_v11, 0.0  ;;  %vm11603_vm9 = vcmp.eq.s32.totalorder %v11512_v4, %v11314_v46  ;;  %3287 = vmatpush.msra.mxu1 %v3241_v48  ;;  %v11627_v43 = vld [vmem:[#allocation187_spill] sm:$0xff] }
 0x3ab   : > { %v1943_v1 = vsel %vm11603_vm9, %v11602_v9, 0.0  ;;  %v2604_v17 = vadd.f32 %v2540_v24, %v2004_v62  ;;  %v2036_v59 = vadd.f32 %v1972_v41, %v1436_v51  ;;  %v1407_v3 = vadd.f32 %v1343_v57, %v743_v34  ;;  %v11616_v24 = vld [vmem:[#allocation261_spill] sm:$0xff]  ;;  %v11623_v41 = vld [vmem:[#allocation42_spill] sm:$0xff]  ;;  %v11628_v34 = vld [vmem:[#allocation92_spill] sm:$0xff] }
 0x3ac   : > { %vm11605_vm13 = vcmp.eq.s32.totalorder %v11512_v4, %v7833_v39  ;;  %vm3079_vm7 = vcmp.eq.s32.totalorder %v11512_v4, %v8584_v13  ;;  %vm11606_vm12 = vcmp.eq.s32.totalorder %v11521_v27, %v11306_v7  ;;  %vm11608_vm1 = vcmp.eq.s32.totalorder %v11521_v27, %v11309_v28  ;;  %v11630_v57 = vld [vmem:[#allocation160_spill] sm:$0xff] }
 0x3ad   : > { %v2543_v61 = vsel %vm11605_vm13, %v11604_v60, 0.0  ;;  %v775_v10 = vsel %vm11606_vm12, %v3628_v30, 0.0  ;;  %v1375_v54 = vsel %vm11608_vm1, %v11607_v25, 0.0  ;;  %vm11610_vm2 = vcmp.eq.s32.totalorder %v11521_v27, %v11314_v46 }
 0x3ae   : > { %v1975_v16 = vsel %vm11610_vm2, %v11609_v49, 0.0  ;;  %v3204_v47 = vadd.f32 %v3140_v8, %v2604_v17  ;;  %v2636_v55 = vadd.f32 %v2572_v29, %v2036_v59  ;;  %v2007_v32 = vadd.f32 %v1943_v1, %v1407_v3  ;;  %v11625_v29 = vld [vmem:[#allocation87_spill] sm:$0xff]  ;;  %v3631_v1 = vld [vmem:[%s3904_s7 + $0x50] sm:$0xff] }
 0x3af   : > { %v3143_v4 = vsel %vm3079_vm7, %v11611_v23, 0.0  ;;  %v1439_v63 = vadd.f32 %v1375_v54, %v775_v10  ;;  %vm11613_vm15 = vcmp.eq.s32.totalorder %v11521_v27, %v7833_v39  ;;  %vm3111_vm10 = vcmp.eq.s32.totalorder %v11521_v27, %v8584_v13  ;;  %v11634_v10 = vld [vmem:[#allocation117_spill] sm:$0xff]  ;;  %v11636_v54 = vld [vmem:[#allocation175_spill] sm:$0xff] }
 0x3b0   : > { %v2575_v44 = vsel %vm11613_vm15, %v11612_v6, 0.0  ;;  %vm11615_vm8 = vcmp.eq.s32.totalorder %v11614_v22, %v11311_v33  ;;  %3310 = vmatpush.msra.mxu2 %v3204_v47  ;;  %v3236_v12 = vadd.f32 %v3172_v45, %v2636_v55  ;;  %v2607_v14 = vadd.f32 %v2543_v61, %v2007_v32  ;;  %v11633_v61 = vld [vmem:[#allocation207_spill] sm:$0xff]  ;;  %v3632_v6 = vld [vmem:[%s3904_s7 + $0x150] sm:$0xff] }
 0x3b1   : > { %v738_v31 = vsel %vm11615_vm8, %v3629_v2, 0.0  ;;  %v3175_v18 = vsel %vm3111_vm10, %v11616_v24, 0.0  ;;  %vm11618_vm3 = vcmp.eq.s32.totalorder %v11614_v22, %v11317_v36  ;;  %v2039_v19 = vadd.f32 %v1975_v16, %v1439_v63  ;;  %v11638_v16 = vld [vmem:[#allocation76_spill] sm:$0xff]  ;;  %v11642_v2 = vld [vmem:[#allocation85_spill] sm:$0xff] }
 0x3b2   : > { %v1338_v53 = vsel %vm11618_vm3, %v11617_v56, 0.0  ;;  %vm11620_vm14 = vcmp.eq.s32.totalorder %v11614_v22, %v11321_v42  ;;  %vm11622_vm11 = vcmp.eq.s32.totalorder %v11614_v22, %v11324_v5  ;;  %3330 = vmatpush.msra.mxu3 %v3236_v12  ;;  %v3207_v38 = vadd.f32 %v3143_v4, %v2607_v14  ;;  %v11640_v4 = vld [vmem:[#allocation248_spill] sm:$0xff]  ;;  %v11644_v12 = vld [vmem:[#allocation214_spill] sm:$0xff]  ;;  %v11646_v14 = vld [vmem:[#allocation233_spill] sm:$0xff] }
 0x3b3   : > { %v1402_v8 = vadd.f32 %v1338_v53, %v738_v31  ;;  %v1938_v27 = vsel %vm11620_vm14, %v11619_v26, 0.0  ;;  %v2538_v52 = vsel %vm11622_vm11, %v11621_v35, 0.0  ;;  %vm3074_vm5 = vcmp.eq.s32.totalorder %v11614_v22, %v11326_v0  ;;  %v3633_v26 = vld [vmem:[%s3904_s7 + $0x28] sm:$0xff] }
 0x3b4   : > { %vm11624_vm6 = vcmp.eq.s32.totalorder %v11623_v41, %v11311_v33  ;;  %vm11626_vm4 = vcmp.eq.s32.totalorder %v11623_v41, %v11317_v36  ;;  %v2639_v62 = vadd.f32 %v2575_v44, %v2039_v19  ;;  %v3138_v45 = vsel %vm3074_vm5, %v11627_v43, 0.0  ;;  %3268 = vmatpush.msra.mxu0 %v3207_v38  ;;  %v11648_v19 = vld [vmem:[#allocation260_spill] sm:$0xff] }
 0x3b5   : > { %v770_v58 = vsel %vm11624_vm6, %v3630_v20, 0.0  ;;  %v1370_v48 = vsel %vm11626_vm4, %v11625_v29, 0.0  ;;  %v2002_v51 = vadd.f32 %v1938_v27, %v1402_v8  ;;  %vm11629_vm0 = vcmp.eq.s32.totalorder %v11623_v41, %v11321_v42  ;;  %v11649_v27 = vld [vmem:[#allocation26_spill] sm:$0xff]  ;;  %v11653_v20 = vld [vmem:[#allocation60_spill] sm:$0xff] }
 0x3b6   : > { %v1434_v21 = vadd.f32 %v1370_v48, %v770_v58  ;;  %v1970_v11 = vsel %vm11629_vm0, %v11628_v34, 0.0  ;;  %vm11631_vm9 = vcmp.eq.s32.totalorder %v11623_v41, %v11324_v5  ;;  %vm3106_vm13 = vcmp.eq.s32.totalorder %v11623_v41, %v11326_v0  ;;  %v3634_v43 = vld [vmem:[%s3904_s7 + $0x128] sm:$0xff]  ;;  %v11659_v34 = vld [vmem:[#allocation86_spill] sm:$0xff] }
 0x3b7   : > { %v2570_v9 = vsel %vm11631_vm9, %v11630_v57, 0.0  ;;  %vm11632_vm7 = vcmp.eq.s32.totalorder %v11547_v37, %v11306_v7  ;;  %v3239_v59 = vadd.f32 %v3175_v18, %v2639_v62  ;;  %v2602_v3 = vadd.f32 %v2538_v52, %v2002_v51  ;;  %v11651_v52 = vld [vmem:[#allocation13_spill] sm:$0xff]  ;;  %v11655_v62 = vld [vmem:[#allocation143_spill] sm:$0xff] }
 0x3b8   : > { %v741_v17 = vsel %vm11632_vm7, %v3631_v1, 0.0  ;;  %v2034_v60 = vadd.f32 %v1970_v11, %v1434_v21  ;;  %v3170_v30 = vsel %vm3106_vm13, %v11633_v61, 0.0  ;;  %vm11635_vm12 = vcmp.eq.s32.totalorder %v11547_v37, %v11309_v28  ;;  %v11661_v57 = vld [vmem:[#allocation89_spill] sm:$0xff] }
 0x3b9   : > { %v1341_v25 = vsel %vm11635_vm12, %v11634_v10, 0.0  ;;  %vm11637_vm1 = vcmp.eq.s32.totalorder %v11547_v37, %v11314_v46  ;;  %vm11639_vm2 = vcmp.eq.s32.totalorder %v11547_v37, %v7833_v39  ;;  %vm3077_vm15 = vcmp.eq.s32.totalorder %v11547_v37, %v8584_v13  ;;  %3288 = vmatpush.msra.mxu1 %v3239_v59 }
 0x3ba   : > { %v1941_v49 = vsel %vm11637_vm1, %v11636_v54, 0.0  ;;  %v2541_v47 = vsel %vm11639_vm2, %v11638_v16, 0.0  ;;  %v3202_v55 = vadd.f32 %v3138_v45, %v2602_v3  ;;  %v2634_v32 = vadd.f32 %v2570_v9, %v2034_v60  ;;  %v11657_v45 = vld [vmem:[#allocation41_spill] sm:$0xff]  ;;  %v11663_v3 = vld [vmem:[#allocation186_spill] sm:$0xff] }
 0x3bb   : > { %v1405_v23 = vadd.f32 %v1341_v25, %v741_v17  ;;  %v3141_v63 = vsel %vm3077_vm15, %v11640_v4, 0.0  ;;  %vm11641_vm10 = vcmp.eq.s32.totalorder %v11555_v50, %v11306_v7  ;;  %vm11643_vm8 = vcmp.eq.s32.totalorder %v11555_v50, %v11309_v28  ;;  %v3635_v25 = vld [vmem:[%s3904_s7 + $0x40] sm:$0xff] }
 0x3bc   : > { %v773_v44 = vsel %vm11641_vm10, %v3632_v6, 0.0  ;;  %v1373_v31 = vsel %vm11643_vm8, %v11642_v2, 0.0  ;;  %vm11645_vm3 = vcmp.eq.s32.totalorder %v11555_v50, %v11314_v46  ;;  %vm11647_vm14 = vcmp.eq.s32.totalorder %v11555_v50, %v7833_v39  ;;  %3311 = vmatpush.msra.mxu2 %v3202_v55  ;;  %v11670_v6 = vld [vmem:[#allocation174_spill] sm:$0xff] }
 0x3bd   : > { %v1973_v37 = vsel %vm11645_vm3, %v11644_v12, 0.0  ;;  %v2573_v24 = vsel %vm11647_vm14, %v11646_v14, 0.0  ;;  %v3234_v18 = vadd.f32 %v3170_v30, %v2634_v32  ;;  %v2005_v56 = vadd.f32 %v1941_v49, %v1405_v23  ;;  %v11664_v30 = vld [vmem:[#allocation159_spill] sm:$0xff]  ;;  %v11668_v32 = vld [vmem:[#allocation116_spill] sm:$0xff]  ;;  %v11672_v2 = vld [vmem:[#allocation110_spill] sm:$0xff] }
 0x3be   : > { %v1437_v53 = vadd.f32 %v1373_v31, %v773_v44  ;;  %vm3109_vm11 = vcmp.eq.s32.totalorder %v11555_v50, %v8584_v13  ;;  %vm11650_vm5 = vcmp.eq.s32.totalorder %v11649_v27, %v11311_v33  ;;  %vm11652_vm6 = vcmp.eq.s32.totalorder %v11649_v27, %v11317_v36 }
 0x3bf   : > { %v3173_v8 = vsel %vm3109_vm11, %v11648_v19, 0.0  ;;  %v736_v35 = vsel %vm11650_vm5, %v3633_v26, 0.0  ;;  %v1336_v38 = vsel %vm11652_vm6, %v11651_v52, 0.0  ;;  %vm11654_vm4 = vcmp.eq.s32.totalorder %v11649_v27, %v11321_v42  ;;  %3331 = vmatpush.msra.mxu3 %v3234_v18  ;;  %v11677_v19 = vld [vmem:[#allocation247_spill] sm:$0xff]  ;;  %v11680_v52 = vld [vmem:[#allocation232_spill] sm:$0xff] }
 0x3c0   : > { %v1936_v58 = vsel %vm11654_vm4, %v11653_v20, 0.0  ;;  %v2605_v29 = vadd.f32 %v2541_v47, %v2005_v56  ;;  %v2037_v50 = vadd.f32 %v1973_v37, %v1437_v53  ;;  %v1400_v48 = vadd.f32 %v1336_v38, %v736_v35  ;;  %v11667_v47 = vld [vmem:[#allocation206_spill] sm:$0xff]  ;;  %v3636_v37 = vld [vmem:[%s3904_s7 + $0x140] sm:$0xff]  ;;  %v11678_v35 = vld [vmem:[#allocation200_spill] sm:$0xff] }
 0x3c1   : > { %vm11656_vm0 = vcmp.eq.s32.totalorder %v11649_v27, %v11324_v5  ;;  %vm3072_vm9 = vcmp.eq.s32.totalorder %v11649_v27, %v11326_v0  ;;  %vm11658_vm13 = vcmp.eq.s32.totalorder %v11657_v45, %v11311_v33  ;;  %vm11660_vm7 = vcmp.eq.s32.totalorder %v11657_v45, %v11317_v36  ;;  %v3637_v20 = vld [vmem:[%s3904_s7 + $0x18] sm:$0xff] }
 0x3c2   : > { %v2536_v51 = vsel %vm11656_vm0, %v11655_v62, 0.0  ;;  %v768_v21 = vsel %vm11658_vm13, %v3634_v43, 0.0  ;;  %v1368_v11 = vsel %vm11660_vm7, %v11659_v34, 0.0  ;;  %vm11662_vm12 = vcmp.eq.s32.totalorder %v11657_v45, %v11321_v42 }
 0x3c3   : > { %v1968_v9 = vsel %vm11662_vm12, %v11661_v57, 0.0  ;;  %v3205_v1 = vadd.f32 %v3141_v63, %v2605_v29  ;;  %v2637_v17 = vadd.f32 %v2573_v24, %v2037_v50  ;;  %v2000_v59 = vadd.f32 %v1936_v58, %v1400_v48  ;;  %v11675_v24 = vld [vmem:[#allocation84_spill] sm:$0xff]  ;;  %v11682_v58 = vld [vmem:[#allocation25_spill] sm:$0xff]  ;;  %v11689_v57 = vld [vmem:[#allocation142_spill] sm:$0xff] }
 0x3c4   : > { %v3136_v60 = vsel %vm3072_vm9, %v11663_v3, 0.0  ;;  %v1432_v61 = vadd.f32 %v1368_v11, %v768_v21  ;;  %vm11665_vm1 = vcmp.eq.s32.totalorder %v11657_v45, %v11324_v5  ;;  %vm3104_vm2 = vcmp.eq.s32.totalorder %v11657_v45, %v11326_v0  ;;  %v11685_v21 = vld [vmem:[#allocation12_spill] sm:$0xff]  ;;  %v11687_v11 = vld [vmem:[#allocation58_spill] sm:$0xff]  ;;  %v11691_v3 = vld [vmem:[#allocation185_spill] sm:$0xff] }
 0x3c5   : > { %v2568_v10 = vsel %vm11665_vm1, %v11664_v30, 0.0  ;;  %vm11666_vm15 = vcmp.eq.s32.totalorder %v11580_v15, %v11306_v7  ;;  %3269 = vmatpush.msra.mxu0 %v3205_v1  ;;  %v3237_v49 = vadd.f32 %v3173_v8, %v2637_v17  ;;  %v2600_v16 = vadd.f32 %v2536_v51, %v2000_v59  ;;  %v11684_v51 = vld [vmem:[#allocation259_spill] sm:$0xff]  ;;  %v11692_v30 = vld [vmem:[#allocation40_spill] sm:$0xff] }
 0x3c6   : > { %v739_v54 = vsel %vm11666_vm15, %v3635_v25, 0.0  ;;  %v3168_v55 = vsel %vm3104_vm2, %v11667_v47, 0.0  ;;  %vm11669_vm10 = vcmp.eq.s32.totalorder %v11580_v15, %v11309_v28  ;;  %v2032_v4 = vadd.f32 %v1968_v9, %v1432_v61  ;;  %v3638_v61 = vld [vmem:[%s3904_s7 + $0x118] sm:$0xff]  ;;  %v11694_v25 = vld [vmem:[#allocation83_spill] sm:$0xff] }
 0x3c7   : > { %v1339_v23 = vsel %vm11669_vm10, %v11668_v32, 0.0  ;;  %vm11671_vm8 = vcmp.eq.s32.totalorder %v11580_v15, %v11314_v46  ;;  %vm11673_vm3 = vcmp.eq.s32.totalorder %v11580_v15, %v7833_v39  ;;  %3289 = vmatpush.msra.mxu1 %v3237_v49  ;;  %v3200_v12 = vadd.f32 %v3136_v60, %v2600_v16  ;;  %v11696_v49 = vld [vmem:[#allocation80_spill] sm:$0xff]  ;;  %v11698_v47 = vld [vmem:[#allocation158_spill] sm:$0xff] }
 0x3c8   : > { %v1403_v63 = vadd.f32 %v1339_v23, %v739_v54  ;;  %v1939_v44 = vsel %vm11671_vm8, %v11670_v6, 0.0  ;;  %v2539_v31 = vsel %vm11673_vm3, %v11672_v2, 0.0  ;;  %vm3075_vm14 = vcmp.eq.s32.totalorder %v11580_v15, %v8584_v13 }
 0x3c9   : > { %vm11674_vm11 = vcmp.eq.s32.totalorder %v11590_v40, %v11306_v7  ;;  %vm11676_vm5 = vcmp.eq.s32.totalorder %v11590_v40, %v11309_v28  ;;  %v2632_v56 = vadd.f32 %v2568_v10, %v2032_v4  ;;  %v3139_v8 = vsel %vm3075_vm14, %v11677_v19, 0.0  ;;  %3312 = vmatpush.msra.mxu2 %v3200_v12 }
 0x3ca   : > { %v771_v14 = vsel %vm11674_vm11, %v3636_v37, 0.0  ;;  %v1371_v18 = vsel %vm11676_vm5, %v11675_v24, 0.0  ;;  %v2003_v53 = vadd.f32 %v1939_v44, %v1403_v63  ;;  %vm11679_vm6 = vcmp.eq.s32.totalorder %v11590_v40, %v11314_v46  ;;  %v11700_v63 = vld [vmem:[#allocation205_spill] sm:$0xff]  ;;  %v11704_v37 = vld [vmem:[#allocation156_spill] sm:$0xff] }
 0x3cb   : > { %v1435_v26 = vadd.f32 %v1371_v18, %v771_v14  ;;  %v1971_v15 = vsel %vm11679_vm6, %v11678_v35, 0.0  ;;  %vm11681_vm4 = vcmp.eq.s32.totalorder %v11590_v40, %v7833_v39  ;;  %vm3107_vm0 = vcmp.eq.s32.totalorder %v11590_v40, %v8584_v13  ;;  %v3639_v44 = vld [vmem:[%s3904_s7 + $0x30] sm:$0xff] }
 0x3cc   : > { %v2571_v38 = vsel %vm11681_vm4, %v11680_v52, 0.0  ;;  %vm11683_vm9 = vcmp.eq.s32.totalorder %v11682_v58, %v11311_v33  ;;  %v3232_v50 = vadd.f32 %v3168_v55, %v2632_v56  ;;  %v2603_v48 = vadd.f32 %v2539_v31, %v2003_v53  ;;  %v11702_v31 = vld [vmem:[#allocation115_spill] sm:$0xff]  ;;  %v11706_v53 = vld [vmem:[#allocation21_spill] sm:$0xff] }
 0x3cd   : > { %v734_v29 = vsel %vm11683_vm9, %v3637_v20, 0.0  ;;  %v2035_v62 = vadd.f32 %v1971_v15, %v1435_v26  ;;  %v3171_v43 = vsel %vm3107_vm0, %v11684_v51, 0.0  ;;  %vm11686_vm13 = vcmp.eq.s32.totalorder %v11682_v58, %v11317_v36  ;;  %v11709_v35 = vld [vmem:[#allocation81_spill] sm:$0xff]  ;;  %v11714_v51 = vld [vmem:[#allocation231_spill] sm:$0xff] }
 0x3ce   : > { %v1334_v34 = vsel %vm11686_vm13, %v11685_v21, 0.0  ;;  %vm11688_vm7 = vcmp.eq.s32.totalorder %v11682_v58, %v11321_v42  ;;  %vm11690_vm12 = vcmp.eq.s32.totalorder %v11682_v58, %v11324_v5  ;;  %vm3070_vm1 = vcmp.eq.s32.totalorder %v11682_v58, %v11326_v0  ;;  %3332 = vmatpush.msra.mxu3 %v3232_v50  ;;  %v11711_v52 = vld [vmem:[#allocation197_spill] sm:$0xff]  ;;  %v3641_v21 = vld [vmem:[%s3904_s7 + $0x8] sm:$0xff] }
 0x3cf   : > { %v1934_v40 = vsel %vm11688_vm7, %v11687_v11, 0.0  ;;  %v2534_v9 = vsel %vm11690_vm12, %v11689_v57, 0.0  ;;  %v3203_v1 = vadd.f32 %v3139_v8, %v2603_v48  ;;  %v2635_v17 = vadd.f32 %v2571_v38, %v2035_v62  ;;  %v3640_v8 = vld [vmem:[%s3904_s7 + $0x130] sm:$0xff]  ;;  %v11713_v48 = vld [vmem:[#allocation246_spill] sm:$0xff] }
 0x3d0   : > { %v1398_v59 = vadd.f32 %v1334_v34, %v734_v29  ;;  %v3134_v60 = vsel %vm3070_vm1, %v11691_v3, 0.0  ;;  %vm11693_vm2 = vcmp.eq.s32.totalorder %v11692_v30, %v11311_v33  ;;  %vm11695_vm15 = vcmp.eq.s32.totalorder %v11692_v30, %v11317_v36  ;;  %v11716_v34 = vld [vmem:[#allocation24_spill] sm:$0xff] }
 0x3d1   : > { %v766_v10 = vsel %vm11693_vm2, %v3638_v61, 0.0  ;;  %v1366_v54 = vsel %vm11695_vm15, %v11694_v25, 0.0  ;;  %vm11697_vm10 = vcmp.eq.s32.totalorder %v11692_v30, %v11321_v42  ;;  %vm11699_vm8 = vcmp.eq.s32.totalorder %v11692_v30, %v11324_v5  ;;  %3270 = vmatpush.msra.mxu0 %v3203_v1  ;;  %v11721_v61 = vld [vmem:[#allocation57_spill] sm:$0xff] }
 0x3d2   : > { %v1966_v16 = vsel %vm11697_vm10, %v11696_v49, 0.0  ;;  %v2566_v55 = vsel %vm11699_vm8, %v11698_v47, 0.0  ;;  %v3235_v32 = vadd.f32 %v3171_v43, %v2635_v17  ;;  %v1998_v23 = vadd.f32 %v1934_v40, %v1398_v59  ;;  %v11719_v17 = vld [vmem:[#allocation11_spill] sm:$0xff]  ;;  %v3642_v49 = vld [vmem:[%s3904_s7 + $0x108] sm:$0xff] }
 0x3d3   : > { %v1430_v4 = vadd.f32 %v1366_v54, %v766_v10  ;;  %vm3102_vm3 = vcmp.eq.s32.totalorder %v11692_v30, %v11326_v0  ;;  %vm11701_vm14 = vcmp.eq.s32.totalorder %v11614_v22, %v11306_v7  ;;  %vm11703_vm11 = vcmp.eq.s32.totalorder %v11614_v22, %v11309_v28  ;;  %v11723_v10 = vld [vmem:[#allocation141_spill] sm:$0xff] }
 0x3d4   : > { %v3166_v6 = vsel %vm3102_vm3, %v11700_v63, 0.0  ;;  %v737_v2 = vsel %vm11701_vm14, %v3639_v44, 0.0  ;;  %v1337_v12 = vsel %vm11703_vm11, %v11702_v31, 0.0  ;;  %vm11705_vm5 = vcmp.eq.s32.totalorder %v11614_v22, %v11314_v46  ;;  %3290 = vmatpush.msra.mxu1 %v3235_v32  ;;  %v11729_v63 = vld [vmem:[#allocation184_spill] sm:$0xff] }
 0x3d5   : > { %v1937_v14 = vsel %vm11705_vm5, %v11704_v37, 0.0  ;;  %v2598_v24 = vadd.f32 %v2534_v9, %v1998_v23  ;;  %v2030_v18 = vadd.f32 %v1966_v16, %v1430_v4  ;;  %v1401_v56 = vadd.f32 %v1337_v12, %v737_v2  ;;  %v11718_v9 = vld [vmem:[#allocation258_spill] sm:$0xff]  ;;  %v11725_v16 = vld [vmem:[#allocation39_spill] sm:$0xff]  ;;  %v11730_v2 = vld [vmem:[#allocation77_spill] sm:$0xff] }
 0x3d6   : > { %vm11707_vm6 = vcmp.eq.s32.totalorder %v11614_v22, %v7833_v39  ;;  %vm3073_vm4 = vcmp.eq.s32.totalorder %v11614_v22, %v8584_v13  ;;  %vm11708_vm0 = vcmp.eq.s32.totalorder %v11623_v41, %v11306_v7  ;;  %vm11710_vm9 = vcmp.eq.s32.totalorder %v11623_v41, %v11309_v28  ;;  %v11732_v12 = vld [vmem:[#allocation157_spill] sm:$0xff] }
 0x3d7   : > { %v2537_v19 = vsel %vm11707_vm6, %v11706_v53, 0.0  ;;  %v769_v26 = vsel %vm11708_vm0, %v3640_v8, 0.0  ;;  %v1369_v15 = vsel %vm11710_vm9, %v11709_v35, 0.0  ;;  %vm11712_vm13 = vcmp.eq.s32.totalorder %v11623_v41, %v11314_v46  ;;  %v11736_v53 = vld [vmem:[#allocation114_spill] sm:$0xff]  ;;  %v11740_v8 = vld [vmem:[#allocation75_spill] sm:$0xff] }
 0x3d8   : > { %v1969_v38 = vsel %vm11712_vm13, %v11711_v52, 0.0  ;;  %v3198_v20 = vadd.f32 %v3134_v60, %v2598_v24  ;;  %v2630_v29 = vadd.f32 %v2566_v55, %v2030_v18  ;;  %v2001_v50 = vadd.f32 %v1937_v14, %v1401_v56  ;;  %v11727_v55 = vld [vmem:[#allocation82_spill] sm:$0xff]  ;;  %v9393_v52 = vld [vmem:[%s3914_s8] sm:$0xff] }
 0x3d9   : > { %v3137_v22 = vsel %vm3073_vm4, %v11713_v48, 0.0  ;;  %v1433_v62 = vadd.f32 %v1369_v15, %v769_v26  ;;  %vm11715_vm7 = vcmp.eq.s32.totalorder %v11623_v41, %v7833_v39  ;;  %vm3105_vm12 = vcmp.eq.s32.totalorder %v11623_v41, %v8584_v13 }
 0x3da   : > { %v2569_v43 = vsel %vm11715_vm7, %v11714_v51, 0.0  ;;  %vm11717_vm1 = vcmp.eq.s32.totalorder %v11716_v34, %v11311_v33  ;;  %3313 = vmatpush.msra.mxu2 %v3198_v20  ;;  %v3230_v40 = vadd.f32 %v3166_v6, %v2630_v29  ;;  %v2601_v57 = vadd.f32 %v2537_v19, %v2001_v50  ;;  %v11738_v19 = vld [vmem:[#allocation38_spill] sm:$0xff]  ;;  %v11742_v20 = vld [vmem:[#allocation245_spill] sm:$0xff]  ;;  %v3644_v50 = vld [vmem:[%s3904_s7 + $0x120] sm:$0xff] }
 0x3db   : > { %v732_v11 = vsel %vm11717_vm1, %v3641_v21, 0.0  ;;  %v3169_v1 = vsel %vm3105_vm12, %v11718_v9, 0.0  ;;  %vm11720_vm2 = vcmp.eq.s32.totalorder %v11716_v34, %v11317_v36  ;;  %v2033_v3 = vadd.f32 %v1969_v38, %v1433_v62 }
 0x3dc   : > { %v1332_v59 = vsel %vm11720_vm2, %v11719_v17, 0.0  ;;  %vm11722_vm15 = vcmp.eq.s32.totalorder %v11716_v34, %v11321_v42  ;;  %vm11724_vm10 = vcmp.eq.s32.totalorder %v11716_v34, %v11324_v5  ;;  %3333 = vmatpush.msra.mxu3 %v3230_v40  ;;  %v3201_v54 = vadd.f32 %v3137_v22, %v2601_v57  ;;  %v11744_v22 = vld [vmem:[#allocation130_spill] sm:$0xff] }
 0x3dd   : > { %v1396_v60 = vadd.f32 %v1332_v59, %v732_v11  ;;  %v1932_v41 = vsel %vm11722_vm15, %v11721_v61, 0.0  ;;  %v2532_v25 = vsel %vm11724_vm10, %v11723_v10, 0.0  ;;  %vm3068_vm8 = vcmp.eq.s32.totalorder %v11716_v34, %v11326_v0  ;;  %v9413_v40 = vld [vmem:[%s3914_s8 + $0x8] sm:$0xff]  ;;  %v3645_v59 = vld [vmem:[%s3904_s7 + $0x10] sm:$0xff] }
 0x3de   : > { %vm11726_vm3 = vcmp.eq.s32.totalorder %v11725_v16, %v11311_v33  ;;  %vm11728_vm14 = vcmp.eq.s32.totalorder %v11725_v16, %v11317_v36  ;;  %v2633_v23 = vadd.f32 %v2569_v43, %v2033_v3  ;;  %v3132_v6 = vsel %vm3068_vm8, %v11729_v63, 0.0  ;;  %3271 = vmatpush.msra.mxu0 %v3201_v54  ;;  %v3643_v36 = vld [vmem:[%s3904_s7 + $0x20] sm:$0xff]  ;;  %v11748_v43 = vld [vmem:[#allocation230_spill] sm:$0xff]  ;;  %v11761_v63 = vld [vmem:[#allocation193_spill] sm:$0xff] }
 0x3df   : > { %v764_v47 = vsel %vm11726_vm3, %v3642_v49, 0.0  ;;  %v1364_v32 = vsel %vm11728_vm14, %v11727_v55, 0.0  ;;  %v1996_v4 = vadd.f32 %v1932_v41, %v1396_v60  ;;  %vm11731_vm11 = vcmp.eq.s32.totalorder %v11725_v16, %v11321_v42  ;;  %v11735_v42 = vld [vmem:[#allocation204_spill] sm:$0xff]  ;;  %v11752_v60 = vld [vmem:[#allocation113_spill] sm:$0xff]  ;;  %v11756_v49 = vld [vmem:[#allocation22_spill] sm:$0xff] }
 0x3e0   : > { %v1428_v44 = vadd.f32 %v1364_v32, %v764_v47  ;;  %v1964_v31 = vsel %vm11731_vm11, %v11730_v2, 0.0  ;;  %vm11733_vm5 = vcmp.eq.s32.totalorder %v11725_v16, %v11324_v5  ;;  %vm3100_vm6 = vcmp.eq.s32.totalorder %v11725_v16, %v11326_v0  ;;  %v11754_v41 = vld [vmem:[#allocation37_spill] sm:$0xff] }
 0x3e1   : > { %v2564_v33 = vsel %vm11733_vm5, %v11732_v12, 0.0  ;;  %vm11734_vm4 = vcmp.eq.s32.totalorder %v11649_v27, %v11306_v7  ;;  %v3233_v14 = vadd.f32 %v3169_v1, %v2633_v23  ;;  %v2596_v24 = vadd.f32 %v2532_v25, %v1996_v4  ;;  %v11750_v1 = vld [vmem:[#allocation257_spill] sm:$0xff]  ;;  %v11763_v12 = vld [vmem:[#allocation244_spill] sm:$0xff] }
 0x3e2   : > { %v735_v37 = vsel %vm11734_vm4, %v3643_v36, 0.0  ;;  %v2028_v18 = vadd.f32 %v1964_v31, %v1428_v44  ;;  %v3164_v56 = vsel %vm3100_vm6, %v11735_v42, 0.0  ;;  %vm11737_vm0 = vcmp.eq.s32.totalorder %v11649_v27, %v11309_v28  ;;  %v3646_v55 = vld [vmem:[%s3904_s7 + $0x110] sm:$0xff] }
 0x3e3   : > { %v1335_v5 = vsel %vm11737_vm0, %v11736_v53, 0.0  ;;  %vm11739_vm9 = vcmp.eq.s32.totalorder %v11649_v27, %v11314_v46  ;;  %vm11741_vm13 = vcmp.eq.s32.totalorder %v11649_v27, %v7833_v39  ;;  %vm3071_vm7 = vcmp.eq.s32.totalorder %v11649_v27, %v8584_v13  ;;  %3291 = vmatpush.msra.mxu1 %v3233_v14  ;;  %v11746_v27 = vld [vmem:[#allocation196_spill] sm:$0xff]  ;;  %v11759_v23 = vld [vmem:[#allocation129_spill] sm:$0xff]  ;;  %v3647_v14 = vld [vmem:[%s3904_s7] sm:$0xff] }
 0x3e4   : > { %v1935_v0 = vsel %vm11739_vm9, %v11738_v19, 0.0  ;;  %v2535_v26 = vsel %vm11741_vm13, %v11740_v8, 0.0  ;;  %v3196_v35 = vadd.f32 %v3132_v6, %v2596_v24  ;;  %v2628_v15 = vadd.f32 %v2564_v33, %v2028_v18  ;;  %v11764_v36 = vld [vmem:[#allocation229_spill] sm:$0xff] }
 0x3e5   : > { %v1399_v38 = vadd.f32 %v1335_v5, %v735_v37  ;;  %v3135_v29 = vsel %vm3071_vm7, %v11742_v20, 0.0  ;;  %vm11743_vm12 = vcmp.eq.s32.totalorder %v11657_v45, %v11306_v7  ;;  %vm11745_vm1 = vcmp.eq.s32.totalorder %v11657_v45, %v11309_v28  ;;  %v11768_v5 = vld [vmem:[#allocation112_spill] sm:$0xff]  ;;  %v3648_v20 = vld [vmem:[%s3904_s7 + $0x100] sm:$0xff] }
 0x3e6   : > { %v767_v48 = vsel %vm11743_vm12, %v3644_v50, 0.0  ;;  %v1367_v62 = vsel %vm11745_vm1, %v11744_v22, 0.0  ;;  %vm11747_vm2 = vcmp.eq.s32.totalorder %v11657_v45, %v11314_v46  ;;  %vm11749_vm15 = vcmp.eq.s32.totalorder %v11657_v45, %v7833_v39  ;;  %3314 = vmatpush.msra.mxu2 %v3196_v35  ;;  %v11772_v35 = vld [vmem:[#allocation78_spill] sm:$0xff]  ;;  %v11775_v50 = vld [vmem:[#allocation128_spill] sm:$0xff] }
 0x3e7   : > { %v1967_v51 = vsel %vm11747_vm2, %v11746_v27, 0.0  ;;  %v2567_v21 = vsel %vm11749_vm15, %v11748_v43, 0.0  ;;  %v3228_v11 = vadd.f32 %v3164_v56, %v2628_v15  ;;  %v1999_v57 = vadd.f32 %v1935_v0, %v1399_v38  ;;  %3315 = vmatmul.f32.vlgmr.msra.gmra.mxu2 %v9393_v52  ;;  %v11767_v56 = vld [vmem:[#allocation256_spill] sm:$0xff] }
 0x3e8   : > { %v1431_v9 = vadd.f32 %v1367_v62, %v767_v48  ;;  %vm3103_vm10 = vcmp.eq.s32.totalorder %v11657_v45, %v8584_v13  ;;  %vm11751_vm8 = vcmp.eq.s32.totalorder %v11682_v58, %v11306_v7  ;;  %vm11753_vm3 = vcmp.eq.s32.totalorder %v11682_v58, %v11309_v28 }
 0x3e9   : > { %v3167_v17 = vsel %vm3103_vm10, %v11750_v1, 0.0  ;;  %v733_v3 = vsel %vm11751_vm8, %v3645_v59, 0.0  ;;  %v1333_v61 = vsel %vm11753_vm3, %v11752_v60, 0.0  ;;  %vm11755_vm14 = vcmp.eq.s32.totalorder %v11682_v58, %v11314_v46  ;;  %3334 = vmatpush.msra.mxu3 %v3228_v11  ;;  %v11780_v11 = vld [vmem:[#allocation228_spill] sm:$0xff]  ;;  %v11782_v1 = vld [vmem:[#allocation255_spill] sm:$0xff] }
 0x3ea   : > { %v1933_v10 = vsel %vm11755_vm14, %v11754_v41, 0.0  ;;  %v2599_v45 = vadd.f32 %v2535_v26, %v1999_v57  ;;  %v2031_v25 = vadd.f32 %v1967_v51, %v1431_v9  ;;  %v1397_v54 = vadd.f32 %v1333_v61, %v733_v3  ;;  %3335 = vmatmul.f32.vlgmr.msra.gmra.mxu3 %v9413_v40  ;;  %v11770_v26 = vld [vmem:[#allocation36_spill] sm:$0xff]  ;;  %v11777_v51 = vld [vmem:[#allocation189_spill] sm:$0xff] }
 0x3eb   : > { %vm11757_vm11 = vcmp.eq.s32.totalorder %v11682_v58, %v7833_v39  ;;  %vm3069_vm5 = vcmp.eq.s32.totalorder %v11682_v58, %v8584_v13  ;;  %vm11758_vm6 = vcmp.eq.s32.totalorder %v11692_v30, %v11306_v7  ;;  %vm11760_vm4 = vcmp.eq.s32.totalorder %v11692_v30, %v11309_v28 }
 0x3ec   : > { %v2533_v47 = vsel %vm11757_vm11, %v11756_v49, 0.0  ;;  %v765_v32 = vsel %vm11758_vm6, %v3646_v55, 0.0  ;;  %v1365_v4 = vsel %vm11760_vm4, %v11759_v23, 0.0  ;;  %vm11762_vm0 = vcmp.eq.s32.totalorder %v11692_v30, %v11314_v46 }
 0x3ed   : > { %v1965_v6 = vsel %vm11762_vm0, %v11761_v63, 0.0  ;;  %v3199_v44 = vadd.f32 %v3135_v29, %v2599_v45  ;;  %v2631_v2 = vadd.f32 %v2567_v21, %v2031_v25  ;;  %v1997_v31 = vadd.f32 %v1933_v10, %v1397_v54  ;;  %v11778_v21 = vld [vmem:[#allocation192_spill] sm:$0xff] }
 0x3ee   : > { %v3133_v58 = vsel %vm3069_vm5, %v11763_v12, 0.0  ;;  %v1429_v33 = vadd.f32 %v1365_v4, %v765_v32  ;;  %vm11765_vm9 = vcmp.eq.s32.totalorder %v11692_v30, %v7833_v39  ;;  %vm3101_vm13 = vcmp.eq.s32.totalorder %v11692_v30, %v8584_v13 }
 0x3ef   : > { %v2565_v37 = vsel %vm11765_vm9, %v11764_v36, 0.0  ;;  %vm11766_vm7 = vcmp.eq.s32.totalorder %v11716_v34, %v11306_v7  ;;  %3272 = vmatpush.msra.mxu0 %v3199_v44  ;;  %v3231_v18 = vadd.f32 %v3167_v17, %v2631_v2  ;;  %v2597_v42 = vadd.f32 %v2533_v47, %v1997_v31 }
 0x3f0   : > { %v731_v24 = vsel %vm11766_vm7, %v3647_v14, 0.0  ;;  %v3165_v53 = vsel %vm3101_vm13, %v11767_v56, 0.0  ;;  %vm11769_vm12 = vcmp.eq.s32.totalorder %v11716_v34, %v11309_v28  ;;  %v2029_v0 = vadd.f32 %v1965_v6, %v1429_v33 }
 0x3f1   : > { %v1331_v19 = vsel %vm11769_vm12, %v11768_v5, 0.0  ;;  %vm11771_vm1 = vcmp.eq.s32.totalorder %v11716_v34, %v11314_v46  ;;  %vm11773_vm2 = vcmp.eq.s32.totalorder %v11716_v34, %v7833_v39  ;;  %3292 = vmatpush.msra.mxu1 %v3231_v18  ;;  %v3197_v38 = vadd.f32 %v3133_v58, %v2597_v42 }
 0x3f2   : > { %v1395_v8 = vadd.f32 %v1331_v19, %v731_v24  ;;  %v1931_v30 = vsel %vm11771_vm1, %v11770_v26, 0.0  ;;  %v2531_v15 = vsel %vm11773_vm2, %v11772_v35, 0.0  ;;  %vm3067_vm15 = vcmp.eq.s32.totalorder %v11716_v34, %v8584_v13 }
 0x3f3   : > { %vm11774_vm10 = vcmp.eq.s32.totalorder %v11725_v16, %v11306_v7  ;;  %vm11776_vm8 = vcmp.eq.s32.totalorder %v11725_v16, %v11309_v28  ;;  %v2629_v22 = vadd.f32 %v2565_v37, %v2029_v0  ;;  %3273 = vmatpush.msra.mxu0 %v3197_v38  ;;  %v3131_v43 = vsel %vm3067_vm15, %v11777_v51, 0.0 }
 0x3f4   : > { %v763_v29 = vsel %vm11774_vm10, %v3648_v20, 0.0  ;;  %v1363_v48 = vsel %vm11776_vm8, %v11775_v50, 0.0  ;;  %v1995_v62 = vadd.f32 %v1931_v30, %v1395_v8  ;;  %vm11779_vm3 = vcmp.eq.s32.totalorder %v11725_v16, %v11314_v46 }
 0x3f5   : > { %v1427_v27 = vadd.f32 %v1363_v48, %v763_v29  ;;  %v1963_v34 = vsel %vm11779_vm3, %v11778_v21, 0.0  ;;  %vm11781_vm14 = vcmp.eq.s32.totalorder %v11725_v16, %v7833_v39  ;;  %vm3099_vm11 = vcmp.eq.s32.totalorder %v11725_v16, %v8584_v13 }
 0x3f6   : > { %v2563_v7 = vsel %vm11781_vm14, %v11780_v11, 0.0  ;;  %v3229_v28 = vadd.f32 %v3165_v53, %v2629_v22  ;;  %v2595_v57 = vadd.f32 %v2531_v15, %v1995_v62  ;;  %v3163_v17 = vsel %vm3099_vm11, %v11782_v1, 0.0 }
 0x3f7   : > { %v2027_v9 = vadd.f32 %v1963_v34, %v1427_v27 }
 0x3f8   : > { %3293 = vmatpush.msra.mxu1 %v3229_v28  ;;  %v3195_v59 = vadd.f32 %v3131_v43, %v2595_v57 }
 0x3f9   : > { %v2627_v3 = vadd.f32 %v2563_v7, %v2027_v9 }
 0x3fa   : > { %3274 = vmatpush.msra.mxu0 %v3195_v59 }
 0x3fb   : > { %v3227_v46 = vadd.f32 %v3163_v17, %v2627_v3  ;;  %3275 = vmatmul.f32.vlgmr.msra.gmra.mxu0 %v9393_v52 }
 0x3fd   : > { %3294 = vmatpush.msra.mxu1 %v3227_v46 }
 0x3fe   : > { %3295 = vmatmul.f32.vlgmr.msra.gmra.mxu1 %v9413_v40 }
 0x46a   : > { %v3316_v39 = vpop.f32.mrf.mxu2 }
 0x46d   : > { %v3336_v13 = vpop.f32.mrf.mxu3 }
 0x46e   : > { %v3337_v16 = vadd.f32 %v3336_v13, %v3316_v39 }
 0x470   : > { %3340 = vst [vmem:[%s221_s15 + $0x8] sm:$0xff] %v3337_v16 }
 0x478   : > { %v3276_v60 = vpop.f32.mrf.mxu0 }
 0x47b   : > { %v3296_v52 = vpop.f32.mrf.mxu1 }
 0x47c   : > { %v3297_v61 = vadd.f32 %v3296_v52, %v3276_v60 }
 0x47e   : > { %3339 = vst [vmem:[%s221_s15] sm:$0xff] %v3297_v61 }
 0x47f   : > { %3736 = shalt.err (!%p3733_p13)
}
 0x480   : > { %3493 = dma.vmem_to_hbm [thread:$0]  (%p3865_p9), %s3358_s26, 256, %s3360_s19, %s3342_s27  }
 0x481 PF: > { %s3371_s3 = sand.u32 1, %s3775_s9   ;;  %p3503_p0 = pnand %p3470_p12, %p3872_p11 }
 0x482   : > { %s3372_s25 = scalar_lea.sflag [#allocation4], %s3371_s3 }
 0x483   : > { %p3504_p1 = pneg %p3503_p0 }
 0x485   : > { %3770 = dma.done.wait (%p3504_p1), %s3372_s25, 256  }
 0x486   : > { %3772 = vsyncadd (%p3504_p1), %s3372_s25, 4294967040  ;;  %s21_s14 = sadd.s32 1, %s3795_s14   ;;  %s11783_s9 = smov %s3779_s10 }
 0x487   : > { %p18_p2 = scmp.ge.s32.totalorder %s21_s14, 4   ;;  %s11784_s10 = smov %s3783_s11 }
 0x488   : > { %s11785_s11 = smov %s3870_s23  ;;  %s11786_s12 = smov %s3791_s13 }
 0x489   : > { %s11787_s13 = smov %s11789_s17  ;;  %20 = sbr.rel (!%p18_p2) target bundleno = 8 (0x8), region = 86 }
 0x48e   :  { %3378 = vsyncpa [#allocation3], 1 }
 0x48f   :  { %3380 = vsyncpa [#allocation3 + $0x1], 1 }
 0x490   :  { %3381 = vsyncpa [#allocation6], 1 }
 0x491   :  { %3383 = vsyncpa [#allocation6 + $0x1], 1 }
 0x492   :  { %3384 = vsyncpa [#allocation4], 1 }
 0x493   :  { %3386 = vsyncpa [#allocation4 + $0x1], 1 }

</bundles_post_ra>
